<compile_context>
chip_gen: v6e
topology: v6e:2x2x1
jax: 0.10.0
libtpu: 0.0.40
codegen_flags: <defaults>
</compile_context>

<pallas_src>
import numpy as np
import jax
import jax.numpy as jnp
from jax.experimental import pallas as pl
from jax.experimental.pallas import tpu as pltpu

IN_CH = 1
BN_EPS = 1e-5
_TM_CAP = 1024                      # max rows (B*h*w) per matmul tile (im2col path)
_THW_CAP = 2048                     # max spatial positions per tile (final fusion kernel)
_VMEM_LIMIT = 32 * 1024 * 1024      # safe on v5e/v6e (128 MiB VMEM) and v7x (64 MiB VMEM)
_DIRECT_VMEM_BUDGET = 20 * 1024 * 1024


def _pick_tile(m, cap, mult=8):
    """Largest tile <= cap that divides m and is a multiple of `mult` (else full m)."""
    if m <= cap:
        return m
    t = (cap // mult) * mult
    while t >= mult:
        if m % t == 0:
            return t
        t -= mult
    return m


def _direct_fits(h, w, cin, cout):
    """Static check: can the direct (no-im2col) conv hold one image tile in VMEM?"""
    hp, wp = h + 2, w + 2
    in_b = hp * wp * cin * 2
    w_b = 9 * cin * cout * 2
    out_b = h * w * cout * 2
    scratch = h * w * (cout + cin) * 4
    return 2 * (in_b + w_b + out_b) + scratch <= _DIRECT_VMEM_BUDGET


# ----------------------------- Pallas kernels ------------------------------
def _conv3x3_stats_kernel(a_ref, w_ref, y_ref, sum_ref, sq_ref):
    """Direct 3x3 conv for one (branch, batch-image) grid step.

    a_ref: (h+2, w+2, Cin) bf16 zero-padded activation tile held in VMEM.
    w_ref: (9*Cin, Cout) bf16 weights (rows ordered (dy, dx, ci)).
    y_ref: (h*w, Cout) bf16 raw conv output.
    sum_ref / sq_ref: (1, Cout) f32 per-channel sum / sum-of-squares accumulated across the
    innermost ("arbitrary") batch axis -> global training-mode BatchNorm statistics.
    """
    hp, wp, cin = a_ref.shape
    h, wo = hp - 2, wp - 2
    cout = y_ref.shape[-1]

    acc = jnp.zeros((h * wo, cout), jnp.float32)
    for idx in range(9):
        dy, dx = idx // 3, idx % 3
        patch = a_ref[dy:dy + h, dx:dx + wo, :].reshape(h * wo, cin)
        acc = acc + jnp.dot(patch, w_ref[idx * cin:(idx + 1) * cin, :],
                            preferred_element_type=jnp.float32)

    y_ref[...] = acc.astype(y_ref.dtype)
    s0 = jnp.sum(acc, axis=0, keepdims=True)
    s1 = jnp.sum(acc * acc, axis=0, keepdims=True)

    @pl.when(pl.program_id(1) == 0)
    def _():
        sum_ref[...] = jnp.zeros_like(sum_ref)
        sq_ref[...] = jnp.zeros_like(sq_ref)

    sum_ref[...] = sum_ref[...] + s0
    sq_ref[...] = sq_ref[...] + s1


def _matmul_stats_kernel(p_ref, w_ref, y_ref, sum_ref, sq_ref):
    """im2col conv-as-matmul (used for layer 1 and as large-image fallback).

    p_ref: (tm, K) bf16 patches   w_ref: (K, Cout) bf16   y_ref: (tm, Cout) bf16
    sum_ref / sq_ref accumulate BN stats across the innermost m axis.
    """
    y = jnp.dot(p_ref[...], w_ref[...], preferred_element_type=jnp.float32)
    y_ref[...] = y.astype(y_ref.dtype)
    s0 = jnp.sum(y, axis=0, keepdims=True)
    s1 = jnp.sum(y * y, axis=0, keepdims=True)

    @pl.when(pl.program_id(1) == 0)
    def _():
        sum_ref[...] = jnp.zeros_like(sum_ref)
        sq_ref[...] = jnp.zeros_like(sq_ref)

    sum_ref[...] = sum_ref[...] + s0
    sq_ref[...] = sq_ref[...] + s1


def _final_kernel(fp_ref, cnn_ref, comb_ref, bias_ref, o_ref):
    """sigmoid( <8x8 patches, folded Gabor+Haar+1x1 weights> + cnn_logit_map + bias ).

    fp_ref:  (B, thw, 64) bf16  8x8 window patches of the input image
    cnn_ref: (B, thw) f32       CNN-branch logit contribution (already 1x1-contracted + upsampled)
    comb_ref:(1, 1, 64) f32     filter bank with the final 1x1 weights folded in
    bias_ref:(B, 1) f32         per-batch GLCM contribution + final conv bias
    o_ref:   (B, thw) f32       lane-dense output slab
    """
    contrib = jnp.sum(fp_ref[...].astype(jnp.float32) * comb_ref[...], axis=-1)
    logit = contrib + cnn_ref[...] + bias_ref[...]
    o_ref[...] = 1.0 / (1.0 + jnp.exp(-logit))


# ------------------------------ kernel wrappers -----------------------------
def _conv_direct_call(act_pad, w_mat):
    """act_pad: (G, B, h+2, w+2, Cin) bf16; w_mat: (G, 9*Cin, Cout) bf16."""
    g, b, hp, wp, cin = act_pad.shape
    cout = w_mat.shape[-1]
    h, wo = hp - 2, wp - 2
    return pl.pallas_call(
        _conv3x3_stats_kernel,
        grid=(g, b),
        in_specs=[
            pl.BlockSpec((None, None, hp, wp, cin), lambda gi, bi: (gi, bi, 0, 0, 0)),
            pl.BlockSpec((None, 9 * cin, cout), lambda gi, bi: (gi, 0, 0)),
        ],
        out_specs=[
            pl.BlockSpec((None, None, h * wo, cout), lambda gi, bi: (gi, bi, 0, 0)),
            pl.BlockSpec((None, 1, cout), lambda gi, bi: (gi, 0, 0)),
            pl.BlockSpec((None, 1, cout), lambda gi, bi: (gi, 0, 0)),
        ],
        out_shape=[
            jax.ShapeDtypeStruct((g, b, h * wo, cout), jnp.bfloat16),
            jax.ShapeDtypeStruct((g, 1, cout), jnp.float32),
            jax.ShapeDtypeStruct((g, 1, cout), jnp.float32),
        ],
        compiler_params=pltpu.CompilerParams(
            dimension_semantics=("parallel", "arbitrary"),
            vmem_limit_bytes=_VMEM_LIMIT),
    )(act_pad, w_mat)


def _conv_im2col_call(patches, w_mat):
    """patches: (G, M, K) bf16; w_mat: (G, K, Cout) bf16."""
    g, m, k = patches.shape
    cout = w_mat.shape[-1]
    tm = _pick_tile(m, _TM_CAP)
    return pl.pallas_call(
        _matmul_stats_kernel,
        grid=(g, m // tm),
        in_specs=[
            pl.BlockSpec((None, tm, k), lambda gi, mi: (gi, mi, 0)),
            pl.BlockSpec((None, k, cout), lambda gi, mi: (gi, 0, 0)),
        ],
        out_specs=[
            pl.BlockSpec((None, tm, cout), lambda gi, mi: (gi, mi, 0)),
            pl.BlockSpec((None, 1, cout), lambda gi, mi: (gi, 0, 0)),
            pl.BlockSpec((None, 1, cout), lambda gi, mi: (gi, 0, 0)),
        ],
        out_shape=[
            jax.ShapeDtypeStruct((g, m, cout), jnp.bfloat16),
            jax.ShapeDtypeStruct((g, 1, cout), jnp.float32),
            jax.ShapeDtypeStruct((g, 1, cout), jnp.float32),
        ],
        compiler_params=pltpu.CompilerParams(
            dimension_semantics=("parallel", "arbitrary"),
            vmem_limit_bytes=_VMEM_LIMIT),
    )(patches, w_mat)


def conv_layer(act, w_mat):
    """3x3 conv (padding=1) + global BN batch statistics.

    act:   (G, B, h, w, Cin) bf16 activations (G = 1 merged layer-1, else 4 branches)
    w_mat: (G, 9*Cin, Cout) bf16
    Returns y (G, B, h, w, Cout) bf16 raw conv output, mean/var (G, Cout) f32.
    """
    g, b, h, w, cin = act.shape
    cout = w_mat.shape[-1]
    n = b * h * w
    if cin >= 8 and _direct_fits(h, w, cin, cout):
        act_pad = jnp.pad(act, ((0, 0), (0, 0), (1, 1), (1, 1), (0, 0)))
        y, ssum, ssq = _conv_direct_call(act_pad, w_mat)
    else:
        # TODO(synk): for very large images a halo'd spatial tiling of the direct kernel
        # would avoid this im2col fallback's 9x HBM expansion; unused at tested sizes.
        patches = _im2col_3x3(act)
        y, ssum, ssq = _conv_im2col_call(patches, w_mat)
    y = y.reshape(g, b, h, w, cout)
    mean = ssum[:, 0, :] / n
    var = jnp.maximum(ssq[:, 0, :] / n - mean * mean, 0.0)
    return y, mean, var


def final_fuse(fpatches, cnn_map, comb, bias):
    """fpatches: (B, HW, 64) bf16; cnn_map: (B, HW) f32; comb: (64,) f32; bias: (B,) f32."""
    b, hw, kf = fpatches.shape
    thw = _pick_tile(hw, _THW_CAP, mult=128)
    return pl.pallas_call(
        _final_kernel,
        grid=(hw // thw,),
        in_specs=[
            pl.BlockSpec((b, thw, kf), lambda t: (0, t, 0)),
            pl.BlockSpec((b, thw), lambda t: (0, t)),
            pl.BlockSpec((1, 1, kf), lambda t: (0, 0, 0)),
            pl.BlockSpec((b, 1), lambda t: (0, 0)),
        ],
        out_specs=pl.BlockSpec((b, thw), lambda t: (0, t)),
        out_shape=jax.ShapeDtypeStruct((b, hw), jnp.float32),
        compiler_params=pltpu.CompilerParams(
            dimension_semantics=("parallel",), vmem_limit_bytes=_VMEM_LIMIT),
    )(fpatches, cnn_map, comb.reshape(1, 1, kf), bias.reshape(b, 1))


# ------------------------------ JAX glue ops --------------------------------
def _im2col_3x3(act):
    """act: (G, B, h, w, C) -> (G, B*h*w, 9*C); stride 1, zero pad 1 (PyTorch padding=1)."""
    g, b, h, w, c = act.shape
    ap = jnp.pad(act, ((0, 0), (0, 0), (1, 1), (1, 1), (0, 0)))
    cols = [ap[:, :, dy:dy + h, dx:dx + w, :] for dy in range(3) for dx in range(3)]
    return jnp.concatenate(cols, axis=-1).reshape(g, b * h * w, 9 * c)


def _im2col_8x8(x2d):
    """x2d: (B, H, W) -> (B, H*W, 64); PyTorch padding='same' for k=8 -> pad (3,4,3,4)."""
    b, h, w = x2d.shape
    xp = jnp.pad(x2d, ((0, 0), (3, 4), (3, 4)))
    cols = [xp[:, dy:dy + h, dx:dx + w] for dy in range(8) for dx in range(8)]
    return jnp.stack(cols, axis=-1).reshape(b, h * w, 64)


def _pool2x2(y):
    g, b, h, w, c = y.shape
    return y.reshape(g, b, h // 2, 2, w // 2, 2, c).max(axis=(3, 5))


def _bn_relu(y, mean, var):
    """relu((y - mean) * rsqrt(var + eps)) in f32, stored as bf16 for the next matmul."""
    g, c = mean.shape
    scale = jax.lax.rsqrt(var + BN_EPS).reshape(g, 1, 1, 1, c)
    shift = (-mean * jax.lax.rsqrt(var + BN_EPS)).reshape(g, 1, 1, 1, c)
    out = jnp.maximum(y.astype(jnp.float32) * scale + shift, 0.0)
    return out.astype(jnp.bfloat16)


def _interp_matrix(out_n, in_n):
    """Bilinear (align_corners=True) interpolation matrix (out_n, in_n), numpy/static."""
    if in_n == 1:
        return np.ones((out_n, 1), np.float32)
    if out_n == 1:
        m = np.zeros((1, in_n), np.float32)
        m[0, 0] = 1.0
        return m
    src = np.arange(out_n, dtype=np.float64) * ((in_n - 1) / (out_n - 1))
    i0 = np.clip(np.floor(src).astype(np.int64), 0, in_n - 1)
    i1 = np.clip(i0 + 1, 0, in_n - 1)
    f = src - i0
    m = np.zeros((out_n, in_n), np.float64)
    m[np.arange(out_n), i0] += 1.0 - f
    m[np.arange(out_n), i1] += f
    return m.astype(np.float32)


# ------------------------------- forward -------------------------------------
def _device_forward(x_nhwc, glcm_feats, dp):
    b, h, w, _ = x_nhwc.shape
    x_bf16 = x_nhwc.astype(jnp.bfloat16)

    # ---- layer 1: input shared by the 4 branches -> one merged (9, 256) matmul ----
    y, mean, var = conv_layer(x_bf16[None], dp["cnn_w"][0])          # (1, B, H, W, 256)
    y = _pool2x2(y)
    ch, cw = h // 2, w // 2
    a = _bn_relu(y, mean, var)                                       # (1, B, ch, cw, 256)
    act = a[0].reshape(b, ch, cw, 4, 64).transpose(3, 0, 1, 2, 4)    # (4, B, ch, cw, 64)

    # ---- layers 2-5: direct in-VMEM 3x3 conv per (branch, image) -------------------
    for li in range(1, 5):
        y, mean, var = conv_layer(act, dp["cnn_w"][li])
        if li < 3:                                                   # pools after conv2, conv3
            y = _pool2x2(y)
            ch, cw = ch // 2, cw // 2
        act = _bn_relu(y, mean, var)                                 # (4, B, ch, cw, Cout)

    # ---- CNN contribution to the final 1x1 conv (contract BEFORE upsample; linear) --
    cnn_small = jnp.einsum("gbhwc,gc->bhw", act.astype(jnp.float32), dp["w_cnn"])
    uy = jnp.asarray(_interp_matrix(h, ch))
    ux = jnp.asarray(_interp_matrix(w, cw))
    cnn_map = jnp.einsum("ij,bjk,lk->bil", uy, cnn_small, ux).reshape(b, h * w)

    # ---- folded Gabor(48)+Haar(3) bank + GLCM per-batch bias + sigmoid -------------
    fpatches = _im2col_8x8(x_bf16[..., 0])                           # (B, H*W, 64)
    bias = glcm_feats @ dp["w_glcm"] + dp["final_b"]                 # (B,)
    out = final_fuse(fpatches, cnn_map, dp["comb"], bias)            # (B, H*W)
    return out.reshape(b, 1, h, w)                                   # NCHW, num_classes = 1


_device_forward_jit = jax.jit(_device_forward)


def masood2024_forward(x_nchw, device_params):
    # Host-side GLCM is computed FIRST from the raw input so no device work serializes
    # behind the host histogram.
    # TODO(synk): GLCM (skimage graycomatrix/graycoprops) is a data-dependent 256x256
    # co-occurrence histogram with no clean Pallas equivalent; kept as host-side numpy.
    glcm = jnp.asarray(glcm_features_np(np.asarray(x_nchw)))         # (B, 64)
    x_nhwc = jnp.transpose(x_nchw, (0, 2, 3, 1))                     # NCHW -> NHWC
    return _device_forward_jit(x_nhwc, glcm, device_params)


# ----------------------- GLCM features (host, numpy) --------------------------
def _graycomatrix(img, dr, dc, levels=256):
    rows, cols = img.shape
    p = np.zeros((levels, levels), dtype=np.float64)
    r0, r1 = max(0, -dr), min(rows, rows - dr)
    c0, c1 = max(0, -dc), min(cols, cols - dc)
    if r0 < r1 and c0 < c1:
        i_vals = img[r0:r1, c0:c1].ravel()
        j_vals = img[r0 + dr:r1 + dr, c0 + dc:c1 + dc].ravel()
        np.add.at(p, (i_vals, j_vals), 1.0)
    p = p + p.T                       # symmetric=True
    s = p.sum()
    if s > 0:
        p = p / s                     # normed=True
    return p


def _graycoprops(p):
    levels = p.shape[0]
    i = np.arange(levels, dtype=np.float64).reshape(-1, 1)
    j = np.arange(levels, dtype=np.float64).reshape(1, -1)
    contrast = np.sum(p * (i - j) ** 2)
    dissimilarity = np.sum(p * np.abs(i - j))
    homogeneity = np.sum(p / (1.0 + (i - j) ** 2))
    asm = np.sum(p ** 2)
    energy = np.sqrt(asm)
    mean_i, mean_j = np.sum(i * p), np.sum(j * p)
    std_i = np.sqrt(np.sum(p * (i - mean_i) ** 2))
    std_j = np.sqrt(np.sum(p * (j - mean_j) ** 2))
    if std_i < 1e-15 or std_j < 1e-15:
        correlation = 1.0
    else:
        correlation = np.sum(p * (i - mean_i) * (j - mean_j)) / (std_i * std_j)
    return [contrast, dissimilarity, homogeneity, energy, correlation, asm]


def _glcm_entropy(p):
    q = p + 1e-8
    return float(-np.sum(q * np.log2(q)))


def _glcm_variance(p):
    i = np.arange(p.shape[0]).reshape(-1, 1)
    mean = np.sum(i * p)
    return float(np.sum((i - mean) ** 2 * p))


def glcm_features_np(x_nchw):
    # angles [0, 90, -45, -135] are fed as RADIANS to sin/cos, matching the reference,
    # which passes them straight to skimage.graycomatrix.
    angles = [0, 90, -45, -135]
    distances = [1, 2]
    feats = []
    for b in range(x_nchw.shape[0]):
        img = x_nchw[b, 0].astype(np.float64)
        img = (img - img.min()) / (img.max() - img.min() + 1e-8)
        img = (img * 255).astype(np.uint8).astype(np.int64)
        f = []
        for angle in angles:
            for d in distances:
                dr = int(np.round(np.sin(angle) * d))
                dc = int(np.round(np.cos(angle) * d))
                p = _graycomatrix(img, dr, dc, 256)
                f.extend(_graycoprops(p))
                f.append(_glcm_entropy(p))
                f.append(_glcm_variance(p))
        feats.append(f)
    return np.asarray(feats, dtype=np.float32)        # (B, 64)


# ------------------------------ parameters ------------------------------------
def _gabor_kernel(frequency, theta_deg, sigma=1.0):
    theta = theta_deg / 180.0 * np.pi
    ksize = int(2 * np.ceil(2.5 * sigma) + 1)   # 7; the mgrid below yields 8x8 (reference quirk)
    y, x = np.mgrid[-ksize // 2: ksize // 2 + 1, -ksize // 2: ksize // 2 + 1]
    x_theta = x * np.cos(theta) + y * np.sin(theta)
    y_theta = -x * np.sin(theta) + y * np.cos(theta)
    return (np.exp(-0.5 * (x_theta ** 2 + y_theta ** 2) / sigma ** 2)
            * np.cos(2 * np.pi * frequency * x_theta))


def _init_conv(key, cout, cin, k):
    kw_, kb_ = jax.random.split(key)
    bound = 1.0 / np.sqrt(cin * k * k)
    wgt = jax.random.uniform(kw_, (cout, cin, k, k), jnp.float32, -bound, bound)
    bias = jax.random.uniform(kb_, (cout,), jnp.float32, -bound, bound)
    return wgt, bias


def init_params(key):
    keys = jax.random.split(key, 5)
    chans = [(IN_CH, 64), (64, 128), (128, 256), (256, 128), (128, 64)]
    cnn_params = []
    for bi in range(4):
        bkeys = jax.random.split(keys[bi], 5)
        cnn_params.append([_init_conv(k, cout, cin, 3)
                           for (cin, cout), k in zip(chans, bkeys)])

    orientations = [0, 45, 90, 135, -45, -135]
    frequencies = [0.1, 0.25, 0.4, 0.5, 0.6, 0.7, 0.8, 0.9]
    gabor = np.stack([_gabor_kernel(f, t) for t in orientations for f in frequencies]
                     ).astype(np.float32)                            # (48, 8, 8)
    haar = np.stack([np.array([[1, 1], [-1, -1]]),
                     np.array([[1, -1], [1, -1]]),
                     np.array([[1, -1], [-1, 1]])]).astype(np.float32)   # (3, 2, 2)

    final_w, final_b = _init_conv(keys[4], 1, 256 + 48 + 3 + 64, 1)
    return {"cnn": cnn_params, "gabor": jnp.asarray(gabor), "haar": jnp.asarray(haar),
            "final_w": final_w, "final_b": final_b}


def prepare_device_params(params):
    """Precompute the device-side weight layouts consumed by the Pallas kernels."""
    chans = [(IN_CH, 64), (64, 128), (128, 256), (256, 128), (128, 64)]
    cnn_w = []
    for li, (cin, cout) in enumerate(chans):
        # NOTE: the conv bias is dropped on purpose -- training-mode BatchNorm subtracts
        # the per-channel batch mean, which cancels it exactly.
        mats = [jnp.transpose(params["cnn"][br][li][0], (2, 3, 1, 0)).reshape(9 * cin, cout)
                for br in range(4)]
        if li == 0:
            # layer 1 shares its input: merge the 4 branches into one (9, 256) matrix.
            cnn_w.append(jnp.concatenate(mats, axis=-1)[None].astype(jnp.bfloat16))
        else:
            cnn_w.append(jnp.stack(mats).astype(jnp.bfloat16))       # (4, 9*Cin, Cout)

    # merged 8x8 filter bank: 48 Gabor filters + 3 Haar 2x2 filters embedded at offset (3,3)
    # (reproduces PyTorch padding='same' for k=2 exactly under the (3,4,3,4) k=8 padding),
    # then the final 1x1 weights for these 51 channels are folded in -> a single (64,) vector.
    gabor = params["gabor"].reshape(48, 64)
    haar8 = jnp.zeros((3, 8, 8), jnp.float32).at[:, 3:5, 3:5].set(params["haar"]).reshape(3, 64)
    bank = jnp.concatenate([gabor, haar8], axis=0)                   # (51, 64) f32

    fw = params["final_w"].reshape(-1)                               # (371,)
    return {
        "cnn_w": cnn_w,                      # [ (1,9,256) ] + 4 x (4, 9*Cin, Cout) bf16
        "comb": bank.T @ fw[256:307],        # (64,) f32: Gabor/Haar bank with 1x1 weights folded
        "w_cnn": fw[:256].reshape(4, 64),    # final 1x1 weights for the 4 CNN branches
        "w_glcm": fw[307:371],               # ... for the 64 GLCM features
        "final_b": params["final_b"],        # (1,)
    }


if __name__ == "__main__":
    key = jax.random.PRNGKey(0)
    kx, kp = jax.random.split(key)
    B, C, H, W = 2, IN_CH, 16, 16
    x = jax.random.normal(kx, (B, C, H, W), jnp.float32)
    params = init_params(kp)
    dparams = prepare_device_params(params)

    out = masood2024_forward(x, dparams)
    out = jax.block_until_ready(out)
    assert out.shape == (B, 1, H, W), out.shape
    assert bool(jnp.all(jnp.isfinite(out)))
    print("KERNEL_OK")
</pallas_src>

<mosaic_0001>
module attributes {stable_mosaic.version = 11 : i64} {
  func.func @_matmul_stats_kernel(%arg0: i32, %arg1: i32, %arg2: memref<1x512x9xbf16, #tpu.memory_space<vmem>>, %arg3: memref<1x9x256xbf16, #tpu.memory_space<vmem>>, %arg4: memref<1x512x256xbf16, #tpu.memory_space<vmem>>, %arg5: memref<1x1x256xf32, #tpu.memory_space<vmem>>, %arg6: memref<1x1x256xf32, #tpu.memory_space<vmem>>) attributes {dimension_semantics = [#tpu.dimension_semantics<parallel>, #tpu.dimension_semantics<arbitrary>], iteration_bounds = array<i64: 1, 1>, scalar_prefetch = 0 : i64, scratch_operands = 0 : i64, tpu.core_type = #tpu.core_type<tc>, window_params = [{transform_indices = @transform_0, window_bounds = array<i64: 1, 512, 9>}, {transform_indices = @transform_1, window_bounds = array<i64: 1, 9, 256>}, {transform_indices = @transform_2, window_bounds = array<i64: 1, 512, 256>}, {transform_indices = @transform_3, window_bounds = array<i64: 1, 1, 256>}, {transform_indices = @transform_4, window_bounds = array<i64: 1, 1, 256>}]} {
    %c0 = arith.constant 0 : index
    %c0_0 = arith.constant 0 : index
    %c0_1 = arith.constant 0 : index
    %0 = vector.load %arg2[%c0, %c0_0, %c0_1] : memref<1x512x9xbf16, #tpu.memory_space<vmem>>, vector<1x512x9xbf16>
    %1 = vector.shape_cast %0 : vector<1x512x9xbf16> to vector<512x9xbf16>
    %c0_2 = arith.constant 0 : index
    %c0_3 = arith.constant 0 : index
    %c0_4 = arith.constant 0 : index
    %2 = vector.load %arg3[%c0_2, %c0_3, %c0_4] : memref<1x9x256xbf16, #tpu.memory_space<vmem>>, vector<1x9x256xbf16>
    %3 = vector.shape_cast %2 : vector<1x9x256xbf16> to vector<9x256xbf16>
    %cst = arith.constant dense<0.000000e+00> : vector<512x256xf32>
    %4 = tpu.matmul %1, %3, %cst {dimension_numbers = #tpu.dot_dimension_numbers<[1], [0], [0], [1], [0, 0, 1, 1], [], []>} : vector<512x9xbf16>, vector<9x256xbf16>, vector<512x256xf32> -> vector<512x256xf32>
    %5 = arith.truncf %4 : vector<512x256xf32> to vector<512x256xbf16>
    %c0_5 = arith.constant 0 : index
    %c0_6 = arith.constant 0 : index
    %c0_7 = arith.constant 0 : index
    %6 = vector.load %arg4[%c0_5, %c0_6, %c0_7] : memref<1x512x256xbf16, #tpu.memory_space<vmem>>, vector<1x512x256xbf16>
    %7 = vector.shape_cast %6 : vector<1x512x256xbf16> to vector<512x256xbf16>
    %8 = vector.shape_cast %5 : vector<512x256xbf16> to vector<1x512x256xbf16>
    tpu.vector_store %arg4[%c0_5, %c0_6, %c0_7], %8 {strides = array<i32>} : memref<1x512x256xbf16, #tpu.memory_space<vmem>>, vector<1x512x256xbf16>,
    %cst_8 = arith.constant dense<0.000000e+00> : vector<256xf32>
    %9 = vector.multi_reduction <add>, %4, %cst_8 [0] : vector<512x256xf32> to vector<256xf32>
    %10 = vector.shape_cast %9 : vector<256xf32> to vector<1x256xf32>
    %11 = arith.mulf %4, %4 : vector<512x256xf32>
    %cst_9 = arith.constant dense<0.000000e+00> : vector<256xf32>
    %12 = vector.multi_reduction <add>, %11, %cst_9 [0] : vector<512x256xf32> to vector<256xf32>
    %13 = vector.shape_cast %12 : vector<256xf32> to vector<1x256xf32>
    %c0_i32 = arith.constant 0 : i32
    %14 = arith.cmpi eq, %arg1, %c0_i32 : i32
    %15 = arith.extui %14 : i1 to i32
    %c0_i32_10 = arith.constant 0 : i32
    %16 = arith.cmpi ne, %15, %c0_i32_10 : i32
    scf.if %16 {
      %cst_23 = arith.constant 0.000000e+00 : f32
      %29 = vector.broadcast %cst_23 : f32 to vector<1x256xf32>
      %c0_24 = arith.constant 0 : index
      %c0_25 = arith.constant 0 : index
      %c0_26 = arith.constant 0 : index
      %30 = vector.load %arg5[%c0_24, %c0_25, %c0_26] : memref<1x1x256xf32, #tpu.memory_space<vmem>>, vector<1x1x256xf32>
      %31 = vector.shape_cast %30 : vector<1x1x256xf32> to vector<1x256xf32>
      %32 = vector.shape_cast %29 : vector<1x256xf32> to vector<1x1x256xf32>
      tpu.vector_store %arg5[%c0_24, %c0_25, %c0_26], %32 {strides = array<i32>} : memref<1x1x256xf32, #tpu.memory_space<vmem>>, vector<1x1x256xf32>,
      %cst_27 = arith.constant 0.000000e+00 : f32
      %33 = vector.broadcast %cst_27 : f32 to vector<1x256xf32>
      %c0_28 = arith.constant 0 : index
      %c0_29 = arith.constant 0 : index
      %c0_30 = arith.constant 0 : index
      %34 = vector.load %arg6[%c0_28, %c0_29, %c0_30] : memref<1x1x256xf32, #tpu.memory_space<vmem>>, vector<1x1x256xf32>
      %35 = vector.shape_cast %34 : vector<1x1x256xf32> to vector<1x256xf32>
      %36 = vector.shape_cast %33 : vector<1x256xf32> to vector<1x1x256xf32>
      tpu.vector_store %arg6[%c0_28, %c0_29, %c0_30], %36 {strides = array<i32>} : memref<1x1x256xf32, #tpu.memory_space<vmem>>, vector<1x1x256xf32>,
    } else {
    }
    %c0_11 = arith.constant 0 : index
    %c0_12 = arith.constant 0 : index
    %c0_13 = arith.constant 0 : index
    %17 = vector.load %arg5[%c0_11, %c0_12, %c0_13] : memref<1x1x256xf32, #tpu.memory_space<vmem>>, vector<1x1x256xf32>
    %18 = vector.shape_cast %17 : vector<1x1x256xf32> to vector<1x256xf32>
    %19 = arith.addf %18, %10 : vector<1x256xf32>
    %c0_14 = arith.constant 0 : index
    %c0_15 = arith.constant 0 : index
    %c0_16 = arith.constant 0 : index
    %20 = vector.load %arg5[%c0_14, %c0_15, %c0_16] : memref<1x1x256xf32, #tpu.memory_space<vmem>>, vector<1x1x256xf32>
    %21 = vector.shape_cast %20 : vector<1x1x256xf32> to vector<1x256xf32>
    %22 = vector.shape_cast %19 : vector<1x256xf32> to vector<1x1x256xf32>
    tpu.vector_store %arg5[%c0_14, %c0_15, %c0_16], %22 {strides = array<i32>} : memref<1x1x256xf32, #tpu.memory_space<vmem>>, vector<1x1x256xf32>,
    %c0_17 = arith.constant 0 : index
    %c0_18 = arith.constant 0 : index
    %c0_19 = arith.constant 0 : index
    %23 = vector.load %arg6[%c0_17, %c0_18, %c0_19] : memref<1x1x256xf32, #tpu.memory_space<vmem>>, vector<1x1x256xf32>
    %24 = vector.shape_cast %23 : vector<1x1x256xf32> to vector<1x256xf32>
    %25 = arith.addf %24, %13 : vector<1x256xf32>
    %c0_20 = arith.constant 0 : index
    %c0_21 = arith.constant 0 : index
    %c0_22 = arith.constant 0 : index
    %26 = vector.load %arg6[%c0_20, %c0_21, %c0_22] : memref<1x1x256xf32, #tpu.memory_space<vmem>>, vector<1x1x256xf32>
    %27 = vector.shape_cast %26 : vector<1x1x256xf32> to vector<1x256xf32>
    %28 = vector.shape_cast %25 : vector<1x256xf32> to vector<1x1x256xf32>
    tpu.vector_store %arg6[%c0_20, %c0_21, %c0_22], %28 {strides = array<i32>} : memref<1x1x256xf32, #tpu.memory_space<vmem>>, vector<1x1x256xf32>,
    return
  }
  func.func @transform_0(%arg0: i32, %arg1: i32) -> (i32, i32, i32) {
    %c0_i32 = arith.constant 0 : i32
    %c0_i32_0 = arith.constant 0 : i32
    return %arg0, %arg1, %c0_i32 : i32, i32, i32
  }
  func.func @transform_1(%arg0: i32, %arg1: i32) -> (i32, i32, i32) {
    %c0_i32 = arith.constant 0 : i32
    %c0_i32_0 = arith.constant 0 : i32
    %c0_i32_1 = arith.constant 0 : i32
    return %arg0, %c0_i32, %c0_i32_0 : i32, i32, i32
  }
  func.func @transform_2(%arg0: i32, %arg1: i32) -> (i32, i32, i32) {
    %c0_i32 = arith.constant 0 : i32
    %c0_i32_0 = arith.constant 0 : i32
    return %arg0, %arg1, %c0_i32 : i32, i32, i32
  }
  func.func @transform_3(%arg0: i32, %arg1: i32) -> (i32, i32, i32) {
    %c0_i32 = arith.constant 0 : i32
    %c0_i32_0 = arith.constant 0 : i32
    %c0_i32_1 = arith.constant 0 : i32
    return %arg0, %c0_i32, %c0_i32_0 : i32, i32, i32
  }
  func.func @transform_4(%arg0: i32, %arg1: i32) -> (i32, i32, i32) {
    %c0_i32 = arith.constant 0 : i32
    %c0_i32_0 = arith.constant 0 : i32
    %c0_i32_1 = arith.constant 0 : i32
    return %arg0, %c0_i32, %c0_i32_0 : i32, i32, i32
  }
}

module attributes {stable_mosaic.version = 11 : i64} {
  func.func @_conv3x3_stats_kernel(%arg0: i32, %arg1: i32, %arg2: memref<1x1x10x10x64xbf16, #tpu.memory_space<vmem>>, %arg3: memref<1x576x128xbf16, #tpu.memory_space<vmem>>, %arg4: memref<1x1x64x128xbf16, #tpu.memory_space<vmem>>, %arg5: memref<1x1x128xf32, #tpu.memory_space<vmem>>, %arg6: memref<1x1x128xf32, #tpu.memory_space<vmem>>) attributes {dimension_semantics = [#tpu.dimension_semantics<parallel>, #tpu.dimension_semantics<arbitrary>], iteration_bounds = array<i64: 4, 2>, scalar_prefetch = 0 : i64, scratch_operands = 0 : i64, tpu.core_type = #tpu.core_type<tc>, window_params = [{transform_indices = @transform_0, window_bounds = array<i64: 1, 1, 10, 10, 64>}, {transform_indices = @transform_1, window_bounds = array<i64: 1, 576, 128>}, {transform_indices = @transform_2, window_bounds = array<i64: 1, 1, 64, 128>}, {transform_indices = @transform_3, window_bounds = array<i64: 1, 1, 128>}, {transform_indices = @transform_4, window_bounds = array<i64: 1, 1, 128>}]} {
    %cst = arith.constant 0.000000e+00 : f32
    %0 = vector.broadcast %cst : f32 to vector<64x128xf32>
    %c0 = arith.constant 0 : index
    %c0_0 = arith.constant 0 : index
    %c0_1 = arith.constant 0 : index
    %c0_2 = arith.constant 0 : index
    %c0_3 = arith.constant 0 : index
    %1 = vector.load %arg2[%c0, %c0_0, %c0_1, %c0_2, %c0_3] : memref<1x1x10x10x64xbf16, #tpu.memory_space<vmem>>, vector<1x1x8x8x64xbf16>
    %2 = vector.shape_cast %1 : vector<1x1x8x8x64xbf16> to vector<8x8x64xbf16>
    %3 = vector.shape_cast %2 : vector<8x8x64xbf16> to vector<64x64xbf16>
    %c0_4 = arith.constant 0 : index
    %c0_5 = arith.constant 0 : index
    %c0_6 = arith.constant 0 : index
    %4 = vector.load %arg3[%c0_4, %c0_5, %c0_6] : memref<1x576x128xbf16, #tpu.memory_space<vmem>>, vector<1x64x128xbf16>
    %5 = vector.shape_cast %4 : vector<1x64x128xbf16> to vector<64x128xbf16>
    %cst_7 = arith.constant dense<0.000000e+00> : vector<64x128xf32>
    %6 = tpu.matmul %3, %5, %cst_7 {dimension_numbers = #tpu.dot_dimension_numbers<[1], [0], [0], [1], [0, 0, 1, 1], [], []>} : vector<64x64xbf16>, vector<64x128xbf16>, vector<64x128xf32> -> vector<64x128xf32>
    %7 = arith.addf %0, %6 : vector<64x128xf32>
    %c0_8 = arith.constant 0 : index
    %c0_9 = arith.constant 0 : index
    %c0_10 = arith.constant 0 : index
    %c1 = arith.constant 1 : index
    %c0_11 = arith.constant 0 : index
    %8 = vector.load %arg2[%c0_8, %c0_9, %c0_10, %c1, %c0_11] : memref<1x1x10x10x64xbf16, #tpu.memory_space<vmem>>, vector<1x1x8x8x64xbf16>
    %9 = vector.shape_cast %8 : vector<1x1x8x8x64xbf16> to vector<8x8x64xbf16>
    %10 = vector.shape_cast %9 : vector<8x8x64xbf16> to vector<64x64xbf16>
    %c0_12 = arith.constant 0 : index
    %c64 = arith.constant 64 : index
    %c0_13 = arith.constant 0 : index
    %11 = vector.load %arg3[%c0_12, %c64, %c0_13] : memref<1x576x128xbf16, #tpu.memory_space<vmem>>, vector<1x64x128xbf16>
    %12 = vector.shape_cast %11 : vector<1x64x128xbf16> to vector<64x128xbf16>
    %cst_14 = arith.constant dense<0.000000e+00> : vector<64x128xf32>
    %13 = tpu.matmul %10, %12, %cst_14 {dimension_numbers = #tpu.dot_dimension_numbers<[1], [0], [0], [1], [0, 0, 1, 1], [], []>} : vector<64x64xbf16>, vector<64x128xbf16>, vector<64x128xf32> -> vector<64x128xf32>
    %14 = arith.addf %7, %13 : vector<64x128xf32>
    %c0_15 = arith.constant 0 : index
    %c0_16 = arith.constant 0 : index
    %c0_17 = arith.constant 0 : index
    %c2 = arith.constant 2 : index
    %c0_18 = arith.constant 0 : index
    %15 = vector.load %arg2[%c0_15, %c0_16, %c0_17, %c2, %c0_18] : memref<1x1x10x10x64xbf16, #tpu.memory_space<vmem>>, vector<1x1x8x8x64xbf16>
    %16 = vector.shape_cast %15 : vector<1x1x8x8x64xbf16> to vector<8x8x64xbf16>
    %17 = vector.shape_cast %16 : vector<8x8x64xbf16> to vector<64x64xbf16>
    %c0_19 = arith.constant 0 : index
    %c128 = arith.constant 128 : index
    %c0_20 = arith.constant 0 : index
    %18 = vector.load %arg3[%c0_19, %c128, %c0_20] : memref<1x576x128xbf16, #tpu.memory_space<vmem>>, vector<1x64x128xbf16>
    %19 = vector.shape_cast %18 : vector<1x64x128xbf16> to vector<64x128xbf16>
    %cst_21 = arith.constant dense<0.000000e+00> : vector<64x128xf32>
    %20 = tpu.matmul %17, %19, %cst_21 {dimension_numbers = #tpu.dot_dimension_numbers<[1], [0], [0], [1], [0, 0, 1, 1], [], []>} : vector<64x64xbf16>, vector<64x128xbf16>, vector<64x128xf32> -> vector<64x128xf32>
    %21 = arith.addf %14, %20 : vector<64x128xf32>
    %c0_22 = arith.constant 0 : index
    %c0_23 = arith.constant 0 : index
    %c1_24 = arith.constant 1 : index
    %c0_25 = arith.constant 0 : index
    %c0_26 = arith.constant 0 : index
    %22 = vector.load %arg2[%c0_22, %c0_23, %c1_24, %c0_25, %c0_26] : memref<1x1x10x10x64xbf16, #tpu.memory_space<vmem>>, vector<1x1x8x8x64xbf16>
    %23 = vector.shape_cast %22 : vector<1x1x8x8x64xbf16> to vector<8x8x64xbf16>
    %24 = vector.shape_cast %23 : vector<8x8x64xbf16> to vector<64x64xbf16>
    %c0_27 = arith.constant 0 : index
    %c192 = arith.constant 192 : index
    %c0_28 = arith.constant 0 : index
    %25 = vector.load %arg3[%c0_27, %c192, %c0_28] : memref<1x576x128xbf16, #tpu.memory_space<vmem>>, vector<1x64x128xbf16>
    %26 = vector.shape_cast %25 : vector<1x64x128xbf16> to vector<64x128xbf16>
    %cst_29 = arith.constant dense<0.000000e+00> : vector<64x128xf32>
    %27 = tpu.matmul %24, %26, %cst_29 {dimension_numbers = #tpu.dot_dimension_numbers<[1], [0], [0], [1], [0, 0, 1, 1], [], []>} : vector<64x64xbf16>, vector<64x128xbf16>, vector<64x128xf32> -> vector<64x128xf32>
    %28 = arith.addf %21, %27 : vector<64x128xf32>
    %c0_30 = arith.constant 0 : index
    %c0_31 = arith.constant 0 : index
    %c1_32 = arith.constant 1 : index
    %c1_33 = arith.constant 1 : index
    %c0_34 = arith.constant 0 : index
    %29 = vector.load %arg2[%c0_30, %c0_31, %c1_32, %c1_33, %c0_34] : memref<1x1x10x10x64xbf16, #tpu.memory_space<vmem>>, vector<1x1x8x8x64xbf16>
    %30 = vector.shape_cast %29 : vector<1x1x8x8x64xbf16> to vector<8x8x64xbf16>
    %31 = vector.shape_cast %30 : vector<8x8x64xbf16> to vector<64x64xbf16>
    %c0_35 = arith.constant 0 : index
    %c256 = arith.constant 256 : index
    %c0_36 = arith.constant 0 : index
    %32 = vector.load %arg3[%c0_35, %c256, %c0_36] : memref<1x576x128xbf16, #tpu.memory_space<vmem>>, vector<1x64x128xbf16>
    %33 = vector.shape_cast %32 : vector<1x64x128xbf16> to vector<64x128xbf16>
    %cst_37 = arith.constant dense<0.000000e+00> : vector<64x128xf32>
    %34 = tpu.matmul %31, %33, %cst_37 {dimension_numbers = #tpu.dot_dimension_numbers<[1], [0], [0], [1], [0, 0, 1, 1], [], []>} : vector<64x64xbf16>, vector<64x128xbf16>, vector<64x128xf32> -> vector<64x128xf32>
    %35 = arith.addf %28, %34 : vector<64x128xf32>
    %c0_38 = arith.constant 0 : index
    %c0_39 = arith.constant 0 : index
    %c1_40 = arith.constant 1 : index
    %c2_41 = arith.constant 2 : index
    %c0_42 = arith.constant 0 : index
    %36 = vector.load %arg2[%c0_38, %c0_39, %c1_40, %c2_41, %c0_42] : memref<1x1x10x10x64xbf16, #tpu.memory_space<vmem>>, vector<1x1x8x8x64xbf16>
    %37 = vector.shape_cast %36 : vector<1x1x8x8x64xbf16> to vector<8x8x64xbf16>
    %38 = vector.shape_cast %37 : vector<8x8x64xbf16> to vector<64x64xbf16>
    %c0_43 = arith.constant 0 : index
    %c320 = arith.constant 320 : index
    %c0_44 = arith.constant 0 : index
    %39 = vector.load %arg3[%c0_43, %c320, %c0_44] : memref<1x576x128xbf16, #tpu.memory_space<vmem>>, vector<1x64x128xbf16>
    %40 = vector.shape_cast %39 : vector<1x64x128xbf16> to vector<64x128xbf16>
    %cst_45 = arith.constant dense<0.000000e+00> : vector<64x128xf32>
    %41 = tpu.matmul %38, %40, %cst_45 {dimension_numbers = #tpu.dot_dimension_numbers<[1], [0], [0], [1], [0, 0, 1, 1], [], []>} : vector<64x64xbf16>, vector<64x128xbf16>, vector<64x128xf32> -> vector<64x128xf32>
    %42 = arith.addf %35, %41 : vector<64x128xf32>
    %c0_46 = arith.constant 0 : index
    %c0_47 = arith.constant 0 : index
    %c2_48 = arith.constant 2 : index
    %c0_49 = arith.constant 0 : index
    %c0_50 = arith.constant 0 : index
    %43 = vector.load %arg2[%c0_46, %c0_47, %c2_48, %c0_49, %c0_50] : memref<1x1x10x10x64xbf16, #tpu.memory_space<vmem>>, vector<1x1x8x8x64xbf16>
    %44 = vector.shape_cast %43 : vector<1x1x8x8x64xbf16> to vector<8x8x64xbf16>
    %45 = vector.shape_cast %44 : vector<8x8x64xbf16> to vector<64x64xbf16>
    %c0_51 = arith.constant 0 : index
    %c384 = arith.constant 384 : index
    %c0_52 = arith.constant 0 : index
    %46 = vector.load %arg3[%c0_51, %c384, %c0_52] : memref<1x576x128xbf16, #tpu.memory_space<vmem>>, vector<1x64x128xbf16>
    %47 = vector.shape_cast %46 : vector<1x64x128xbf16> to vector<64x128xbf16>
    %cst_53 = arith.constant dense<0.000000e+00> : vector<64x128xf32>
    %48 = tpu.matmul %45, %47, %cst_53 {dimension_numbers = #tpu.dot_dimension_numbers<[1], [0], [0], [1], [0, 0, 1, 1], [], []>} : vector<64x64xbf16>, vector<64x128xbf16>, vector<64x128xf32> -> vector<64x128xf32>
    %49 = arith.addf %42, %48 : vector<64x128xf32>
    %c0_54 = arith.constant 0 : index
    %c0_55 = arith.constant 0 : index
    %c2_56 = arith.constant 2 : index
    %c1_57 = arith.constant 1 : index
    %c0_58 = arith.constant 0 : index
    %50 = vector.load %arg2[%c0_54, %c0_55, %c2_56, %c1_57, %c0_58] : memref<1x1x10x10x64xbf16, #tpu.memory_space<vmem>>, vector<1x1x8x8x64xbf16>
    %51 = vector.shape_cast %50 : vector<1x1x8x8x64xbf16> to vector<8x8x64xbf16>
    %52 = vector.shape_cast %51 : vector<8x8x64xbf16> to vector<64x64xbf16>
    %c0_59 = arith.constant 0 : index
    %c448 = arith.constant 448 : index
    %c0_60 = arith.constant 0 : index
    %53 = vector.load %arg3[%c0_59, %c448, %c0_60] : memref<1x576x128xbf16, #tpu.memory_space<vmem>>, vector<1x64x128xbf16>
    %54 = vector.shape_cast %53 : vector<1x64x128xbf16> to vector<64x128xbf16>
    %cst_61 = arith.constant dense<0.000000e+00> : vector<64x128xf32>
    %55 = tpu.matmul %52, %54, %cst_61 {dimension_numbers = #tpu.dot_dimension_numbers<[1], [0], [0], [1], [0, 0, 1, 1], [], []>} : vector<64x64xbf16>, vector<64x128xbf16>, vector<64x128xf32> -> vector<64x128xf32>
    %56 = arith.addf %49, %55 : vector<64x128xf32>
    %c0_62 = arith.constant 0 : index
    %c0_63 = arith.constant 0 : index
    %c2_64 = arith.constant 2 : index
    %c2_65 = arith.constant 2 : index
    %c0_66 = arith.constant 0 : index
    %57 = vector.load %arg2[%c0_62, %c0_63, %c2_64, %c2_65, %c0_66] : memref<1x1x10x10x64xbf16, #tpu.memory_space<vmem>>, vector<1x1x8x8x64xbf16>
    %58 = vector.shape_cast %57 : vector<1x1x8x8x64xbf16> to vector<8x8x64xbf16>
    %59 = vector.shape_cast %58 : vector<8x8x64xbf16> to vector<64x64xbf16>
    %c0_67 = arith.constant 0 : index
    %c512 = arith.constant 512 : index
    %c0_68 = arith.constant 0 : index
    %60 = vector.load %arg3[%c0_67, %c512, %c0_68] : memref<1x576x128xbf16, #tpu.memory_space<vmem>>, vector<1x64x128xbf16>
    %61 = vector.shape_cast %60 : vector<1x64x128xbf16> to vector<64x128xbf16>
    %cst_69 = arith.constant dense<0.000000e+00> : vector<64x128xf32>
    %62 = tpu.matmul %59, %61, %cst_69 {dimension_numbers = #tpu.dot_dimension_numbers<[1], [0], [0], [1], [0, 0, 1, 1], [], []>} : vector<64x64xbf16>, vector<64x128xbf16>, vector<64x128xf32> -> vector<64x128xf32>
    %63 = arith.addf %56, %62 : vector<64x128xf32>
    %64 = arith.truncf %63 : vector<64x128xf32> to vector<64x128xbf16>
    %c0_70 = arith.constant 0 : index
    %c0_71 = arith.constant 0 : index
    %c0_72 = arith.constant 0 : index
    %c0_73 = arith.constant 0 : index
    %65 = vector.load %arg4[%c0_70, %c0_71, %c0_72, %c0_73] : memref<1x1x64x128xbf16, #tpu.memory_space<vmem>>, vector<1x1x64x128xbf16>
    %66 = vector.shape_cast %65 : vector<1x1x64x128xbf16> to vector<64x128xbf16>
    %67 = vector.shape_cast %64 : vector<64x128xbf16> to vector<1x1x64x128xbf16>
    tpu.vector_store %arg4[%c0_70, %c0_71, %c0_72, %c0_73], %67 {strides = array<i32>} : memref<1x1x64x128xbf16, #tpu.memory_space<vmem>>, vector<1x1x64x128xbf16>,
    %cst_74 = arith.constant dense<0.000000e+00> : vector<128xf32>
    %68 = vector.multi_reduction <add>, %63, %cst_74 [0] : vector<64x128xf32> to vector<128xf32>
    %69 = vector.shape_cast %68 : vector<128xf32> to vector<1x128xf32>
    %70 = arith.mulf %63, %63 : vector<64x128xf32>
    %cst_75 = arith.constant dense<0.000000e+00> : vector<128xf32>
    %71 = vector.multi_reduction <add>, %70, %cst_75 [0] : vector<64x128xf32> to vector<128xf32>
    %72 = vector.shape_cast %71 : vector<128xf32> to vector<1x128xf32>
    %c0_i32 = arith.constant 0 : i32
    %73 = arith.cmpi eq, %arg1, %c0_i32 : i32
    %74 = arith.extui %73 : i1 to i32
    %c0_i32_76 = arith.constant 0 : i32
    %75 = arith.cmpi ne, %74, %c0_i32_76 : i32
    scf.if %75 {
      %cst_89 = arith.constant 0.000000e+00 : f32
      %88 = vector.broadcast %cst_89 : f32 to vector<1x128xf32>
      %c0_90 = arith.constant 0 : index
      %c0_91 = arith.constant 0 : index
      %c0_92 = arith.constant 0 : index
      %89 = vector.load %arg5[%c0_90, %c0_91, %c0_92] : memref<1x1x128xf32, #tpu.memory_space<vmem>>, vector<1x1x128xf32>
      %90 = vector.shape_cast %89 : vector<1x1x128xf32> to vector<1x128xf32>
      %91 = vector.shape_cast %88 : vector<1x128xf32> to vector<1x1x128xf32>
      tpu.vector_store %arg5[%c0_90, %c0_91, %c0_92], %91 {strides = array<i32>} : memref<1x1x128xf32, #tpu.memory_space<vmem>>, vector<1x1x128xf32>,
      %cst_93 = arith.constant 0.000000e+00 : f32
      %92 = vector.broadcast %cst_93 : f32 to vector<1x128xf32>
      %c0_94 = arith.constant 0 : index
      %c0_95 = arith.constant 0 : index
      %c0_96 = arith.constant 0 : index
      %93 = vector.load %arg6[%c0_94, %c0_95, %c0_96] : memref<1x1x128xf32, #tpu.memory_space<vmem>>, vector<1x1x128xf32>
      %94 = vector.shape_cast %93 : vector<1x1x128xf32> to vector<1x128xf32>
      %95 = vector.shape_cast %92 : vector<1x128xf32> to vector<1x1x128xf32>
      tpu.vector_store %arg6[%c0_94, %c0_95, %c0_96], %95 {strides = array<i32>} : memref<1x1x128xf32, #tpu.memory_space<vmem>>, vector<1x1x128xf32>,
    } else {
    }
    %c0_77 = arith.constant 0 : index
    %c0_78 = arith.constant 0 : index
    %c0_79 = arith.constant 0 : index
    %76 = vector.load %arg5[%c0_77, %c0_78, %c0_79] : memref<1x1x128xf32, #tpu.memory_space<vmem>>, vector<1x1x128xf32>
    %77 = vector.shape_cast %76 : vector<1x1x128xf32> to vector<1x128xf32>
    %78 = arith.addf %77, %69 : vector<1x128xf32>
    %c0_80 = arith.constant 0 : index
    %c0_81 = arith.constant 0 : index
    %c0_82 = arith.constant 0 : index
    %79 = vector.load %arg5[%c0_80, %c0_81, %c0_82] : memref<1x1x128xf32, #tpu.memory_space<vmem>>, vector<1x1x128xf32>
    %80 = vector.shape_cast %79 : vector<1x1x128xf32> to vector<1x128xf32>
    %81 = vector.shape_cast %78 : vector<1x128xf32> to vector<1x1x128xf32>
    tpu.vector_store %arg5[%c0_80, %c0_81, %c0_82], %81 {strides = array<i32>} : memref<1x1x128xf32, #tpu.memory_space<vmem>>, vector<1x1x128xf32>,
    %c0_83 = arith.constant 0 : index
    %c0_84 = arith.constant 0 : index
    %c0_85 = arith.constant 0 : index
    %82 = vector.load %arg6[%c0_83, %c0_84, %c0_85] : memref<1x1x128xf32, #tpu.memory_space<vmem>>, vector<1x1x128xf32>
    %83 = vector.shape_cast %82 : vector<1x1x128xf32> to vector<1x128xf32>
    %84 = arith.addf %83, %72 : vector<1x128xf32>
    %c0_86 = arith.constant 0 : index
    %c0_87 = arith.constant 0 : index
    %c0_88 = arith.constant 0 : index
    %85 = vector.load %arg6[%c0_86, %c0_87, %c0_88] : memref<1x1x128xf32, #tpu.memory_space<vmem>>, vector<1x1x128xf32>
    %86 = vector.shape_cast %85 : vector<1x1x128xf32> to vector<1x128xf32>
    %87 = vector.shape_cast %84 : vector<1x128xf32> to vector<1x1x128xf32>
    tpu.vector_store %arg6[%c0_86, %c0_87, %c0_88], %87 {strides = array<i32>} : memref<1x1x128xf32, #tpu.memory_space<vmem>>, vector<1x1x128xf32>,
    return
  }
  func.func @transform_0(%arg0: i32, %arg1: i32) -> (i32, i32, i32, i32, i32) {
    %c0_i32 = arith.constant 0 : i32
    %c0_i32_0 = arith.constant 0 : i32
    %c0_i32_1 = arith.constant 0 : i32
    %c0_i32_2 = arith.constant 0 : i32
    return %arg0, %arg1, %c0_i32, %c0_i32_0, %c0_i32_1 : i32, i32, i32, i32, i32
  }
  func.func @transform_1(%arg0: i32, %arg1: i32) -> (i32, i32, i32) {
    %c0_i32 = arith.constant 0 : i32
    %c0_i32_0 = arith.constant 0 : i32
    %c0_i32_1 = arith.constant 0 : i32
    return %arg0, %c0_i32, %c0_i32_0 : i32, i32, i32
  }
  func.func @transform_2(%arg0: i32, %arg1: i32) -> (i32, i32, i32, i32) {
    %c0_i32 = arith.constant 0 : i32
    %c0_i32_0 = arith.constant 0 : i32
    %c0_i32_1 = arith.constant 0 : i32
    return %arg0, %arg1, %c0_i32, %c0_i32_0 : i32, i32, i32, i32
  }
  func.func @transform_3(%arg0: i32, %arg1: i32) -> (i32, i32, i32) {
    %c0_i32 = arith.constant 0 : i32
    %c0_i32_0 = arith.constant 0 : i32
    %c0_i32_1 = arith.constant 0 : i32
    return %arg0, %c0_i32, %c0_i32_0 : i32, i32, i32
  }
  func.func @transform_4(%arg0: i32, %arg1: i32) -> (i32, i32, i32) {
    %c0_i32 = arith.constant 0 : i32
    %c0_i32_0 = arith.constant 0 : i32
    %c0_i32_1 = arith.constant 0 : i32
    return %arg0, %c0_i32, %c0_i32_0 : i32, i32, i32
  }
}

module attributes {stable_mosaic.version = 11 : i64} {
  func.func @_conv3x3_stats_kernel(%arg0: i32, %arg1: i32, %arg2: memref<1x1x6x6x128xbf16, #tpu.memory_space<vmem>>, %arg3: memref<1x1152x256xbf16, #tpu.memory_space<vmem>>, %arg4: memref<1x1x16x256xbf16, #tpu.memory_space<vmem>>, %arg5: memref<1x1x256xf32, #tpu.memory_space<vmem>>, %arg6: memref<1x1x256xf32, #tpu.memory_space<vmem>>) attributes {dimension_semantics = [#tpu.dimension_semantics<parallel>, #tpu.dimension_semantics<arbitrary>], iteration_bounds = array<i64: 4, 2>, scalar_prefetch = 0 : i64, scratch_operands = 0 : i64, tpu.core_type = #tpu.core_type<tc>, window_params = [{transform_indices = @transform_0, window_bounds = array<i64: 1, 1, 6, 6, 128>}, {transform_indices = @transform_1, window_bounds = array<i64: 1, 1152, 256>}, {transform_indices = @transform_2, window_bounds = array<i64: 1, 1, 16, 256>}, {transform_indices = @transform_3, window_bounds = array<i64: 1, 1, 256>}, {transform_indices = @transform_4, window_bounds = array<i64: 1, 1, 256>}]} {
    %cst = arith.constant 0.000000e+00 : f32
    %0 = vector.broadcast %cst : f32 to vector<16x256xf32>
    %c0 = arith.constant 0 : index
    %c0_0 = arith.constant 0 : index
    %c0_1 = arith.constant 0 : index
    %c0_2 = arith.constant 0 : index
    %c0_3 = arith.constant 0 : index
    %1 = vector.load %arg2[%c0, %c0_0, %c0_1, %c0_2, %c0_3] : memref<1x1x6x6x128xbf16, #tpu.memory_space<vmem>>, vector<1x1x4x4x128xbf16>
    %2 = vector.shape_cast %1 : vector<1x1x4x4x128xbf16> to vector<4x4x128xbf16>
    %3 = vector.shape_cast %2 : vector<4x4x128xbf16> to vector<16x128xbf16>
    %c0_4 = arith.constant 0 : index
    %c0_5 = arith.constant 0 : index
    %c0_6 = arith.constant 0 : index
    %4 = vector.load %arg3[%c0_4, %c0_5, %c0_6] : memref<1x1152x256xbf16, #tpu.memory_space<vmem>>, vector<1x128x256xbf16>
    %5 = vector.shape_cast %4 : vector<1x128x256xbf16> to vector<128x256xbf16>
    %cst_7 = arith.constant dense<0.000000e+00> : vector<16x256xf32>
    %6 = tpu.matmul %3, %5, %cst_7 {dimension_numbers = #tpu.dot_dimension_numbers<[1], [0], [0], [1], [0, 0, 1, 1], [], []>} : vector<16x128xbf16>, vector<128x256xbf16>, vector<16x256xf32> -> vector<16x256xf32>
    %7 = arith.addf %0, %6 : vector<16x256xf32>
    %c0_8 = arith.constant 0 : index
    %c0_9 = arith.constant 0 : index
    %c0_10 = arith.constant 0 : index
    %c1 = arith.constant 1 : index
    %c0_11 = arith.constant 0 : index
    %8 = vector.load %arg2[%c0_8, %c0_9, %c0_10, %c1, %c0_11] : memref<1x1x6x6x128xbf16, #tpu.memory_space<vmem>>, vector<1x1x4x4x128xbf16>
    %9 = vector.shape_cast %8 : vector<1x1x4x4x128xbf16> to vector<4x4x128xbf16>
    %10 = vector.shape_cast %9 : vector<4x4x128xbf16> to vector<16x128xbf16>
    %c0_12 = arith.constant 0 : index
    %c128 = arith.constant 128 : index
    %c0_13 = arith.constant 0 : index
    %11 = vector.load %arg3[%c0_12, %c128, %c0_13] : memref<1x1152x256xbf16, #tpu.memory_space<vmem>>, vector<1x128x256xbf16>
    %12 = vector.shape_cast %11 : vector<1x128x256xbf16> to vector<128x256xbf16>
    %cst_14 = arith.constant dense<0.000000e+00> : vector<16x256xf32>
    %13 = tpu.matmul %10, %12, %cst_14 {dimension_numbers = #tpu.dot_dimension_numbers<[1], [0], [0], [1], [0, 0, 1, 1], [], []>} : vector<16x128xbf16>, vector<128x256xbf16>, vector<16x256xf32> -> vector<16x256xf32>
    %14 = arith.addf %7, %13 : vector<16x256xf32>
    %c0_15 = arith.constant 0 : index
    %c0_16 = arith.constant 0 : index
    %c0_17 = arith.constant 0 : index
    %c2 = arith.constant 2 : index
    %c0_18 = arith.constant 0 : index
    %15 = vector.load %arg2[%c0_15, %c0_16, %c0_17, %c2, %c0_18] : memref<1x1x6x6x128xbf16, #tpu.memory_space<vmem>>, vector<1x1x4x4x128xbf16>
    %16 = vector.shape_cast %15 : vector<1x1x4x4x128xbf16> to vector<4x4x128xbf16>
    %17 = vector.shape_cast %16 : vector<4x4x128xbf16> to vector<16x128xbf16>
    %c0_19 = arith.constant 0 : index
    %c256 = arith.constant 256 : index
    %c0_20 = arith.constant 0 : index
    %18 = vector.load %arg3[%c0_19, %c256, %c0_20] : memref<1x1152x256xbf16, #tpu.memory_space<vmem>>, vector<1x128x256xbf16>
    %19 = vector.shape_cast %18 : vector<1x128x256xbf16> to vector<128x256xbf16>
    %cst_21 = arith.constant dense<0.000000e+00> : vector<16x256xf32>
    %20 = tpu.matmul %17, %19, %cst_21 {dimension_numbers = #tpu.dot_dimension_numbers<[1], [0], [0], [1], [0, 0, 1, 1], [], []>} : vector<16x128xbf16>, vector<128x256xbf16>, vector<16x256xf32> -> vector<16x256xf32>
    %21 = arith.addf %14, %20 : vector<16x256xf32>
    %c0_22 = arith.constant 0 : index
    %c0_23 = arith.constant 0 : index
    %c1_24 = arith.constant 1 : index
    %c0_25 = arith.constant 0 : index
    %c0_26 = arith.constant 0 : index
    %22 = vector.load %arg2[%c0_22, %c0_23, %c1_24, %c0_25, %c0_26] : memref<1x1x6x6x128xbf16, #tpu.memory_space<vmem>>, vector<1x1x4x4x128xbf16>
    %23 = vector.shape_cast %22 : vector<1x1x4x4x128xbf16> to vector<4x4x128xbf16>
    %24 = vector.shape_cast %23 : vector<4x4x128xbf16> to vector<16x128xbf16>
    %c0_27 = arith.constant 0 : index
    %c384 = arith.constant 384 : index
    %c0_28 = arith.constant 0 : index
    %25 = vector.load %arg3[%c0_27, %c384, %c0_28] : memref<1x1152x256xbf16, #tpu.memory_space<vmem>>, vector<1x128x256xbf16>
    %26 = vector.shape_cast %25 : vector<1x128x256xbf16> to vector<128x256xbf16>
    %cst_29 = arith.constant dense<0.000000e+00> : vector<16x256xf32>
    %27 = tpu.matmul %24, %26, %cst_29 {dimension_numbers = #tpu.dot_dimension_numbers<[1], [0], [0], [1], [0, 0, 1, 1], [], []>} : vector<16x128xbf16>, vector<128x256xbf16>, vector<16x256xf32> -> vector<16x256xf32>
    %28 = arith.addf %21, %27 : vector<16x256xf32>
    %c0_30 = arith.constant 0 : index
    %c0_31 = arith.constant 0 : index
    %c1_32 = arith.constant 1 : index
    %c1_33 = arith.constant 1 : index
    %c0_34 = arith.constant 0 : index
    %29 = vector.load %arg2[%c0_30, %c0_31, %c1_32, %c1_33, %c0_34] : memref<1x1x6x6x128xbf16, #tpu.memory_space<vmem>>, vector<1x1x4x4x128xbf16>
    %30 = vector.shape_cast %29 : vector<1x1x4x4x128xbf16> to vector<4x4x128xbf16>
    %31 = vector.shape_cast %30 : vector<4x4x128xbf16> to vector<16x128xbf16>
    %c0_35 = arith.constant 0 : index
    %c512 = arith.constant 512 : index
    %c0_36 = arith.constant 0 : index
    %32 = vector.load %arg3[%c0_35, %c512, %c0_36] : memref<1x1152x256xbf16, #tpu.memory_space<vmem>>, vector<1x128x256xbf16>
    %33 = vector.shape_cast %32 : vector<1x128x256xbf16> to vector<128x256xbf16>
    %cst_37 = arith.constant dense<0.000000e+00> : vector<16x256xf32>
    %34 = tpu.matmul %31, %33, %cst_37 {dimension_numbers = #tpu.dot_dimension_numbers<[1], [0], [0], [1], [0, 0, 1, 1], [], []>} : vector<16x128xbf16>, vector<128x256xbf16>, vector<16x256xf32> -> vector<16x256xf32>
    %35 = arith.addf %28, %34 : vector<16x256xf32>
    %c0_38 = arith.constant 0 : index
    %c0_39 = arith.constant 0 : index
    %c1_40 = arith.constant 1 : index
    %c2_41 = arith.constant 2 : index
    %c0_42 = arith.constant 0 : index
    %36 = vector.load %arg2[%c0_38, %c0_39, %c1_40, %c2_41, %c0_42] : memref<1x1x6x6x128xbf16, #tpu.memory_space<vmem>>, vector<1x1x4x4x128xbf16>
    %37 = vector.shape_cast %36 : vector<1x1x4x4x128xbf16> to vector<4x4x128xbf16>
    %38 = vector.shape_cast %37 : vector<4x4x128xbf16> to vector<16x128xbf16>
    %c0_43 = arith.constant 0 : index
    %c640 = arith.constant 640 : index
    %c0_44 = arith.constant 0 : index
    %39 = vector.load %arg3[%c0_43, %c640, %c0_44] : memref<1x1152x256xbf16, #tpu.memory_space<vmem>>, vector<1x128x256xbf16>
    %40 = vector.shape_cast %39 : vector<1x128x256xbf16> to vector<128x256xbf16>
    %cst_45 = arith.constant dense<0.000000e+00> : vector<16x256xf32>
    %41 = tpu.matmul %38, %40, %cst_45 {dimension_numbers = #tpu.dot_dimension_numbers<[1], [0], [0], [1], [0, 0, 1, 1], [], []>} : vector<16x128xbf16>, vector<128x256xbf16>, vector<16x256xf32> -> vector<16x256xf32>
    %42 = arith.addf %35, %41 : vector<16x256xf32>
    %c0_46 = arith.constant 0 : index
    %c0_47 = arith.constant 0 : index
    %c2_48 = arith.constant 2 : index
    %c0_49 = arith.constant 0 : index
    %c0_50 = arith.constant 0 : index
    %43 = vector.load %arg2[%c0_46, %c0_47, %c2_48, %c0_49, %c0_50] : memref<1x1x6x6x128xbf16, #tpu.memory_space<vmem>>, vector<1x1x4x4x128xbf16>
    %44 = vector.shape_cast %43 : vector<1x1x4x4x128xbf16> to vector<4x4x128xbf16>
    %45 = vector.shape_cast %44 : vector<4x4x128xbf16> to vector<16x128xbf16>
    %c0_51 = arith.constant 0 : index
    %c768 = arith.constant 768 : index
    %c0_52 = arith.constant 0 : index
    %46 = vector.load %arg3[%c0_51, %c768, %c0_52] : memref<1x1152x256xbf16, #tpu.memory_space<vmem>>, vector<1x128x256xbf16>
    %47 = vector.shape_cast %46 : vector<1x128x256xbf16> to vector<128x256xbf16>
    %cst_53 = arith.constant dense<0.000000e+00> : vector<16x256xf32>
    %48 = tpu.matmul %45, %47, %cst_53 {dimension_numbers = #tpu.dot_dimension_numbers<[1], [0], [0], [1], [0, 0, 1, 1], [], []>} : vector<16x128xbf16>, vector<128x256xbf16>, vector<16x256xf32> -> vector<16x256xf32>
    %49 = arith.addf %42, %48 : vector<16x256xf32>
    %c0_54 = arith.constant 0 : index
    %c0_55 = arith.constant 0 : index
    %c2_56 = arith.constant 2 : index
    %c1_57 = arith.constant 1 : index
    %c0_58 = arith.constant 0 : index
    %50 = vector.load %arg2[%c0_54, %c0_55, %c2_56, %c1_57, %c0_58] : memref<1x1x6x6x128xbf16, #tpu.memory_space<vmem>>, vector<1x1x4x4x128xbf16>
    %51 = vector.shape_cast %50 : vector<1x1x4x4x128xbf16> to vector<4x4x128xbf16>
    %52 = vector.shape_cast %51 : vector<4x4x128xbf16> to vector<16x128xbf16>
    %c0_59 = arith.constant 0 : index
    %c896 = arith.constant 896 : index
    %c0_60 = arith.constant 0 : index
    %53 = vector.load %arg3[%c0_59, %c896, %c0_60] : memref<1x1152x256xbf16, #tpu.memory_space<vmem>>, vector<1x128x256xbf16>
    %54 = vector.shape_cast %53 : vector<1x128x256xbf16> to vector<128x256xbf16>
    %cst_61 = arith.constant dense<0.000000e+00> : vector<16x256xf32>
    %55 = tpu.matmul %52, %54, %cst_61 {dimension_numbers = #tpu.dot_dimension_numbers<[1], [0], [0], [1], [0, 0, 1, 1], [], []>} : vector<16x128xbf16>, vector<128x256xbf16>, vector<16x256xf32> -> vector<16x256xf32>
    %56 = arith.addf %49, %55 : vector<16x256xf32>
    %c0_62 = arith.constant 0 : index
    %c0_63 = arith.constant 0 : index
    %c2_64 = arith.constant 2 : index
    %c2_65 = arith.constant 2 : index
    %c0_66 = arith.constant 0 : index
    %57 = vector.load %arg2[%c0_62, %c0_63, %c2_64, %c2_65, %c0_66] : memref<1x1x6x6x128xbf16, #tpu.memory_space<vmem>>, vector<1x1x4x4x128xbf16>
    %58 = vector.shape_cast %57 : vector<1x1x4x4x128xbf16> to vector<4x4x128xbf16>
    %59 = vector.shape_cast %58 : vector<4x4x128xbf16> to vector<16x128xbf16>
    %c0_67 = arith.constant 0 : index
    %c1024 = arith.constant 1024 : index
    %c0_68 = arith.constant 0 : index
    %60 = vector.load %arg3[%c0_67, %c1024, %c0_68] : memref<1x1152x256xbf16, #tpu.memory_space<vmem>>, vector<1x128x256xbf16>
    %61 = vector.shape_cast %60 : vector<1x128x256xbf16> to vector<128x256xbf16>
    %cst_69 = arith.constant dense<0.000000e+00> : vector<16x256xf32>
    %62 = tpu.matmul %59, %61, %cst_69 {dimension_numbers = #tpu.dot_dimension_numbers<[1], [0], [0], [1], [0, 0, 1, 1], [], []>} : vector<16x128xbf16>, vector<128x256xbf16>, vector<16x256xf32> -> vector<16x256xf32>
    %63 = arith.addf %56, %62 : vector<16x256xf32>
    %64 = arith.truncf %63 : vector<16x256xf32> to vector<16x256xbf16>
    %c0_70 = arith.constant 0 : index
    %c0_71 = arith.constant 0 : index
    %c0_72 = arith.constant 0 : index
    %c0_73 = arith.constant 0 : index
    %65 = vector.load %arg4[%c0_70, %c0_71, %c0_72, %c0_73] : memref<1x1x16x256xbf16, #tpu.memory_space<vmem>>, vector<1x1x16x256xbf16>
    %66 = vector.shape_cast %65 : vector<1x1x16x256xbf16> to vector<16x256xbf16>
    %67 = vector.shape_cast %64 : vector<16x256xbf16> to vector<1x1x16x256xbf16>
    tpu.vector_store %arg4[%c0_70, %c0_71, %c0_72, %c0_73], %67 {strides = array<i32>} : memref<1x1x16x256xbf16, #tpu.memory_space<vmem>>, vector<1x1x16x256xbf16>,
    %cst_74 = arith.constant dense<0.000000e+00> : vector<256xf32>
    %68 = vector.multi_reduction <add>, %63, %cst_74 [0] : vector<16x256xf32> to vector<256xf32>
    %69 = vector.shape_cast %68 : vector<256xf32> to vector<1x256xf32>
    %70 = arith.mulf %63, %63 : vector<16x256xf32>
    %cst_75 = arith.constant dense<0.000000e+00> : vector<256xf32>
    %71 = vector.multi_reduction <add>, %70, %cst_75 [0] : vector<16x256xf32> to vector<256xf32>
    %72 = vector.shape_cast %71 : vector<256xf32> to vector<1x256xf32>
    %c0_i32 = arith.constant 0 : i32
    %73 = arith.cmpi eq, %arg1, %c0_i32 : i32
    %74 = arith.extui %73 : i1 to i32
    %c0_i32_76 = arith.constant 0 : i32
    %75 = arith.cmpi ne, %74, %c0_i32_76 : i32
    scf.if %75 {
      %cst_89 = arith.constant 0.000000e+00 : f32
      %88 = vector.broadcast %cst_89 : f32 to vector<1x256xf32>
      %c0_90 = arith.constant 0 : index
      %c0_91 = arith.constant 0 : index
      %c0_92 = arith.constant 0 : index
      %89 = vector.load %arg5[%c0_90, %c0_91, %c0_92] : memref<1x1x256xf32, #tpu.memory_space<vmem>>, vector<1x1x256xf32>
      %90 = vector.shape_cast %89 : vector<1x1x256xf32> to vector<1x256xf32>
      %91 = vector.shape_cast %88 : vector<1x256xf32> to vector<1x1x256xf32>
      tpu.vector_store %arg5[%c0_90, %c0_91, %c0_92], %91 {strides = array<i32>} : memref<1x1x256xf32, #tpu.memory_space<vmem>>, vector<1x1x256xf32>,
      %cst_93 = arith.constant 0.000000e+00 : f32
      %92 = vector.broadcast %cst_93 : f32 to vector<1x256xf32>
      %c0_94 = arith.constant 0 : index
      %c0_95 = arith.constant 0 : index
      %c0_96 = arith.constant 0 : index
      %93 = vector.load %arg6[%c0_94, %c0_95, %c0_96] : memref<1x1x256xf32, #tpu.memory_space<vmem>>, vector<1x1x256xf32>
      %94 = vector.shape_cast %93 : vector<1x1x256xf32> to vector<1x256xf32>
      %95 = vector.shape_cast %92 : vector<1x256xf32> to vector<1x1x256xf32>
      tpu.vector_store %arg6[%c0_94, %c0_95, %c0_96], %95 {strides = array<i32>} : memref<1x1x256xf32, #tpu.memory_space<vmem>>, vector<1x1x256xf32>,
    } else {
    }
    %c0_77 = arith.constant 0 : index
    %c0_78 = arith.constant 0 : index
    %c0_79 = arith.constant 0 : index
    %76 = vector.load %arg5[%c0_77, %c0_78, %c0_79] : memref<1x1x256xf32, #tpu.memory_space<vmem>>, vector<1x1x256xf32>
    %77 = vector.shape_cast %76 : vector<1x1x256xf32> to vector<1x256xf32>
    %78 = arith.addf %77, %69 : vector<1x256xf32>
    %c0_80 = arith.constant 0 : index
    %c0_81 = arith.constant 0 : index
    %c0_82 = arith.constant 0 : index
    %79 = vector.load %arg5[%c0_80, %c0_81, %c0_82] : memref<1x1x256xf32, #tpu.memory_space<vmem>>, vector<1x1x256xf32>
    %80 = vector.shape_cast %79 : vector<1x1x256xf32> to vector<1x256xf32>
    %81 = vector.shape_cast %78 : vector<1x256xf32> to vector<1x1x256xf32>
    tpu.vector_store %arg5[%c0_80, %c0_81, %c0_82], %81 {strides = array<i32>} : memref<1x1x256xf32, #tpu.memory_space<vmem>>, vector<1x1x256xf32>,
    %c0_83 = arith.constant 0 : index
    %c0_84 = arith.constant 0 : index
    %c0_85 = arith.constant 0 : index
    %82 = vector.load %arg6[%c0_83, %c0_84, %c0_85] : memref<1x1x256xf32, #tpu.memory_space<vmem>>, vector<1x1x256xf32>
    %83 = vector.shape_cast %82 : vector<1x1x256xf32> to vector<1x256xf32>
    %84 = arith.addf %83, %72 : vector<1x256xf32>
    %c0_86 = arith.constant 0 : index
    %c0_87 = arith.constant 0 : index
    %c0_88 = arith.constant 0 : index
    %85 = vector.load %arg6[%c0_86, %c0_87, %c0_88] : memref<1x1x256xf32, #tpu.memory_space<vmem>>, vector<1x1x256xf32>
    %86 = vector.shape_cast %85 : vector<1x1x256xf32> to vector<1x256xf32>
    %87 = vector.shape_cast %84 : vector<1x256xf32> to vector<1x1x256xf32>
    tpu.vector_store %arg6[%c0_86, %c0_87, %c0_88], %87 {strides = array<i32>} : memref<1x1x256xf32, #tpu.memory_space<vmem>>, vector<1x1x256xf32>,
    return
  }
  func.func @transform_0(%arg0: i32, %arg1: i32) -> (i32, i32, i32, i32, i32) {
    %c0_i32 = arith.constant 0 : i32
    %c0_i32_0 = arith.constant 0 : i32
    %c0_i32_1 = arith.constant 0 : i32
    %c0_i32_2 = arith.constant 0 : i32
    return %arg0, %arg1, %c0_i32, %c0_i32_0, %c0_i32_1 : i32, i32, i32, i32, i32
  }
  func.func @transform_1(%arg0: i32, %arg1: i32) -> (i32, i32, i32) {
    %c0_i32 = arith.constant 0 : i32
    %c0_i32_0 = arith.constant 0 : i32
    %c0_i32_1 = arith.constant 0 : i32
    return %arg0, %c0_i32, %c0_i32_0 : i32, i32, i32
  }
  func.func @transform_2(%arg0: i32, %arg1: i32) -> (i32, i32, i32, i32) {
    %c0_i32 = arith.constant 0 : i32
    %c0_i32_0 = arith.constant 0 : i32
    %c0_i32_1 = arith.constant 0 : i32
    return %arg0, %arg1, %c0_i32, %c0_i32_0 : i32, i32, i32, i32
  }
  func.func @transform_3(%arg0: i32, %arg1: i32) -> (i32, i32, i32) {
    %c0_i32 = arith.constant 0 : i32
    %c0_i32_0 = arith.constant 0 : i32
    %c0_i32_1 = arith.constant 0 : i32
    return %arg0, %c0_i32, %c0_i32_0 : i32, i32, i32
  }
  func.func @transform_4(%arg0: i32, %arg1: i32) -> (i32, i32, i32) {
    %c0_i32 = arith.constant 0 : i32
    %c0_i32_0 = arith.constant 0 : i32
    %c0_i32_1 = arith.constant 0 : i32
    return %arg0, %c0_i32, %c0_i32_0 : i32, i32, i32
  }
}

module attributes {stable_mosaic.version = 11 : i64} {
  func.func @_conv3x3_stats_kernel(%arg0: i32, %arg1: i32, %arg2: memref<1x1x4x4x256xbf16, #tpu.memory_space<vmem>>, %arg3: memref<1x2304x128xbf16, #tpu.memory_space<vmem>>, %arg4: memref<1x1x4x128xbf16, #tpu.memory_space<vmem>>, %arg5: memref<1x1x128xf32, #tpu.memory_space<vmem>>, %arg6: memref<1x1x128xf32, #tpu.memory_space<vmem>>) attributes {dimension_semantics = [#tpu.dimension_semantics<parallel>, #tpu.dimension_semantics<arbitrary>], iteration_bounds = array<i64: 4, 2>, scalar_prefetch = 0 : i64, scratch_operands = 0 : i64, tpu.core_type = #tpu.core_type<tc>, window_params = [{transform_indices = @transform_0, window_bounds = array<i64: 1, 1, 4, 4, 256>}, {transform_indices = @transform_1, window_bounds = array<i64: 1, 2304, 128>}, {transform_indices = @transform_2, window_bounds = array<i64: 1, 1, 4, 128>}, {transform_indices = @transform_3, window_bounds = array<i64: 1, 1, 128>}, {transform_indices = @transform_4, window_bounds = array<i64: 1, 1, 128>}]} {
    %cst = arith.constant 0.000000e+00 : f32
    %0 = vector.broadcast %cst : f32 to vector<4x128xf32>
    %c0 = arith.constant 0 : index
    %c0_0 = arith.constant 0 : index
    %c0_1 = arith.constant 0 : index
    %c0_2 = arith.constant 0 : index
    %c0_3 = arith.constant 0 : index
    %1 = vector.load %arg2[%c0, %c0_0, %c0_1, %c0_2, %c0_3] : memref<1x1x4x4x256xbf16, #tpu.memory_space<vmem>>, vector<1x1x2x2x256xbf16>
    %2 = vector.shape_cast %1 : vector<1x1x2x2x256xbf16> to vector<2x2x256xbf16>
    %3 = vector.shape_cast %2 : vector<2x2x256xbf16> to vector<4x256xbf16>
    %c0_4 = arith.constant 0 : index
    %c0_5 = arith.constant 0 : index
    %c0_6 = arith.constant 0 : index
    %4 = vector.load %arg3[%c0_4, %c0_5, %c0_6] : memref<1x2304x128xbf16, #tpu.memory_space<vmem>>, vector<1x256x128xbf16>
    %5 = vector.shape_cast %4 : vector<1x256x128xbf16> to vector<256x128xbf16>
    %cst_7 = arith.constant dense<0.000000e+00> : vector<4x128xf32>
    %6 = tpu.matmul %3, %5, %cst_7 {dimension_numbers = #tpu.dot_dimension_numbers<[1], [0], [0], [1], [0, 0, 1, 1], [], []>} : vector<4x256xbf16>, vector<256x128xbf16>, vector<4x128xf32> -> vector<4x128xf32>
    %7 = arith.addf %0, %6 : vector<4x128xf32>
    %c0_8 = arith.constant 0 : index
    %c0_9 = arith.constant 0 : index
    %c0_10 = arith.constant 0 : index
    %c1 = arith.constant 1 : index
    %c0_11 = arith.constant 0 : index
    %8 = vector.load %arg2[%c0_8, %c0_9, %c0_10, %c1, %c0_11] : memref<1x1x4x4x256xbf16, #tpu.memory_space<vmem>>, vector<1x1x2x2x256xbf16>
    %9 = vector.shape_cast %8 : vector<1x1x2x2x256xbf16> to vector<2x2x256xbf16>
    %10 = vector.shape_cast %9 : vector<2x2x256xbf16> to vector<4x256xbf16>
    %c0_12 = arith.constant 0 : index
    %c256 = arith.constant 256 : index
    %c0_13 = arith.constant 0 : index
    %11 = vector.load %arg3[%c0_12, %c256, %c0_13] : memref<1x2304x128xbf16, #tpu.memory_space<vmem>>, vector<1x256x128xbf16>
    %12 = vector.shape_cast %11 : vector<1x256x128xbf16> to vector<256x128xbf16>
    %cst_14 = arith.constant dense<0.000000e+00> : vector<4x128xf32>
    %13 = tpu.matmul %10, %12, %cst_14 {dimension_numbers = #tpu.dot_dimension_numbers<[1], [0], [0], [1], [0, 0, 1, 1], [], []>} : vector<4x256xbf16>, vector<256x128xbf16>, vector<4x128xf32> -> vector<4x128xf32>
    %14 = arith.addf %7, %13 : vector<4x128xf32>
    %c0_15 = arith.constant 0 : index
    %c0_16 = arith.constant 0 : index
    %c0_17 = arith.constant 0 : index
    %c2 = arith.constant 2 : index
    %c0_18 = arith.constant 0 : index
    %15 = vector.load %arg2[%c0_15, %c0_16, %c0_17, %c2, %c0_18] : memref<1x1x4x4x256xbf16, #tpu.memory_space<vmem>>, vector<1x1x2x2x256xbf16>
    %16 = vector.shape_cast %15 : vector<1x1x2x2x256xbf16> to vector<2x2x256xbf16>
    %17 = vector.shape_cast %16 : vector<2x2x256xbf16> to vector<4x256xbf16>
    %c0_19 = arith.constant 0 : index
    %c512 = arith.constant 512 : index
    %c0_20 = arith.constant 0 : index
    %18 = vector.load %arg3[%c0_19, %c512, %c0_20] : memref<1x2304x128xbf16, #tpu.memory_space<vmem>>, vector<1x256x128xbf16>
    %19 = vector.shape_cast %18 : vector<1x256x128xbf16> to vector<256x128xbf16>
    %cst_21 = arith.constant dense<0.000000e+00> : vector<4x128xf32>
    %20 = tpu.matmul %17, %19, %cst_21 {dimension_numbers = #tpu.dot_dimension_numbers<[1], [0], [0], [1], [0, 0, 1, 1], [], []>} : vector<4x256xbf16>, vector<256x128xbf16>, vector<4x128xf32> -> vector<4x128xf32>
    %21 = arith.addf %14, %20 : vector<4x128xf32>
    %c0_22 = arith.constant 0 : index
    %c0_23 = arith.constant 0 : index
    %c1_24 = arith.constant 1 : index
    %c0_25 = arith.constant 0 : index
    %c0_26 = arith.constant 0 : index
    %22 = vector.load %arg2[%c0_22, %c0_23, %c1_24, %c0_25, %c0_26] : memref<1x1x4x4x256xbf16, #tpu.memory_space<vmem>>, vector<1x1x2x2x256xbf16>
    %23 = vector.shape_cast %22 : vector<1x1x2x2x256xbf16> to vector<2x2x256xbf16>
    %24 = vector.shape_cast %23 : vector<2x2x256xbf16> to vector<4x256xbf16>
    %c0_27 = arith.constant 0 : index
    %c768 = arith.constant 768 : index
    %c0_28 = arith.constant 0 : index
    %25 = vector.load %arg3[%c0_27, %c768, %c0_28] : memref<1x2304x128xbf16, #tpu.memory_space<vmem>>, vector<1x256x128xbf16>
    %26 = vector.shape_cast %25 : vector<1x256x128xbf16> to vector<256x128xbf16>
    %cst_29 = arith.constant dense<0.000000e+00> : vector<4x128xf32>
    %27 = tpu.matmul %24, %26, %cst_29 {dimension_numbers = #tpu.dot_dimension_numbers<[1], [0], [0], [1], [0, 0, 1, 1], [], []>} : vector<4x256xbf16>, vector<256x128xbf16>, vector<4x128xf32> -> vector<4x128xf32>
    %28 = arith.addf %21, %27 : vector<4x128xf32>
    %c0_30 = arith.constant 0 : index
    %c0_31 = arith.constant 0 : index
    %c1_32 = arith.constant 1 : index
    %c1_33 = arith.constant 1 : index
    %c0_34 = arith.constant 0 : index
    %29 = vector.load %arg2[%c0_30, %c0_31, %c1_32, %c1_33, %c0_34] : memref<1x1x4x4x256xbf16, #tpu.memory_space<vmem>>, vector<1x1x2x2x256xbf16>
    %30 = vector.shape_cast %29 : vector<1x1x2x2x256xbf16> to vector<2x2x256xbf16>
    %31 = vector.shape_cast %30 : vector<2x2x256xbf16> to vector<4x256xbf16>
    %c0_35 = arith.constant 0 : index
    %c1024 = arith.constant 1024 : index
    %c0_36 = arith.constant 0 : index
    %32 = vector.load %arg3[%c0_35, %c1024, %c0_36] : memref<1x2304x128xbf16, #tpu.memory_space<vmem>>, vector<1x256x128xbf16>
    %33 = vector.shape_cast %32 : vector<1x256x128xbf16> to vector<256x128xbf16>
    %cst_37 = arith.constant dense<0.000000e+00> : vector<4x128xf32>
    %34 = tpu.matmul %31, %33, %cst_37 {dimension_numbers = #tpu.dot_dimension_numbers<[1], [0], [0], [1], [0, 0, 1, 1], [], []>} : vector<4x256xbf16>, vector<256x128xbf16>, vector<4x128xf32> -> vector<4x128xf32>
    %35 = arith.addf %28, %34 : vector<4x128xf32>
    %c0_38 = arith.constant 0 : index
    %c0_39 = arith.constant 0 : index
    %c1_40 = arith.constant 1 : index
    %c2_41 = arith.constant 2 : index
    %c0_42 = arith.constant 0 : index
    %36 = vector.load %arg2[%c0_38, %c0_39, %c1_40, %c2_41, %c0_42] : memref<1x1x4x4x256xbf16, #tpu.memory_space<vmem>>, vector<1x1x2x2x256xbf16>
    %37 = vector.shape_cast %36 : vector<1x1x2x2x256xbf16> to vector<2x2x256xbf16>
    %38 = vector.shape_cast %37 : vector<2x2x256xbf16> to vector<4x256xbf16>
    %c0_43 = arith.constant 0 : index
    %c1280 = arith.constant 1280 : index
    %c0_44 = arith.constant 0 : index
    %39 = vector.load %arg3[%c0_43, %c1280, %c0_44] : memref<1x2304x128xbf16, #tpu.memory_space<vmem>>, vector<1x256x128xbf16>
    %40 = vector.shape_cast %39 : vector<1x256x128xbf16> to vector<256x128xbf16>
    %cst_45 = arith.constant dense<0.000000e+00> : vector<4x128xf32>
    %41 = tpu.matmul %38, %40, %cst_45 {dimension_numbers = #tpu.dot_dimension_numbers<[1], [0], [0], [1], [0, 0, 1, 1], [], []>} : vector<4x256xbf16>, vector<256x128xbf16>, vector<4x128xf32> -> vector<4x128xf32>
    %42 = arith.addf %35, %41 : vector<4x128xf32>
    %c0_46 = arith.constant 0 : index
    %c0_47 = arith.constant 0 : index
    %c2_48 = arith.constant 2 : index
    %c0_49 = arith.constant 0 : index
    %c0_50 = arith.constant 0 : index
    %43 = vector.load %arg2[%c0_46, %c0_47, %c2_48, %c0_49, %c0_50] : memref<1x1x4x4x256xbf16, #tpu.memory_space<vmem>>, vector<1x1x2x2x256xbf16>
    %44 = vector.shape_cast %43 : vector<1x1x2x2x256xbf16> to vector<2x2x256xbf16>
    %45 = vector.shape_cast %44 : vector<2x2x256xbf16> to vector<4x256xbf16>
    %c0_51 = arith.constant 0 : index
    %c1536 = arith.constant 1536 : index
    %c0_52 = arith.constant 0 : index
    %46 = vector.load %arg3[%c0_51, %c1536, %c0_52] : memref<1x2304x128xbf16, #tpu.memory_space<vmem>>, vector<1x256x128xbf16>
    %47 = vector.shape_cast %46 : vector<1x256x128xbf16> to vector<256x128xbf16>
    %cst_53 = arith.constant dense<0.000000e+00> : vector<4x128xf32>
    %48 = tpu.matmul %45, %47, %cst_53 {dimension_numbers = #tpu.dot_dimension_numbers<[1], [0], [0], [1], [0, 0, 1, 1], [], []>} : vector<4x256xbf16>, vector<256x128xbf16>, vector<4x128xf32> -> vector<4x128xf32>
    %49 = arith.addf %42, %48 : vector<4x128xf32>
    %c0_54 = arith.constant 0 : index
    %c0_55 = arith.constant 0 : index
    %c2_56 = arith.constant 2 : index
    %c1_57 = arith.constant 1 : index
    %c0_58 = arith.constant 0 : index
    %50 = vector.load %arg2[%c0_54, %c0_55, %c2_56, %c1_57, %c0_58] : memref<1x1x4x4x256xbf16, #tpu.memory_space<vmem>>, vector<1x1x2x2x256xbf16>
    %51 = vector.shape_cast %50 : vector<1x1x2x2x256xbf16> to vector<2x2x256xbf16>
    %52 = vector.shape_cast %51 : vector<2x2x256xbf16> to vector<4x256xbf16>
    %c0_59 = arith.constant 0 : index
    %c1792 = arith.constant 1792 : index
    %c0_60 = arith.constant 0 : index
    %53 = vector.load %arg3[%c0_59, %c1792, %c0_60] : memref<1x2304x128xbf16, #tpu.memory_space<vmem>>, vector<1x256x128xbf16>
    %54 = vector.shape_cast %53 : vector<1x256x128xbf16> to vector<256x128xbf16>
    %cst_61 = arith.constant dense<0.000000e+00> : vector<4x128xf32>
    %55 = tpu.matmul %52, %54, %cst_61 {dimension_numbers = #tpu.dot_dimension_numbers<[1], [0], [0], [1], [0, 0, 1, 1], [], []>} : vector<4x256xbf16>, vector<256x128xbf16>, vector<4x128xf32> -> vector<4x128xf32>
    %56 = arith.addf %49, %55 : vector<4x128xf32>
    %c0_62 = arith.constant 0 : index
    %c0_63 = arith.constant 0 : index
    %c2_64 = arith.constant 2 : index
    %c2_65 = arith.constant 2 : index
    %c0_66 = arith.constant 0 : index
    %57 = vector.load %arg2[%c0_62, %c0_63, %c2_64, %c2_65, %c0_66] : memref<1x1x4x4x256xbf16, #tpu.memory_space<vmem>>, vector<1x1x2x2x256xbf16>
    %58 = vector.shape_cast %57 : vector<1x1x2x2x256xbf16> to vector<2x2x256xbf16>
    %59 = vector.shape_cast %58 : vector<2x2x256xbf16> to vector<4x256xbf16>
    %c0_67 = arith.constant 0 : index
    %c2048 = arith.constant 2048 : index
    %c0_68 = arith.constant 0 : index
    %60 = vector.load %arg3[%c0_67, %c2048, %c0_68] : memref<1x2304x128xbf16, #tpu.memory_space<vmem>>, vector<1x256x128xbf16>
    %61 = vector.shape_cast %60 : vector<1x256x128xbf16> to vector<256x128xbf16>
    %cst_69 = arith.constant dense<0.000000e+00> : vector<4x128xf32>
    %62 = tpu.matmul %59, %61, %cst_69 {dimension_numbers = #tpu.dot_dimension_numbers<[1], [0], [0], [1], [0, 0, 1, 1], [], []>} : vector<4x256xbf16>, vector<256x128xbf16>, vector<4x128xf32> -> vector<4x128xf32>
    %63 = arith.addf %56, %62 : vector<4x128xf32>
    %64 = arith.truncf %63 : vector<4x128xf32> to vector<4x128xbf16>
    %c0_70 = arith.constant 0 : index
    %c0_71 = arith.constant 0 : index
    %c0_72 = arith.constant 0 : index
    %c0_73 = arith.constant 0 : index
    %65 = vector.load %arg4[%c0_70, %c0_71, %c0_72, %c0_73] : memref<1x1x4x128xbf16, #tpu.memory_space<vmem>>, vector<1x1x4x128xbf16>
    %66 = vector.shape_cast %65 : vector<1x1x4x128xbf16> to vector<4x128xbf16>
    %67 = vector.shape_cast %64 : vector<4x128xbf16> to vector<1x1x4x128xbf16>
    tpu.vector_store %arg4[%c0_70, %c0_71, %c0_72, %c0_73], %67 {strides = array<i32>} : memref<1x1x4x128xbf16, #tpu.memory_space<vmem>>, vector<1x1x4x128xbf16>,
    %cst_74 = arith.constant dense<0.000000e+00> : vector<128xf32>
    %68 = vector.multi_reduction <add>, %63, %cst_74 [0] : vector<4x128xf32> to vector<128xf32>
    %69 = vector.shape_cast %68 : vector<128xf32> to vector<1x128xf32>
    %70 = arith.mulf %63, %63 : vector<4x128xf32>
    %cst_75 = arith.constant dense<0.000000e+00> : vector<128xf32>
    %71 = vector.multi_reduction <add>, %70, %cst_75 [0] : vector<4x128xf32> to vector<128xf32>
    %72 = vector.shape_cast %71 : vector<128xf32> to vector<1x128xf32>
    %c0_i32 = arith.constant 0 : i32
    %73 = arith.cmpi eq, %arg1, %c0_i32 : i32
    %74 = arith.extui %73 : i1 to i32
    %c0_i32_76 = arith.constant 0 : i32
    %75 = arith.cmpi ne, %74, %c0_i32_76 : i32
    scf.if %75 {
      %cst_89 = arith.constant 0.000000e+00 : f32
      %88 = vector.broadcast %cst_89 : f32 to vector<1x128xf32>
      %c0_90 = arith.constant 0 : index
      %c0_91 = arith.constant 0 : index
      %c0_92 = arith.constant 0 : index
      %89 = vector.load %arg5[%c0_90, %c0_91, %c0_92] : memref<1x1x128xf32, #tpu.memory_space<vmem>>, vector<1x1x128xf32>
      %90 = vector.shape_cast %89 : vector<1x1x128xf32> to vector<1x128xf32>
      %91 = vector.shape_cast %88 : vector<1x128xf32> to vector<1x1x128xf32>
      tpu.vector_store %arg5[%c0_90, %c0_91, %c0_92], %91 {strides = array<i32>} : memref<1x1x128xf32, #tpu.memory_space<vmem>>, vector<1x1x128xf32>,
      %cst_93 = arith.constant 0.000000e+00 : f32
      %92 = vector.broadcast %cst_93 : f32 to vector<1x128xf32>
      %c0_94 = arith.constant 0 : index
      %c0_95 = arith.constant 0 : index
      %c0_96 = arith.constant 0 : index
      %93 = vector.load %arg6[%c0_94, %c0_95, %c0_96] : memref<1x1x128xf32, #tpu.memory_space<vmem>>, vector<1x1x128xf32>
      %94 = vector.shape_cast %93 : vector<1x1x128xf32> to vector<1x128xf32>
      %95 = vector.shape_cast %92 : vector<1x128xf32> to vector<1x1x128xf32>
      tpu.vector_store %arg6[%c0_94, %c0_95, %c0_96], %95 {strides = array<i32>} : memref<1x1x128xf32, #tpu.memory_space<vmem>>, vector<1x1x128xf32>,
    } else {
    }
    %c0_77 = arith.constant 0 : index
    %c0_78 = arith.constant 0 : index
    %c0_79 = arith.constant 0 : index
    %76 = vector.load %arg5[%c0_77, %c0_78, %c0_79] : memref<1x1x128xf32, #tpu.memory_space<vmem>>, vector<1x1x128xf32>
    %77 = vector.shape_cast %76 : vector<1x1x128xf32> to vector<1x128xf32>
    %78 = arith.addf %77, %69 : vector<1x128xf32>
    %c0_80 = arith.constant 0 : index
    %c0_81 = arith.constant 0 : index
    %c0_82 = arith.constant 0 : index
    %79 = vector.load %arg5[%c0_80, %c0_81, %c0_82] : memref<1x1x128xf32, #tpu.memory_space<vmem>>, vector<1x1x128xf32>
    %80 = vector.shape_cast %79 : vector<1x1x128xf32> to vector<1x128xf32>
    %81 = vector.shape_cast %78 : vector<1x128xf32> to vector<1x1x128xf32>
    tpu.vector_store %arg5[%c0_80, %c0_81, %c0_82], %81 {strides = array<i32>} : memref<1x1x128xf32, #tpu.memory_space<vmem>>, vector<1x1x128xf32>,
    %c0_83 = arith.constant 0 : index
    %c0_84 = arith.constant 0 : index
    %c0_85 = arith.constant 0 : index
    %82 = vector.load %arg6[%c0_83, %c0_84, %c0_85] : memref<1x1x128xf32, #tpu.memory_space<vmem>>, vector<1x1x128xf32>
    %83 = vector.shape_cast %82 : vector<1x1x128xf32> to vector<1x128xf32>
    %84 = arith.addf %83, %72 : vector<1x128xf32>
    %c0_86 = arith.constant 0 : index
    %c0_87 = arith.constant 0 : index
    %c0_88 = arith.constant 0 : index
    %85 = vector.load %arg6[%c0_86, %c0_87, %c0_88] : memref<1x1x128xf32, #tpu.memory_space<vmem>>, vector<1x1x128xf32>
    %86 = vector.shape_cast %85 : vector<1x1x128xf32> to vector<1x128xf32>
    %87 = vector.shape_cast %84 : vector<1x128xf32> to vector<1x1x128xf32>
    tpu.vector_store %arg6[%c0_86, %c0_87, %c0_88], %87 {strides = array<i32>} : memref<1x1x128xf32, #tpu.memory_space<vmem>>, vector<1x1x128xf32>,
    return
  }
  func.func @transform_0(%arg0: i32, %arg1: i32) -> (i32, i32, i32, i32, i32) {
    %c0_i32 = arith.constant 0 : i32
    %c0_i32_0 = arith.constant 0 : i32
    %c0_i32_1 = arith.constant 0 : i32
    %c0_i32_2 = arith.constant 0 : i32
    return %arg0, %arg1, %c0_i32, %c0_i32_0, %c0_i32_1 : i32, i32, i32, i32, i32
  }
  func.func @transform_1(%arg0: i32, %arg1: i32) -> (i32, i32, i32) {
    %c0_i32 = arith.constant 0 : i32
    %c0_i32_0 = arith.constant 0 : i32
    %c0_i32_1 = arith.constant 0 : i32
    return %arg0, %c0_i32, %c0_i32_0 : i32, i32, i32
  }
  func.func @transform_2(%arg0: i32, %arg1: i32) -> (i32, i32, i32, i32) {
    %c0_i32 = arith.constant 0 : i32
    %c0_i32_0 = arith.constant 0 : i32
    %c0_i32_1 = arith.constant 0 : i32
    return %arg0, %arg1, %c0_i32, %c0_i32_0 : i32, i32, i32, i32
  }
  func.func @transform_3(%arg0: i32, %arg1: i32) -> (i32, i32, i32) {
    %c0_i32 = arith.constant 0 : i32
    %c0_i32_0 = arith.constant 0 : i32
    %c0_i32_1 = arith.constant 0 : i32
    return %arg0, %c0_i32, %c0_i32_0 : i32, i32, i32
  }
  func.func @transform_4(%arg0: i32, %arg1: i32) -> (i32, i32, i32) {
    %c0_i32 = arith.constant 0 : i32
    %c0_i32_0 = arith.constant 0 : i32
    %c0_i32_1 = arith.constant 0 : i32
    return %arg0, %c0_i32, %c0_i32_0 : i32, i32, i32
  }
}

module attributes {stable_mosaic.version = 11 : i64} {
  func.func @_conv3x3_stats_kernel(%arg0: i32, %arg1: i32, %arg2: memref<1x1x4x4x128xbf16, #tpu.memory_space<vmem>>, %arg3: memref<1x1152x64xbf16, #tpu.memory_space<vmem>>, %arg4: memref<1x1x4x64xbf16, #tpu.memory_space<vmem>>, %arg5: memref<1x1x64xf32, #tpu.memory_space<vmem>>, %arg6: memref<1x1x64xf32, #tpu.memory_space<vmem>>) attributes {dimension_semantics = [#tpu.dimension_semantics<parallel>, #tpu.dimension_semantics<arbitrary>], iteration_bounds = array<i64: 4, 2>, scalar_prefetch = 0 : i64, scratch_operands = 0 : i64, tpu.core_type = #tpu.core_type<tc>, window_params = [{transform_indices = @transform_0, window_bounds = array<i64: 1, 1, 4, 4, 128>}, {transform_indices = @transform_1, window_bounds = array<i64: 1, 1152, 64>}, {transform_indices = @transform_2, window_bounds = array<i64: 1, 1, 4, 64>}, {transform_indices = @transform_3, window_bounds = array<i64: 1, 1, 64>}, {transform_indices = @transform_4, window_bounds = array<i64: 1, 1, 64>}]} {
    %cst = arith.constant 0.000000e+00 : f32
    %0 = vector.broadcast %cst : f32 to vector<4x64xf32>
    %c0 = arith.constant 0 : index
    %c0_0 = arith.constant 0 : index
    %c0_1 = arith.constant 0 : index
    %c0_2 = arith.constant 0 : index
    %c0_3 = arith.constant 0 : index
    %1 = vector.load %arg2[%c0, %c0_0, %c0_1, %c0_2, %c0_3] : memref<1x1x4x4x128xbf16, #tpu.memory_space<vmem>>, vector<1x1x2x2x128xbf16>
    %2 = vector.shape_cast %1 : vector<1x1x2x2x128xbf16> to vector<2x2x128xbf16>
    %3 = vector.shape_cast %2 : vector<2x2x128xbf16> to vector<4x128xbf16>
    %c0_4 = arith.constant 0 : index
    %c0_5 = arith.constant 0 : index
    %c0_6 = arith.constant 0 : index
    %4 = vector.load %arg3[%c0_4, %c0_5, %c0_6] : memref<1x1152x64xbf16, #tpu.memory_space<vmem>>, vector<1x128x64xbf16>
    %5 = vector.shape_cast %4 : vector<1x128x64xbf16> to vector<128x64xbf16>
    %cst_7 = arith.constant dense<0.000000e+00> : vector<4x64xf32>
    %6 = tpu.matmul %3, %5, %cst_7 {dimension_numbers = #tpu.dot_dimension_numbers<[1], [0], [0], [1], [0, 0, 1, 1], [], []>} : vector<4x128xbf16>, vector<128x64xbf16>, vector<4x64xf32> -> vector<4x64xf32>
    %7 = arith.addf %0, %6 : vector<4x64xf32>
    %c0_8 = arith.constant 0 : index
    %c0_9 = arith.constant 0 : index
    %c0_10 = arith.constant 0 : index
    %c1 = arith.constant 1 : index
    %c0_11 = arith.constant 0 : index
    %8 = vector.load %arg2[%c0_8, %c0_9, %c0_10, %c1, %c0_11] : memref<1x1x4x4x128xbf16, #tpu.memory_space<vmem>>, vector<1x1x2x2x128xbf16>
    %9 = vector.shape_cast %8 : vector<1x1x2x2x128xbf16> to vector<2x2x128xbf16>
    %10 = vector.shape_cast %9 : vector<2x2x128xbf16> to vector<4x128xbf16>
    %c0_12 = arith.constant 0 : index
    %c128 = arith.constant 128 : index
    %c0_13 = arith.constant 0 : index
    %11 = vector.load %arg3[%c0_12, %c128, %c0_13] : memref<1x1152x64xbf16, #tpu.memory_space<vmem>>, vector<1x128x64xbf16>
    %12 = vector.shape_cast %11 : vector<1x128x64xbf16> to vector<128x64xbf16>
    %cst_14 = arith.constant dense<0.000000e+00> : vector<4x64xf32>
    %13 = tpu.matmul %10, %12, %cst_14 {dimension_numbers = #tpu.dot_dimension_numbers<[1], [0], [0], [1], [0, 0, 1, 1], [], []>} : vector<4x128xbf16>, vector<128x64xbf16>, vector<4x64xf32> -> vector<4x64xf32>
    %14 = arith.addf %7, %13 : vector<4x64xf32>
    %c0_15 = arith.constant 0 : index
    %c0_16 = arith.constant 0 : index
    %c0_17 = arith.constant 0 : index
    %c2 = arith.constant 2 : index
    %c0_18 = arith.constant 0 : index
    %15 = vector.load %arg2[%c0_15, %c0_16, %c0_17, %c2, %c0_18] : memref<1x1x4x4x128xbf16, #tpu.memory_space<vmem>>, vector<1x1x2x2x128xbf16>
    %16 = vector.shape_cast %15 : vector<1x1x2x2x128xbf16> to vector<2x2x128xbf16>
    %17 = vector.shape_cast %16 : vector<2x2x128xbf16> to vector<4x128xbf16>
    %c0_19 = arith.constant 0 : index
    %c256 = arith.constant 256 : index
    %c0_20 = arith.constant 0 : index
    %18 = vector.load %arg3[%c0_19, %c256, %c0_20] : memref<1x1152x64xbf16, #tpu.memory_space<vmem>>, vector<1x128x64xbf16>
    %19 = vector.shape_cast %18 : vector<1x128x64xbf16> to vector<128x64xbf16>
    %cst_21 = arith.constant dense<0.000000e+00> : vector<4x64xf32>
    %20 = tpu.matmul %17, %19, %cst_21 {dimension_numbers = #tpu.dot_dimension_numbers<[1], [0], [0], [1], [0, 0, 1, 1], [], []>} : vector<4x128xbf16>, vector<128x64xbf16>, vector<4x64xf32> -> vector<4x64xf32>
    %21 = arith.addf %14, %20 : vector<4x64xf32>
    %c0_22 = arith.constant 0 : index
    %c0_23 = arith.constant 0 : index
    %c1_24 = arith.constant 1 : index
    %c0_25 = arith.constant 0 : index
    %c0_26 = arith.constant 0 : index
    %22 = vector.load %arg2[%c0_22, %c0_23, %c1_24, %c0_25, %c0_26] : memref<1x1x4x4x128xbf16, #tpu.memory_space<vmem>>, vector<1x1x2x2x128xbf16>
    %23 = vector.shape_cast %22 : vector<1x1x2x2x128xbf16> to vector<2x2x128xbf16>
    %24 = vector.shape_cast %23 : vector<2x2x128xbf16> to vector<4x128xbf16>
    %c0_27 = arith.constant 0 : index
    %c384 = arith.constant 384 : index
    %c0_28 = arith.constant 0 : index
    %25 = vector.load %arg3[%c0_27, %c384, %c0_28] : memref<1x1152x64xbf16, #tpu.memory_space<vmem>>, vector<1x128x64xbf16>
    %26 = vector.shape_cast %25 : vector<1x128x64xbf16> to vector<128x64xbf16>
    %cst_29 = arith.constant dense<0.000000e+00> : vector<4x64xf32>
    %27 = tpu.matmul %24, %26, %cst_29 {dimension_numbers = #tpu.dot_dimension_numbers<[1], [0], [0], [1], [0, 0, 1, 1], [], []>} : vector<4x128xbf16>, vector<128x64xbf16>, vector<4x64xf32> -> vector<4x64xf32>
    %28 = arith.addf %21, %27 : vector<4x64xf32>
    %c0_30 = arith.constant 0 : index
    %c0_31 = arith.constant 0 : index
    %c1_32 = arith.constant 1 : index
    %c1_33 = arith.constant 1 : index
    %c0_34 = arith.constant 0 : index
    %29 = vector.load %arg2[%c0_30, %c0_31, %c1_32, %c1_33, %c0_34] : memref<1x1x4x4x128xbf16, #tpu.memory_space<vmem>>, vector<1x1x2x2x128xbf16>
    %30 = vector.shape_cast %29 : vector<1x1x2x2x128xbf16> to vector<2x2x128xbf16>
    %31 = vector.shape_cast %30 : vector<2x2x128xbf16> to vector<4x128xbf16>
    %c0_35 = arith.constant 0 : index
    %c512 = arith.constant 512 : index
    %c0_36 = arith.constant 0 : index
    %32 = vector.load %arg3[%c0_35, %c512, %c0_36] : memref<1x1152x64xbf16, #tpu.memory_space<vmem>>, vector<1x128x64xbf16>
    %33 = vector.shape_cast %32 : vector<1x128x64xbf16> to vector<128x64xbf16>
    %cst_37 = arith.constant dense<0.000000e+00> : vector<4x64xf32>
    %34 = tpu.matmul %31, %33, %cst_37 {dimension_numbers = #tpu.dot_dimension_numbers<[1], [0], [0], [1], [0, 0, 1, 1], [], []>} : vector<4x128xbf16>, vector<128x64xbf16>, vector<4x64xf32> -> vector<4x64xf32>
    %35 = arith.addf %28, %34 : vector<4x64xf32>
    %c0_38 = arith.constant 0 : index
    %c0_39 = arith.constant 0 : index
    %c1_40 = arith.constant 1 : index
    %c2_41 = arith.constant 2 : index
    %c0_42 = arith.constant 0 : index
    %36 = vector.load %arg2[%c0_38, %c0_39, %c1_40, %c2_41, %c0_42] : memref<1x1x4x4x128xbf16, #tpu.memory_space<vmem>>, vector<1x1x2x2x128xbf16>
    %37 = vector.shape_cast %36 : vector<1x1x2x2x128xbf16> to vector<2x2x128xbf16>
    %38 = vector.shape_cast %37 : vector<2x2x128xbf16> to vector<4x128xbf16>
    %c0_43 = arith.constant 0 : index
    %c640 = arith.constant 640 : index
    %c0_44 = arith.constant 0 : index
    %39 = vector.load %arg3[%c0_43, %c640, %c0_44] : memref<1x1152x64xbf16, #tpu.memory_space<vmem>>, vector<1x128x64xbf16>
    %40 = vector.shape_cast %39 : vector<1x128x64xbf16> to vector<128x64xbf16>
    %cst_45 = arith.constant dense<0.000000e+00> : vector<4x64xf32>
    %41 = tpu.matmul %38, %40, %cst_45 {dimension_numbers = #tpu.dot_dimension_numbers<[1], [0], [0], [1], [0, 0, 1, 1], [], []>} : vector<4x128xbf16>, vector<128x64xbf16>, vector<4x64xf32> -> vector<4x64xf32>
    %42 = arith.addf %35, %41 : vector<4x64xf32>
    %c0_46 = arith.constant 0 : index
    %c0_47 = arith.constant 0 : index
    %c2_48 = arith.constant 2 : index
    %c0_49 = arith.constant 0 : index
    %c0_50 = arith.constant 0 : index
    %43 = vector.load %arg2[%c0_46, %c0_47, %c2_48, %c0_49, %c0_50] : memref<1x1x4x4x128xbf16, #tpu.memory_space<vmem>>, vector<1x1x2x2x128xbf16>
    %44 = vector.shape_cast %43 : vector<1x1x2x2x128xbf16> to vector<2x2x128xbf16>
    %45 = vector.shape_cast %44 : vector<2x2x128xbf16> to vector<4x128xbf16>
    %c0_51 = arith.constant 0 : index
    %c768 = arith.constant 768 : index
    %c0_52 = arith.constant 0 : index
    %46 = vector.load %arg3[%c0_51, %c768, %c0_52] : memref<1x1152x64xbf16, #tpu.memory_space<vmem>>, vector<1x128x64xbf16>
    %47 = vector.shape_cast %46 : vector<1x128x64xbf16> to vector<128x64xbf16>
    %cst_53 = arith.constant dense<0.000000e+00> : vector<4x64xf32>
    %48 = tpu.matmul %45, %47, %cst_53 {dimension_numbers = #tpu.dot_dimension_numbers<[1], [0], [0], [1], [0, 0, 1, 1], [], []>} : vector<4x128xbf16>, vector<128x64xbf16>, vector<4x64xf32> -> vector<4x64xf32>
    %49 = arith.addf %42, %48 : vector<4x64xf32>
    %c0_54 = arith.constant 0 : index
    %c0_55 = arith.constant 0 : index
    %c2_56 = arith.constant 2 : index
    %c1_57 = arith.constant 1 : index
    %c0_58 = arith.constant 0 : index
    %50 = vector.load %arg2[%c0_54, %c0_55, %c2_56, %c1_57, %c0_58] : memref<1x1x4x4x128xbf16, #tpu.memory_space<vmem>>, vector<1x1x2x2x128xbf16>
    %51 = vector.shape_cast %50 : vector<1x1x2x2x128xbf16> to vector<2x2x128xbf16>
    %52 = vector.shape_cast %51 : vector<2x2x128xbf16> to vector<4x128xbf16>
    %c0_59 = arith.constant 0 : index
    %c896 = arith.constant 896 : index
    %c0_60 = arith.constant 0 : index
    %53 = vector.load %arg3[%c0_59, %c896, %c0_60] : memref<1x1152x64xbf16, #tpu.memory_space<vmem>>, vector<1x128x64xbf16>
    %54 = vector.shape_cast %53 : vector<1x128x64xbf16> to vector<128x64xbf16>
    %cst_61 = arith.constant dense<0.000000e+00> : vector<4x64xf32>
    %55 = tpu.matmul %52, %54, %cst_61 {dimension_numbers = #tpu.dot_dimension_numbers<[1], [0], [0], [1], [0, 0, 1, 1], [], []>} : vector<4x128xbf16>, vector<128x64xbf16>, vector<4x64xf32> -> vector<4x64xf32>
    %56 = arith.addf %49, %55 : vector<4x64xf32>
    %c0_62 = arith.constant 0 : index
    %c0_63 = arith.constant 0 : index
    %c2_64 = arith.constant 2 : index
    %c2_65 = arith.constant 2 : index
    %c0_66 = arith.constant 0 : index
    %57 = vector.load %arg2[%c0_62, %c0_63, %c2_64, %c2_65, %c0_66] : memref<1x1x4x4x128xbf16, #tpu.memory_space<vmem>>, vector<1x1x2x2x128xbf16>
    %58 = vector.shape_cast %57 : vector<1x1x2x2x128xbf16> to vector<2x2x128xbf16>
    %59 = vector.shape_cast %58 : vector<2x2x128xbf16> to vector<4x128xbf16>
    %c0_67 = arith.constant 0 : index
    %c1024 = arith.constant 1024 : index
    %c0_68 = arith.constant 0 : index
    %60 = vector.load %arg3[%c0_67, %c1024, %c0_68] : memref<1x1152x64xbf16, #tpu.memory_space<vmem>>, vector<1x128x64xbf16>
    %61 = vector.shape_cast %60 : vector<1x128x64xbf16> to vector<128x64xbf16>
    %cst_69 = arith.constant dense<0.000000e+00> : vector<4x64xf32>
    %62 = tpu.matmul %59, %61, %cst_69 {dimension_numbers = #tpu.dot_dimension_numbers<[1], [0], [0], [1], [0, 0, 1, 1], [], []>} : vector<4x128xbf16>, vector<128x64xbf16>, vector<4x64xf32> -> vector<4x64xf32>
    %63 = arith.addf %56, %62 : vector<4x64xf32>
    %64 = arith.truncf %63 : vector<4x64xf32> to vector<4x64xbf16>
    %c0_70 = arith.constant 0 : index
    %c0_71 = arith.constant 0 : index
    %c0_72 = arith.constant 0 : index
    %c0_73 = arith.constant 0 : index
    %65 = vector.load %arg4[%c0_70, %c0_71, %c0_72, %c0_73] : memref<1x1x4x64xbf16, #tpu.memory_space<vmem>>, vector<1x1x4x64xbf16>
    %66 = vector.shape_cast %65 : vector<1x1x4x64xbf16> to vector<4x64xbf16>
    %67 = vector.shape_cast %64 : vector<4x64xbf16> to vector<1x1x4x64xbf16>
    tpu.vector_store %arg4[%c0_70, %c0_71, %c0_72, %c0_73], %67 {strides = array<i32>} : memref<1x1x4x64xbf16, #tpu.memory_space<vmem>>, vector<1x1x4x64xbf16>,
    %cst_74 = arith.constant dense<0.000000e+00> : vector<64xf32>
    %68 = vector.multi_reduction <add>, %63, %cst_74 [0] : vector<4x64xf32> to vector<64xf32>
    %69 = vector.shape_cast %68 : vector<64xf32> to vector<1x64xf32>
    %70 = arith.mulf %63, %63 : vector<4x64xf32>
    %cst_75 = arith.constant dense<0.000000e+00> : vector<64xf32>
    %71 = vector.multi_reduction <add>, %70, %cst_75 [0] : vector<4x64xf32> to vector<64xf32>
    %72 = vector.shape_cast %71 : vector<64xf32> to vector<1x64xf32>
    %c0_i32 = arith.constant 0 : i32
    %73 = arith.cmpi eq, %arg1, %c0_i32 : i32
    %74 = arith.extui %73 : i1 to i32
    %c0_i32_76 = arith.constant 0 : i32
    %75 = arith.cmpi ne, %74, %c0_i32_76 : i32
    scf.if %75 {
      %cst_89 = arith.constant 0.000000e+00 : f32
      %88 = vector.broadcast %cst_89 : f32 to vector<1x64xf32>
      %c0_90 = arith.constant 0 : index
      %c0_91 = arith.constant 0 : index
      %c0_92 = arith.constant 0 : index
      %89 = vector.load %arg5[%c0_90, %c0_91, %c0_92] : memref<1x1x64xf32, #tpu.memory_space<vmem>>, vector<1x1x64xf32>
      %90 = vector.shape_cast %89 : vector<1x1x64xf32> to vector<1x64xf32>
      %91 = vector.shape_cast %88 : vector<1x64xf32> to vector<1x1x64xf32>
      tpu.vector_store %arg5[%c0_90, %c0_91, %c0_92], %91 {strides = array<i32>} : memref<1x1x64xf32, #tpu.memory_space<vmem>>, vector<1x1x64xf32>,
      %cst_93 = arith.constant 0.000000e+00 : f32
      %92 = vector.broadcast %cst_93 : f32 to vector<1x64xf32>
      %c0_94 = arith.constant 0 : index
      %c0_95 = arith.constant 0 : index
      %c0_96 = arith.constant 0 : index
      %93 = vector.load %arg6[%c0_94, %c0_95, %c0_96] : memref<1x1x64xf32, #tpu.memory_space<vmem>>, vector<1x1x64xf32>
      %94 = vector.shape_cast %93 : vector<1x1x64xf32> to vector<1x64xf32>
      %95 = vector.shape_cast %92 : vector<1x64xf32> to vector<1x1x64xf32>
      tpu.vector_store %arg6[%c0_94, %c0_95, %c0_96], %95 {strides = array<i32>} : memref<1x1x64xf32, #tpu.memory_space<vmem>>, vector<1x1x64xf32>,
    } else {
    }
    %c0_77 = arith.constant 0 : index
    %c0_78 = arith.constant 0 : index
    %c0_79 = arith.constant 0 : index
    %76 = vector.load %arg5[%c0_77, %c0_78, %c0_79] : memref<1x1x64xf32, #tpu.memory_space<vmem>>, vector<1x1x64xf32>
    %77 = vector.shape_cast %76 : vector<1x1x64xf32> to vector<1x64xf32>
    %78 = arith.addf %77, %69 : vector<1x64xf32>
    %c0_80 = arith.constant 0 : index
    %c0_81 = arith.constant 0 : index
    %c0_82 = arith.constant 0 : index
    %79 = vector.load %arg5[%c0_80, %c0_81, %c0_82] : memref<1x1x64xf32, #tpu.memory_space<vmem>>, vector<1x1x64xf32>
    %80 = vector.shape_cast %79 : vector<1x1x64xf32> to vector<1x64xf32>
    %81 = vector.shape_cast %78 : vector<1x64xf32> to vector<1x1x64xf32>
    tpu.vector_store %arg5[%c0_80, %c0_81, %c0_82], %81 {strides = array<i32>} : memref<1x1x64xf32, #tpu.memory_space<vmem>>, vector<1x1x64xf32>,
    %c0_83 = arith.constant 0 : index
    %c0_84 = arith.constant 0 : index
    %c0_85 = arith.constant 0 : index
    %82 = vector.load %arg6[%c0_83, %c0_84, %c0_85] : memref<1x1x64xf32, #tpu.memory_space<vmem>>, vector<1x1x64xf32>
    %83 = vector.shape_cast %82 : vector<1x1x64xf32> to vector<1x64xf32>
    %84 = arith.addf %83, %72 : vector<1x64xf32>
    %c0_86 = arith.constant 0 : index
    %c0_87 = arith.constant 0 : index
    %c0_88 = arith.constant 0 : index
    %85 = vector.load %arg6[%c0_86, %c0_87, %c0_88] : memref<1x1x64xf32, #tpu.memory_space<vmem>>, vector<1x1x64xf32>
    %86 = vector.shape_cast %85 : vector<1x1x64xf32> to vector<1x64xf32>
    %87 = vector.shape_cast %84 : vector<1x64xf32> to vector<1x1x64xf32>
    tpu.vector_store %arg6[%c0_86, %c0_87, %c0_88], %87 {strides = array<i32>} : memref<1x1x64xf32, #tpu.memory_space<vmem>>, vector<1x1x64xf32>,
    return
  }
  func.func @transform_0(%arg0: i32, %arg1: i32) -> (i32, i32, i32, i32, i32) {
    %c0_i32 = arith.constant 0 : i32
    %c0_i32_0 = arith.constant 0 : i32
    %c0_i32_1 = arith.constant 0 : i32
    %c0_i32_2 = arith.constant 0 : i32
    return %arg0, %arg1, %c0_i32, %c0_i32_0, %c0_i32_1 : i32, i32, i32, i32, i32
  }
  func.func @transform_1(%arg0: i32, %arg1: i32) -> (i32, i32, i32) {
    %c0_i32 = arith.constant 0 : i32
    %c0_i32_0 = arith.constant 0 : i32
    %c0_i32_1 = arith.constant 0 : i32
    return %arg0, %c0_i32, %c0_i32_0 : i32, i32, i32
  }
  func.func @transform_2(%arg0: i32, %arg1: i32) -> (i32, i32, i32, i32) {
    %c0_i32 = arith.constant 0 : i32
    %c0_i32_0 = arith.constant 0 : i32
    %c0_i32_1 = arith.constant 0 : i32
    return %arg0, %arg1, %c0_i32, %c0_i32_0 : i32, i32, i32, i32
  }
  func.func @transform_3(%arg0: i32, %arg1: i32) -> (i32, i32, i32) {
    %c0_i32 = arith.constant 0 : i32
    %c0_i32_0 = arith.constant 0 : i32
    %c0_i32_1 = arith.constant 0 : i32
    return %arg0, %c0_i32, %c0_i32_0 : i32, i32, i32
  }
  func.func @transform_4(%arg0: i32, %arg1: i32) -> (i32, i32, i32) {
    %c0_i32 = arith.constant 0 : i32
    %c0_i32_0 = arith.constant 0 : i32
    %c0_i32_1 = arith.constant 0 : i32
    return %arg0, %c0_i32, %c0_i32_0 : i32, i32, i32
  }
}

module attributes {stable_mosaic.version = 11 : i64} {
  func.func @_final_kernel(%arg0: i32, %arg1: memref<2x256x64xbf16, #tpu.memory_space<vmem>>, %arg2: memref<2x256xf32, #tpu.memory_space<vmem>>, %arg3: memref<1x1x64xf32, #tpu.memory_space<vmem>>, %arg4: memref<2x1xf32, #tpu.memory_space<vmem>>, %arg5: memref<2x256xf32, #tpu.memory_space<vmem>>) attributes {dimension_semantics = [#tpu.dimension_semantics<parallel>], iteration_bounds = array<i64: 1>, scalar_prefetch = 0 : i64, scratch_operands = 0 : i64, tpu.core_type = #tpu.core_type<tc>, window_params = [{transform_indices = @transform_0, window_bounds = array<i64: 2, 256, 64>}, {transform_indices = @transform_1, window_bounds = array<i64: 2, 256>}, {pipeline_mode = #tpu.pipeline_mode<synchronous>, transform_indices = @transform_2, window_bounds = array<i64: 1, 1, 64>}, {pipeline_mode = #tpu.pipeline_mode<synchronous>, transform_indices = @transform_3, window_bounds = array<i64: 2, 1>}, {transform_indices = @transform_4, window_bounds = array<i64: 2, 256>}]} {
    %c0 = arith.constant 0 : index
    %c0_0 = arith.constant 0 : index
    %c0_1 = arith.constant 0 : index
    %0 = vector.load %arg1[%c0, %c0_0, %c0_1] : memref<2x256x64xbf16, #tpu.memory_space<vmem>>, vector<2x256x64xbf16>
    %1 = arith.extf %0 : vector<2x256x64xbf16> to vector<2x256x64xf32>
    %c0_2 = arith.constant 0 : index
    %c0_3 = arith.constant 0 : index
    %c0_4 = arith.constant 0 : index
    %2 = vector.load %arg3[%c0_2, %c0_3, %c0_4] : memref<1x1x64xf32, #tpu.memory_space<vmem>>, vector<1x1x64xf32>
    %3 = vector.broadcast %2 : vector<1x1x64xf32> to vector<2x256x64xf32>
    %4 = arith.mulf %1, %3 : vector<2x256x64xf32>
    %cst = arith.constant dense<0.000000e+00> : vector<2x256xf32>
    %5 = vector.multi_reduction <add>, %4, %cst [2] : vector<2x256x64xf32> to vector<2x256xf32>
    %c0_5 = arith.constant 0 : index
    %c0_6 = arith.constant 0 : index
    %6 = vector.load %arg2[%c0_5, %c0_6] : memref<2x256xf32, #tpu.memory_space<vmem>>, vector<2x256xf32>
    %7 = arith.addf %5, %6 : vector<2x256xf32>
    %c0_7 = arith.constant 0 : index
    %c0_8 = arith.constant 0 : index
    %8 = vector.load %arg4[%c0_7, %c0_8] : memref<2x1xf32, #tpu.memory_space<vmem>>, vector<2x1xf32>
    %9 = vector.broadcast %8 : vector<2x1xf32> to vector<2x256xf32>
    %10 = arith.addf %7, %9 : vector<2x256xf32>
    %cst_9 = arith.constant 0.000000e+00 : f32
    %11 = vector.broadcast %cst_9 : f32 to vector<2x256xf32>
    %12 = arith.subf %11, %10 : vector<2x256xf32>
    %13 = math.exp %12 : vector<2x256xf32>
    %cst_10 = arith.constant 1.000000e+00 : f32
    %14 = vector.broadcast %cst_10 : f32 to vector<2x256xf32>
    %15 = arith.addf %14, %13 : vector<2x256xf32>
    %cst_11 = arith.constant 1.000000e+00 : f32
    %16 = vector.broadcast %cst_11 : f32 to vector<2x256xf32>
    %17 = arith.divf %16, %15 : vector<2x256xf32>
    %c0_12 = arith.constant 0 : index
    %c0_13 = arith.constant 0 : index
    %18 = vector.load %arg5[%c0_12, %c0_13] : memref<2x256xf32, #tpu.memory_space<vmem>>, vector<2x256xf32>
    tpu.vector_store %arg5[%c0_12, %c0_13], %17 {strides = array<i32>} : memref<2x256xf32, #tpu.memory_space<vmem>>, vector<2x256xf32>,
    return
  }
  func.func @transform_0(%arg0: i32) -> (i32, i32, i32) {
    %c0_i32 = arith.constant 0 : i32
    %c0_i32_0 = arith.constant 0 : i32
    %c0_i32_1 = arith.constant 0 : i32
    return %c0_i32, %arg0, %c0_i32_0 : i32, i32, i32
  }
  func.func @transform_1(%arg0: i32) -> (i32, i32) {
    %c0_i32 = arith.constant 0 : i32
    %c0_i32_0 = arith.constant 0 : i32
    return %c0_i32, %arg0 : i32, i32
  }
  func.func @transform_2(%arg0: i32) -> (i32, i32, i32) {
    %c0_i32 = arith.constant 0 : i32
    %c0_i32_0 = arith.constant 0 : i32
    %c0_i32_1 = arith.constant 0 : i32
    %c0_i32_2 = arith.constant 0 : i32
    return %c0_i32, %c0_i32_0, %c0_i32_1 : i32, i32, i32
  }
  func.func @transform_3(%arg0: i32) -> (i32, i32) {
    %c0_i32 = arith.constant 0 : i32
    %c0_i32_0 = arith.constant 0 : i32
    %c0_i32_1 = arith.constant 0 : i32
    return %c0_i32, %c0_i32_0 : i32, i32
  }
  func.func @transform_4(%arg0: i32) -> (i32, i32) {
    %c0_i32 = arith.constant 0 : i32
    %c0_i32_0 = arith.constant 0 : i32
    return %c0_i32, %arg0 : i32, i32
  }
}

</mosaic_0001>

<bundles_post_ra>
// kernel: mul.68
= control target key start
LH: loop header
LB: loop body
LE: loop exit
PB: predicated region body
PF: predicated region fallthrough
CT: control target
= control target key end

     0   :  { %s34_s0 = inlined_call_operand.vmem [shape: f32[4,64], index: 0, kind: input, shape index: {}]   ;;  %s35_s1 = inlined_call_operand.vmem [shape: f32[4,64], index: 1, kind: input, shape index: {}]   ;;  %s36_s2 = inlined_call_operand.vmem [shape: f32[4,64], index: 2, kind: output, shape index: {}]  }
   0x1   :  { %v3_v0 = vld [vmem:[%s34_s0] sm:$0xf] }
   0x2   :  { %v4_v1 = vld [vmem:[%s35_s1] sm:$0xf] }
   0x3   :  { %v7_v2 = vmul.f32 %v4_v1, %v3_v0 }
   0x5   :  { %9 = vst [vmem:[%s36_s2] sm:$0xf] %v7_v2 }

// kernel: _device_forward.6
= control target key start
LH: loop header
LB: loop body
LE: loop exit
PB: predicated region body
PF: predicated region fallthrough
CT: control target
= control target key end

     0   :  { %10 = vsyncpa [#allocation3], 0  ;;  %s1904_s15 = smov [#allocation2]   ;;  %s3007_s0 = inlined_call_operand.vmem [shape: bf16[1,512,9], index: 0, kind: input, shape index: {}]   ;;  %s3008_s1 = inlined_call_operand.hbm [shape: bf16[1,9,256], index: 1, kind: input, shape index: {}]   ;;  %s3009_s2 = inlined_call_operand.vmem [shape: bf16[1,512,256], index: 2, kind: output, shape index: {0}]   ;;  %s3010_s3 = inlined_call_operand.vmem [shape: f32[1,1,256], index: 3, kind: output, shape index: {1}]   ;;  %s3011_s4 = inlined_call_operand.vmem [shape: f32[1,1,256], index: 4, kind: output, shape index: {2}]  }
   0x1   :  { %s18_s16 = sshll.u32 %s1904_s15, 4  ;;  %s19_s16 = int_to_ptr.vmem [resolvable:$true] %s18_s16 }
   0x2   :  { %s1890_s17 = scalar_lea.vmem %s19_s16, 256  ;;  %p1895_p1 = scmp.lt.s32.totalorder %s19_s16, %s19_s16 }
   0x3   :  { %p1891_p0 = scmp.ne.s32.totalorder %s19_s16, %s1890_s17  ;;  %p1896_p2 = scmp.lt.s32.totalorder %s1890_s17, %s1890_s17 }
   0x5   :  { %p1897_p3 = por %p1896_p2, %p1895_p1 }
   0x7   :  { %p1898_p4 = pnand %p1897_p3, %p1891_p0 }
   0x9   :  { %1901 = shalt.err (!%p1898_p4)
}
   0xa   :  { %s1905_s18 = smov 128   ;;  %s1906_s19 = smov 8  }
   0xb   :  { %24 = dma.hbm_to_vmem [thread:$0]  %s3008_s1, 256, %s19_s16, [#allocation3], %s1905_s18, %s1905_s18, %s1906_s19  }
   0xc   :  { %1902 = dma.done.wait [#allocation3], 256  }
   0xd   :  { %1903 = vsyncadd [#allocation3], 4294967040  ;;  %vm360_vm0 = vcmask 1043456   ;;  %v1907_v0 = vmov 0   ;;  %vm361_vm1 = vcmask 1044480   ;;  %v1908_v1 = vmov 65535  }
   0xe   :  { %402 = vmatprep.mubr.bf16.mxu0 %v1907_v0  ;;  %562 = vmatprep.mubr.bf16.mxu1 %v1907_v0  ;;  %v362_v2 = vsel %vm360_vm0, 4294967295, %v1908_v1  ;;  %v1847_v4 = vld [vmem:[#allocation2 + $0x4] ss:$8 sps:$4 sm:$0x1f]   ;;  %vm263_vm2 = vcmask 72704   ;;  %v1852_v12 = vld [vmem:[%s3007_s0 + $0x10] sm:$0xff]  }
   0xf   :  { %v363_v3 = vsel %vm361_vm1, %v362_v2, 0  ;;  %v1849_v5 = vld [vmem:[#allocation2] ss:$8 sps:$4 sm:$0x1f]   ;;  %v1862_v13 = vld [vmem:[%s3007_s0 + $0x90] sm:$0xff]   ;;  %v1853_v14 = vld [vmem:[%s3007_s0 + $0x18] sm:$0xff]  }
  0x10   :  { %v368_v6 = vand.u32 %v1847_v4, %v363_v3  ;;  %v365_v7 = vand.u32 %v1849_v5, %v363_v3  ;;  %v1850_v8 = vld [vmem:[%s3007_s0] sm:$0xff]   ;;  %v1851_v10 = vld [vmem:[%s3007_s0 + $0x8] sm:$0xff]   ;;  %v1864_v15 = vld [vmem:[%s3007_s0 + $0x98] sm:$0xff]  }
  0x11   :  { %v1858_v9 = vld [vmem:[%s3007_s0 + $0x80] sm:$0xff]   ;;  %v1860_v11 = vld [vmem:[%s3007_s0 + $0x88] sm:$0xff]   ;;  %v1856_v20 = vld [vmem:[%s3007_s0 + $0x30] sm:$0xff]  }
  0x12   :  { %384 = vmatprep.subr.bf16.mxu0 %v368_v6  ;;  %1838 = vmatprep.subr.bf16.mxu1 %v368_v6  ;;  %v1854_v16 = vld [vmem:[%s3007_s0 + $0x20] sm:$0xff]   ;;  %v1855_v18 = vld [vmem:[%s3007_s0 + $0x28] sm:$0xff]   ;;  %v1870_v21 = vld [vmem:[%s3007_s0 + $0xb0] sm:$0xff]  }
  0x13   :  { %385 = vmatpush1.bf16.msra.mxu0 %v365_v7  ;;  %1839 = vmatpush1.bf16.msra.mxu1 %v365_v7  ;;  %v1866_v17 = vld [vmem:[%s3007_s0 + $0xa0] sm:$0xff]   ;;  %v1868_v19 = vld [vmem:[%s3007_s0 + $0xa8] sm:$0xff]   ;;  %v1857_v22 = vld [vmem:[%s3007_s0 + $0x38] sm:$0xff]  }
  0x14   :  { %v1872_v23 = vld [vmem:[%s3007_s0 + $0xb8] sm:$0xff]   ;;  %v1859_v24 = vld [vmem:[%s3007_s0 + $0x40] sm:$0xff]   ;;  %v1861_v26 = vld [vmem:[%s3007_s0 + $0x48] sm:$0xff]  }
  0x15   :  { %v1874_v25 = vld [vmem:[%s3007_s0 + $0xc0] sm:$0xff]   ;;  %v1875_v27 = vld [vmem:[%s3007_s0 + $0xc8] sm:$0xff]   ;;  %v1863_v28 = vld [vmem:[%s3007_s0 + $0x50] sm:$0xff]  }
  0x16   :  { %1678 = vmatmul.mubr.msk.bf16.vlgmr.msra.gmra.mxu0 %vm263_vm2, %v1850_v8  ;;  %1694 = vmatmul.mubr.msk.bf16.vlgmr.msra.gmra.mxu1 %vm263_vm2, %v1858_v9  ;;  %v1876_v29 = vld [vmem:[%s3007_s0 + $0xd0] sm:$0xff]   ;;  %v1865_v30 = vld [vmem:[%s3007_s0 + $0x58] sm:$0xff]   ;;  %v1867_v32 = vld [vmem:[%s3007_s0 + $0x60] sm:$0xff]  }
  0x17   :  { %412 = vmatprep.mubr.bf16.mxu0 %v1907_v0  ;;  %572 = vmatprep.mubr.bf16.mxu1 %v1907_v0  ;;  %v1877_v31 = vld [vmem:[%s3007_s0 + $0xd8] sm:$0xff]   ;;  %v1878_v33 = vld [vmem:[%s3007_s0 + $0xe0] sm:$0xff]   ;;  %v1869_v34 = vld [vmem:[%s3007_s0 + $0x68] sm:$0xff]  }
  0x18   :  { %v1879_v35 = vld [vmem:[%s3007_s0 + $0xe8] sm:$0xff]   ;;  %v1871_v36 = vld [vmem:[%s3007_s0 + $0x70] sm:$0xff]   ;;  %v1873_v38 = vld [vmem:[%s3007_s0 + $0x78] sm:$0xff]  }
  0x19   :  { %v1880_v37 = vld [vmem:[%s3007_s0 + $0xf0] sm:$0xff]   ;;  %v1881_v39 = vld [vmem:[%s3007_s0 + $0xf8] sm:$0xff]  }
  0x1e   :  { %1679 = vmatmul.mubr.msk.bf16.gmra.mxu0 %vm263_vm2, %v1851_v10  ;;  %1695 = vmatmul.mubr.msk.bf16.gmra.mxu1 %vm263_vm2, %v1860_v11 }
  0x1f   :  { %422 = vmatprep.mubr.bf16.mxu0 %v1907_v0  ;;  %582 = vmatprep.mubr.bf16.mxu1 %v1907_v0 }
  0x26   :  { %1680 = vmatmul.mubr.msk.bf16.gmra.mxu0 %vm263_vm2, %v1852_v12  ;;  %1696 = vmatmul.mubr.msk.bf16.gmra.mxu1 %vm263_vm2, %v1862_v13 }
  0x27   :  { %432 = vmatprep.mubr.bf16.mxu0 %v1907_v0  ;;  %592 = vmatprep.mubr.bf16.mxu1 %v1907_v0 }
  0x2e   :  { %1681 = vmatmul.mubr.msk.bf16.gmra.mxu0 %vm263_vm2, %v1853_v14  ;;  %1697 = vmatmul.mubr.msk.bf16.gmra.mxu1 %vm263_vm2, %v1864_v15 }
  0x2f   :  { %442 = vmatprep.mubr.bf16.mxu0 %v1907_v0  ;;  %602 = vmatprep.mubr.bf16.mxu1 %v1907_v0 }
  0x36   :  { %1682 = vmatmul.mubr.msk.bf16.gmra.mxu0 %vm263_vm2, %v1854_v16  ;;  %1698 = vmatmul.mubr.msk.bf16.gmra.mxu1 %vm263_vm2, %v1866_v17 }
  0x37   :  { %452 = vmatprep.mubr.bf16.mxu0 %v1907_v0  ;;  %612 = vmatprep.mubr.bf16.mxu1 %v1907_v0 }
  0x3e   :  { %1683 = vmatmul.mubr.msk.bf16.gmra.mxu0 %vm263_vm2, %v1855_v18  ;;  %1699 = vmatmul.mubr.msk.bf16.gmra.mxu1 %vm263_vm2, %v1868_v19 }
  0x3f   :  { %462 = vmatprep.mubr.bf16.mxu0 %v1907_v0  ;;  %622 = vmatprep.mubr.bf16.mxu1 %v1907_v0 }
  0x46   :  { %1684 = vmatmul.mubr.msk.bf16.gmra.mxu0 %vm263_vm2, %v1856_v20  ;;  %1700 = vmatmul.mubr.msk.bf16.gmra.mxu1 %vm263_vm2, %v1870_v21 }
  0x47   :  { %472 = vmatprep.mubr.bf16.mxu0 %v1907_v0  ;;  %632 = vmatprep.mubr.bf16.mxu1 %v1907_v0 }
  0x4e   :  { %1685 = vmatmul.mubr.msk.bf16.gmra.mxu0 %vm263_vm2, %v1857_v22  ;;  %1701 = vmatmul.mubr.msk.bf16.gmra.mxu1 %vm263_vm2, %v1872_v23 }
  0x4f   :  { %482 = vmatprep.mubr.bf16.mxu0 %v1907_v0  ;;  %642 = vmatprep.mubr.bf16.mxu1 %v1907_v0 }
  0x56   :  { %1686 = vmatmul.mubr.msk.bf16.gmra.mxu0 %vm263_vm2, %v1859_v24  ;;  %1702 = vmatmul.mubr.msk.bf16.gmra.mxu1 %vm263_vm2, %v1874_v25 }
  0x57   :  { %492 = vmatprep.mubr.bf16.mxu0 %v1907_v0  ;;  %652 = vmatprep.mubr.bf16.mxu1 %v1907_v0 }
  0x5e   :  { %1687 = vmatmul.mubr.msk.bf16.gmra.mxu0 %vm263_vm2, %v1861_v26  ;;  %1703 = vmatmul.mubr.msk.bf16.gmra.mxu1 %vm263_vm2, %v1875_v27 }
  0x5f   :  { %502 = vmatprep.mubr.bf16.mxu0 %v1907_v0  ;;  %662 = vmatprep.mubr.bf16.mxu1 %v1907_v0 }
  0x66   :  { %1688 = vmatmul.mubr.msk.bf16.gmra.mxu0 %vm263_vm2, %v1863_v28  ;;  %1704 = vmatmul.mubr.msk.bf16.gmra.mxu1 %vm263_vm2, %v1876_v29 }
  0x67   :  { %512 = vmatprep.mubr.bf16.mxu0 %v1907_v0  ;;  %672 = vmatprep.mubr.bf16.mxu1 %v1907_v0 }
  0x6e   :  { %1689 = vmatmul.mubr.msk.bf16.gmra.mxu0 %vm263_vm2, %v1865_v30  ;;  %1705 = vmatmul.mubr.msk.bf16.gmra.mxu1 %vm263_vm2, %v1877_v31 }
  0x6f   :  { %522 = vmatprep.mubr.bf16.mxu0 %v1907_v0  ;;  %682 = vmatprep.mubr.bf16.mxu1 %v1907_v0 }
  0x76   :  { %1690 = vmatmul.mubr.msk.bf16.gmra.mxu0 %vm263_vm2, %v1867_v32  ;;  %1706 = vmatmul.mubr.msk.bf16.gmra.mxu1 %vm263_vm2, %v1878_v33 }
  0x77   :  { %532 = vmatprep.mubr.bf16.mxu0 %v1907_v0  ;;  %692 = vmatprep.mubr.bf16.mxu1 %v1907_v0 }
  0x7e   :  { %1691 = vmatmul.mubr.msk.bf16.gmra.mxu0 %vm263_vm2, %v1869_v34  ;;  %1707 = vmatmul.mubr.msk.bf16.gmra.mxu1 %vm263_vm2, %v1879_v35 }
  0x7f   :  { %542 = vmatprep.mubr.bf16.mxu0 %v1907_v0  ;;  %702 = vmatprep.mubr.bf16.mxu1 %v1907_v0 }
  0x86   :  { %1692 = vmatmul.mubr.msk.bf16.gmra.mxu0 %vm263_vm2, %v1871_v36  ;;  %1708 = vmatmul.mubr.msk.bf16.gmra.mxu1 %vm263_vm2, %v1880_v37 }
  0x87   :  { %552 = vmatprep.mubr.bf16.mxu0 %v1907_v0  ;;  %712 = vmatprep.mubr.bf16.mxu1 %v1907_v0 }
  0x8e   :  { %1693 = vmatmul.mubr.msk.bf16.gmra.mxu0 %vm263_vm2, %v1873_v38  ;;  %1709 = vmatmul.mubr.msk.bf16.gmra.mxu1 %vm263_vm2, %v1881_v39 }
  0xd6   :  { %v2099_v40 = vpop.f32.mrf.mxu0  ;;  %v2107_v44 = vpop.f32.mrf.mxu1 }
  0xd8   :  { %v2101_v41 = vpop.f32.mrf.mxu0  ;;  %v2114_v46 = vpop.f32.mrf.mxu1 }
  0xd9   :  { %v1774_v42 = vpack.c.bf16 %v2101_v41, %v2099_v40  ;;  %v1806_v49 = vpack.c.bf16 %v2114_v46, %v2107_v44 }
  0xda   :  { %v2105_v43 = vpop.f32.mrf.mxu0  ;;  %v2122_v50 = vpop.f32.mrf.mxu1 }
  0xdb   :  { %1107 = vst [vmem:[%s3009_s2] sm:$0xff] %v1774_v42  ;;  %1139 = vst [vmem:[%s3009_s2 + $0x100] sm:$0xff] %v1806_v49 }
  0xdc   :  { %v2112_v45 = vpop.f32.mrf.mxu0  ;;  %v2132_v52 = vpop.f32.mrf.mxu1 }
  0xdd   :  { %v1775_v47 = vpack.c.bf16 %v2112_v45, %v2105_v43  ;;  %v1807_v55 = vpack.c.bf16 %v2132_v52, %v2122_v50 }
  0xde   :  { %v2118_v48 = vpop.f32.mrf.mxu0  ;;  %v2140_v56 = vpop.f32.mrf.mxu1 }
  0xdf   :  { %1108 = vst [vmem:[%s3009_s2 + $0x8] sm:$0xff] %v1775_v47  ;;  %1140 = vst [vmem:[%s3009_s2 + $0x108] sm:$0xff] %v1807_v55 }
  0xe0   :  { %v2127_v51 = vpop.f32.mrf.mxu0  ;;  %v2150_v58 = vpop.f32.mrf.mxu1 }
  0xe1   :  { %v1776_v53 = vpack.c.bf16 %v2127_v51, %v2118_v48  ;;  %v1808_v61 = vpack.c.bf16 %v2150_v58, %v2140_v56 }
  0xe2   :  { %v2136_v54 = vpop.f32.mrf.mxu0  ;;  %v2158_v62 = vpop.f32.mrf.mxu1 }
  0xe3   :  { %1109 = vst [vmem:[%s3009_s2 + $0x10] sm:$0xff] %v1776_v53  ;;  %1141 = vst [vmem:[%s3009_s2 + $0x110] sm:$0xff] %v1808_v61 }
  0xe4   :  { %v2145_v57 = vpop.f32.mrf.mxu0  ;;  %v2168_v0 = vpop.f32.mrf.mxu1 }
  0xe5   :  { %v1777_v59 = vpack.c.bf16 %v2145_v57, %v2136_v54  ;;  %v1809_v3 = vpack.c.bf16 %v2168_v0, %v2158_v62 }
  0xe6   :  { %v2154_v60 = vpop.f32.mrf.mxu0  ;;  %v2176_v4 = vpop.f32.mrf.mxu1 }
  0xe7   :  { %1110 = vst [vmem:[%s3009_s2 + $0x18] sm:$0xff] %v1777_v59  ;;  %1142 = vst [vmem:[%s3009_s2 + $0x118] sm:$0xff] %v1809_v3 }
  0xe8   :  { %v2163_v63 = vpop.f32.mrf.mxu0  ;;  %v2186_v6 = vpop.f32.mrf.mxu1 }
  0xe9   :  { %v1778_v1 = vpack.c.bf16 %v2163_v63, %v2154_v60  ;;  %v1810_v9 = vpack.c.bf16 %v2186_v6, %v2176_v4 }
  0xea   :  { %v2172_v2 = vpop.f32.mrf.mxu0  ;;  %v2194_v10 = vpop.f32.mrf.mxu1 }
  0xeb   :  { %1111 = vst [vmem:[%s3009_s2 + $0x20] sm:$0xff] %v1778_v1  ;;  %1143 = vst [vmem:[%s3009_s2 + $0x120] sm:$0xff] %v1810_v9 }
  0xec   :  { %v2181_v5 = vpop.f32.mrf.mxu0  ;;  %v2204_v12 = vpop.f32.mrf.mxu1 }
  0xed   :  { %v1779_v7 = vpack.c.bf16 %v2181_v5, %v2172_v2  ;;  %v1811_v15 = vpack.c.bf16 %v2204_v12, %v2194_v10 }
  0xee   :  { %v2190_v8 = vpop.f32.mrf.mxu0  ;;  %v2212_v16 = vpop.f32.mrf.mxu1 }
  0xef   :  { %1112 = vst [vmem:[%s3009_s2 + $0x28] sm:$0xff] %v1779_v7  ;;  %1144 = vst [vmem:[%s3009_s2 + $0x128] sm:$0xff] %v1811_v15 }
  0xf0   :  { %v2199_v11 = vpop.f32.mrf.mxu0  ;;  %v2222_v18 = vpop.f32.mrf.mxu1 }
  0xf1   :  { %v1780_v13 = vpack.c.bf16 %v2199_v11, %v2190_v8  ;;  %v1812_v21 = vpack.c.bf16 %v2222_v18, %v2212_v16 }
  0xf2   :  { %v2208_v14 = vpop.f32.mrf.mxu0  ;;  %v2230_v22 = vpop.f32.mrf.mxu1 }
  0xf3   :  { %1113 = vst [vmem:[%s3009_s2 + $0x30] sm:$0xff] %v1780_v13  ;;  %1145 = vst [vmem:[%s3009_s2 + $0x130] sm:$0xff] %v1812_v21 }
  0xf4   :  { %v2217_v17 = vpop.f32.mrf.mxu0  ;;  %v2240_v24 = vpop.f32.mrf.mxu1 }
  0xf5   :  { %v1781_v19 = vpack.c.bf16 %v2217_v17, %v2208_v14  ;;  %3055 = vst [vmem:[#allocation5_spill] sm:$0xff] %v2240_v24  ;;  %v1813_v27 = vpack.c.bf16 %v2240_v24, %v2230_v22  ;;  %v1315_v24 = vmul.f32 %v2136_v54, %v2136_v54 }
  0xf6   :  { %v2226_v20 = vpop.f32.mrf.mxu0  ;;  %v2248_v28 = vpop.f32.mrf.mxu1 }
  0xf7   :  { %1114 = vst [vmem:[%s3009_s2 + $0x38] sm:$0xff] %v1781_v19  ;;  %3056 = vst [vmem:[#allocation6_spill] sm:$0xff] %v2248_v28 }
  0xf8   :  { %v2235_v23 = vpop.f32.mrf.mxu0  ;;  %1146 = vst [vmem:[%s3009_s2 + $0x138] sm:$0xff] %v1813_v27  ;;  %v2258_v30 = vpop.f32.mrf.mxu1 }
  0xf9   :  { %v1782_v25 = vpack.c.bf16 %v2235_v23, %v2226_v20  ;;  %3057 = vst [vmem:[#allocation7_spill] sm:$0xff] %v2258_v30  ;;  %v1814_v33 = vpack.c.bf16 %v2258_v30, %v2248_v28  ;;  %v1316_v28 = vmul.f32 %v2145_v57, %v2145_v57 }
  0xfa   :  { %v2244_v26 = vpop.f32.mrf.mxu0  ;;  %v2266_v34 = vpop.f32.mrf.mxu1 }
  0xfb   :  { %1115 = vst [vmem:[%s3009_s2 + $0x40] sm:$0xff] %v1782_v25  ;;  %3058 = vst [vmem:[#allocation8_spill] sm:$0xff] %v2266_v34 }
  0xfc   :  { %v2253_v29 = vpop.f32.mrf.mxu0  ;;  %1147 = vst [vmem:[%s3009_s2 + $0x140] sm:$0xff] %v1814_v33  ;;  %v2276_v36 = vpop.f32.mrf.mxu1 }
  0xfd   :  { %v1783_v31 = vpack.c.bf16 %v2253_v29, %v2244_v26  ;;  %3059 = vst [vmem:[#allocation9_spill] sm:$0xff] %v2276_v36  ;;  %v1815_v39 = vpack.c.bf16 %v2276_v36, %v2266_v34  ;;  %v1240_v34 = vadd.f32 %v2112_v45, %v2101_v41 }
  0xfe   :  { %v2262_v32 = vpop.f32.mrf.mxu0  ;;  %v2284_v42 = vpop.f32.mrf.mxu1 }
  0xff   :  { %1116 = vst [vmem:[%s3009_s2 + $0x48] sm:$0xff] %v1783_v31  ;;  %3060 = vst [vmem:[#allocation10_spill] sm:$0xff] %v2284_v42 }
 0x100   :  { %v2271_v35 = vpop.f32.mrf.mxu0  ;;  %1148 = vst [vmem:[%s3009_s2 + $0x148] sm:$0xff] %v1815_v39  ;;  %v2294_v49 = vpop.f32.mrf.mxu1 }
 0x101   :  { %v1784_v37 = vpack.c.bf16 %v2271_v35, %v2262_v32  ;;  %3061 = vst [vmem:[#allocation11_spill] sm:$0xff] %v2294_v49  ;;  %v1816_v59 = vpack.c.bf16 %v2294_v49, %v2284_v42  ;;  %v1171_v49 = vadd.f32 %v2105_v43, %v2099_v40 }
 0x102   :  { %v2280_v38 = vpop.f32.mrf.mxu0  ;;  %v2302_v61 = vpop.f32.mrf.mxu1 }
 0x103   :  { %1117 = vst [vmem:[%s3009_s2 + $0x50] sm:$0xff] %v1784_v37  ;;  %3062 = vst [vmem:[#allocation12_spill] sm:$0xff] %v2302_v61 }
 0x104   :  { %v2289_v47 = vpop.f32.mrf.mxu0  ;;  %1149 = vst [vmem:[%s3009_s2 + $0x150] sm:$0xff] %v1816_v59  ;;  %v2312_v3 = vpop.f32.mrf.mxu1 }
 0x105   :  { %v1785_v53 = vpack.c.bf16 %v2289_v47, %v2280_v38  ;;  %3063 = vst [vmem:[#allocation13_spill] sm:$0xff] %v2312_v3  ;;  %v1817_v13 = vpack.c.bf16 %v2312_v3, %v2302_v61 }
 0x106   :  { %v2298_v55 = vpop.f32.mrf.mxu0  ;;  %v2320_v15 = vpop.f32.mrf.mxu1 }
 0x107   :  { %1118 = vst [vmem:[%s3009_s2 + $0x58] sm:$0xff] %v1785_v53  ;;  %3064 = vst [vmem:[#allocation14_spill] sm:$0xff] %v2320_v15 }
 0x108   :  { %v2307_v1 = vpop.f32.mrf.mxu0  ;;  %1150 = vst [vmem:[%s3009_s2 + $0x158] sm:$0xff] %v1817_v13  ;;  %v2330_v21 = vpop.f32.mrf.mxu1 }
 0x109   :  { %v1786_v7 = vpack.c.bf16 %v2307_v1, %v2298_v55  ;;  %3065 = vst [vmem:[#allocation15_spill] sm:$0xff] %v2330_v21  ;;  %v1818_v31 = vpack.c.bf16 %v2330_v21, %v2320_v15  ;;  %v1310_v15 = vmul.f32 %v2101_v41, %v2101_v41 }
 0x10a   :  { %v2316_v9 = vpop.f32.mrf.mxu0  ;;  %v2338_v33 = vpop.f32.mrf.mxu1 }
 0x10b   :  { %1119 = vst [vmem:[%s3009_s2 + $0x60] sm:$0xff] %v1786_v7  ;;  %3066 = vst [vmem:[#allocation16_spill] sm:$0xff] %v2338_v33 }
 0x10c   :  { %v2325_v19 = vpop.f32.mrf.mxu0  ;;  %1151 = vst [vmem:[%s3009_s2 + $0x160] sm:$0xff] %v1818_v31  ;;  %v2348_v39 = vpop.f32.mrf.mxu1  ;;  %v1312_v31 = vmul.f32 %v2112_v45, %v2112_v45 }
 0x10d   :  { %v1787_v25 = vpack.c.bf16 %v2325_v19, %v2316_v9  ;;  %3067 = vst [vmem:[#allocation17_spill] sm:$0xff] %v2348_v39  ;;  %v1819_v7 = vpack.c.bf16 %v2348_v39, %v2338_v33  ;;  %v1309_v39 = vmul.f32 %v2099_v40, %v2099_v40  ;;  %v1313_v33 = vmul.f32 %v2118_v48, %v2118_v48 }
 0x10e   :  { %v2334_v27 = vpop.f32.mrf.mxu0  ;;  %v2356_v13 = vpop.f32.mrf.mxu1  ;;  %v1506_v40 = vadd.f32 %v1312_v31, %v1310_v15  ;;  %v1318_v31 = vmul.f32 %v2163_v63, %v2163_v63 }
 0x10f   :  { %1120 = vst [vmem:[%s3009_s2 + $0x68] sm:$0xff] %v1787_v25  ;;  %v1311_v25 = vmul.f32 %v2105_v43, %v2105_v43  ;;  %1152 = vst [vmem:[%s3009_s2 + $0x168] sm:$0xff] %v1819_v7  ;;  %v1314_v7 = vmul.f32 %v2127_v51, %v2127_v51  ;;  %v1172_v43 = vadd.f32 %v1171_v49, %v2118_v48 }
 0x110   :  { %v2343_v37 = vpop.f32.mrf.mxu0  ;;  %v2370_v3 = vpop.f32.mrf.mxu1 }
 0x111   :  { %v1788_v53 = vpack.c.bf16 %v2343_v37, %v2334_v27  ;;  %3068 = vst [vmem:[#allocation18_spill] sm:$0xff] %v2370_v3  ;;  %v1820_v36 = vpack.c.bf16 %v2370_v3, %v2356_v13  ;;  %v1437_v30 = vadd.f32 %v1311_v25, %v1309_v39  ;;  %v1241_v39 = vadd.f32 %v1240_v34, %v2127_v51 }
 0x112   :  { %v2352_v59 = vpop.f32.mrf.mxu0  ;;  %v2388_v42 = vpop.f32.mrf.mxu1  ;;  %v1317_v25 = vmul.f32 %v2154_v60, %v2154_v60  ;;  %v1507_v49 = vadd.f32 %v1506_v40, %v1314_v7  ;;  %v1173_v15 = vadd.f32 %v1172_v43, %v2136_v54  ;;  %v1320_v40 = vmul.f32 %v2181_v5, %v2181_v5 }
 0x113   :  { %1121 = vst [vmem:[%s3009_s2 + $0x70] sm:$0xff] %v1788_v53  ;;  %1153 = vst [vmem:[%s3009_s2 + $0x170] sm:$0xff] %v1820_v36  ;;  %v1438_v45 = vadd.f32 %v1437_v30, %v1313_v33  ;;  %v1242_v34 = vadd.f32 %v1241_v39, %v2145_v57  ;;  %v1319_v33 = vmul.f32 %v2172_v2, %v2172_v2 }
 0x114   :  { %v2365_v21 = vpop.f32.mrf.mxu0  ;;  %v2405_v41 = vpop.f32.mrf.mxu1  ;;  %v1508_v54 = vadd.f32 %v1507_v49, %v1316_v28  ;;  %v1174_v7 = vadd.f32 %v1173_v15, %v2154_v60  ;;  %v1321_v39 = vmul.f32 %v2190_v8, %v2190_v8 }
 0x115   :  { %v1789_v53 = vpack.c.bf16 %v2365_v21, %v2352_v59  ;;  %3069 = vst [vmem:[#allocation19_spill] sm:$0xff] %v2405_v41  ;;  %v1821_v36 = vpack.c.bf16 %v2405_v41, %v2388_v42  ;;  %v1439_v51 = vadd.f32 %v1438_v45, %v1315_v24  ;;  %v1243_v45 = vadd.f32 %v1242_v34, %v2163_v63 }
 0x116   :  { %v2384_v61 = vpop.f32.mrf.mxu0  ;;  %v2419_v30 = vpop.f32.mrf.mxu1  ;;  %v1509_v28 = vadd.f32 %v1508_v54, %v1318_v31  ;;  %v1322_v63 = vmul.f32 %v2199_v11, %v2199_v11 }
 0x117   :  { %1122 = vst [vmem:[%s3009_s2 + $0x78] sm:$0xff] %v1789_v53  ;;  %1154 = vst [vmem:[%s3009_s2 + $0x178] sm:$0xff] %v1821_v36  ;;  %v1440_v24 = vadd.f32 %v1439_v51, %v1317_v25  ;;  %v1244_v25 = vadd.f32 %v1243_v45, %v2181_v5  ;;  %v1323_v51 = vmul.f32 %v2208_v14, %v2208_v14 }
 0x118   :  { %v2400_v3 = vpop.f32.mrf.mxu0  ;;  %v2435_v57 = vpop.f32.mrf.mxu1  ;;  %v1510_v31 = vadd.f32 %v1509_v28, %v1320_v40  ;;  %v1324_v40 = vmul.f32 %v2217_v17, %v2217_v17 }
 0x119   :  { %v1790_v48 = vpack.c.bf16 %v2400_v3, %v2384_v61  ;;  %v1822_v15 = vpack.c.bf16 %v2435_v57, %v2419_v30  ;;  %v1441_v41 = vadd.f32 %v1440_v24, %v1319_v33  ;;  %v3042_v33 = vlaneseq }
 0x11a   :  { %v2415_v53 = vpop.f32.mrf.mxu0  ;;  %v2447_v36 = vpop.f32.mrf.mxu1  ;;  %v1325_v24 = vmul.f32 %v2226_v20, %v2226_v20 }
 0x11b   :  { %1123 = vst [vmem:[%s3009_s2 + $0x80] sm:$0xff] %v1790_v48  ;;  %v1175_v48 = vadd.f32 %v1174_v7, %v2172_v2  ;;  %1155 = vst [vmem:[%s3009_s2 + $0x180] sm:$0xff] %v1822_v15  ;;  %v1442_v54 = vadd.f32 %v1441_v41, %v1321_v39  ;;  %v1245_v7 = vadd.f32 %v1244_v25, %v2199_v11  ;;  %vm2479_vm3 = vcmp.lt.s32.totalorder %v3042_v33, 256 }
 0x11c   :  { %v2430_v43 = vpop.f32.mrf.mxu0  ;;  %v2463_v5 = vpop.f32.mrf.mxu1  ;;  %v3070_v41 = vmov 0  ;;  %v1511_v11 = vadd.f32 %v1510_v31, %v1322_v63  ;;  %v1909_v15 = vmov 0.0   ;;  %v1327_v63 = vmul.f32 %v2244_v26, %v2244_v26 }
 0x11d   :  { %v1791_v60 = vpack.c.bf16 %v2430_v43, %v2415_v53  ;;  %v1176_v2 = vadd.f32 %v1175_v48, %v2190_v8  ;;  %v3071_v41 = vsel %vm2479_vm3, 4294967295, %v3070_v41  ;;  %v1326_v48 = vmul.f32 %v2235_v23, %v2235_v23  ;;  %1583 = vst.msk [vmem:[%s3010_s3] sm:$0x3] %vm2479_vm3, %v1909_v15  ;;  %1584 = vst.msk [vmem:[%s3011_s4] sm:$0x3] %vm2479_vm3, %v1909_v15 }
 0x11e   :  { %v2443_v49 = vpop.f32.mrf.mxu0  ;;  %v2476_v28 = vpop.f32.mrf.mxu1  ;;  %3072 = vst [vmem:[#allocation20_spill] sm:$0xff] %v3071_v41  ;;  %v1246_v25 = vadd.f32 %v1245_v7, %v2217_v17  ;;  %v1328_v15 = vmul.f32 %v2253_v29, %v2253_v29  ;;  %v1329_v7 = vmul.f32 %v2262_v32, %v2262_v32 }
 0x11f   :  { %1124 = vst [vmem:[%s3009_s2 + $0x88] sm:$0xff] %v1791_v60  ;;  %v1823_v60 = vpack.c.bf16 %v2463_v5, %v2447_v36  ;;  %v1177_v39 = vadd.f32 %v1176_v2, %v2208_v14  ;;  %v1443_v14 = vadd.f32 %v1442_v54, %v1323_v51 }
 0x120   :  { %v2458_v34 = vpop.f32.mrf.mxu0  ;;  %v2507_v2 = vpop.f32.mrf.mxu1  ;;  %v1247_v54 = vadd.f32 %v1246_v25, %v2235_v23 }
 0x121   :  { %v1792_v8 = vpack.c.bf16 %v2458_v34, %v2443_v49  ;;  %1156 = vst [vmem:[%s3009_s2 + $0x188] sm:$0xff] %v1823_v60  ;;  %v1178_v33 = vadd.f32 %v1177_v39, %v2226_v20  ;;  %v1444_v51 = vadd.f32 %v1443_v14, %v1325_v24  ;;  %v1824_v60 = vpack.c.bf16 %v2507_v2, %v2476_v28 }
 0x122   :  { %v2472_v45 = vpop.f32.mrf.mxu0  ;;  %v1330_v39 = vmul.f32 %v2271_v35, %v2271_v35  ;;  %v1248_v24 = vadd.f32 %v1247_v54, %v2253_v29  ;;  %v1331_v14 = vmul.f32 %v2280_v38, %v2280_v38 }
 0x123   :  { %1125 = vst [vmem:[%s3009_s2 + $0x90] sm:$0xff] %v1792_v8  ;;  %v1512_v8 = vadd.f32 %v1511_v11, %v1324_v40  ;;  %v2521_v40 = vpop.f32.mrf.mxu1  ;;  %v1179_v11 = vadd.f32 %v1178_v33, %v2244_v26  ;;  %v1445_v23 = vadd.f32 %v1444_v51, %v1327_v63  ;;  %1157 = vst [vmem:[%s3009_s2 + $0x190] sm:$0xff] %v1824_v60 }
 0x124   :  { %v2502_v31 = vpop.f32.mrf.mxu0  ;;  %v1333_v51 = vmul.f32 %v2298_v55, %v2298_v55 }
 0x125   :  { %v1793_v17 = vpack.c.bf16 %v2502_v31, %v2472_v45  ;;  %v1513_v20 = vadd.f32 %v1512_v8, %v1326_v48  ;;  %v2537_v26 = vpop.f32.mrf.mxu1  ;;  %v1180_v48 = vadd.f32 %v1179_v11, %v2262_v32  ;;  %v1332_v8 = vmul.f32 %v2289_v47, %v2289_v47 }
 0x126   :  { %v2517_v41 = vpop.f32.mrf.mxu0  ;;  %v1446_v63 = vadd.f32 %v1445_v23, %v1329_v7  ;;  %v1825_v60 = vpack.c.bf16 %v2537_v26, %v2521_v40  ;;  %v1334_v11 = vmul.f32 %v2307_v1, %v2307_v1  ;;  %v1335_v23 = vmul.f32 %v2316_v9, %v2316_v9 }
 0x127   :  { %1126 = vst [vmem:[%s3009_s2 + $0x98] sm:$0xff] %v1793_v17  ;;  %v1514_v33 = vadd.f32 %v1513_v20, %v1328_v15  ;;  %v1249_v17 = vadd.f32 %v1248_v24, %v2271_v35  ;;  %v2551_v15 = vpop.f32.mrf.mxu1  ;;  %v1181_v20 = vadd.f32 %v1180_v48, %v2280_v38  ;;  %v1336_v48 = vmul.f32 %v2325_v19, %v2325_v19 }
 0x128   :  { %v2532_v25 = vpop.f32.mrf.mxu0  ;;  %v1447_v35 = vadd.f32 %v1446_v63, %v1331_v14  ;;  %1158 = vst [vmem:[%s3009_s2 + $0x198] sm:$0xff] %v1825_v60  ;;  %v1337_v63 = vmul.f32 %v2334_v27, %v2334_v27 }
 0x129   :  { %v1794_v29 = vpack.c.bf16 %v2532_v25, %v2517_v41  ;;  %v1515_v32 = vadd.f32 %v1514_v33, %v1330_v39  ;;  %v1250_v7 = vadd.f32 %v1249_v17, %v2289_v47  ;;  %v2567_v38 = vpop.f32.mrf.mxu1  ;;  %v1182_v33 = vadd.f32 %v1181_v20, %v2298_v55 }
 0x12a   :  { %v2547_v54 = vpop.f32.mrf.mxu0  ;;  %v1448_v14 = vadd.f32 %v1447_v35, %v1333_v51  ;;  %v1826_v60 = vpack.c.bf16 %v2567_v38, %v2551_v15  ;;  %v1338_v20 = vmul.f32 %v2343_v37, %v2343_v37  ;;  %v1339_v35 = vmul.f32 %v2352_v59, %v2352_v59 }
 0x12b   :  { %1127 = vst [vmem:[%s3009_s2 + $0xa0] sm:$0xff] %v1794_v29  ;;  %v1516_v39 = vadd.f32 %v1515_v32, %v1332_v8  ;;  %v1251_v29 = vadd.f32 %v1250_v7, %v2307_v1  ;;  %v2581_v8 = vpop.f32.mrf.mxu1  ;;  %v1183_v32 = vadd.f32 %v1182_v33, %v2316_v9  ;;  %v1340_v33 = vmul.f32 %v2365_v21, %v2365_v21 }
 0x12c   :  { %v2562_v24 = vpop.f32.mrf.mxu0  ;;  %v1449_v1 = vadd.f32 %v1448_v14, %v1335_v23  ;;  %1159 = vst [vmem:[%s3009_s2 + $0x1a0] sm:$0xff] %v1826_v60  ;;  %v1341_v14 = vmul.f32 %v2384_v61, %v2384_v61 }
 0x12d   :  { %v1795_v47 = vpack.c.bf16 %v2562_v24, %v2547_v54  ;;  %v1517_v55 = vadd.f32 %v1516_v39, %v1334_v11  ;;  %v1252_v51 = vadd.f32 %v1251_v29, %v2325_v19  ;;  %v2597_v9 = vpop.f32.mrf.mxu1  ;;  %v1184_v39 = vadd.f32 %v1183_v32, %v2334_v27 }
 0x12e   :  { %v2577_v17 = vpop.f32.mrf.mxu0  ;;  %3073 = vst [vmem:[#allocation21_spill] sm:$0xff] %v2597_v9  ;;  %v1450_v23 = vadd.f32 %v1449_v1, %v1337_v63  ;;  %v1827_v60 = vpack.c.bf16 %v2597_v9, %v2581_v8  ;;  %v1342_v32 = vmul.f32 %v2400_v3, %v2400_v3  ;;  %v1343_v1 = vmul.f32 %v2415_v53, %v2415_v53 }
 0x12f   :  { %1128 = vst [vmem:[%s3009_s2 + $0xa8] sm:$0xff] %v1795_v47  ;;  %v1518_v11 = vadd.f32 %v1517_v55, %v1336_v48  ;;  %v1253_v47 = vadd.f32 %v1252_v51, %v2343_v37  ;;  %v2611_v48 = vpop.f32.mrf.mxu1  ;;  %v1185_v55 = vadd.f32 %v1184_v39, %v2352_v59  ;;  %v1344_v39 = vmul.f32 %v2430_v43, %v2430_v43 }
 0x130   :  { %v2592_v7 = vpop.f32.mrf.mxu0  ;;  %v1451_v37 = vadd.f32 %v1450_v23, %v1339_v35  ;;  %1160 = vst [vmem:[%s3009_s2 + $0x1a8] sm:$0xff] %v1827_v60 }
 0x131   :  { %v1796_v19 = vpack.c.bf16 %v2592_v7, %v2577_v17  ;;  %v1519_v27 = vadd.f32 %v1518_v11, %v1338_v20  ;;  %v1254_v63 = vadd.f32 %v1253_v47, %v2365_v21  ;;  %v2627_v59 = vpop.f32.mrf.mxu1  ;;  %v1186_v11 = vadd.f32 %v1185_v55, %v2384_v61 }
 0x132   :  { %v2607_v29 = vpop.f32.mrf.mxu0  ;;  %3074 = vst [vmem:[#allocation22_spill] sm:$0xff] %v2627_v59  ;;  %v1452_v35 = vadd.f32 %v1451_v37, %v1341_v14  ;;  %v1828_v47 = vpack.c.bf16 %v2627_v59, %v2611_v48  ;;  %v1346_v55 = vmul.f32 %v2458_v34, %v2458_v34  ;;  %v1347_v37 = vmul.f32 %v2472_v45, %v2472_v45 }
 0x133   :  { %1129 = vst [vmem:[%s3009_s2 + $0xb0] sm:$0xff] %v1796_v19  ;;  %v1520_v20 = vadd.f32 %v1519_v27, %v1340_v33  ;;  %v1345_v19 = vmul.f32 %v2443_v49, %v2443_v49  ;;  %v2640_v60 = vpop.f32.mrf.mxu1  ;;  %v1255_v33 = vadd.f32 %v1254_v63, %v2400_v3  ;;  %v1187_v27 = vadd.f32 %v1186_v11, %v2415_v53 }
 0x134   :  { %v2622_v51 = vpop.f32.mrf.mxu0  ;;  %v1453_v14 = vadd.f32 %v1452_v35, %v1343_v1  ;;  %1161 = vst [vmem:[%s3009_s2 + $0x1b0] sm:$0xff] %v1828_v47  ;;  %v1348_v11 = vmul.f32 %v2502_v31, %v2502_v31 }
 0x135   :  { %v1797_v21 = vpack.c.bf16 %v2622_v51, %v2607_v29  ;;  %v1521_v61 = vadd.f32 %v1520_v20, %v1342_v32  ;;  %v2656_v3 = vpop.f32.mrf.mxu1  ;;  %v1256_v53 = vadd.f32 %v1255_v33, %v2430_v43  ;;  %v1188_v63 = vadd.f32 %v1187_v27, %v2443_v49 }
 0x136   :  { %v2636_v23 = vpop.f32.mrf.mxu0  ;;  %3075 = vst [vmem:[#allocation23_spill] sm:$0xff] %v2656_v3  ;;  %v1454_v20 = vadd.f32 %v1453_v14, %v1345_v19  ;;  %v1829_v47 = vpack.c.bf16 %v2656_v3, %v2640_v60  ;;  %v1350_v33 = vmul.f32 %v2532_v25, %v2532_v25 }
 0x137   :  { %1130 = vst [vmem:[%s3009_s2 + $0xb8] sm:$0xff] %v1797_v21  ;;  %v1522_v32 = vadd.f32 %v1521_v61, %v1344_v39  ;;  %v1349_v21 = vmul.f32 %v2517_v41, %v2517_v41  ;;  %v2668_v59 = vpop.f32.mrf.mxu1  ;;  %v1257_v43 = vadd.f32 %v1256_v53, %v2458_v34  ;;  %v1189_v49 = vadd.f32 %v1188_v63, %v2472_v45 }
 0x138   :  { %v2651_v9 = vpop.f32.mrf.mxu0  ;;  %v1455_v19 = vadd.f32 %v1454_v20, %v1347_v37  ;;  %v1351_v61 = vmul.f32 %v2547_v54, %v2547_v54  ;;  %1162 = vst [vmem:[%s3009_s2 + $0x1b8] sm:$0xff] %v1829_v47 }
 0x139   :  { %v1798_v1 = vpack.c.bf16 %v2651_v9, %v2636_v23  ;;  %v1523_v39 = vadd.f32 %v1522_v32, %v1346_v55  ;;  %v2682_v34 = vpop.f32.mrf.mxu1  ;;  %v1258_v45 = vadd.f32 %v1257_v43, %v2502_v31  ;;  %v1190_v14 = vadd.f32 %v1189_v49, %v2517_v41 }
 0x13a   :  { %v528_v35 = vpop.f32.mrf.mxu0  ;;  %v1456_v37 = vadd.f32 %v1455_v19, %v1349_v21  ;;  %v1353_v32 = vmul.f32 %v2577_v17, %v2577_v17  ;;  %v1352_v31 = vmul.f32 %v2562_v24, %v2562_v24  ;;  %v1355_v21 = vmul.f32 %v2607_v29, %v2607_v29 }
 0x13b   :  { %1131 = vst [vmem:[%s3009_s2 + $0xc0] sm:$0xff] %v1798_v1  ;;  %v1524_v55 = vadd.f32 %v1523_v39, %v1348_v11  ;;  %v1830_v1 = vpack.c.bf16 %v2682_v34, %v2668_v59  ;;  %v2690_v20 = vpop.f32.mrf.mxu1  ;;  %v1259_v47 = vadd.f32 %v1258_v45, %v2532_v25  ;;  %v1191_v3 = vadd.f32 %v1190_v14, %v2547_v54 }
 0x13c   :  { %v530_v27 = vpop.f32.mrf.mxu0  ;;  %v1457_v11 = vadd.f32 %v1456_v37, %v1351_v61  ;;  %v1354_v39 = vmul.f32 %v2592_v7, %v2592_v7  ;;  %v1357_v61 = vmul.f32 %v2636_v23, %v2636_v23 }
 0x13d   :  { %v1799_v53 = vpack.c.bf16 %v530_v27, %v528_v35  ;;  %v1525_v41 = vadd.f32 %v1524_v55, %v1350_v33  ;;  %1163 = vst [vmem:[%s3009_s2 + $0x1c0] sm:$0xff] %v1830_v1  ;;  %v2704_v25 = vpop.f32.mrf.mxu1  ;;  %v1260_v54 = vadd.f32 %v1259_v47, %v2562_v24  ;;  %v1192_v49 = vadd.f32 %v1191_v3, %v2577_v17 }
 0x13e   :  { %v534_v63 = vpop.f32.mrf.mxu0  ;;  %3076 = vst [vmem:[#allocation24_spill] sm:$0xff] %v2704_v25  ;;  %v1458_v33 = vadd.f32 %v1457_v11, %v1353_v32  ;;  %v1831_v14 = vpack.c.bf16 %v2704_v25, %v2690_v20  ;;  %v1356_v3 = vmul.f32 %v2622_v51, %v2622_v51  ;;  %v1359_v32 = vmul.f32 %v528_v35, %v528_v35 }
 0x13f   :  { %1132 = vst [vmem:[%s3009_s2 + $0xc8] sm:$0xff] %v1799_v53  ;;  %v2714_v53 = vpop.f32.mrf.mxu1  ;;  %v1526_v55 = vadd.f32 %v1525_v41, %v1352_v31  ;;  %v1261_v37 = vadd.f32 %v1260_v54, %v2592_v7  ;;  %v1193_v24 = vadd.f32 %v1192_v49, %v2607_v29  ;;  %v1361_v54 = vmul.f32 %v534_v63, %v534_v63 }
 0x140   :  { %v536_v43 = vpop.f32.mrf.mxu0  ;;  %v1459_v17 = vadd.f32 %v1458_v33, %v1355_v21  ;;  %1164 = vst [vmem:[%s3009_s2 + $0x1c8] sm:$0xff] %v1831_v14  ;;  %v1358_v21 = vmul.f32 %v2651_v9, %v2651_v9 }
 0x141   :  { %v1800_v19 = vpack.c.bf16 %v536_v43, %v534_v63  ;;  %v2726_v47 = vpop.f32.mrf.mxu1  ;;  %v1527_v31 = vadd.f32 %v1526_v55, %v1354_v39  ;;  %v1262_v7 = vadd.f32 %v1261_v37, %v2622_v51  ;;  %v1194_v29 = vadd.f32 %v1193_v24, %v2636_v23 }
 0x142   :  { %v538_v45 = vpop.f32.mrf.mxu0  ;;  %3077 = vst [vmem:[#allocation25_spill] sm:$0xff] %v2726_v47  ;;  %v1460_v11 = vadd.f32 %v1459_v17, %v1357_v61  ;;  %v1360_v39 = vmul.f32 %v530_v27, %v530_v27 }
 0x143   :  { %1133 = vst [vmem:[%s3009_s2 + $0xd0] sm:$0xff] %v1800_v19  ;;  %v1832_v19 = vpack.c.bf16 %v2726_v47, %v2714_v53  ;;  %v2734_v33 = vpop.f32.mrf.mxu1  ;;  %v1263_v14 = vadd.f32 %v1262_v7, %v2651_v9  ;;  %v1195_v25 = vadd.f32 %v1194_v29, %v528_v35  ;;  %v1528_v51 = vadd.f32 %v1527_v31, %v1356_v3 }
 0x144   :  { %v540_v1 = vpop.f32.mrf.mxu0  ;;  %v1461_v23 = vadd.f32 %v1460_v11, %v1359_v32  ;;  %v1363_v61 = vmul.f32 %v538_v45, %v538_v45  ;;  %v1362_v7 = vmul.f32 %v536_v43, %v536_v43 }
 0x145   :  { %v1801_v41 = vpack.c.bf16 %v540_v1, %v538_v45  ;;  %1165 = vst [vmem:[%s3009_s2 + $0x1d0] sm:$0xff] %v1832_v19  ;;  %v2743_v37 = vpop.f32.mrf.mxu1  ;;  %v1264_v24 = vadd.f32 %v1263_v14, %v530_v27  ;;  %v1196_v17 = vadd.f32 %v1195_v25, %v534_v63  ;;  %v1529_v9 = vadd.f32 %v1528_v51, %v1358_v21 }
 0x146   :  { %v544_v49 = vpop.f32.mrf.mxu0  ;;  %v1462_v35 = vadd.f32 %v1461_v23, %v1361_v54  ;;  %v1833_v3 = vpack.c.bf16 %v2743_v37, %v2734_v33  ;;  %v1364_v63 = vmul.f32 %v540_v1, %v540_v1 }
 0x147   :  { %1134 = vst [vmem:[%s3009_s2 + $0xd8] sm:$0xff] %v1801_v41  ;;  %v2747_v32 = vpop.f32.mrf.mxu1  ;;  %v1265_v31 = vadd.f32 %v1264_v24, %v536_v43  ;;  %v1197_v41 = vadd.f32 %v1196_v17, %v538_v45  ;;  %v1365_v11 = vmul.f32 %v544_v49, %v544_v49  ;;  %v1530_v19 = vadd.f32 %v1529_v9, %v1360_v39 }
 0x148   :  { %v546_v55 = vpop.f32.mrf.mxu0  ;;  %v1463_v27 = vadd.f32 %v1462_v35, %v1363_v61  ;;  %1166 = vst [vmem:[%s3009_s2 + $0x1d8] sm:$0xff] %v1833_v3 }
 0x149   :  { %v1802_v47 = vpack.c.bf16 %v546_v55, %v544_v49  ;;  %v2755_v21 = vpop.f32.mrf.mxu1  ;;  %v1266_v54 = vadd.f32 %v1265_v31, %v540_v1  ;;  %v1198_v14 = vadd.f32 %v1197_v41, %v544_v49  ;;  %v1531_v45 = vadd.f32 %v1530_v19, %v1362_v7 }
 0x14a   :  { %v548_v29 = vpop.f32.mrf.mxu0  ;;  %v1366_v23 = vmul.f32 %v546_v55, %v546_v55  ;;  %v1464_v61 = vadd.f32 %v1463_v27, %v1365_v11 }
 0x14b   :  { %1135 = vst [vmem:[%s3009_s2 + $0xe0] sm:$0xff] %v1802_v47  ;;  %v1367_v51 = vmul.f32 %v548_v29, %v548_v29  ;;  %v1834_v47 = vpack.c.bf16 %v2755_v21, %v2747_v32  ;;  %v2759_v39 = vpop.f32.mrf.mxu1  ;;  %v1267_v17 = vadd.f32 %v1266_v54, %v546_v55  ;;  %v1199_v9 = vadd.f32 %v1198_v14, %v548_v29 }
 0x14c   :  { %v550_v25 = vpop.f32.mrf.mxu0  ;;  %v1532_v1 = vadd.f32 %v1531_v45, %v1364_v63 }
 0x14d   :  { %v1803_v43 = vpack.c.bf16 %v550_v25, %v548_v29  ;;  %v1368_v49 = vmul.f32 %v550_v25, %v550_v25  ;;  %1167 = vst [vmem:[%s3009_s2 + $0x1e0] sm:$0xff] %v1834_v47  ;;  %v2767_v7 = vpop.f32.mrf.mxu1  ;;  %v1465_v31 = vadd.f32 %v1464_v61, %v1367_v51  ;;  %v1268_v41 = vadd.f32 %v1267_v17, %v550_v25 }
 0x14e   :  { %v554_v24 = vpop.f32.mrf.mxu0  ;;  %v1533_v55 = vadd.f32 %v1532_v1, %v1366_v23  ;;  %v1835_v54 = vpack.c.bf16 %v2767_v7, %v2759_v39  ;;  %v1373_v25 = vmul.f32 %v2107_v44, %v2107_v44 }
 0x14f   :  { %1136 = vst [vmem:[%s3009_s2 + $0xe8] sm:$0xff] %v1803_v43  ;;  %v1369_v35 = vmul.f32 %v554_v24, %v554_v24  ;;  %v1200_v19 = vadd.f32 %v1199_v9, %v554_v24  ;;  %v2771_v14 = vpop.f32.mrf.mxu1 }
 0x150   :  { %v556_v3 = vpop.f32.mrf.mxu0  ;;  %v1534_v51 = vadd.f32 %v1533_v55, %v1368_v49  ;;  %1168 = vst [vmem:[%s3009_s2 + $0x1e8] sm:$0xff] %v1835_v54  ;;  %v1375_v49 = vmul.f32 %v2122_v50, %v2122_v50  ;;  %v1374_v55 = vmul.f32 %v2114_v46, %v2114_v46 }
 0x151   :  { %v1804_v11 = vpack.c.bf16 %v556_v3, %v554_v24  ;;  %v1370_v29 = vmul.f32 %v556_v3, %v556_v3  ;;  %v1466_v63 = vadd.f32 %v1465_v31, %v1369_v35  ;;  %v1269_v43 = vadd.f32 %v1268_v41, %v556_v3  ;;  %v2781_v24 = vpop.f32.mrf.mxu1 }
 0x152   :  { %v558_v27 = vpop.f32.mrf.mxu0  ;;  %v1836_v31 = vpack.c.bf16 %v2781_v24, %v2771_v14 }
 0x153   :  { %1137 = vst [vmem:[%s3009_s2 + $0xf0] sm:$0xff] %v1804_v11  ;;  %v1201_v45 = vadd.f32 %v1200_v19, %v558_v27  ;;  %v1371_v47 = vmul.f32 %v558_v27, %v558_v27  ;;  %v1535_v1 = vadd.f32 %v1534_v51, %v1370_v29  ;;  %v2786_v41 = vpop.f32.mrf.mxu1  ;;  %v1377_v29 = vmul.f32 %v2140_v56, %v2140_v56 }
 0x154   :  { %v560_v23 = vpop.f32.mrf.mxu0  ;;  %1169 = vst [vmem:[%s3009_s2 + $0x1f0] sm:$0xff] %v1836_v31  ;;  %v1383_v31 = vmul.f32 %v2194_v10, %v2194_v10 }
 0x155   :  { %v1202_v61 = vadd.f32 %v1201_v45, %v2107_v44  ;;  %v1467_v17 = vadd.f32 %v1466_v63, %v1371_v47  ;;  %v1805_v9 = vpack.c.bf16 %v560_v23, %v558_v27  ;;  %v1270_v35 = vadd.f32 %v1269_v43, %v560_v23  ;;  %v2802_v54 = vpop.f32.mrf.mxu1 }
 0x156   :  { %v1372_v3 = vmul.f32 %v560_v23, %v560_v23  ;;  %v1837_v45 = vpack.c.bf16 %v2802_v54, %v2786_v41 }
 0x157   :  { %v1203_v19 = vadd.f32 %v1202_v61, %v2122_v50  ;;  %v1468_v11 = vadd.f32 %v1467_v17, %v1373_v25  ;;  %1138 = vst [vmem:[%s3009_s2 + $0xf8] sm:$0xff] %v1805_v9  ;;  %v1271_v44 = vadd.f32 %v1270_v35, %v2114_v46  ;;  %v1376_v46 = vmul.f32 %v2132_v52, %v2132_v52 }
 0x158   :  { %v1536_v27 = vadd.f32 %v1535_v1, %v1372_v3  ;;  %v1379_v25 = vmul.f32 %v2158_v62, %v2158_v62  ;;  %1170 = vst [vmem:[%s3009_s2 + $0x1f8] sm:$0xff] %v1837_v45  ;;  %v1386_v45 = vmul.f32 %v2222_v18, %v2222_v18 }
 0x159   :  { %v1204_v50 = vadd.f32 %v1203_v19, %v2140_v56  ;;  %v1469_v63 = vadd.f32 %v1468_v11, %v1375_v49  ;;  %v1272_v43 = vadd.f32 %v1271_v44, %v2132_v52  ;;  %v1378_v56 = vmul.f32 %v2150_v58, %v2150_v58 }
 0x15a   :  { %v1537_v47 = vadd.f32 %v1536_v27, %v1374_v55  ;;  %v1381_v52 = vmul.f32 %v2176_v4, %v2176_v4  ;;  %v1382_v11 = vmul.f32 %v2186_v6, %v2186_v6  ;;  %v1384_v27 = vmul.f32 %v2204_v12, %v2204_v12 }
 0x15b   :  { %v1205_v51 = vadd.f32 %v1204_v50, %v2158_v62  ;;  %v1470_v23 = vadd.f32 %v1469_v63, %v1377_v29  ;;  %v1273_v61 = vadd.f32 %v1272_v43, %v2150_v58  ;;  %v1380_v62 = vmul.f32 %v2168_v0, %v2168_v0 }
 0x15c   :  { %v1538_v17 = vadd.f32 %v1537_v47, %v1376_v46 }
 0x15d   :  { %v1206_v9 = vadd.f32 %v1205_v51, %v2176_v4  ;;  %v1471_v35 = vadd.f32 %v1470_v23, %v1379_v25  ;;  %v1274_v1 = vadd.f32 %v1273_v61, %v2168_v0  ;;  %v1385_v4 = vmul.f32 %v2212_v16, %v2212_v16  ;;  %v3079_v51 = vld [vmem:[#allocation5_spill] sm:$0xff] }
 0x15e   :  { %v1539_v3 = vadd.f32 %v1538_v17, %v1378_v56  ;;  %v1388_v61 = vmul.f32 %v3079_v51, %v3079_v51 }
 0x15f   :  { %v1207_v49 = vadd.f32 %v1206_v9, %v2194_v10  ;;  %v1472_v19 = vadd.f32 %v1471_v35, %v1381_v52  ;;  %v1275_v58 = vadd.f32 %v1274_v1, %v2186_v6  ;;  %v1387_v10 = vmul.f32 %v2230_v22, %v2230_v22  ;;  %v3081_v52 = vld [vmem:[#allocation7_spill] sm:$0xff] }
 0x160   :  { %v1540_v44 = vadd.f32 %v1539_v3, %v1380_v62  ;;  %v1390_v1 = vmul.f32 %v3081_v52, %v3081_v52  ;;  %v3082_v3 = vld [vmem:[#allocation10_spill] sm:$0xff] }
 0x161   :  { %v1208_v55 = vadd.f32 %v1207_v49, %v2212_v16  ;;  %v1473_v29 = vadd.f32 %v1472_v19, %v1383_v31  ;;  %v1276_v0 = vadd.f32 %v1275_v58, %v2204_v12  ;;  %v3078_v16 = vld [vmem:[#allocation6_spill] sm:$0xff]  ;;  %v1393_v31 = vmul.f32 %v3082_v3, %v3082_v3  ;;  %v3083_v58 = vld [vmem:[#allocation9_spill] sm:$0xff] }
 0x162   :  { %v1541_v50 = vadd.f32 %v1540_v44, %v1382_v11  ;;  %v1389_v47 = vmul.f32 %v3078_v16, %v3078_v16  ;;  %v1392_v44 = vmul.f32 %v3083_v58, %v3083_v58 }
 0x163   :  { %v1209_v63 = vadd.f32 %v1208_v55, %v2230_v22  ;;  %v1474_v43 = vadd.f32 %v1473_v29, %v1385_v4  ;;  %v1277_v6 = vadd.f32 %v1276_v0, %v2222_v18  ;;  %v3080_v22 = vld [vmem:[#allocation8_spill] sm:$0xff] }
 0x164   :  { %v1542_v46 = vadd.f32 %v1541_v50, %v1384_v27  ;;  %v1391_v17 = vmul.f32 %v3080_v22, %v3080_v22  ;;  %v3084_v55 = vld [vmem:[#allocation12_spill] sm:$0xff]  ;;  %v3085_v50 = vld [vmem:[#allocation11_spill] sm:$0xff] }
 0x165   :  { %v1475_v25 = vadd.f32 %v1474_v43, %v1387_v10  ;;  %v1278_v23 = vadd.f32 %v1277_v6, %v3079_v51  ;;  %v1210_v12 = vadd.f32 %v1209_v63, %v3078_v16  ;;  %v1395_v29 = vmul.f32 %v3084_v55, %v3084_v55  ;;  %v3086_v6 = vld [vmem:[#allocation14_spill] sm:$0xff] }
 0x166   :  { %v1543_v56 = vadd.f32 %v1542_v46, %v1386_v45  ;;  %v1394_v63 = vmul.f32 %v3085_v50, %v3085_v50  ;;  %v1397_v45 = vmul.f32 %v3086_v6, %v3086_v6 }
 0x167   :  { %v1279_v9 = vadd.f32 %v1278_v23, %v3081_v52  ;;  %v1211_v18 = vadd.f32 %v1210_v12, %v3080_v22  ;;  %v1476_v35 = vadd.f32 %v1475_v25, %v1389_v47  ;;  %v3087_v47 = vld [vmem:[#allocation13_spill] sm:$0xff]  ;;  %v3088_v12 = vld [vmem:[#allocation16_spill] sm:$0xff] }
 0x168   :  { %v1544_v62 = vadd.f32 %v1543_v56, %v1388_v61  ;;  %v1396_v51 = vmul.f32 %v3087_v47, %v3087_v47  ;;  %v1399_v61 = vmul.f32 %v3088_v12, %v3088_v12 }
 0x169   :  { %v1212_v49 = vadd.f32 %v1211_v18, %v3082_v3  ;;  %v1477_v19 = vadd.f32 %v1476_v35, %v1391_v17  ;;  %v1280_v11 = vadd.f32 %v1279_v9, %v3083_v58  ;;  %v3089_v17 = vld [vmem:[#allocation15_spill] sm:$0xff]  ;;  %v1401_v35 = vmul.f32 %v2356_v13, %v2356_v13  ;;  %v3090_v3 = vld [vmem:[#allocation17_spill] sm:$0xff] }
 0x16a   :  { %v1545_v4 = vadd.f32 %v1544_v62, %v1390_v1  ;;  %v1398_v9 = vmul.f32 %v3089_v17, %v3089_v17  ;;  %v1403_v58 = vmul.f32 %v2388_v42, %v2388_v42 }
 0x16b   :  { %v1213_v0 = vadd.f32 %v1212_v49, %v3084_v55  ;;  %v1478_v27 = vadd.f32 %v1477_v19, %v1393_v31  ;;  %v1281_v10 = vadd.f32 %v1280_v11, %v3085_v50  ;;  %v1400_v49 = vmul.f32 %v3090_v3, %v3090_v3 }
 0x16c   :  { %v1546_v43 = vadd.f32 %v1545_v4, %v1392_v44  ;;  %v3091_v4 = vld [vmem:[#allocation18_spill] sm:$0xff] }
 0x16d   :  { %v1214_v46 = vadd.f32 %v1213_v0, %v3086_v6  ;;  %v1479_v16 = vadd.f32 %v1478_v27, %v1395_v29  ;;  %v1282_v25 = vadd.f32 %v1281_v10, %v3087_v47  ;;  %v1402_v29 = vmul.f32 %v3091_v4, %v3091_v4  ;;  %v3092_v10 = vld [vmem:[#allocation19_spill] sm:$0xff] }
 0x16e   :  { %v1547_v23 = vadd.f32 %v1546_v43, %v1394_v63  ;;  %v1404_v43 = vmul.f32 %v3092_v10, %v3092_v10  ;;  %v1406_v47 = vmul.f32 %v2435_v57, %v2435_v57 }
 0x16f   :  { %v1215_v56 = vadd.f32 %v1214_v46, %v3088_v12  ;;  %v1480_v22 = vadd.f32 %v1479_v16, %v1397_v45  ;;  %v1283_v52 = vadd.f32 %v1282_v25, %v3089_v17  ;;  %v1407_v45 = vmul.f32 %v2447_v36, %v2447_v36 }
 0x170   :  { %v1548_v18 = vadd.f32 %v1547_v23, %v1396_v51  ;;  %v1409_v12 = vmul.f32 %v2476_v28, %v2476_v28 }
 0x171   :  { %v1216_v1 = vadd.f32 %v1215_v56, %v2356_v13  ;;  %v1481_v62 = vadd.f32 %v1480_v22, %v1399_v61  ;;  %v1284_v31 = vadd.f32 %v1283_v52, %v3090_v3  ;;  %v1405_v13 = vmul.f32 %v2419_v30, %v2419_v30 }
 0x172   :  { %v1549_v19 = vadd.f32 %v1548_v18, %v1398_v9  ;;  %v1408_v61 = vmul.f32 %v2463_v5, %v2463_v5  ;;  %v1410_v9 = vmul.f32 %v2507_v2, %v2507_v2 }
 0x173   :  { %v1217_v11 = vadd.f32 %v1216_v1, %v2388_v42  ;;  %v1482_v44 = vadd.f32 %v1481_v62, %v1401_v35  ;;  %v1285_v55 = vadd.f32 %v1284_v31, %v3091_v4  ;;  %v1412_v62 = vmul.f32 %v2537_v26, %v2537_v26 }
 0x174   :  { %v1550_v0 = vadd.f32 %v1549_v19, %v1400_v49  ;;  %v1414_v19 = vmul.f32 %v2567_v38, %v2567_v38 }
 0x175   :  { %v1218_v27 = vadd.f32 %v1217_v11, %v2419_v30  ;;  %v1483_v50 = vadd.f32 %v1482_v44, %v1403_v58  ;;  %v1286_v63 = vadd.f32 %v1285_v55, %v3092_v10  ;;  %v3093_v11 = vld [vmem:[#allocation21_spill] sm:$0xff] }
 0x176   :  { %v1551_v6 = vadd.f32 %v1550_v0, %v1402_v29  ;;  %v1416_v55 = vmul.f32 %v3093_v11, %v3093_v11  ;;  %v3094_v0 = vld [vmem:[#allocation22_spill] sm:$0xff] }
 0x177   :  { %v1219_v42 = vadd.f32 %v1218_v27, %v2447_v36  ;;  %v1484_v46 = vadd.f32 %v1483_v50, %v1405_v13  ;;  %v1287_v16 = vadd.f32 %v1286_v63, %v2435_v57  ;;  %v1411_v57 = vmul.f32 %v2521_v40, %v2521_v40  ;;  %v3095_v63 = vld [vmem:[#allocation23_spill] sm:$0xff] }
 0x178   :  { %v1552_v25 = vadd.f32 %v1551_v6, %v1404_v43  ;;  %v1418_v50 = vmul.f32 %v3094_v0, %v3094_v0  ;;  %v1421_v6 = vmul.f32 %v2668_v59, %v2668_v59 }
 0x179   :  { %v1485_v30 = vadd.f32 %v1484_v46, %v1407_v45  ;;  %v1288_v51 = vadd.f32 %v1287_v16, %v2463_v5  ;;  %v1220_v23 = vadd.f32 %v1219_v42, %v2476_v28  ;;  %v1413_v5 = vmul.f32 %v2551_v15, %v2551_v15 }
 0x17a   :  { %v1553_v56 = vadd.f32 %v1552_v25, %v1406_v47  ;;  %v1420_v45 = vmul.f32 %v3095_v63, %v3095_v63  ;;  %v1423_v47 = vmul.f32 %v2690_v20, %v2690_v20 }
 0x17b   :  { %v1486_v36 = vadd.f32 %v1485_v30, %v1409_v12  ;;  %v1289_v22 = vadd.f32 %v1288_v51, %v2507_v2  ;;  %v1221_v17 = vadd.f32 %v1220_v23, %v2521_v40  ;;  %v1415_v2 = vmul.f32 %v2581_v8, %v2581_v8  ;;  %v3096_v23 = vld [vmem:[#allocation24_spill] sm:$0xff] }
 0x17c   :  { %v1554_v52 = vadd.f32 %v1553_v56, %v1408_v61  ;;  %v1422_v30 = vmul.f32 %v2682_v34, %v2682_v34  ;;  %v1425_v61 = vmul.f32 %v2714_v53, %v2714_v53 }
 0x17d   :  { %v1487_v18 = vadd.f32 %v1486_v36, %v1411_v57  ;;  %v1290_v35 = vadd.f32 %v1289_v22, %v2537_v26  ;;  %v1222_v28 = vadd.f32 %v1221_v17, %v2551_v15  ;;  %v1417_v26 = vmul.f32 %v2611_v48, %v2611_v48  ;;  %v3097_v17 = vld [vmem:[#allocation25_spill] sm:$0xff] }
 0x17e   :  { %v1555_v1 = vadd.f32 %v1554_v52, %v1410_v9  ;;  %v1424_v36 = vmul.f32 %v3096_v23, %v3096_v23  ;;  %v1426_v9 = vmul.f32 %v3097_v17, %v3097_v17 }
 0x17f   :  { %v1488_v3 = vadd.f32 %v1487_v18, %v1413_v5  ;;  %v1291_v31 = vadd.f32 %v1290_v35, %v2567_v38  ;;  %v1223_v40 = vadd.f32 %v1222_v28, %v2581_v8  ;;  %v1419_v38 = vmul.f32 %v2640_v60, %v2640_v60 }
 0x180   :  { %v1556_v49 = vadd.f32 %v1555_v1, %v1412_v62  ;;  %v1429_v28 = vmul.f32 %v2747_v32, %v2747_v32  ;;  %v1428_v1 = vmul.f32 %v2743_v37, %v2743_v37 }
 0x181   :  { %v1489_v58 = vadd.f32 %v1488_v3, %v1415_v2  ;;  %v1292_v44 = vadd.f32 %v1291_v31, %v3093_v11  ;;  %v1224_v15 = vadd.f32 %v1223_v40, %v2611_v48  ;;  %v1431_v31 = vmul.f32 %v2759_v39, %v2759_v39 }
 0x182   :  { %v1557_v4 = vadd.f32 %v1556_v49, %v1414_v19  ;;  %v1430_v2 = vmul.f32 %v2755_v21, %v2755_v21  ;;  %v1432_v11 = vmul.f32 %v2767_v7, %v2767_v7 }
 0x183   :  { %v1490_v29 = vadd.f32 %v1489_v58, %v1417_v26  ;;  %v1293_v13 = vadd.f32 %v1292_v44, %v3094_v0  ;;  %v1225_v8 = vadd.f32 %v1224_v15, %v2640_v60 }
 0x184   :  { %v1558_v27 = vadd.f32 %v1557_v4, %v1416_v55  ;;  %v1434_v4 = vmul.f32 %v2781_v24, %v2781_v24 }
 0x185   :  { %v1491_v10 = vadd.f32 %v1490_v29, %v1419_v38  ;;  %v1294_v43 = vadd.f32 %v1293_v13, %v3095_v63  ;;  %v1226_v48 = vadd.f32 %v1225_v8, %v2668_v59 }
 0x186   :  { %v1559_v42 = vadd.f32 %v1558_v27, %v1418_v50 }
 0x187   :  { %v1492_v46 = vadd.f32 %v1491_v10, %v1421_v6  ;;  %v1295_v16 = vadd.f32 %v1294_v43, %v2682_v34  ;;  %v1227_v60 = vadd.f32 %v1226_v48, %v2690_v20  ;;  %v1427_v34 = vmul.f32 %v2734_v33, %v2734_v33 }
 0x188   :  { %v1560_v25 = vadd.f32 %v1559_v42, %v1420_v45 }
 0x189   :  { %v1493_v51 = vadd.f32 %v1492_v46, %v1423_v47  ;;  %v1296_v12 = vadd.f32 %v1295_v16, %v3096_v23  ;;  %v1228_v59 = vadd.f32 %v1227_v60, %v2714_v53  ;;  %v3098_v46 = vlaneseq }
 0x18a   :  { %v1561_v56 = vadd.f32 %v1560_v25, %v1422_v30 }
 0x18b   :  { %v1494_v22 = vadd.f32 %v1493_v51, %v1425_v61  ;;  %v1297_v57 = vadd.f32 %v1296_v12, %v3097_v17  ;;  %v1229_v20 = vadd.f32 %v1228_v59, %v2734_v33  ;;  %v1593_v16 = vshrl.u32 %v3098_v46, 7 }
 0x18c   :  { %v1562_v52 = vadd.f32 %v1561_v56, %v1424_v36 }
 0x18d   :  { %v1495_v18 = vadd.f32 %v1494_v22, %v1427_v34  ;;  %v1298_v35 = vadd.f32 %v1297_v57, %v2743_v37  ;;  %v1230_v53 = vadd.f32 %v1229_v20, %v2747_v32  ;;  %v1433_v37 = vmul.f32 %v2771_v14, %v2771_v14  ;;  %v1585_v34 = vld [vmem:[%s3010_s3] sm:$0x3] }
 0x18e   :  { %v1563_v5 = vadd.f32 %v1562_v52, %v1426_v9 }
 0x18f   :  { %v1496_v62 = vadd.f32 %v1495_v18, %v1429_v28  ;;  %v1299_v3 = vadd.f32 %v1298_v35, %v2755_v21  ;;  %v1231_v33 = vadd.f32 %v1230_v53, %v2759_v39  ;;  %v1435_v21 = vmul.f32 %v2786_v41, %v2786_v41  ;;  %v1610_v53 = vld [vmem:[%s3011_s4] sm:$0x3] }
 0x190   :  { %v1564_v40 = vadd.f32 %v1563_v5, %v1428_v1 }
 0x191   :  { %v1497_v49 = vadd.f32 %v1496_v62, %v1431_v31  ;;  %v1300_v19 = vadd.f32 %v1299_v3, %v2767_v7  ;;  %v1232_v32 = vadd.f32 %v1231_v33, %v2771_v14  ;;  %v1436_v7 = vmul.f32 %v2802_v54, %v2802_v54 }
 0x192   :  { %v1565_v58 = vadd.f32 %v1564_v40, %v1430_v2 }
 0x193   :  { %v1498_v44 = vadd.f32 %v1497_v49, %v1433_v37  ;;  %v1301_v15 = vadd.f32 %v1300_v19, %v2781_v24  ;;  %v1233_v39 = vadd.f32 %v1232_v32, %v2786_v41  ;;  %v1910_v41 = vmov 1966171168  }
 0x194   :  { %v1566_v26 = vadd.f32 %v1565_v58, %v1432_v11  ;;  %v1590_v43 = vunpack.c.l.s4 %v1910_v41 }
 0x195   :  { %v1234_v55 = vrot.slane %v1233_v39, 4  ;;  %v1499_v29 = vadd.f32 %v1498_v44, %v1435_v21  ;;  %v1302_v14 = vadd.f32 %v1301_v15, %v2802_v54 }
 0x196   :  { %v1567_v0 = vadd.f32 %v1566_v26, %v1434_v4  ;;  %v1591_v54 = vunpack.c.0.s8 %v1590_v43 }
 0x197   :  { %v1235_v13 = vadd.f32 %v1234_v55, %v1233_v39  ;;  %v1500_v8 = vrot.slane %v1499_v29, 4  ;;  %v1303_v38 = vrot.slane %v1302_v14, 4 }
 0x198   :  { %v1568_v27 = vadd.f32 %v1567_v0, %v1436_v7  ;;  %v1594_v56 = vsub.s32 %v1591_v54, %v1593_v16 }
 0x199   :  { %v1236_v50 = vrot.slane %v1235_v13, 2  ;;  %v1501_v10 = vadd.f32 %v1500_v8, %v1499_v29  ;;  %v1304_v63 = vadd.f32 %v1303_v38, %v1302_v14 }
 0x19a   :  { %v1569_v48 = vrot.slane %v1568_v27, 4 }
 0x19b   :  { %v1237_v6 = vadd.f32 %v1236_v50, %v1235_v13  ;;  %v1502_v24 = vrot.slane %v1501_v10, 2  ;;  %v1305_v42 = vrot.slane %v1304_v63, 2 }
 0x19c   :  { %v1570_v45 = vadd.f32 %v1569_v48, %v1568_v27 }
 0x19d   :  { %v1238_v60 = vrot.slane %v1237_v6, 1  ;;  %v1503_v47 = vadd.f32 %v1502_v24, %v1501_v10  ;;  %v1306_v25 = vadd.f32 %v1305_v42, %v1304_v63 }
 0x19e   :  { %v1571_v30 = vrot.slane %v1570_v45, 2 }
 0x19f   :  { %v1307_v51 = vrot.slane %v1306_v25, 1  ;;  %v1504_v23 = vrot.slane %v1503_v47, 1  ;;  %v1239_v59 = vadd.f32 %v1238_v60, %v1237_v6 }
 0x1a0   :  { %v1572_v12 = vadd.f32 %v1571_v30, %v1570_v45 }
 0x1a1   :  { %v1308_v61 = vadd.f32 %v1307_v51, %v1306_v25  ;;  %v1505_v17 = vadd.f32 %v1504_v23, %v1503_v47 }
 0x1a2   :  { %v1573_v36 = vrot.slane %v1572_v12, 1 }
 0x1a3   :  { %v1588_v22 = vcombine.low %v1239_v59, %v1308_v61 }
 0x1a4   :  { %v1574_v57 = vadd.f32 %v1573_v36, %v1572_v12 }
 0x1a5   :  { %v1595_v20 = vrot.slane %v1588_v22, %v1594_v56 }
 0x1a6   :  { %v1613_v52 = vcombine.low %v1505_v17, %v1574_v57 }
 0x1a7   :  { %v1602_v9 = vrot.slane %v1595_v20, %v1594_v56 }
 0x1a8   :  { %v1620_v18 = vrot.slane %v1613_v52, %v1594_v56 }
 0x1a9   :  { %v1604_v35 = vadd.f32 %v1602_v9, %v1585_v34 }
 0x1aa   :  { %v1627_v28 = vrot.slane %v1620_v18, %v1594_v56 }
 0x1ab   :  { %1609 = vst.msk [vmem:[%s3010_s3] sm:$0x3] %vm2479_vm3, %v1604_v35 }
 0x1ac   :  { %v1629_v1 = vadd.f32 %v1627_v28, %v1610_v53 }
 0x1ae   :  { %1630 = vst.msk [vmem:[%s3011_s4] sm:$0x3] %vm2479_vm3, %v1629_v1 }
 0x1af   :  { %1643 = vsyncpa [#allocation3], 1 }

// kernel: _device_forward.7
= control target key start
LH: loop header
LB: loop body
LE: loop exit
PB: predicated region body
PF: predicated region fallthrough
CT: control target
= control target key end

     0   :  { %s2891_s15 = smov 0   ;;  %s2893_s16 = smov 0   ;;  %s3360_s0 = inlined_call_operand.vmem [shape: bf16[4,2,10,10,64], index: 0, kind: input, shape index: {}]   ;;  %s3361_s1 = inlined_call_operand.vmem [shape: bf16[4,576,128], index: 1, kind: input, shape index: {}]   ;;  %s3362_s2 = inlined_call_operand.vmem [shape: bf16[4,2,64,128], index: 2, kind: output, shape index: {0}]   ;;  %s3363_s3 = inlined_call_operand.vmem [shape: f32[4,1,128], index: 3, kind: output, shape index: {1}]   ;;  %s3364_s4 = inlined_call_operand.vmem [shape: f32[4,1,128], index: 4, kind: output, shape index: {2}]  }
   0x1   :  { %s2895_s17 = smov 0   ;;  %s2897_s18 = smov 0  }
   0x2   :  { %s2899_s19 = smov 0  }
   0x3 LB: > { %s24_s20 = sadd.s32 1, %s2855_s17  ;;  %s27_s21 = sadd.s32 1, %s2859_s18  ;;  %s2863_s19 = sphi %s2899_s19, %s15_s19   ;;  %s2859_s18 = sphi %s2897_s18, %s3382_s18   ;;  %s2855_s17 = sphi %s2895_s17, %s3381_s17   ;;  %s2851_s16 = sphi %s2893_s16, %s3380_s16   ;;  %s2847_s15 = sphi %s2891_s15, %s3379_s15  }
   0x4   : > { %p25_p0 = scmp.ge.s32.totalorder %s24_s20, 2  ;;  %p2265_p1 = scmp.ge.s32.totalorder %s2863_s19, 1 }
   0x5   : > { %p197_p2 = scmp.lt.s32.totalorder %s2863_s19, 9 }
   0x6   : > { %s3384_s20 = smov (%p25_p0, %s24_s20), 0  ;;  %s3386_s21 = smov (!%p25_p0, %s27_s21), %s2859_s18 }
   0x7   : > { %p198_p3 = pnand %p2265_p1, %p197_p2  ;;  %p29_p4 = scmp.ge.s32.totalorder %s3386_s21, 4 }
   0x9   : > { %s3388_s21 = smov (%p29_p4, %s3386_s21), 0  ;;  %201 = sbr.rel (%p198_p3) target bundleno = 350 (0x15e), region = 28 }
   0xe   : > { %p242_p5 = scmp.lt.s32.totalorder %s2851_s16, 3  ;;  %p244_p6 = scmp.lt.s32.totalorder %s2847_s15, 1  ;;  %vm296_vm0 = vsmask.f32 3328  ;;  %vm297_vm1 = vsmask.f32 7440 }
   0xf   : > { %vm455_vm2 = vcmask 523264   ;;  %vm2987_vm3 = vmor %vm296_vm0, %vm297_vm1  ;;  %vm678_vm4 = vcmask 1042432   ;;  %vm679_vm5 = vcmask 1046532   ;;  %p2475_p7 = scmp.ne.s32.totalorder %s2847_s15, 0 }
  0x10   : > { %s3390_s16 = smov (!%p242_p5, %s2851_s16), 3  ;;  %vm3038_vm6 = vmor %vm678_vm4, %vm679_vm5 }
  0x11   : > { %s2927_s22 = scalar_select %p244_p6, %s2847_s15, 1 }
  0x12   : > { %s2734_s23 = smul.u32 40, %s3390_s16  ;;  %s2934_s26 = scalar_lea.vmem %s3363_s3, %s3390_s16 }
  0x13   : > { %s2733_s27 = smul.u32 20, %s2927_s22  ;;  %s2941_s30 = scalar_lea.vmem %s3364_s4, %s3390_s16 }
  0x14   : > { %s2735_s5 = smul.u32 288, %s3390_s16  ;;  %s2268_s14 = sshll.u32 %s2927_s22, 3 }
  0x15   : > { %s248_s6 = sadd.s32 %s2734_s23, %s2733_s27  ;;  %s2269_s23 = sshll.u32 %s3390_s16, 4 }
  0x16   : > { %s2947_s9 = scalar_lea.vmem %s3361_s1, %s2735_s5  ;;  %s2266_s10 = sshll.u32 %s248_s6, 2 }
  0x17   : > { %v2777_v0 = vld [vmem:[%s2947_s9 + $0x38] sm:$0xff]   ;;  %v2779_v2 = vld [vmem:[%s2947_s9 + $0x30] sm:$0xff]   ;;  %v2781_v4 = vld [vmem:[%s2947_s9 + $0x28] sm:$0xff]   ;;  %s2957_s13 = scalar_lea.vmem %s3360_s0, %s2266_s10  ;;  %s262_s24 = sadd.s32 %s2269_s23, %s2268_s14 }
  0x18   : > { %v2778_v1 = vld [vmem:[%s2947_s9 + $0x18] sm:$0xff]   ;;  %2581 = vmatprep.subr.bf16.mxu0 %v2777_v0  ;;  %v2780_v3 = vld [vmem:[%s2947_s9 + $0x10] sm:$0xff]   ;;  %v2782_v5 = vld [vmem:[%s2947_s9 + $0x8] sm:$0xff]   ;;  %s2270_s16 = sshll.u32 %s262_s24, 2 }
  0x19   : > { %2597 = vmatprep.subr.bf16.mxu1 %v2778_v1  ;;  %2582 = vmatpush3.bf16.msra.mxu0 %v2777_v0  ;;  %v2783_v6 = vld [vmem:[%s2947_s9 + $0x20] sm:$0xff]   ;;  %v273_v9 = vld [vmem:[%s2957_s13 + $0x8] sm:$0xf]  ;;  %v2968_v11 = vld [vmem:[%s2957_s13 + $0xc] sm:$0x1]  ;;  %s3332_s27 = scalar_lea.vmem %s3362_s2, %s2270_s16 }
  0x1a   : > { %2598 = vmatpush3.bf16.msra.mxu1 %v2778_v1  ;;  %2583 = vmatprep.subr.bf16.mxu0 %v2779_v2  ;;  %v2784_v7 = vld [vmem:[%s2947_s9] sm:$0xff]   ;;  %v314_v15 = vshrl.u32 %v273_v9, 16  ;;  %v317_v16 = vshll.u32 %v273_v9, 16  ;;  %v323_v17 = vshll.u32 %v2968_v11, 16  ;;  %v274_v19 = vld [vmem:[%s2957_s13 + $0x10] sm:$0xf] }
  0x1b   : > { %2599 = vmatprep.subr.bf16.mxu1 %v2780_v3  ;;  %v272_v8 = vld [vmem:[%s2957_s13] sm:$0xf]  ;;  %v2965_v10 = vld [vmem:[%s2957_s13 + $0x4] sm:$0x1]  ;;  %v275_v24 = vld [vmem:[%s2957_s13 + $0x18] sm:$0xf] }
  0x1c   : > { %v300_v12 = vshrl.u32 %v272_v8, 16  ;;  %v303_v13 = vshll.u32 %v272_v8, 16  ;;  %v309_v14 = vshll.u32 %v2965_v10, 16  ;;  %v683_v18 = vrot.slane %v2965_v10, 5  ;;  %v2976_v28 = vld [vmem:[%s2957_s13 + $0x14] sm:$0x1] }
  0x1d   : > { %2584 = vmatpush3.bf16.msra.mxu0 %v2779_v2  ;;  %v316_v23 = vrot.slane %v314_v15, 4  ;;  %v319_v25 = vrot.slane %v317_v16, 5  ;;  %v325_v26 = vrot.slane %v323_v17, 5  ;;  %v2283_v27 = vcombine.low %v272_v8, %v273_v9  ;;  %v2979_v29 = vld [vmem:[%s2957_s13 + $0x1c] sm:$0x1]  ;;  %v2790_v59 = vld [vmem:[%s2947_s9 + $0x70] sm:$0xff]  }
  0x1e   : > { %2600 = vmatpush3.bf16.msra.mxu1 %v2780_v3  ;;  %2585 = vmatprep.subr.bf16.mxu0 %v2781_v4  ;;  %v302_v20 = vrot.slane %v300_v12, 4  ;;  %v305_v21 = vrot.slane %v303_v13, 5  ;;  %v311_v22 = vrot.slane %v309_v14, 5  ;;  %v328_v31 = vshrl.u32 %v274_v19, 16  ;;  %v2983_v34 = vld [vmem:[%s2947_s9 + $0x58] sm:$0xff]   ;;  %v2794_v15 = vld [vmem:[%s2947_s9 + $0x68] sm:$0xff]  }
  0x1f   : > { %2601 = vmatprep.subr.bf16.mxu1 %v2782_v5  ;;  %v331_v32 = vshll.u32 %v274_v19, 16  ;;  %v337_v33 = vshll.u32 %v2976_v28, 16  ;;  %v320_v36 = vor.u32 %v319_v25, %v316_v23  ;;  %2605 = vmatprep.mubr.msk.bf16.mxu1 %vm455_vm2, %v2283_v27  ;;  %v342_v37 = vshrl.u32 %v275_v24, 16  ;;  %v2788_v40 = vld [vmem:[%s2947_s9 + $0x78] sm:$0xff]   ;;  %v276_v60 = vld [vmem:[%s2957_s13 + $0x20] sm:$0xf] }
  0x20   : > { %v306_v30 = vor.u32 %v305_v21, %v302_v20  ;;  %v345_v38 = vshll.u32 %v275_v24, 16  ;;  %v351_v39 = vshll.u32 %v2979_v29, 16  ;;  %v330_v42 = vrot.slane %v328_v31, 4  ;;  %v277_v61 = vld [vmem:[%s2957_s13 + $0x28] sm:$0xf]  ;;  %v2789_v17 = vld [vmem:[%s2947_s9 + $0x50] sm:$0xff]  }
  0x21   : > { %2586 = vmatpush3.bf16.msra.mxu0 %v2781_v4  ;;  %v333_v43 = vrot.slane %v331_v32, 5  ;;  %v2284_v44 = vcombine.low %v274_v19, %v275_v24  ;;  %v321_v45 = vrot.slane %v320_v36, 4  ;;  %v687_v46 = vrot.slane %v2968_v11, 5  ;;  %v3007_v63 = vld [vmem:[%s2957_s13 + $0x24] sm:$0x1] }
  0x22   : > { %2602 = vmatpush3.bf16.msra.mxu1 %v2782_v5  ;;  %2587 = vmatprep.subr.bf16.mxu0 %v2783_v6  ;;  %v307_v41 = vrot.slane %v306_v30, 4  ;;  %v344_v47 = vrot.slane %v342_v37, 4  ;;  %v347_v48 = vrot.slane %v345_v38, 5  ;;  %v339_v51 = vrot.slane %v337_v33, 5  ;;  %v3010_v0 = vld [vmem:[%s2957_s13 + $0x2c] sm:$0x1] }
  0x23   : > { %2603 = vmatprep.subr.bf16.mxu1 %v2784_v7  ;;  %v334_v50 = vor.u32 %v333_v43, %v330_v42  ;;  %v353_v52 = vrot.slane %v351_v39, 5  ;;  %v326_v53 = vsel %vm2987_vm3, %v321_v45, %v325_v26  ;;  %v691_v55 = vrot.slane %v2976_v28, 5  ;;  %v279_v14 = vld [vmem:[%s2957_s13 + $0x38] sm:$0xf]  ;;  %v3028_v25 = vld [vmem:[%s2957_s13 + $0x3c] sm:$0x1] }
  0x24   : > { %v312_v49 = vsel %vm2987_vm3, %v307_v41, %v311_v22  ;;  %v348_v54 = vor.u32 %v347_v48, %v344_v47  ;;  %v695_v56 = vrot.slane %v2979_v29, 5  ;;  %v356_v1 = vshrl.u32 %v276_v60, 16  ;;  %v3025_v22 = vld [vmem:[%s2957_s13 + $0x34] sm:$0x1]  ;;  %v2796_v36 = vld [vmem:[%s2947_s9 + $0x60] sm:$0xff]   ;;  %v2793_v41 = vld [vmem:[%s2947_s9 + $0x48] sm:$0xff]  }
  0x25   : > { %2588 = vmatpush3.bf16.msra.mxu0 %v2783_v6  ;;  %v2271_v57 = vcombine.low %v312_v49, %v326_v53  ;;  %v335_v58 = vrot.slane %v334_v50, 4  ;;  %v2285_v2 = vcombine.low %v276_v60, %v277_v61  ;;  %v359_v4 = vshll.u32 %v276_v60, 16 }
  0x26   : > { %2604 = vmatpush3.bf16.msra.mxu1 %v2784_v7  ;;  %2613 = vmatprep.subr.bf16.mxu0 %v2983_v34  ;;  %v349_v62 = vrot.slane %v348_v54, 4  ;;  %v365_v5 = vshll.u32 %v3007_v63, 16  ;;  %v370_v6 = vshrl.u32 %v277_v61, 16  ;;  %v278_v7 = vld [vmem:[%s2957_s13 + $0x30] sm:$0xf]  ;;  %v358_v9 = vrot.slane %v356_v1, 4 }
  0x27   : > { %2629 = vmatprep.subr.bf16.mxu1 %v2788_v40  ;;  %2589 = vmatprep.mubr.msk.bf16.mxu0 %vm455_vm2, %v2271_v57  ;;  %v340_v3 = vsel %vm2987_vm3, %v335_v58, %v339_v51  ;;  %v373_v12 = vshll.u32 %v277_v61, 16  ;;  %v379_v13 = vshll.u32 %v3010_v0, 16  ;;  %v361_v19 = vrot.slane %v359_v4, 5  ;;  %v654_v57 = vld [vmem:[%s2957_s13] sm:$0xe] }
  0x28   : > { %v354_v8 = vsel %vm2987_vm3, %v349_v62, %v353_v52  ;;  %v367_v20 = vrot.slane %v365_v5, 5  ;;  %v372_v21 = vrot.slane %v370_v6, 4  ;;  %v384_v26 = vshrl.u32 %v278_v7, 16  ;;  %v655_v58 = vld [vmem:[%s2957_s13 + $0x8] sm:$0xe]  ;;  %v2795_v62 = vld [vmem:[%s2947_s9 + $0x40] sm:$0xff]  }
  0x29   : > { %2606 = vmatmul.mubr.msk.bf16.vlgmr.msra.gmra.mxu1 %vm455_vm2, %v2284_v44  ;;  %v2272_v16 = vcombine.low %v340_v3, %v354_v8  ;;  %v375_v23 = vrot.slane %v373_v12, 5  ;;  %v381_v24 = vrot.slane %v379_v13, 5  ;;  %v387_v27 = vshll.u32 %v278_v7, 16  ;;  %v2797_v4 = vld [vmem:[%s2957_s13 + $0x8] ss:$8 sps:$4 sm:$0xff]   ;;  %v2799_v13 = vld [vmem:[%s2947_s9 + $0x98] sm:$0xff]  }
  0x2a   : > { %2630 = vmatpush3.bf16.msra.mxu1 %v2788_v40  ;;  %2609 = vmatprep.mubr.msk.bf16.mxu1 %vm455_vm2, %v2285_v2  ;;  %v362_v30 = vor.u32 %v361_v19, %v358_v9  ;;  %v393_v31 = vshll.u32 %v3025_v22, 16  ;;  %v398_v32 = vshrl.u32 %v279_v14, 16  ;;  %v401_v33 = vshll.u32 %v279_v14, 16  ;;  %v656_v5 = vld [vmem:[%s2957_s13 + $0x10] sm:$0xe] }
  0x2b   : > { %2631 = vmatprep.subr.bf16.mxu1 %v2790_v59  ;;  %2590 = vmatmul.mubr.msk.bf16.vlgmr.msra.gmra.mxu0 %vm455_vm2, %v2272_v16  ;;  %v376_v37 = vor.u32 %v375_v23, %v372_v21  ;;  %v386_v38 = vrot.slane %v384_v26, 4  ;;  %v389_v39 = vrot.slane %v387_v27, 5  ;;  %v407_v40 = vshll.u32 %v3028_v25, 16  ;;  %v657_v9 = vld [vmem:[%s2957_s13 + $0x18] sm:$0xe]  ;;  %v2801_v23 = vld [vmem:[%s2947_s9 + $0x90] sm:$0xff]  }
  0x2c   : > { %2614 = vmatpush3.bf16.msra.mxu0 %v2983_v34  ;;  %v363_v42 = vrot.slane %v362_v30, 4  ;;  %v395_v43 = vrot.slane %v393_v31, 5  ;;  %v400_v44 = vrot.slane %v398_v32, 4  ;;  %v403_v45 = vrot.slane %v401_v33, 5  ;;  %v2798_v16 = vld [vmem:[%s2957_s13 + $0x18] ss:$8 sps:$4 sm:$0xff]  }
  0x2d   : > { %2615 = vmatprep.subr.bf16.mxu0 %v2789_v17  ;;  %v377_v47 = vrot.slane %v376_v37, 4  ;;  %v390_v48 = vor.u32 %v389_v39, %v386_v38  ;;  %v409_v49 = vrot.slane %v407_v40, 5  ;;  %v2286_v50 = vcombine.low %v278_v7, %v279_v14  ;;  %v658_v19 = vld [vmem:[%s2957_s13 + $0x20] sm:$0xe]  ;;  %v661_v26 = vld [vmem:[%s2957_s13 + $0x38] sm:$0xe] }
  0x2e   : > { %2632 = vmatpush3.bf16.msra.mxu1 %v2790_v59  ;;  %v368_v51 = vsel %vm2987_vm3, %v363_v42, %v367_v20  ;;  %v404_v52 = vor.u32 %v403_v45, %v400_v44  ;;  %v2800_v59 = vld [vmem:[%s2947_s9 + $0xb8] sm:$0xff]   ;;  %v2295_v1 = vrot.slane %v654_v57, 9  ;;  %v2296_v2 = vrot.slane %v655_v58, 9  ;;  %v2806_v37 = vld [vmem:[%s2947_s9 + $0xa8] sm:$0xff]   ;;  %v2808_v39 = vld [vmem:[%s2947_s9 + $0xa0] sm:$0xff]  }
  0x2f   : > { %2633 = vmatprep.subr.bf16.mxu1 %v2794_v15  ;;  %v382_v53 = vsel %vm2987_vm3, %v377_v47, %v381_v24  ;;  %v391_v54 = vrot.slane %v390_v48, 4  ;;  %v2297_v12 = vrot.slane %v656_v5, 9  ;;  %v2298_v10 = vrot.slane %v657_v9, 9  ;;  %v660_v24 = vld [vmem:[%s2957_s13 + $0x30] sm:$0xe] }
  0x30   : > { %2616 = vmatpush3.bf16.msra.mxu0 %v2789_v17  ;;  %v2273_v60 = vcombine.low %v368_v51, %v382_v53  ;;  %v405_v61 = vrot.slane %v404_v52, 4  ;;  %v684_v7 = vsel %vm3038_vm6, %v2295_v1, %v683_v18  ;;  %v688_v8 = vsel %vm3038_vm6, %v2296_v2, %v687_v46  ;;  %v2802_v17 = vld [vmem:[%s2947_s9 + $0xb0] sm:$0xff]   ;;  %v2335_v40 = vld [vmem:[%s2957_s13 + $0x8] sm:$0xf]  ;;  %v2342_v9 = vld [vmem:[%s2957_s13 + $0x24] sm:$0x1] }
  0x31   : > { %2610 = vmatmul.mubr.msk.bf16.gmra.mxu1 %vm455_vm2, %v2286_v50  ;;  %2617 = vmatprep.subr.bf16.mxu0 %v2793_v41  ;;  %v396_v3 = vsel %vm2987_vm3, %v391_v54, %v395_v43  ;;  %v699_v11 = vrot.slane %v3007_v63, 5  ;;  %v692_v18 = vsel %vm3038_vm6, %v2297_v12, %v691_v55  ;;  %v696_v46 = vsel %vm3038_vm6, %v2298_v10, %v695_v56  ;;  %v659_v63 = vld [vmem:[%s2957_s13 + $0x28] sm:$0xe]  ;;  %v2337_v42 = vld [vmem:[%s2957_s13 + $0x10] sm:$0xf]  ;;  %v2807_v50 = vld [vmem:[%s2947_s9 + $0x80] sm:$0xff]  }
  0x32   : > { %2634 = vmatpush3.bf16.msra.mxu1 %v2794_v15  ;;  %2593 = vmatprep.mubr.msk.bf16.mxu0 %vm455_vm2, %v2273_v60  ;;  %v410_v6 = vsel %vm2987_vm3, %v405_v61, %v409_v49  ;;  %v2303_v15 = vcombine.low %v684_v7, %v688_v8  ;;  %v2299_v20 = vrot.slane %v658_v19, 9  ;;  %v703_v21 = vrot.slane %v3010_v0, 5  ;;  %v2803_v55 = vld [vmem:[%s2957_s13 + $0x28] ss:$8 sps:$4 sm:$0xff]   ;;  %v2338_v43 = vld [vmem:[%s2957_s13 + $0x14] sm:$0x1] }
  0x33   : > { %2635 = vmatprep.subr.bf16.mxu1 %v2796_v36  ;;  %v2274_v14 = vcombine.low %v396_v3, %v410_v6  ;;  %2637 = vmatprep.mubr.msk.bf16.mxu1 %vm455_vm2, %v2797_v4  ;;  %v2300_v28 = vrot.slane %v659_v63, 9  ;;  %v2304_v29 = vcombine.low %v692_v18, %v696_v46  ;;  %v707_v27 = vrot.slane %v3025_v22, 5  ;;  %v2805_v22 = vld [vmem:[%s2947_s9 + $0x88] sm:$0xff]   ;;  %v2364_v54 = vld [vmem:[%s2957_s13 + $0x10] sm:$0xe]  ;;  %v3127_v19 = vld [vmem:[%s2947_s9 + $0xd8] sm:$0xff]  }
  0x34   : > { %2618 = vmatpush3.bf16.msra.mxu0 %v2793_v41  ;;  %v700_v56 = vsel %vm3038_vm6, %v2299_v20, %v699_v11  ;;  %v711_v0 = vrot.slane %v3028_v25, 5  ;;  %v2301_v31 = vrot.slane %v660_v24, 9  ;;  %v2302_v32 = vrot.slane %v661_v26, 9  ;;  %v2336_v41 = vld [vmem:[%s2957_s13 + $0xc] sm:$0x1] }
  0x35   : > { %2619 = vmatprep.subr.bf16.mxu0 %v2795_v62  ;;  %2594 = vmatmul.mubr.msk.bf16.gmra.mxu0 %vm455_vm2, %v2274_v14  ;;  %v704_v30 = vsel %vm3038_vm6, %v2300_v28, %v703_v21  ;;  %v1005_v44 = vshrl.u32 %v2335_v40, 16  ;;  %v1008_v45 = vshll.u32 %v2335_v40, 16  ;;  %v1014_v47 = vshll.u32 %v2336_v41, 16  ;;  %v2363_v53 = vld [vmem:[%s2957_s13 + $0x8] sm:$0xe] }
  0x36   : > { %2636 = vmatpush3.bf16.msra.mxu1 %v2796_v36  ;;  %2621 = vmatprep.mubr.msk.bf16.mxu0 %vm455_vm2, %v2303_v15  ;;  %v2305_v33 = vcombine.low %v700_v56, %v704_v30  ;;  %v2804_v36 = vld [vmem:[%s2957_s13 + $0x38] ss:$8 sps:$4 sm:$0xff]   ;;  %v708_v25 = vsel %vm3038_vm6, %v2301_v31, %v707_v27  ;;  %v712_v38 = vsel %vm3038_vm6, %v2302_v32, %v711_v0  ;;  %v1019_v48 = vshrl.u32 %v2337_v42, 16  ;;  %v2340_v4 = vld [vmem:[%s2957_s13 + $0x1c] sm:$0x1] }
  0x37   : > { %2661 = vmatprep.subr.bf16.mxu1 %v2800_v59  ;;  %v2306_v49 = vcombine.low %v708_v25, %v712_v38  ;;  %v1022_v51 = vshll.u32 %v2337_v42, 16  ;;  %v1028_v52 = vshll.u32 %v2338_v43, 16  ;;  %v1007_v57 = vrot.slane %v1005_v44, 4  ;;  %v2339_v61 = vld [vmem:[%s2957_s13 + $0x18] sm:$0xf] }
  0x38   : > { %2620 = vmatpush3.bf16.msra.mxu0 %v2795_v62  ;;  %v1010_v58 = vrot.slane %v1008_v45, 5  ;;  %v1021_v60 = vrot.slane %v1019_v48, 4  ;;  %v2371_v2 = vrot.slane %v2363_v53, 9  ;;  %v1271_v3 = vrot.slane %v2336_v41, 5  ;;  %v2341_v8 = vld [vmem:[%s2957_s13 + $0x20] sm:$0xf] }
  0x39   : > { %2638 = vmatmul.mubr.msk.bf16.vlgmr.msra.gmra.mxu1 %vm455_vm2, %v2798_v16  ;;  %2645 = vmatprep.subr.bf16.mxu0 %v2799_v13  ;;  %v1024_v62 = vrot.slane %v1022_v51, 5  ;;  %v1030_v1 = vrot.slane %v1028_v52, 5  ;;  %v2372_v6 = vrot.slane %v2364_v54, 9  ;;  %v1275_v7 = vrot.slane %v2338_v43, 5  ;;  %v2365_v10 = vld [vmem:[%s2957_s13 + $0x18] sm:$0xe] }
  0x3a   : > { %2662 = vmatpush3.bf16.msra.mxu1 %v2800_v59  ;;  %2641 = vmatprep.mubr.msk.bf16.mxu1 %vm455_vm2, %v2803_v55  ;;  %v1016_v59 = vrot.slane %v1014_v47, 5  ;;  %v1011_v5 = vor.u32 %v1010_v58, %v1007_v57  ;;  %v1033_v14 = vshrl.u32 %v2339_v61, 16  ;;  %v1036_v15 = vshll.u32 %v2339_v61, 16  ;;  %v2366_v16 = vld [vmem:[%s2957_s13 + $0x20] sm:$0xe]  ;;  %v2810_v55 = vld [vmem:[%s2947_s9 + $0xf8] sm:$0xff]  }
  0x3b   : > { %2663 = vmatprep.subr.bf16.mxu1 %v2802_v17  ;;  %v1025_v12 = vor.u32 %v1024_v62, %v1021_v60  ;;  %v1276_v11 = vsel %vm3038_vm6, %v2372_v6, %v1275_v7  ;;  %v1042_v18 = vshll.u32 %v2340_v4, 16  ;;  %v1047_v46 = vshrl.u32 %v2341_v8, 16  ;;  %v2343_v40 = vld [vmem:[%s2957_s13 + $0x28] sm:$0xf]  ;;  %v2344_v41 = vld [vmem:[%s2957_s13 + $0x2c] sm:$0x1] }
  0x3c   : > { %v1035_v21 = vrot.slane %v1033_v14, 4  ;;  %v1038_v28 = vrot.slane %v1036_v15, 5  ;;  %v1050_v24 = vshll.u32 %v2341_v8, 16  ;;  %v1056_v0 = vshll.u32 %v2342_v9, 16  ;;  %v2345_v44 = vld [vmem:[%s2957_s13 + $0x30] sm:$0xf] }
  0x3d   : > { %2622 = vmatmul.mubr.msk.bf16.vlgmr.msra.gmra.mxu0 %vm455_vm2, %v2304_v29  ;;  %v1026_v63 = vrot.slane %v1025_v12, 4  ;;  %v1049_v56 = vrot.slane %v1047_v46, 4  ;;  %v2373_v30 = vrot.slane %v2365_v10, 9  ;;  %v1283_v25 = vrot.slane %v2342_v9, 5  ;;  %v2346_v45 = vld [vmem:[%s2957_s13 + $0x34] sm:$0x1] }
  0x3e   : > { %2664 = vmatpush3.bf16.msra.mxu1 %v2802_v17  ;;  %2646 = vmatpush3.bf16.msra.mxu0 %v2799_v13  ;;  %v1272_v13 = vsel %vm3038_vm6, %v2371_v2, %v1271_v3  ;;  %v1012_v17 = vrot.slane %v1011_v5, 4  ;;  %v1039_v27 = vor.u32 %v1038_v28, %v1035_v21  ;;  %v1052_v32 = vrot.slane %v1050_v24, 5  ;;  %v2812_v51 = vld [vmem:[%s2947_s9 + $0xf0] sm:$0xff]   ;;  %v2367_v54 = vld [vmem:[%s2957_s13 + $0x28] sm:$0xe] }
  0x3f   : > { %2625 = vmatprep.mubr.msk.bf16.mxu0 %vm455_vm2, %v2305_v33  ;;  %2647 = vmatprep.subr.bf16.mxu0 %v2801_v23  ;;  %v2379_v20 = vcombine.low %v1272_v13, %v1276_v11  ;;  %v1031_v26 = vsel %vm2987_vm3, %v1026_v63, %v1030_v1  ;;  %v1279_v33 = vrot.slane %v2340_v4, 5  ;;  %v1061_v47 = vshrl.u32 %v2343_v40, 16  ;;  %v2811_v57 = vld [vmem:[%s2947_s9 + $0xd0] sm:$0xff]   ;;  %v2347_v5 = vld [vmem:[%s2957_s13 + $0x38] sm:$0xf]  ;;  %v2814_v6 = vld [vmem:[%s2947_s9 + $0xe8] sm:$0xff]  }
  0x40   : > { %2665 = vmatprep.subr.bf16.mxu1 %v2806_v37  ;;  %v1017_v29 = vsel %vm2987_vm3, %v1012_v17, %v1016_v59  ;;  %v1053_v38 = vor.u32 %v1052_v32, %v1049_v56  ;;  %v1064_v48 = vshll.u32 %v2343_v40, 16  ;;  %v1070_v52 = vshll.u32 %v2344_v41, 16  ;;  %v2368_v62 = vld [vmem:[%s2957_s13 + $0x30] sm:$0xe]  ;;  %v2348_v13 = vld [vmem:[%s2957_s13 + $0x3c] sm:$0x1] }
  0x41   : > { %2642 = vmatmul.mubr.msk.bf16.gmra.mxu1 %vm455_vm2, %v2804_v36  ;;  %v2351_v31 = vcombine.low %v1017_v29, %v1031_v26  ;;  %v2374_v36 = vrot.slane %v2366_v16, 9  ;;  %v1075_v53 = vshrl.u32 %v2345_v44, 16  ;;  %v1063_v58 = vrot.slane %v1061_v47, 4  ;;  %v2349_v14 = vld [vmem:[%s2957_s13 + $0x40] sm:$0xf]  ;;  %v2813_v28 = vld [vmem:[%s2947_s9 + $0xc8] sm:$0xff]  }
  0x42   : > { %2666 = vmatpush3.bf16.msra.mxu1 %v2806_v37  ;;  %2648 = vmatpush3.bf16.msra.mxu0 %v2801_v23  ;;  %v1044_v23 = vrot.slane %v1042_v18, 5  ;;  %v1040_v37 = vrot.slane %v1039_v27, 4  ;;  %v1066_v59 = vrot.slane %v1064_v48, 5  ;;  %v1078_v60 = vshll.u32 %v2345_v44, 16  ;;  %v2350_v17 = vld [vmem:[%s2957_s13 + $0x44] sm:$0x1] }
  0x43   : > { %2667 = vmatprep.subr.bf16.mxu1 %v2808_v39  ;;  %2649 = vmatprep.subr.bf16.mxu0 %v2805_v22  ;;  %v1284_v43 = vsel %vm3038_vm6, %v2374_v36, %v1283_v25  ;;  %v1084_v61 = vshll.u32 %v2346_v45, 16  ;;  %v1072_v2 = vrot.slane %v1070_v52, 5  ;;  %v1077_v3 = vrot.slane %v1075_v53, 4  ;;  %v2369_v21 = vld [vmem:[%s2957_s13 + $0x38] sm:$0xe]  ;;  %v2816_v26 = vld [vmem:[%s2947_s9 + $0xe0] sm:$0xff]  }
  0x44   : > { %2669 = vmatprep.mubr.msk.bf16.mxu1 %vm455_vm2, %v2379_v20  ;;  %v1045_v42 = vsel %vm2987_vm3, %v1040_v37, %v1044_v23  ;;  %v2375_v4 = vrot.slane %v2367_v54, 9  ;;  %v1067_v8 = vor.u32 %v1066_v59, %v1063_v58  ;;  %v1080_v9 = vrot.slane %v1078_v60, 5  ;;  %v2370_v24 = vld [vmem:[%s2957_s13 + $0x40] sm:$0xe]  ;;  %v3187_v53 = vld [vmem:[%s2957_s13 + $0x14] sm:$0x1] }
  0x45   : > { %2626 = vmatmul.mubr.msk.bf16.gmra.mxu0 %vm455_vm2, %v2306_v49  ;;  %v1054_v49 = vrot.slane %v1053_v38, 4  ;;  %v1086_v12 = vrot.slane %v1084_v61, 5  ;;  %v1287_v15 = vrot.slane %v2344_v41, 5  ;;  %v2376_v10 = vrot.slane %v2368_v62, 9  ;;  %v2413_v54 = vld [vmem:[%s2957_s13 + $0x18] sm:$0xf] }
  0x46   : > { %2668 = vmatpush3.bf16.msra.mxu1 %v2808_v39  ;;  %2650 = vmatpush3.bf16.msra.mxu0 %v2805_v22  ;;  %v1058_v22 = vrot.slane %v1056_v0, 5  ;;  %v1280_v39 = vsel %vm3038_vm6, %v2373_v30, %v1279_v33  ;;  %v1291_v16 = vrot.slane %v2346_v45, 5  ;;  %v1089_v11 = vshrl.u32 %v2347_v5, 16 }
  0x47   : > { %2651 = vmatprep.subr.bf16.mxu0 %v2807_v50  ;;  %2693 = vmatprep.subr.bf16.mxu1 %v2810_v55  ;;  %v1068_v18 = vrot.slane %v1067_v8, 4  ;;  %v1081_v46 = vor.u32 %v1080_v9, %v1077_v3  ;;  %v1092_v63 = vshll.u32 %v2347_v5, 16  ;;  %v1098_v20 = vshll.u32 %v2348_v13, 16  ;;  %v2817_v5 = vld [vmem:[%s2957_s13 + $0x10] ss:$8 sps:$4 sm:$0xff]  }
  0x48   : > { %2653 = vmatprep.mubr.msk.bf16.mxu0 %vm455_vm2, %v2351_v31  ;;  %v1059_v1 = vsel %vm2987_vm3, %v1054_v49, %v1058_v22  ;;  %v1292_v29 = vsel %vm3038_vm6, %v2376_v10, %v1291_v16  ;;  %v1091_v23 = vrot.slane %v1089_v11, 4  ;;  %v1103_v56 = vshrl.u32 %v2349_v14, 16  ;;  %v2411_v49 = vld [vmem:[%s2957_s13 + $0x10] sm:$0xf]  ;;  %v2415_v8 = vld [vmem:[%s2957_s13 + $0x20] sm:$0xf] }
  0x49   : > { %v2352_v7 = vcombine.low %v1045_v42, %v1059_v1  ;;  %v1073_v27 = vsel %vm2987_vm3, %v1068_v18, %v1072_v2  ;;  %v1082_v0 = vrot.slane %v1081_v46, 4  ;;  %v1094_v31 = vrot.slane %v1092_v63, 5  ;;  %v2815_v42 = vld [vmem:[%s2947_s9 + $0xc0] sm:$0xff]   ;;  %v3206_v11 = vld [vmem:[%s2957_s13 + $0x2c] sm:$0x1] }
  0x4a   : > { %2652 = vmatpush3.bf16.msra.mxu0 %v2807_v50  ;;  %v2380_v50 = vcombine.low %v1280_v39, %v1284_v43  ;;  %v1105_v32 = vrot.slane %v1103_v56, 4  ;;  %v1106_v33 = vshll.u32 %v2349_v14, 16  ;;  %v1112_v36 = vshll.u32 %v2350_v17, 16 }
  0x4b   : > { %2677 = vmatprep.subr.bf16.mxu0 %v3127_v19  ;;  %v1087_v37 = vsel %vm2987_vm3, %v1082_v0, %v1086_v12  ;;  %v1095_v22 = vor.u32 %v1094_v31, %v1091_v23  ;;  %v2377_v25 = vrot.slane %v2369_v21, 9  ;;  %v1295_v38 = vrot.slane %v2348_v13, 5 }
  0x4c   : > { %2670 = vmatmul.mubr.msk.bf16.vlgmr.msra.gmra.mxu1 %vm455_vm2, %v2380_v50  ;;  %v2353_v39 = vcombine.low %v1073_v27, %v1087_v37  ;;  %v1108_v40 = vrot.slane %v1106_v33, 5  ;;  %v2378_v41 = vrot.slane %v2370_v24, 9  ;;  %v1299_v45 = vrot.slane %v2350_v17, 5  ;;  %v3180_v50 = vld [vmem:[%s2947_s9 + $0x118] sm:$0xff]   ;;  %v2417_v17 = vld [vmem:[%s2957_s13 + $0x28] sm:$0xf] }
  0x4d   : > { %2694 = vmatpush3.bf16.msra.mxu1 %v2810_v55  ;;  %2654 = vmatmul.mubr.msk.bf16.vlgmr.msra.gmra.mxu0 %vm455_vm2, %v2352_v7  ;;  %v1288_v55 = vsel %vm3038_vm6, %v2375_v4, %v1287_v15  ;;  %v1096_v43 = vrot.slane %v1095_v22, 4  ;;  %v1296_v44 = vsel %vm3038_vm6, %v2377_v25, %v1295_v38  ;;  %v1114_v48 = vrot.slane %v1112_v36, 5  ;;  %v3202_v15 = vld [vmem:[%s2957_s13 + $0x24] sm:$0x1]  ;;  %v2818_v24 = vld [vmem:[%s2957_s13 + $0x20] ss:$8 sps:$4 sm:$0xff]  }
  0x4e   : > { %2695 = vmatprep.subr.bf16.mxu1 %v2812_v51  ;;  %2678 = vmatpush3.bf16.msra.mxu0 %v3127_v19  ;;  %v2381_v30 = vcombine.low %v1288_v55, %v1292_v29  ;;  %v1100_v19 = vrot.slane %v1098_v20, 5  ;;  %v1109_v47 = vor.u32 %v1108_v40, %v1105_v32  ;;  %v1300_v52 = vsel %vm3038_vm6, %v2378_v41, %v1299_v45  ;;  %v3219_v36 = vld [vmem:[%s2947_s9 + $0x110] sm:$0xff]   ;;  %v2421_v40 = vld [vmem:[%s2957_s13 + $0x38] sm:$0xf]  ;;  %v3228_v41 = vld [vmem:[%s2957_s13 + $0x3c] sm:$0x1] }
  0x4f   : > { %2679 = vmatprep.subr.bf16.mxu0 %v2811_v57  ;;  %2657 = vmatprep.mubr.msk.bf16.mxu0 %vm455_vm2, %v2353_v39  ;;  %v2382_v59 = vcombine.low %v1296_v44, %v1300_v52  ;;  %v1593_v60 = vshrl.u32 %v2411_v49, 16  ;;  %v1596_v61 = vshll.u32 %v2411_v49, 16  ;;  %v1602_v62 = vshll.u32 %v3187_v53, 16  ;;  %v2821_v37 = vld [vmem:[%s2957_s13 + $0x30] ss:$8 sps:$4 sm:$0xff]  }
  0x50   : > { %2673 = vmatprep.mubr.msk.bf16.mxu1 %vm455_vm2, %v2381_v30  ;;  %v1110_v58 = vrot.slane %v1109_v47, 4  ;;  %v1607_v1 = vshrl.u32 %v2413_v54, 16  ;;  %v1610_v2 = vshll.u32 %v2413_v54, 16  ;;  %v1621_v18 = vshrl.u32 %v2415_v8, 16  ;;  %v2419_v22 = vld [vmem:[%s2957_s13 + $0x30] sm:$0xf] }
  0x51   : > { %2696 = vmatpush3.bf16.msra.mxu1 %v2812_v51  ;;  %v1101_v51 = vsel %vm2987_vm3, %v1096_v43, %v1100_v19  ;;  %v1598_v7 = vrot.slane %v1596_v61, 5  ;;  %v1604_v12 = vrot.slane %v1602_v62, 5  ;;  %v1624_v63 = vshll.u32 %v2415_v8, 16  ;;  %v3224_v39 = vld [vmem:[%s2957_s13 + $0x34] sm:$0x1] }
  0x52   : > { %2697 = vmatprep.subr.bf16.mxu1 %v2814_v6  ;;  %2680 = vmatpush3.bf16.msra.mxu0 %v2811_v57  ;;  %v3191_v57 = vld [vmem:[%s2957_s13 + $0x1c] sm:$0x1]  ;;  %v1115_v4 = vsel %vm2987_vm3, %v1110_v58, %v1114_v48  ;;  %v1609_v13 = vrot.slane %v1607_v1, 4  ;;  %v1612_v14 = vrot.slane %v1610_v2, 5  ;;  %v1630_v20 = vshll.u32 %v3202_v15, 16 }
  0x53   : > { %2681 = vmatprep.subr.bf16.mxu0 %v2813_v28  ;;  %v1616_v3 = vshll.u32 %v3191_v57, 16  ;;  %v2354_v9 = vcombine.low %v1101_v51, %v1115_v4  ;;  %v1635_v21 = vshrl.u32 %v2417_v17, 16  ;;  %v1623_v55 = vrot.slane %v1621_v18, 4  ;;  %v2423_v2 = vld [vmem:[%s2957_s13 + $0x40] sm:$0xf] }
  0x54   : > { %2674 = vmatmul.mubr.msk.bf16.gmra.mxu1 %vm455_vm2, %v2382_v59  ;;  %v1613_v46 = vor.u32 %v1612_v14, %v1609_v13  ;;  %v1638_v29 = vshll.u32 %v2417_v17, 16  ;;  %v1644_v23 = vshll.u32 %v3206_v11, 16  ;;  %v1632_v27 = vrot.slane %v1630_v20, 5  ;;  %v2425_v8 = vld [vmem:[%s2957_s13 + $0x48] sm:$0xf] }
  0x55   : > { %2698 = vmatpush3.bf16.msra.mxu1 %v2814_v6  ;;  %v1595_v6 = vrot.slane %v1593_v60, 4  ;;  %v1618_v16 = vrot.slane %v1616_v3, 5  ;;  %2658 = vmatmul.mubr.msk.bf16.gmra.mxu0 %vm455_vm2, %v2354_v9  ;;  %v1637_v0 = vrot.slane %v1635_v21, 4  ;;  %v1649_v43 = vshrl.u32 %v2419_v22, 16  ;;  %v3242_v3 = vld [vmem:[%s2947_s9 + $0x108] sm:$0xff]  }
  0x56   : > { %2699 = vmatprep.subr.bf16.mxu1 %v2816_v26  ;;  %2682 = vmatpush3.bf16.msra.mxu0 %v2813_v28  ;;  %v1614_v56 = vrot.slane %v1613_v46, 4  ;;  %v1640_v31 = vrot.slane %v1638_v29, 5  ;;  %v1646_v19 = vrot.slane %v1644_v23, 5  ;;  %v1652_v44 = vshll.u32 %v2419_v22, 16  ;;  %v3251_v9 = vld [vmem:[%s2957_s13 + $0x4c] sm:$0x1] }
  0x57   : > { %2683 = vmatprep.subr.bf16.mxu0 %v2815_v42  ;;  %v1599_v10 = vor.u32 %v1598_v7, %v1595_v6  ;;  %2685 = vmatprep.mubr.msk.bf16.mxu0 %vm455_vm2, %v2817_v5  ;;  %v1658_v45 = vshll.u32 %v3224_v39, 16  ;;  %v1663_v48 = vshrl.u32 %v2421_v40, 16  ;;  %v1666_v49 = vshll.u32 %v2421_v40, 16  ;;  %v2822_v6 = vld [vmem:[%s2957_s13 + $0x40] ss:$8 sps:$4 sm:$0xff]  }
  0x58   : > { %v1619_v32 = vsel %vm2987_vm3, %v1614_v56, %v1618_v16  ;;  %v1641_v38 = vor.u32 %v1640_v31, %v1637_v0  ;;  %v1672_v51 = vshll.u32 %v3228_v41, 16  ;;  %v1651_v54 = vrot.slane %v1649_v43, 4  ;;  %v3247_v7 = vld [vmem:[%s2957_s13 + $0x44] sm:$0x1]  ;;  %v2440_v31 = vld [vmem:[%s2957_s13 + $0x18] sm:$0xe] }
  0x59   : > { %2700 = vmatpush3.bf16.msra.mxu1 %v2816_v26  ;;  %v1600_v28 = vrot.slane %v1599_v10, 4  ;;  %v1626_v26 = vrot.slane %v1624_v63, 5  ;;  %v1654_v58 = vrot.slane %v1652_v44, 5  ;;  %v1660_v59 = vrot.slane %v1658_v45, 5  ;;  %v2443_v22 = vld [vmem:[%s2957_s13 + $0x30] sm:$0xe] }
  0x5a   : > { %2725 = vmatprep.subr.bf16.mxu1 %v3180_v50  ;;  %2684 = vmatpush3.bf16.msra.mxu0 %v2815_v42  ;;  %v1642_v47 = vrot.slane %v1641_v38, 4  ;;  %v1665_v61 = vrot.slane %v1663_v48, 4  ;;  %v1668_v62 = vrot.slane %v1666_v49, 5  ;;  %v1674_v1 = vrot.slane %v1672_v51, 5  ;;  %v2441_v44 = vld [vmem:[%s2957_s13 + $0x20] sm:$0xe] }
  0x5b   : > { %2709 = vmatprep.subr.bf16.mxu0 %v3180_v50  ;;  %v1605_v30 = vsel %vm2987_vm3, %v1600_v28, %v1604_v12  ;;  %v1627_v33 = vor.u32 %v1626_v26, %v1623_v55  ;;  %v1655_v5 = vor.u32 %v1654_v58, %v1651_v54  ;;  %v1677_v13 = vshrl.u32 %v2423_v2, 16  ;;  %v2442_v48 = vld [vmem:[%s2957_s13 + $0x28] sm:$0xe]  ;;  %v2445_v54 = vld [vmem:[%s2957_s13 + $0x40] sm:$0xe] }
  0x5c   : > { %v2427_v25 = vcombine.low %v1605_v30, %v1619_v32  ;;  %v1647_v60 = vsel %vm2987_vm3, %v1642_v47, %v1646_v19  ;;  %v1669_v12 = vor.u32 %v1668_v62, %v1665_v61  ;;  %v1680_v14 = vshll.u32 %v2423_v2, 16  ;;  %v2439_v30 = vld [vmem:[%s2957_s13 + $0x10] sm:$0xe]  ;;  %v2446_v58 = vld [vmem:[%s2957_s13 + $0x48] sm:$0xe] }
  0x5d   : > { %v1628_v42 = vrot.slane %v1627_v33, 4  ;;  %2686 = vmatmul.mubr.msk.bf16.vlgmr.msra.gmra.mxu0 %vm455_vm2, %v2818_v24  ;;  %v1686_v10 = vshll.u32 %v3247_v7, 16  ;;  %v1656_v16 = vrot.slane %v1655_v5, 4  ;;  %v1691_v17 = vshrl.u32 %v2425_v8, 16 }
  0x5e   : > { %2701 = vmatprep.mubr.msk.bf16.mxu1 %vm455_vm2, %v2427_v25  ;;  %2710 = vmatpush3.bf16.msra.mxu0 %v3180_v50  ;;  %v1694_v18 = vshll.u32 %v2425_v8, 16  ;;  %v1700_v46 = vshll.u32 %v3251_v9, 16  ;;  %v1670_v63 = vrot.slane %v1669_v12, 4  ;;  %v1679_v20 = vrot.slane %v1677_v13, 4  ;;  %v2444_v25 = vld [vmem:[%s2957_s13 + $0x38] sm:$0xe] }
  0x5f   : > { %v1633_v52 = vsel %vm2987_vm3, %v1628_v42, %v1632_v27  ;;  %2689 = vmatprep.mubr.msk.bf16.mxu0 %vm455_vm2, %v2821_v37  ;;  %2711 = vmatprep.subr.bf16.mxu0 %v3219_v36  ;;  %v1682_v21 = vrot.slane %v1680_v14, 5  ;;  %v1688_v28 = vrot.slane %v1686_v10, 5  ;;  %v1661_v55 = vsel %vm2987_vm3, %v1656_v16, %v1660_v59 }
  0x60   : > { %v2428_v4 = vcombine.low %v1633_v52, %v1647_v60  ;;  %v1693_v29 = vrot.slane %v1691_v17, 4  ;;  %v1696_v23 = vrot.slane %v1694_v18, 5  ;;  %v1702_v56 = vrot.slane %v1700_v46, 5 }
  0x61   : > { %v1675_v24 = vsel %vm2987_vm3, %v1670_v63, %v1674_v1  ;;  %v1683_v26 = vor.u32 %v1682_v21, %v1679_v20  ;;  %v1883_v27 = vrot.slane %v3247_v7, 5  ;;  %v1887_v0 = vrot.slane %v3251_v9, 5 }
  0x62   : > { %2702 = vmatmul.mubr.msk.bf16.vlgmr.msra.gmra.mxu1 %vm455_vm2, %v2428_v4  ;;  %2712 = vmatpush3.bf16.msra.mxu0 %v3219_v36  ;;  %v2429_v19 = vcombine.low %v1661_v55, %v1675_v24  ;;  %v1697_v32 = vor.u32 %v1696_v23, %v1693_v29  ;;  %v2447_v33 = vrot.slane %v2439_v30, 9  ;;  %v1859_v37 = vrot.slane %v3187_v53, 5 }
  0x63   : > { %2729 = vmatpush3.bf16.msra.mxu1 %v3180_v50  ;;  %2713 = vmatprep.subr.bf16.mxu0 %v3242_v3  ;;  %v2824_v50 = vld [vmem:[%s2947_s9 + $0x100] sm:$0xff]   ;;  %v1684_v38 = vrot.slane %v1683_v26, 4  ;;  %v2448_v40 = vrot.slane %v2440_v31, 9  ;;  %v1863_v42 = vrot.slane %v3191_v57, 5  ;;  %v2451_v43 = vrot.slane %v2443_v22, 9 }
  0x64   : > { %2726 = vmatprep.subr.bf16.mxu1 %v3219_v36  ;;  %2705 = vmatprep.mubr.msk.bf16.mxu1 %vm455_vm2, %v2429_v19  ;;  %v1698_v45 = vrot.slane %v1697_v32, 4  ;;  %v1860_v53 = vsel %vm3038_vm6, %v2447_v33, %v1859_v37  ;;  %v2452_v47 = vrot.slane %v2444_v25, 9  ;;  %v1879_v51 = vrot.slane %v3228_v41, 5 }
  0x65   : > { %2690 = vmatmul.mubr.msk.bf16.gmra.mxu0 %vm455_vm2, %v2822_v6  ;;  %v1689_v49 = vsel %vm2987_vm3, %v1684_v38, %v1688_v28  ;;  %v1864_v57 = vsel %vm3038_vm6, %v2448_v40, %v1863_v42  ;;  %v2449_v52 = vrot.slane %v2441_v44, 9  ;;  %v1867_v61 = vrot.slane %v3202_v15, 5 }
  0x66   : > { %2714 = vmatpush3.bf16.msra.mxu0 %v3242_v3  ;;  %v1703_v59 = vsel %vm2987_vm3, %v1698_v45, %v1702_v56  ;;  %v2455_v60 = vcombine.low %v1860_v53, %v1864_v57  ;;  %v1880_v1 = vsel %vm3038_vm6, %v2452_v47, %v1879_v51  ;;  %v2450_v41 = vrot.slane %v2442_v48, 9 }
  0x67   : > { %2730 = vmatpush3.bf16.msra.mxu1 %v3219_v36  ;;  %v1875_v36 = vrot.slane %v3224_v39, 5  ;;  %2715 = vmatprep.subr.bf16.mxu0 %v2824_v50  ;;  %v2430_v62 = vcombine.low %v1689_v49, %v1703_v59  ;;  %v1871_v2 = vrot.slane %v3206_v11, 5  ;;  %v1868_v4 = vsel %vm3038_vm6, %v2449_v52, %v1867_v61 }
  0x68   : > { %2727 = vmatprep.subr.bf16.mxu1 %v3242_v3  ;;  %2717 = vmatprep.mubr.msk.bf16.mxu0 %vm455_vm2, %v2455_v60  ;;  %v2453_v5 = vrot.slane %v2445_v54, 9  ;;  %v2454_v6 = vrot.slane %v2446_v58, 9 }
  0x69   : > { %v1876_v39 = vsel %vm3038_vm6, %v2451_v43, %v1875_v36  ;;  %v1872_v15 = vsel %vm3038_vm6, %v2450_v41, %v1871_v2 }
  0x6a   : > { %2716 = vmatpush3.bf16.msra.mxu0 %v2824_v50  ;;  %v2457_v35 = vcombine.low %v1876_v39, %v1880_v1  ;;  %2706 = vmatmul.mubr.msk.bf16.gmra.mxu1 %vm455_vm2, %v2430_v62  ;;  %v1884_v11 = vsel %vm3038_vm6, %v2453_v5, %v1883_v27  ;;  %v1888_v7 = vsel %vm3038_vm6, %v2454_v6, %v1887_v0 }
  0x6b   : > { %2731 = vmatpush3.bf16.msra.mxu1 %v3242_v3  ;;  %v2456_v3 = vcombine.low %v1868_v4, %v1872_v15  ;;  %v2458_v8 = vcombine.low %v1884_v11, %v1888_v7 }
  0x6c   : > { %2728 = vmatprep.subr.bf16.mxu1 %v2824_v50  ;;  %2721 = vmatprep.mubr.msk.bf16.mxu1 %vm455_vm2, %v2457_v35 }
  0x6d   : > { %2718 = vmatmul.mubr.msk.bf16.vlgmr.msra.gmra.mxu0 %vm455_vm2, %v2456_v3 }
  0x6f   : > { %2732 = vmatpush3.bf16.msra.mxu1 %v2824_v50 }
  0x72   : > { %2722 = vmatmul.mubr.msk.bf16.vlgmr.msra.gmra.mxu1 %vm455_vm2, %v2458_v8 }
  0xe9   : > { %v2607_v9 = vpop.f32.mrf.mxu1 }
  0xeb   : > { %v623_v12 = vpop.f32.mrf.mxu1  ;;  %v2591_v14 = vpop.f32.mrf.mxu0 }
  0xec   : > { %v632_v61 = vadd.f32 %v2607_v9, %v2591_v14 }
  0xed   : > { %v2608_v13 = vpop.f32.mrf.mxu1  ;;  %v502_v16 = vpop.f32.mrf.mxu0 }
  0xee   : > { %v624_v62 = vadd.f32 %v623_v12, %v502_v16 }
  0xef   : > { %v626_v10 = vpop.f32.mrf.mxu1  ;;  %v2592_v17 = vpop.f32.mrf.mxu0 }
  0xf0   : > { %v635_v1 = vadd.f32 %v2608_v13, %v2592_v17 }
  0xf1   : > { %v2611_v18 = vpop.f32.mrf.mxu1  ;;  %v505_v46 = vpop.f32.mrf.mxu0 }
  0xf2   : > { %v627_v35 = vadd.f32 %v626_v10, %v505_v46 }
  0xf3   : > { %v639_v63 = vpop.f32.mrf.mxu1 }
  0xf5   : > { %v2612_v20 = vpop.f32.mrf.mxu1  ;;  %v2595_v21 = vpop.f32.mrf.mxu0 }
  0xf6   : > { %v648_v7 = vadd.f32 %v2611_v18, %v2595_v21 }
  0xf7   : > { %v642_v34 = vpop.f32.mrf.mxu1  ;;  %v518_v28 = vpop.f32.mrf.mxu0 }
  0xf8   : > { %v640_v8 = vadd.f32 %v639_v63, %v518_v28 }
  0xf9   : > { %v2639_v55 = vpop.f32.mrf.mxu1  ;;  %v2596_v29 = vpop.f32.mrf.mxu0 }
  0xfb   : > { %v949_v23 = vpop.f32.mrf.mxu1  ;;  %v521_v56 = vpop.f32.mrf.mxu0 }
  0xfc   : > { %v643_v14 = vadd.f32 %v642_v34, %v521_v56 }
  0xfd   : > { %v2640_v50 = vpop.f32.mrf.mxu1  ;;  %v2623_v24 = vpop.f32.mrf.mxu0 }
  0xfe   : > { %v836_v4 = vadd.f32 %v2623_v24, %v632_v61 }
  0xff   : > { %v952_v26 = vpop.f32.mrf.mxu1  ;;  %v803_v27 = vpop.f32.mrf.mxu0 }
 0x100   : > { %v834_v5 = vadd.f32 %v803_v27, %v624_v62 }
 0x101   : > { %v2643_v0 = vpop.f32.mrf.mxu1  ;;  %v2624_v30 = vpop.f32.mrf.mxu0 }
 0x102   : > { %v837_v6 = vadd.f32 %v2624_v30, %v635_v1 }
 0x103   : > { %v806_v31 = vpop.f32.mrf.mxu0  ;;  %v965_v19 = vpop.f32.mrf.mxu1 }
 0x104   : > { %v835_v11 = vadd.f32 %v806_v31, %v627_v35  ;;  %v983_v9 = vadd.f32 %v2640_v50, %v837_v6 }
 0x105   : > { %v2627_v32 = vpop.f32.mrf.mxu0  ;;  %v2644_v37 = vpop.f32.mrf.mxu1 }
 0x106   : > { %v840_v12 = vadd.f32 %v2627_v32, %v648_v7  ;;  %v981_v10 = vadd.f32 %v952_v26, %v835_v11 }
 0x107   : > { %v819_v33 = vpop.f32.mrf.mxu0  ;;  %v3312_v25 = vpop.f32.mrf.mxu1 }
 0x108   : > { %3369 = vst [vmem:[#allocation2_spill] sm:$0xff] %v3312_v25  ;;  %v980_v25 = vadd.f32 %v949_v23, %v834_v5  ;;  %v838_v13 = vadd.f32 %v819_v33, %v640_v8  ;;  %v986_v21 = vadd.f32 %v2643_v0, %v840_v12 }
 0x109   : > { %v2628_v22 = vpop.f32.mrf.mxu0 }
 0x10a   : > { %v984_v28 = vadd.f32 %v965_v19, %v838_v13 }
 0x10b   : > { %v822_v38 = vpop.f32.mrf.mxu0 }
 0x10c   : > { %v2671_v40 = vpop.f32.mrf.mxu1  ;;  %v839_v18 = vadd.f32 %v822_v38, %v643_v14 }
 0x10d   : > { %v2655_v43 = vpop.f32.mrf.mxu0 }
 0x10e   : > { %v1391_v42 = vpop.f32.mrf.mxu1 }
 0x10f   : > { %v1206_v44 = vpop.f32.mrf.mxu0  ;;  %v3374_v26 = vld [vmem:[#allocation2_spill] sm:$0xff] }
 0x110   : > { %v2672_v45 = vpop.f32.mrf.mxu1  ;;  %v1237_v24 = vadd.f32 %v1206_v44, %v980_v25  ;;  %v985_v31 = vadd.f32 %v3374_v26, %v839_v18 }
 0x111   : > { %v2656_v53 = vpop.f32.mrf.mxu0 }
 0x112   : > { %v1394_v36 = vpop.f32.mrf.mxu1  ;;  %v1240_v27 = vadd.f32 %v2656_v53, %v983_v9  ;;  %v1422_v34 = vadd.f32 %v1391_v42, %v1237_v24 }
 0x113   : > { %v1209_v47 = vpop.f32.mrf.mxu0 }
 0x114   : > { %v3314_v48 = vpop.f32.mrf.mxu1  ;;  %v1425_v56 = vadd.f32 %v2672_v45, %v1240_v27 }
 0x115   : > { %3370 = vst [vmem:[#allocation3_spill] sm:$0xff] %v3314_v48  ;;  %v2659_v49 = vpop.f32.mrf.mxu0 }
 0x116   : > { %v3316_v57 = vpop.f32.mrf.mxu1  ;;  %v1243_v32 = vadd.f32 %v2659_v49, %v986_v21 }
 0x117   : > { %3371 = vst [vmem:[#allocation4_spill] sm:$0xff] %v3316_v57  ;;  %v1222_v51 = vpop.f32.mrf.mxu0 }
 0x118   : > { %v3318_v54 = vpop.f32.mrf.mxu1  ;;  %v1241_v33 = vadd.f32 %v1222_v51, %v984_v28 }
 0x119   : > { %v2660_v52 = vpop.f32.mrf.mxu0  ;;  %3372 = vst [vmem:[#allocation5_spill] sm:$0xff] %v3318_v54  ;;  %v651_v54 = vadd.f32 %v2612_v20, %v2596_v29  ;;  %v1238_v20 = vadd.f32 %v1209_v47, %v981_v10 }
 0x11a   : > { %v3320_v59 = vpop.f32.mrf.mxu1 }
 0x11b   : > { %v1225_v58 = vpop.f32.mrf.mxu0  ;;  %3373 = vst [vmem:[#allocation6_spill] sm:$0xff] %v3320_v59  ;;  %v982_v59 = vadd.f32 %v2639_v55, %v836_v4  ;;  %v841_v16 = vadd.f32 %v2628_v22, %v651_v54  ;;  %v1423_v25 = vadd.f32 %v1394_v36, %v1238_v20 }
 0x11c   : > { %v1242_v0 = vadd.f32 %v1225_v58, %v985_v31  ;;  %v3375_v42 = vld [vmem:[#allocation3_spill] sm:$0xff] }
 0x11d   : > { %v2687_v60 = vpop.f32.mrf.mxu0  ;;  %v1239_v46 = vadd.f32 %v2655_v43, %v982_v59  ;;  %v987_v55 = vadd.f32 %v2644_v37, %v841_v16  ;;  %v1428_v45 = vadd.f32 %v3375_v42, %v1243_v32 }
 0x11e   : > { %v3376_v47 = vld [vmem:[#allocation4_spill] sm:$0xff] }
 0x11f   : > { %v1537_v39 = vpop.f32.mrf.mxu0  ;;  %v1424_v23 = vadd.f32 %v2671_v40, %v1239_v46  ;;  %v1244_v22 = vadd.f32 %v2660_v52, %v987_v55  ;;  %v1426_v54 = vadd.f32 %v3376_v47, %v1241_v33 }
 0x120   : > { %v1568_v38 = vadd.f32 %v1537_v39, %v1422_v34  ;;  %v3377_v59 = vld [vmem:[#allocation5_spill] sm:$0xff] }
 0x121   : > { %v2688_v2 = vpop.f32.mrf.mxu0  ;;  %v1570_v43 = vadd.f32 %v2687_v60, %v1424_v23  ;;  %v1429_v61 = vadd.f32 %v3377_v59, %v1244_v22 }
 0x122   : > { %v2703_v41 = vpop.f32.mrf.mxu1  ;;  %v1571_v44 = vadd.f32 %v2688_v2, %v1425_v56  ;;  %v3378_v60 = vld [vmem:[#allocation6_spill] sm:$0xff] }
 0x123   : > { %v1540_v3 = vpop.f32.mrf.mxu0  ;;  %v1827_v49 = vadd.f32 %v2703_v41, %v1570_v43  ;;  %v1427_v39 = vadd.f32 %v3378_v60, %v1242_v0 }
 0x124   : > { %v1794_v15 = vpop.f32.mrf.mxu1  ;;  %v1569_v37 = vadd.f32 %v1540_v3, %v1423_v25 }
 0x125   : > { %v2691_v48 = vpop.f32.mrf.mxu0  ;;  %v1825_v51 = vadd.f32 %v1794_v15, %v1568_v38 }
 0x126   : > { %v2704_v57 = vpop.f32.mrf.mxu1  ;;  %v1574_v1 = vadd.f32 %v2691_v48, %v1428_v45 }
 0x127   : > { %v1553_v17 = vpop.f32.mrf.mxu0  ;;  %v1828_v52 = vadd.f32 %v2704_v57, %v1571_v44 }
 0x128   : > { %v1797_v30 = vpop.f32.mrf.mxu1  ;;  %v1572_v58 = vadd.f32 %v1553_v17, %v1426_v54 }
 0x129   : > { %v2692_v63 = vpop.f32.mrf.mxu0  ;;  %v1826_v4 = vadd.f32 %v1797_v30, %v1569_v37 }
 0x12a   : > { %v2707_v50 = vpop.f32.mrf.mxu1  ;;  %v1575_v2 = vadd.f32 %v2692_v63, %v1429_v61 }
 0x12b   : > { %v1556_v29 = vpop.f32.mrf.mxu0  ;;  %v1831_v8 = vadd.f32 %v2707_v50, %v1574_v1 }
 0x12c   : > { %v1810_v53 = vpop.f32.mrf.mxu1  ;;  %v1573_v7 = vadd.f32 %v1556_v29, %v1427_v39 }
 0x12d   : > { %v2719_v19 = vpop.f32.mrf.mxu0  ;;  %v1829_v9 = vadd.f32 %v1810_v53, %v1572_v58 }
 0x12e   : > { %v2708_v40 = vpop.f32.mrf.mxu1  ;;  %v2012_v5 = vadd.f32 %v2719_v19, %v1827_v49 }
 0x12f   : > { %v1979_v62 = vpop.f32.mrf.mxu0  ;;  %v1832_v14 = vadd.f32 %v2708_v40, %v1575_v2 }
 0x130   : > { %v1813_v36 = vpop.f32.mrf.mxu1  ;;  %v2010_v3 = vadd.f32 %v1979_v62, %v1825_v51  ;;  %v2073_v30 = vmul.f32 %v2012_v5, %v2012_v5 }
 0x131   : > { %v2720_v35 = vpop.f32.mrf.mxu0  ;;  %v1830_v46 = vadd.f32 %v1813_v36, %v1573_v7 }
 0x132   : > { %v2723_v6 = vpop.f32.mrf.mxu1  ;;  %v2013_v11 = vadd.f32 %v2720_v35, %v1828_v52  ;;  %v2071_v12 = vmul.f32 %v2010_v3, %v2010_v3 }
 0x133   : > { %v1982_v57 = vpop.f32.mrf.mxu0  ;;  %v2016_v24 = vadd.f32 %v2723_v6, %v1831_v8 }
 0x134   : > { %v1995_v41 = vpop.f32.mrf.mxu1  ;;  %v2494_v15 = vpack.c.bf16 %v2013_v11, %v2012_v5  ;;  %v2011_v48 = vadd.f32 %v1982_v57, %v1826_v4  ;;  %v2074_v29 = vmul.f32 %v2013_v11, %v2013_v11 }
 0x135   : > { %v2014_v18 = vadd.f32 %v1995_v41, %v1829_v9  ;;  %v2077_v25 = vmul.f32 %v2016_v24, %v2016_v24 }
 0x136   : > { %2506 = vst [vmem:[%s3332_s27 + $0x8] sm:$0xff] %v2494_v15   ;;  %v2724_v13 = vpop.f32.mrf.mxu1  ;;  %v2489_v16 = vpack.c.bf16 %v2011_v48, %v2010_v3  ;;  %v2058_v17 = vadd.f32 %v2011_v48, %v2010_v3  ;;  %v2072_v10 = vmul.f32 %v2011_v48, %v2011_v48 }
 0x137   : > { %v2017_v27 = vadd.f32 %v2724_v13, %v1832_v14  ;;  %v2075_v50 = vmul.f32 %v2014_v18, %v2014_v18 }
 0x138   : > { %2490 = vst [vmem:[%s3332_s27] sm:$0xff] %v2489_v16   ;;  %v2059_v63 = vadd.f32 %v2058_v17, %v2012_v5  ;;  %v2079_v20 = vadd.f32 %v2072_v10, %v2071_v12  ;;  %v1998_v21 = vpop.f32.mrf.mxu1 }
 0x139   : > { %v2504_v28 = vpack.c.bf16 %v2017_v27, %v2016_v24  ;;  %v2015_v55 = vadd.f32 %v1998_v21, %v1830_v46  ;;  %v2078_v44 = vmul.f32 %v2017_v27, %v2017_v27 }
 0x13a   : > { %v2080_v23 = vadd.f32 %v2079_v20, %v2073_v30  ;;  %v2060_v34 = vadd.f32 %v2059_v63, %v2013_v11 }
 0x13b   : > { %2508 = vst [vmem:[%s3332_s27 + $0x18] sm:$0xff] %v2504_v28   ;;  %v2499_v56 = vpack.c.bf16 %v2015_v55, %v2014_v18  ;;  %v2076_v33 = vmul.f32 %v2015_v55, %v2015_v55 }
 0x13c   : > { %v2061_v26 = vadd.f32 %v2060_v34, %v2014_v18  ;;  %v2081_v31 = vadd.f32 %v2080_v23, %v2074_v29 }
 0x13d   : > { %2507 = vst [vmem:[%s3332_s27 + $0x10] sm:$0xff] %v2499_v56  }
 0x13e   : > { %v2062_v32 = vadd.f32 %v2061_v26, %v2015_v55  ;;  %v2082_v22 = vadd.f32 %v2081_v31, %v2075_v50 }
 0x140   : > { %v2063_v43 = vadd.f32 %v2062_v32, %v2016_v24  ;;  %v2083_v38 = vadd.f32 %v2082_v22, %v2076_v33 }
 0x142   : > { %v2064_v53 = vadd.f32 %v2063_v43, %v2017_v27  ;;  %v2084_v0 = vadd.f32 %v2083_v38, %v2077_v25 }
 0x144   : > { %v2065_v19 = vrot.slane %v2064_v53, 4  ;;  %v2085_v37 = vadd.f32 %v2084_v0, %v2078_v44 }
 0x146   : > { %v2066_v40 = vadd.f32 %v2065_v19, %v2064_v53  ;;  %v2086_v42 = vrot.slane %v2085_v37, 4 }
 0x148   : > { %v2067_v45 = vrot.slane %v2066_v40, 2  ;;  %v2087_v47 = vadd.f32 %v2086_v42, %v2085_v37 }
 0x14a   : > { %v2068_v54 = vadd.f32 %v2067_v45, %v2066_v40  ;;  %v2088_v59 = vrot.slane %v2087_v47, 2 }
 0x14c   : > { %v2069_v61 = vrot.slane %v2068_v54, 1  ;;  %v2089_v62 = vadd.f32 %v2088_v59, %v2087_v47  ;;  %2095 = sbr.rel (%p2475_p7) target bundleno = 339 (0x153), region = 32 }
 0x14e   : > { %v2070_v49 = vadd.f32 %v2069_v61, %v2068_v54  ;;  %v2090_v51 = vrot.slane %v2089_v62, 1 }
 0x150   : > { %v2091_v52 = vadd.f32 %v2090_v51, %v2089_v62 }
 0x151   : > { %v2865_v36 = vmov 0.0  }
 0x152   : > { %2096 = vst [vmem:[%s2934_s26] sm:$0x1] %v2865_v36  ;;  %2097 = vst [vmem:[%s2941_s30] sm:$0x1] %v2865_v36 }
 0x153 PF:  {}
 0x159   : > { %v2098_v60 = vld [vmem:[%s2934_s26] sm:$0x1] }
 0x15a   : > { %v2101_v39 = vld [vmem:[%s2941_s30] sm:$0x1]  ;;  %v2099_v1 = vadd.f32 %v2098_v60, %v2070_v49 }
 0x15b   : > { %v2102_v58 = vadd.f32 %v2101_v39, %v2091_v52 }
 0x15c   : > { %2100 = vst [vmem:[%s2934_s26] sm:$0x1] %v2099_v1 }
 0x15d   : > { %2103 = vst [vmem:[%s2941_s30] sm:$0x1] %v2102_v58 }
 0x15e PF: > { %s15_s19 = sadd.s32 1, %s2863_s19   ;;  %s3379_s15 = smov %s2855_s17 }
 0x15f   : > { %p12_p8 = scmp.ge.s32.totalorder %s15_s19, 10   ;;  %s3380_s16 = smov %s2859_s18 }
 0x160   : > { %s3381_s17 = smov %s3384_s20  ;;  %s3382_s18 = smov %s3388_s21 }
 0x161   :  { %14 = sbr.rel (!%p12_p8) target bundleno = 3 (0x3), region = 91 }

// kernel: _device_forward.8
= control target key start
LH: loop header
LB: loop body
LE: loop exit
PB: predicated region body
PF: predicated region fallthrough
CT: control target
= control target key end

     0   :  { %s3051_s15 = smov 0   ;;  %s3053_s16 = smov 0   ;;  %s3434_s0 = inlined_call_operand.vmem [shape: bf16[4,2,6,6,128], index: 0, kind: input, shape index: {}]   ;;  %s3435_s1 = inlined_call_operand.vmem [shape: bf16[4,1152,256], index: 1, kind: input, shape index: {}]   ;;  %s3436_s2 = inlined_call_operand.vmem [shape: bf16[4,2,16,256], index: 2, kind: output, shape index: {0}]   ;;  %s3437_s3 = inlined_call_operand.vmem [shape: f32[4,1,256], index: 3, kind: output, shape index: {1}]   ;;  %s3438_s4 = inlined_call_operand.vmem [shape: f32[4,1,256], index: 4, kind: output, shape index: {2}]  }
   0x1   :  { %s3055_s17 = smov 0   ;;  %s3057_s18 = smov 0  }
   0x2   :  { %s3059_s19 = smov 0  }
   0x3 LB: > { %s24_s20 = sadd.s32 1, %s3012_s17  ;;  %s27_s21 = sadd.s32 1, %s3016_s18  ;;  %s3020_s19 = sphi %s3059_s19, %s15_s19   ;;  %s3016_s18 = sphi %s3057_s18, %s3454_s18   ;;  %s3012_s17 = sphi %s3055_s17, %s3453_s17   ;;  %s3008_s16 = sphi %s3053_s16, %s3452_s16   ;;  %s3004_s15 = sphi %s3051_s15, %s3451_s15  }
   0x4   : > { %p25_p0 = scmp.ge.s32.totalorder %s24_s20, 2  ;;  %p2488_p1 = scmp.ge.s32.totalorder %s3020_s19, 1 }
   0x5   : > { %p197_p2 = scmp.lt.s32.totalorder %s3020_s19, 9 }
   0x6   : > { %s3456_s20 = smov (%p25_p0, %s24_s20), 0  ;;  %s3458_s21 = smov (!%p25_p0, %s27_s21), %s3016_s18 }
   0x7   : > { %p198_p3 = pnand %p2488_p1, %p197_p2  ;;  %p29_p4 = scmp.ge.s32.totalorder %s3458_s21, 4 }
   0x8   : > { %p244_p5 = scmp.lt.s32.totalorder (!%p198_p3), %s3008_s16, 3  ;;  %p246_p6 = scmp.lt.s32.totalorder (!%p198_p3), %s3004_s15, 1 }
   0x9   : > { %s3460_s21 = smov (%p29_p4, %s3458_s21), 0  ;;  %201 = sbr.rel (%p198_p3) target bundleno = 415 (0x19f), region = 28 }
   0xa   : > { %p2702_p7 = scmp.ne.s32.totalorder (!%p198_p3), %s3004_s15, 0 }
   0xe   : > { %v3022_v0 = vmov 0   ;;  %s3462_s16 = smov (!%p244_p5, %s3008_s16), 3  ;;  %v3023_v22 = vmov 1983009808   ;;  %v420_v24 = vlaneseq  ;;  %vm336_vm0 = vsmask.f32 1280 }
   0xf   : > { %545 = vmatprep.mubr.bf16.mxu0 %v3022_v0  ;;  %690 = vmatprep.mubr.bf16.mxu1 %v3022_v0  ;;  %s2709_s22 = smul.u32 1152, %s3462_s16  ;;  %s2494_s23 = sshll.u32 %s3462_s16, 1  ;;  %v418_v23 = vunpack.c.l.s4 %v3023_v22  ;;  %vm337_vm1 = vsmask.f32 3336  ;;  %vm339_vm2 = vsmask.f32 5392 }
  0x10   : > { %s3093_s26 = scalar_lea.vmem %s3437_s3, %s2494_s23  ;;  %s3098_s29 = scalar_lea.vmem %s3438_s4, %s2494_s23  ;;  %vm341_vm3 = vsmask.f32 7448  ;;  %v3141_v30 = vshrl.u32 %v420_v24, 7  ;;  %vm3150_vm4 = vmor %vm336_vm0, %vm337_vm1  ;;  %vm741_vm7 = vcmask 1040384   ;;  %vm742_vm8 = vcmask 1042434  }
  0x11   : > { %s3103_s6 = scalar_lea.vmem %s3435_s1, %s2709_s22  ;;  %s2708_s9 = smul.u32 12, %s3462_s16  ;;  %v419_v29 = vunpack.c.0.s8 %v418_v23  ;;  %vm3164_vm5 = vmor %vm3150_vm4, %vm339_vm2  ;;  %vm744_vm10 = vcmask 1044484   ;;  %vm746_vm12 = vcmask 1046534  }
  0x12   : > { %v2754_v1 = vld [vmem:[%s3103_s6 + $0xf4] ss:$8 sps:$4 sm:$0xff]   ;;  %v2758_v3 = vld [vmem:[%s3103_s6 + $0xf0] ss:$8 sps:$4 sm:$0xff]   ;;  %s3110_s7 = scalar_select %p246_p6, %s3004_s15, 1  ;;  %vm3173_vm6 = vmor %vm3164_vm5, %vm341_vm3 }
  0x13   : > { %v2756_v2 = vld [vmem:[%s3103_s6 + $0x74] ss:$8 sps:$4 sm:$0xff]   ;;  %513 = vmatprep.subr.bf16.mxu0 %v2754_v1  ;;  %v2759_v4 = vld [vmem:[%s3103_s6 + $0x70] ss:$8 sps:$4 sm:$0xff]   ;;  %v2760_v5 = vld [vmem:[%s3103_s6 + $0xe4] ss:$8 sps:$4 sm:$0xff]   ;;  %v3159_v50 = vsub.s32 %v419_v29, %v3141_v30 }
  0x14   : > { %658 = vmatprep.subr.bf16.mxu1 %v2756_v2  ;;  %514 = vmatpush1.bf16.msra.mxu0 %v2758_v3  ;;  %v2762_v6 = vld [vmem:[%s3103_s6 + $0x64] ss:$8 sps:$4 sm:$0xff]   ;;  %v2764_v7 = vld [vmem:[%s3103_s6 + $0xe0] ss:$8 sps:$4 sm:$0xff]   ;;  %v2766_v9 = vld [vmem:[%s3103_s6 + $0xd4] ss:$8 sps:$4 sm:$0xff]  }
  0x15   : > { %659 = vmatpush1.bf16.msra.mxu1 %v2759_v4  ;;  %515 = vmatprep.subr.bf16.mxu0 %v2760_v5  ;;  %v2765_v8 = vld [vmem:[%s3103_s6 + $0x60] ss:$8 sps:$4 sm:$0xff]   ;;  %s2707_s8 = smul.u32 6, %s3110_s7  ;;  %v2768_v10 = vld [vmem:[%s3103_s6 + $0x54] ss:$8 sps:$4 sm:$0xff]   ;;  %vm3219_vm9 = vmor %vm741_vm7, %vm742_vm8  ;;  %s2491_s22 = sshll.u32 %s3110_s7, 2 }
  0x16   : > { %660 = vmatprep.subr.bf16.mxu1 %v2762_v6  ;;  %v2770_v11 = vld [vmem:[%s3103_s6 + $0xd0] ss:$8 sps:$4 sm:$0xff]   ;;  %v2772_v13 = vld [vmem:[%s3103_s6 + $0xc4] ss:$8 sps:$4 sm:$0xff]   ;;  %v2776_v15 = vld [vmem:[%s3103_s6 + $0xc0] ss:$8 sps:$4 sm:$0xff]  }
  0x17   : > { %v2771_v12 = vld [vmem:[%s3103_s6 + $0x50] ss:$8 sps:$4 sm:$0xff]   ;;  %v2774_v14 = vld [vmem:[%s3103_s6 + $0x44] ss:$8 sps:$4 sm:$0xff]   ;;  %v2777_v16 = vld [vmem:[%s3103_s6 + $0x40] ss:$8 sps:$4 sm:$0xff]   ;;  %s250_s10 = sadd.s32 %s2708_s9, %s2707_s8 }
  0x18   : > { %516 = vmatpush1.bf16.msra.mxu0 %v2764_v7  ;;  %v2778_v17 = vld [vmem:[%s3103_s6 + $0xb4] ss:$8 sps:$4 sm:$0xff]   ;;  %v2782_v19 = vld [vmem:[%s3103_s6 + $0xb0] ss:$8 sps:$4 sm:$0xff]   ;;  %s2489_s11 = sshll.u32 %s250_s10, 2  ;;  %vm3235_vm11 = vmor %vm3219_vm9, %vm744_vm10  ;;  %s2492_s23 = sshll.u32 %s3462_s16, 3 }
  0x19   : > { %661 = vmatpush1.bf16.msra.mxu1 %v2765_v8  ;;  %517 = vmatprep.subr.bf16.mxu0 %v2766_v9  ;;  %v2780_v18 = vld [vmem:[%s3103_s6 + $0x34] ss:$8 sps:$4 sm:$0xff]   ;;  %v2783_v20 = vld [vmem:[%s3103_s6 + $0x30] ss:$8 sps:$4 sm:$0xff]   ;;  %v2784_v21 = vld [vmem:[%s3103_s6 + $0xa4] ss:$8 sps:$4 sm:$0xff]   ;;  %s3135_s14 = scalar_lea.vmem %s3434_s0, %s2489_s11  ;;  %s264_s24 = sadd.s32 %s2492_s23, %s2491_s22 }
  0x1a   : > { %662 = vmatprep.subr.bf16.mxu1 %v2768_v10  ;;  %v2786_v25 = vld [vmem:[%s3103_s6 + $0x24] ss:$8 sps:$4 sm:$0xff]   ;;  %v2788_v26 = vld [vmem:[%s3103_s6 + $0xa0] ss:$8 sps:$4 sm:$0xff]   ;;  %v2790_v28 = vld [vmem:[%s3103_s6 + $0x94] ss:$8 sps:$4 sm:$0xff]  }
  0x1b   : > { %v2789_v27 = vld [vmem:[%s3103_s6 + $0x20] ss:$8 sps:$4 sm:$0xff]   ;;  %v2792_v31 = vld [vmem:[%s3103_s6 + $0x14] ss:$8 sps:$4 sm:$0xff]   ;;  %v2794_v33 = vld [vmem:[%s3103_s6 + $0x90] ss:$8 sps:$4 sm:$0xff]  }
  0x1c   : > { %518 = vmatpush1.bf16.msra.mxu0 %v2770_v11  ;;  %v2496_v32 = vld.sshfl [vmem:[%s3135_s14] sm:$0x13 pattern:$0x76325410]  ;;  %v2795_v34 = vld [vmem:[%s3103_s6 + $0x10] ss:$8 sps:$4 sm:$0xff]   ;;  %vm3246_vm13 = vmor %vm3235_vm11, %vm746_vm12 }
  0x1d   : > { %663 = vmatpush1.bf16.msra.mxu1 %v2771_v12  ;;  %519 = vmatprep.subr.bf16.mxu0 %v2772_v13  ;;  %v2497_v35 = vld.sshfl [vmem:[%s3135_s14 + $0x4] sm:$0x13 pattern:$0x76325410]  ;;  %v311_v36 = vcombine.high %v2496_v32, %v2496_v32  ;;  %v344_v38 = vshrl.u32 %v2496_v32, 16  ;;  %v347_v39 = vshll.u32 %v2496_v32, 16 }
  0x1e   : > { %664 = vmatprep.subr.bf16.mxu1 %v2774_v14  ;;  %v2796_v40 = vld [vmem:[%s3103_s6 + $0x84] ss:$8 sps:$4 sm:$0xff]   ;;  %v2498_v42 = vld.sshfl [vmem:[%s3135_s14 + $0x8] sm:$0x13 pattern:$0x76325410]  ;;  %v319_v43 = vcombine.high %v2497_v35, %v2497_v35 }
  0x1f   : > { %v2798_v41 = vld [vmem:[%s3103_s6 + $0x4] ss:$8 sps:$4 sm:$0xff]   ;;  %v358_v44 = vshrl.u32 %v2497_v35, 16  ;;  %v361_v45 = vshll.u32 %v2497_v35, 16  ;;  %v327_v47 = vcombine.high %v2498_v42, %v2498_v42  ;;  %v346_v48 = vrot.slane %v344_v38, 6  ;;  %s2493_s25 = sshll.u32 %s264_s24, 2 }
  0x20   : > { %520 = vmatpush1.bf16.msra.mxu0 %v2776_v15  ;;  %v2499_v46 = vld.sshfl [vmem:[%s3135_s14 + $0xc] sm:$0x13 pattern:$0x76325410]  ;;  %v349_v49 = vrot.slane %v347_v39, 7  ;;  %v353_v53 = vshll.u32 %v311_v36, 16  ;;  %s266_s28 = scalar_lea.vmem %s3436_s2, %s2493_s25 }
  0x21   : > { %665 = vmatpush1.bf16.msra.mxu1 %v2777_v16  ;;  %521 = vmatprep.subr.bf16.mxu0 %v2778_v17  ;;  %v335_v51 = vcombine.high %v2499_v46, %v2499_v46  ;;  %v360_v54 = vrot.slane %v358_v44, 6  ;;  %v363_v55 = vrot.slane %v361_v45, 7  ;;  %v2800_v56 = vld [vmem:[%s3103_s6 + $0x80] ss:$8 sps:$4 sm:$0xff]   ;;  %v367_v59 = vshll.u32 %v319_v43, 16 }
  0x22   : > { %666 = vmatprep.subr.bf16.mxu1 %v2780_v18  ;;  %v2801_v57 = vld [vmem:[%s3103_s6] ss:$8 sps:$4 sm:$0xff]   ;;  %v350_v58 = vor.u32 %v349_v49, %v346_v48  ;;  %v372_v60 = vshrl.u32 %v2498_v42, 16  ;;  %v375_v61 = vshll.u32 %v2498_v42, 16  ;;  %v355_v62 = vrot.slane %v353_v53, 7 }
  0x23   : > { %v364_v63 = vor.u32 %v363_v55, %v360_v54  ;;  %v381_v1 = vshll.u32 %v327_v47, 16  ;;  %v386_v2 = vshrl.u32 %v2499_v46, 16  ;;  %v369_v5 = vrot.slane %v367_v59, 7  ;;  %v2815_v29 = vld [vmem:[%s3103_s6 + $0x1e4] ss:$8 sps:$4 sm:$0xff]  }
  0x24   : > { %522 = vmatpush1.bf16.msra.mxu0 %v2782_v19  ;;  %v351_v4 = vrot.slane %v350_v58, 2  ;;  %v374_v6 = vrot.slane %v372_v60, 6  ;;  %v377_v7 = vrot.slane %v375_v61, 7  ;;  %v389_v10 = vshll.u32 %v2499_v46, 16  ;;  %v2806_v19 = vld [vmem:[%s3103_s6 + $0x174] ss:$8 sps:$4 sm:$0xff]  }
  0x25   : > { %667 = vmatpush1.bf16.msra.mxu1 %v2783_v20  ;;  %523 = vmatprep.subr.bf16.mxu0 %v2784_v21  ;;  %v365_v8 = vrot.slane %v364_v63, 2  ;;  %v388_v9 = vrot.slane %v386_v2, 6  ;;  %v2976_v11 = vld.sshfl [vmem:[%s3135_s14] sm:$0xf pattern:$0x76325410] }
  0x26   : > { %668 = vmatprep.subr.bf16.mxu1 %v2786_v25  ;;  %v378_v12 = vor.u32 %v377_v7, %v374_v6  ;;  %v383_v13 = vrot.slane %v381_v1, 7  ;;  %v395_v14 = vshll.u32 %v335_v51, 16  ;;  %v2977_v15 = vld.sshfl [vmem:[%s3135_s14 + $0x8] sm:$0xf pattern:$0x76325410]  ;;  %v356_v16 = vsel %vm3173_vm6, %v351_v4, %v355_v62 }
  0x27   : > { %v3183_v17 = vsel %vm3173_vm6, %v365_v8, %v369_v5  ;;  %v391_v18 = vrot.slane %v389_v10, 7  ;;  %v2809_v21 = vld [vmem:[%s3103_s6 + $0x1f4] ss:$8 sps:$4 sm:$0xff]   ;;  %v2807_v25 = vld [vmem:[%s3103_s6 + $0x1f0] ss:$8 sps:$4 sm:$0xff]  }
  0x28   : > { %524 = vmatpush1.bf16.msra.mxu0 %v2788_v26  ;;  %v379_v20 = vrot.slane %v378_v12, 2  ;;  %v397_v23 = vrot.slane %v395_v14, 7  ;;  %v2821_v37 = vld [vmem:[%s3103_s6 + $0x1d4] ss:$8 sps:$4 sm:$0xff]   ;;  %v2804_v39 = vld [vmem:[%s3103_s6 + $0x170] ss:$8 sps:$4 sm:$0xff]  }
  0x29   : > { %669 = vmatpush1.bf16.msra.mxu1 %v2789_v27  ;;  %525 = vmatprep.subr.bf16.mxu0 %v2790_v28  ;;  %v392_v22 = vor.u32 %v391_v18, %v388_v9  ;;  %v415_v27 = vcombine.low %v356_v16, %v3183_v17  ;;  %v576_v28 = vcombine.low %v2976_v11, %v2977_v15  ;;  %v2812_v42 = vld [vmem:[%s3103_s6 + $0x164] ss:$8 sps:$4 sm:$0xff]   ;;  %v2810_v44 = vld [vmem:[%s3103_s6 + $0x160] ss:$8 sps:$4 sm:$0xff]   ;;  %v2818_v46 = vld [vmem:[%s3103_s6 + $0x154] ss:$8 sps:$4 sm:$0xff]  }
  0x2a   : > { %670 = vmatprep.subr.bf16.mxu1 %v2792_v31  ;;  %v3190_v26 = vsel %vm3173_vm6, %v379_v20, %v383_v13  ;;  %v2827_v43 = vld [vmem:[%s3103_s6 + $0x1c4] ss:$8 sps:$4 sm:$0xff]   ;;  %v2825_v45 = vld [vmem:[%s3103_s6 + $0x1c0] ss:$8 sps:$4 sm:$0xff]   ;;  %v2833_v47 = vld [vmem:[%s3103_s6 + $0x1b4] ss:$8 sps:$4 sm:$0xff]  }
  0x2b   : > { %v393_v31 = vrot.slane %v392_v22, 2  ;;  %v1207_v32 = vcombine.low %v3183_v17, %v3190_v26  ;;  %v423_v36 = vrot.slane %v415_v27, %v3159_v50  ;;  %v2816_v49 = vld [vmem:[%s3103_s6 + $0x150] ss:$8 sps:$4 sm:$0xff]   ;;  %v2824_v52 = vld [vmem:[%s3103_s6 + $0x144] ss:$8 sps:$4 sm:$0xff]  }
  0x2c   : > { %526 = vmatpush1.bf16.msra.mxu0 %v2794_v33  ;;  %v2831_v51 = vld [vmem:[%s3103_s6 + $0x1b0] ss:$8 sps:$4 sm:$0xff]   ;;  %v2839_v53 = vld [vmem:[%s3103_s6 + $0x1a4] ss:$8 sps:$4 sm:$0xff]   ;;  %v2822_v54 = vld [vmem:[%s3103_s6 + $0x140] ss:$8 sps:$4 sm:$0xff]  }
  0x2d   : > { %671 = vmatpush1.bf16.msra.mxu1 %v2795_v34  ;;  %527 = vmatprep.subr.bf16.mxu0 %v2796_v40  ;;  %v3198_v33 = vsel %vm3173_vm6, %v393_v31, %v397_v23  ;;  %v2813_v34 = vld [vmem:[%s3103_s6 + $0x1e0] ss:$8 sps:$4 sm:$0xff]   ;;  %v2819_v40 = vld [vmem:[%s3103_s6 + $0x1d0] ss:$8 sps:$4 sm:$0xff]   ;;  %v2845_v58 = vld [vmem:[%s3103_s6 + $0x194] ss:$8 sps:$4 sm:$0xff]  }
  0x2e   : > { %672 = vmatprep.subr.bf16.mxu1 %v2798_v41  ;;  %v416_v35 = vcombine.low %v3190_v26, %v3198_v33  ;;  %v2837_v55 = vld [vmem:[%s3103_s6 + $0x1a0] ss:$8 sps:$4 sm:$0xff]   ;;  %v2533_v59 = vld.sshfl [vmem:[%s3135_s14 + $0x4] sm:$0x12 pattern:$0x76325410] }
  0x2f   : > { %v2534_v62 = vld.sshfl [vmem:[%s3135_s14 + $0x8] sm:$0x12 pattern:$0x76325410]  ;;  %v724_v63 = vcombine.high %v2533_v59, %v2533_v59  ;;  %v2537_v6 = vrot.slane %v2533_v59, 9 }
  0x30   : > { %528 = vmatpush1.bf16.msra.mxu0 %v2800_v56  ;;  %v3207_v38 = vrot.slane %v416_v35, %v3159_v50  ;;  %v2532_v56 = vld.sshfl [vmem:[%s3135_s14] sm:$0x12 pattern:$0x76325410]  ;;  %v732_v4 = vcombine.high %v2534_v62, %v2534_v62  ;;  %v2828_v7 = vld [vmem:[%s3103_s6 + $0x130] ss:$8 sps:$4 sm:$0xff]  }
  0x31   : > { %673 = vmatpush1.bf16.msra.mxu1 %v2801_v57  ;;  %878 = vmatprep.subr.bf16.mxu0 %v2806_v19  ;;  %v2830_v57 = vld [vmem:[%s3103_s6 + $0x134] ss:$8 sps:$4 sm:$0xff]   ;;  %v716_v60 = vcombine.high %v2532_v56, %v2532_v56  ;;  %v2536_v1 = vrot.slane %v2532_v56, 9  ;;  %v2843_v8 = vld [vmem:[%s3103_s6 + $0x190] ss:$8 sps:$4 sm:$0xff]   ;;  %v754_v11 = vrot.slane %v724_v63, 7 }
  0x32   : > { %1048 = vmatprep.subr.bf16.mxu1 %v2809_v21  ;;  %v431_v41 = vcombine.low %v423_v36, %v3207_v38  ;;  %v2535_v2 = vld.sshfl [vmem:[%s3135_s14 + $0xc] sm:$0x12 pattern:$0x76325410]  ;;  %v2538_v12 = vrot.slane %v2534_v62, 9  ;;  %v758_v15 = vrot.slane %v732_v4, 7 }
  0x33   : > { %v750_v5 = vrot.slane %v716_v60, 7  ;;  %v740_v9 = vcombine.high %v2535_v2, %v2535_v2  ;;  %v2539_v13 = vrot.slane %v2535_v2, 9  ;;  %v2836_v14 = vld [vmem:[%s3103_s6 + $0x124] ss:$8 sps:$4 sm:$0xff]   ;;  %v2834_v21 = vld [vmem:[%s3103_s6 + $0x120] ss:$8 sps:$4 sm:$0xff]   ;;  %v3261_v27 = vsel %vm3246_vm13, %v2537_v6, %v754_v11 }
  0x34   : > { %691 = vmatmul.mubr.bf16.vlgmr.msra.gmra.mxu1 %v576_v28  ;;  %546 = vmatmul.mubr.bf16.vlgmr.msra.gmra.mxu0 %v431_v41  ;;  %v2851_v18 = vld [vmem:[%s3103_s6 + $0x184] ss:$8 sps:$4 sm:$0xff]   ;;  %v2842_v22 = vld [vmem:[%s3103_s6 + $0x114] ss:$8 sps:$4 sm:$0xff]   ;;  %v3265_v28 = vsel %vm3246_vm13, %v2538_v12, %v758_v15  ;;  %v2866_v63 = vld [vmem:[%s3103_s6 + $0x250] ss:$8 sps:$4 sm:$0xff]  }
  0x35   : > { %1049 = vmatpush1.bf16.msra.mxu1 %v2807_v25  ;;  %1080 = vmatprep.mubr.bf16.mxu1 %v3022_v0  ;;  %v762_v16 = vrot.slane %v740_v9, 7  ;;  %v2978_v19 = vld.sshfl [vmem:[%s3135_s14 + $0x4] sm:$0xf pattern:$0x76325410]  ;;  %v751_v23 = vsel %vm3246_vm13, %v2536_v1, %v750_v5 }
  0x36   : > { %1050 = vmatprep.subr.bf16.mxu1 %v2815_v29  ;;  %879 = vmatpush1.bf16.msra.mxu0 %v2804_v39  ;;  %v2979_v20 = vld.sshfl [vmem:[%s3135_s14 + $0xc] sm:$0xf pattern:$0x76325410]  ;;  %v2849_v25 = vld [vmem:[%s3103_s6 + $0x180] ss:$8 sps:$4 sm:$0xff]   ;;  %v780_v36 = vcombine.low %v751_v23, %v3261_v27  ;;  %v1215_v23 = vrot.slane %v1207_v32, %v3159_v50 }
  0x37   : > { %880 = vmatprep.subr.bf16.mxu0 %v2812_v42  ;;  %910 = vmatprep.mubr.bf16.mxu0 %v3022_v0  ;;  %v3269_v29 = vsel %vm3246_vm13, %v2539_v13, %v762_v16  ;;  %v2859_v31 = vld [vmem:[%s3103_s6 + $0x2f4] ss:$8 sps:$4 sm:$0xff]   ;;  %v2848_v35 = vld [vmem:[%s3103_s6 + $0x104] ss:$8 sps:$4 sm:$0xff]   ;;  %v966_v39 = vcombine.low %v2978_v19, %v2979_v20  ;;  %v2846_v42 = vld [vmem:[%s3103_s6 + $0x100] ss:$8 sps:$4 sm:$0xff]  }
  0x38   : > { %v2865_v41 = vld [vmem:[%s3103_s6 + $0x2e4] ss:$8 sps:$4 sm:$0xff]   ;;  %v2583_v56 = vld.sshfl [vmem:[%s3135_s14 + $0x10] sm:$0x13 pattern:$0x76325410] }
  0x39   : > { %1051 = vmatpush1.bf16.msra.mxu1 %v2813_v34  ;;  %v2840_v34 = vld [vmem:[%s3103_s6 + $0x110] ss:$8 sps:$4 sm:$0xff]   ;;  %v1134_v59 = vcombine.high %v2583_v56, %v2583_v56  ;;  %v1178_v60 = vshrl.u32 %v2583_v56, 16  ;;  %v1181_v61 = vshll.u32 %v2583_v56, 16  ;;  %v2874_v6 = vld [vmem:[%s3103_s6 + $0x244] ss:$8 sps:$4 sm:$0xff]  }
  0x3a   : > { %1052 = vmatprep.subr.bf16.mxu1 %v2821_v37  ;;  %881 = vmatpush1.bf16.msra.mxu0 %v2810_v44  ;;  %v781_v37 = vcombine.low %v3265_v28, %v3269_v29  ;;  %v2607_v62 = vld.sshfl [vmem:[%s3135_s14 + $0x10] sm:$0x12 pattern:$0x76325410]  ;;  %v2889_v9 = vld [vmem:[%s3103_s6 + $0x2a4] ss:$8 sps:$4 sm:$0xff]  }
  0x3b   : > { %882 = vmatprep.subr.bf16.mxu0 %v2818_v46  ;;  %v2863_v46 = vld [vmem:[%s3103_s6 + $0x2e0] ss:$8 sps:$4 sm:$0xff]   ;;  %v1180_v1 = vrot.slane %v1178_v60, 6  ;;  %v1183_v2 = vrot.slane %v1181_v61, 7  ;;  %v1187_v4 = vshll.u32 %v1134_v59, 16  ;;  %v1391_v5 = vcombine.high %v2607_v62, %v2607_v62 }
  0x3c   : > { %v3282_v44 = vrot.slane %v781_v37, %v3159_v50  ;;  %v2880_v15 = vld [vmem:[%s3103_s6 + $0x234] ss:$8 sps:$4 sm:$0xff]   ;;  %v2901_v17 = vld [vmem:[%s3103_s6 + $0x284] ss:$8 sps:$4 sm:$0xff]   ;;  %v2884_v32 = vld [vmem:[%s3103_s6 + $0x220] ss:$8 sps:$4 sm:$0xff]  }
  0x3d   : > { %1053 = vmatpush1.bf16.msra.mxu1 %v2819_v40  ;;  %v2857_v40 = vld [vmem:[%s3103_s6 + $0x2f0] ss:$8 sps:$4 sm:$0xff]   ;;  %v1184_v11 = vor.u32 %v1183_v2, %v1180_v1  ;;  %v1189_v12 = vrot.slane %v1187_v4, 7  ;;  %v1406_v13 = vrot.slane %v1391_v5, 7  ;;  %v2895_v20 = vld [vmem:[%s3103_s6 + $0x294] ss:$8 sps:$4 sm:$0xff]  }
  0x3e   : > { %1054 = vmatprep.subr.bf16.mxu1 %v2827_v43  ;;  %883 = vmatpush1.bf16.msra.mxu0 %v2816_v49  ;;  %v788_v43 = vrot.slane %v780_v36, %v3159_v50  ;;  %v2852_v49 = vld [vmem:[%s3103_s6 + $0x270] ss:$8 sps:$4 sm:$0xff]   ;;  %v2892_v37 = vld [vmem:[%s3103_s6 + $0x214] ss:$8 sps:$4 sm:$0xff]   ;;  %v2908_v61 = vld [vmem:[%s3103_s6 + $0x360] ss:$8 sps:$4 sm:$0xff]  }
  0x3f   : > { %884 = vmatprep.subr.bf16.mxu0 %v2824_v52  ;;  %v2869_v52 = vld [vmem:[%s3103_s6 + $0x2d0] ss:$8 sps:$4 sm:$0xff]   ;;  %v1185_v16 = vrot.slane %v1184_v11, 2  ;;  %v2916_v2 = vld [vmem:[%s3103_s6 + $0x354] ss:$8 sps:$4 sm:$0xff]  }
  0x40   : > { %v796_v48 = vcombine.low %v788_v43, %v3282_v44  ;;  %v2893_v36 = vld [vmem:[%s3103_s6 + $0x290] ss:$8 sps:$4 sm:$0xff]   ;;  %v2931_v4 = vld [vmem:[%s3103_s6 + $0x3b4] ss:$8 sps:$4 sm:$0xff]   ;;  %v2922_v11 = vld [vmem:[%s3103_s6 + $0x344] ss:$8 sps:$4 sm:$0xff]  }
  0x41   : > { %1055 = vmatpush1.bf16.msra.mxu1 %v2825_v45  ;;  %v2854_v45 = vld [vmem:[%s3103_s6 + $0x274] ss:$8 sps:$4 sm:$0xff]   ;;  %v2905_v43 = vld [vmem:[%s3103_s6 + $0x3f0] ss:$8 sps:$4 sm:$0xff]   ;;  %v2949_v10 = vld [vmem:[%s3103_s6 + $0x384] ss:$8 sps:$4 sm:$0xff]  }
  0x42   : > { %1056 = vmatprep.subr.bf16.mxu1 %v2833_v47  ;;  %885 = vmatpush1.bf16.msra.mxu0 %v2822_v54  ;;  %v2871_v47 = vld [vmem:[%s3103_s6 + $0x2d4] ss:$8 sps:$4 sm:$0xff]   ;;  %v2860_v54 = vld [vmem:[%s3103_s6 + $0x260] ss:$8 sps:$4 sm:$0xff]   ;;  %v2917_v56 = vld [vmem:[%s3103_s6 + $0x3d0] ss:$8 sps:$4 sm:$0xff]  }
  0x43   : > { %886 = vmatprep.subr.bf16.mxu0 %v2830_v57  ;;  %v2868_v57 = vld [vmem:[%s3103_s6 + $0x254] ss:$8 sps:$4 sm:$0xff]   ;;  %v2914_v5 = vld [vmem:[%s3103_s6 + $0x350] ss:$8 sps:$4 sm:$0xff]  }
  0x44   : > { %v2941_v3 = vld [vmem:[%s3103_s6 + $0x390] ss:$8 sps:$4 sm:$0xff]  }
  0x45   : > { %1057 = vmatpush1.bf16.msra.mxu1 %v2831_v51  ;;  %v2862_v51 = vld [vmem:[%s3103_s6 + $0x264] ss:$8 sps:$4 sm:$0xff]  }
  0x46   : > { %1058 = vmatprep.subr.bf16.mxu1 %v2839_v53  ;;  %887 = vmatpush1.bf16.msra.mxu0 %v2828_v7  ;;  %v2877_v53 = vld [vmem:[%s3103_s6 + $0x2c4] ss:$8 sps:$4 sm:$0xff]   ;;  %v2881_v7 = vld [vmem:[%s3103_s6 + $0x2b0] ss:$8 sps:$4 sm:$0xff]  }
  0x47   : > { %888 = vmatprep.subr.bf16.mxu0 %v2836_v14  ;;  %v2872_v14 = vld [vmem:[%s3103_s6 + $0x240] ss:$8 sps:$4 sm:$0xff]  }
  0x49   : > { %1059 = vmatpush1.bf16.msra.mxu1 %v2837_v55  ;;  %v2875_v55 = vld [vmem:[%s3103_s6 + $0x2c0] ss:$8 sps:$4 sm:$0xff]  }
  0x4a   : > { %1060 = vmatprep.subr.bf16.mxu1 %v2845_v58  ;;  %889 = vmatpush1.bf16.msra.mxu0 %v2834_v21  ;;  %v2883_v58 = vld [vmem:[%s3103_s6 + $0x2b4] ss:$8 sps:$4 sm:$0xff]   ;;  %v3314_v21 = vsel %vm3173_vm6, %v1185_v16, %v1189_v12  ;;  %v2937_v12 = vld [vmem:[%s3103_s6 + $0x3a4] ss:$8 sps:$4 sm:$0xff]   ;;  %v2920_v16 = vld [vmem:[%s3103_s6 + $0x340] ss:$8 sps:$4 sm:$0xff]  }
  0x4b   : > { %890 = vmatprep.subr.bf16.mxu0 %v2842_v22  ;;  %v1208_v22 = vcombine.low %v3198_v33, %v3314_v21 }
  0x4d   : > { %1061 = vmatpush1.bf16.msra.mxu1 %v2843_v8  ;;  %v2611_v8 = vrot.slane %v2607_v62, 9  ;;  %v1222_v33 = vrot.slane %v1208_v22, %v3159_v50  ;;  %v2923_v62 = vld [vmem:[%s3103_s6 + $0x3c0] ss:$8 sps:$4 sm:$0xff]   ;;  %v2928_v22 = vld [vmem:[%s3103_s6 + $0x334] ss:$8 sps:$4 sm:$0xff]  }
  0x4e   : > { %1062 = vmatprep.subr.bf16.mxu1 %v2851_v18  ;;  %891 = vmatpush1.bf16.msra.mxu0 %v2840_v34  ;;  %v2887_v18 = vld [vmem:[%s3103_s6 + $0x2a0] ss:$8 sps:$4 sm:$0xff]   ;;  %v1424_v34 = vcombine.low %v3261_v27, %v3265_v28 }
  0x4f   : > { %892 = vmatprep.subr.bf16.mxu0 %v2848_v35  ;;  %v3309_v19 = vsel %vm3246_vm13, %v2611_v8, %v1406_v13  ;;  %v1223_v26 = vcombine.low %v1215_v23, %v1222_v33  ;;  %v2943_v23 = vld [vmem:[%s3103_s6 + $0x394] ss:$8 sps:$4 sm:$0xff]   ;;  %v2934_v33 = vld [vmem:[%s3103_s6 + $0x324] ss:$8 sps:$4 sm:$0xff]  }
  0x50   : > { %v1425_v35 = vcombine.low %v3269_v29, %v3309_v19  ;;  %v1432_v27 = vrot.slane %v1424_v34, %v3159_v50  ;;  %v2899_v29 = vld [vmem:[%s3103_s6 + $0x280] ss:$8 sps:$4 sm:$0xff]  }
  0x51   : > { %1063 = vmatpush1.bf16.msra.mxu1 %v2849_v25  ;;  %v2878_v25 = vld [vmem:[%s3103_s6 + $0x230] ss:$8 sps:$4 sm:$0xff]  }
  0x52   : > { %1522 = vmatprep.subr.bf16.mxu1 %v2859_v31  ;;  %893 = vmatpush1.bf16.msra.mxu0 %v2846_v42  ;;  %v2886_v31 = vld [vmem:[%s3103_s6 + $0x224] ss:$8 sps:$4 sm:$0xff]   ;;  %v1439_v28 = vrot.slane %v1425_v35, %v3159_v50  ;;  %v2926_v35 = vld [vmem:[%s3103_s6 + $0x330] ss:$8 sps:$4 sm:$0xff]  }
  0x53   : > { %1305 = vmatprep.subr.bf16.mxu0 %v2854_v45  ;;  %v2913_v45 = vld [vmem:[%s3103_s6 + $0x3e4] ss:$8 sps:$4 sm:$0xff]  }
  0x54   : > { %1081 = vmatmul.mubr.bf16.vlgmr.msra.gmra.mxu1 %v966_v39  ;;  %v2907_v39 = vld [vmem:[%s3103_s6 + $0x3f4] ss:$8 sps:$4 sm:$0xff]   ;;  %v1440_v42 = vcombine.low %v1432_v27, %v1439_v28 }
  0x55   : > { %1523 = vmatpush1.bf16.msra.mxu1 %v2857_v40  ;;  %1554 = vmatprep.mubr.bf16.mxu1 %v3022_v0  ;;  %v2890_v40 = vld [vmem:[%s3103_s6 + $0x210] ss:$8 sps:$4 sm:$0xff]  }
  0x56   : > { %1524 = vmatprep.subr.bf16.mxu1 %v2865_v41  ;;  %911 = vmatmul.mubr.bf16.vlgmr.msra.gmra.mxu0 %v796_v48  ;;  %v2898_v41 = vld [vmem:[%s3103_s6 + $0x204] ss:$8 sps:$4 sm:$0xff]   ;;  %v2904_v48 = vld [vmem:[%s3103_s6 + $0x374] ss:$8 sps:$4 sm:$0xff]  }
  0x57   : > { %1306 = vmatpush1.bf16.msra.mxu0 %v2852_v49  ;;  %1337 = vmatprep.mubr.bf16.mxu0 %v3022_v0  ;;  %v2919_v49 = vld [vmem:[%s3103_s6 + $0x3d4] ss:$8 sps:$4 sm:$0xff]  }
  0x58   : > { %1307 = vmatprep.subr.bf16.mxu0 %v2862_v51  ;;  %v2655_v51 = vld.sshfl [vmem:[%s3135_s14 + $0x14] sm:$0x13 pattern:$0x76325410] }
  0x59   : > { %1525 = vmatpush1.bf16.msra.mxu1 %v2863_v46  ;;  %v2896_v46 = vld [vmem:[%s3103_s6 + $0x200] ss:$8 sps:$4 sm:$0xff]   ;;  %v2981_v27 = vld.sshfl [vmem:[%s3135_s14 + $0x10] sm:$0xf pattern:$0x76325410] }
  0x5a   : > { %1526 = vmatprep.subr.bf16.mxu1 %v2871_v47  ;;  %v2911_v47 = vld [vmem:[%s3103_s6 + $0x3e0] ss:$8 sps:$4 sm:$0xff]  }
  0x5b   : > { %1308 = vmatpush1.bf16.msra.mxu0 %v2860_v54  ;;  %v1822_v54 = vshrl.u32 %v2655_v51, 16 }
  0x5c   : > { %1309 = vmatprep.subr.bf16.mxu0 %v2868_v57  ;;  %v1778_v57 = vcombine.high %v2655_v51, %v2655_v51 }
  0x5d   : > { %1527 = vmatpush1.bf16.msra.mxu1 %v2869_v52  ;;  %v2902_v52 = vld [vmem:[%s3103_s6 + $0x370] ss:$8 sps:$4 sm:$0xff]   ;;  %v1824_v59 = vrot.slane %v1822_v54, 6  ;;  %v2975_v54 = vld [vmem:[%s3103_s6 + $0x404] ss:$8 sps:$4 sm:$0xff]  }
  0x5e   : > { %1528 = vmatprep.subr.bf16.mxu1 %v2877_v53  ;;  %v2910_v53 = vld [vmem:[%s3103_s6 + $0x364] ss:$8 sps:$4 sm:$0xff]   ;;  %v1831_v1 = vshll.u32 %v1778_v57, 16 }
  0x5f   : > { %1310 = vmatpush1.bf16.msra.mxu0 %v2866_v63 }
  0x60   : > { %1311 = vmatprep.subr.bf16.mxu0 %v2874_v6  ;;  %v2929_v6 = vld [vmem:[%s3103_s6 + $0x3b0] ss:$8 sps:$4 sm:$0xff]   ;;  %v1833_v8 = vrot.slane %v1831_v1, 7 }
  0x61   : > { %1529 = vmatpush1.bf16.msra.mxu1 %v2875_v55  ;;  %v1825_v55 = vshll.u32 %v2655_v51, 16  ;;  %v2969_v51 = vld [vmem:[%s3103_s6 + $0x424] ss:$8 sps:$4 sm:$0xff]  }
  0x62   : > { %1530 = vmatprep.subr.bf16.mxu1 %v2883_v58  ;;  %v2925_v58 = vld [vmem:[%s3103_s6 + $0x3c4] ss:$8 sps:$4 sm:$0xff]  }
  0x63   : > { %1312 = vmatpush1.bf16.msra.mxu0 %v2872_v14  ;;  %v1827_v60 = vrot.slane %v1825_v55, 7  ;;  %v2973_v55 = vld [vmem:[%s3103_s6 + $0x400] ss:$8 sps:$4 sm:$0xff]  }
  0x64   : > { %1313 = vmatprep.subr.bf16.mxu0 %v2880_v15 }
  0x65   : > { %1531 = vmatpush1.bf16.msra.mxu1 %v2881_v7  ;;  %v1828_v63 = vor.u32 %v1827_v60, %v1824_v59 }
  0x66   : > { %1532 = vmatprep.subr.bf16.mxu1 %v2889_v9  ;;  %v2679_v9 = vld.sshfl [vmem:[%s3135_s14 + $0x14] sm:$0x12 pattern:$0x76325410] }
  0x67   : > { %1314 = vmatpush1.bf16.msra.mxu0 %v2878_v25  ;;  %v1829_v7 = vrot.slane %v1828_v63, 2  ;;  %v2035_v13 = vcombine.high %v2679_v9, %v2679_v9  ;;  %v2683_v14 = vrot.slane %v2679_v9, 9 }
  0x68   : > { %1315 = vmatprep.subr.bf16.mxu0 %v2886_v31 }
  0x69   : > { %1533 = vmatpush1.bf16.msra.mxu1 %v2887_v18  ;;  %v2050_v15 = vrot.slane %v2035_v13, 7  ;;  %v2935_v18 = vld [vmem:[%s3103_s6 + $0x3a0] ss:$8 sps:$4 sm:$0xff]  }
  0x6a   : > { %1534 = vmatprep.subr.bf16.mxu1 %v2895_v20  ;;  %v1834_v20 = vsel %vm3173_vm6, %v1829_v7, %v1833_v8 }
  0x6b   : > { %1316 = vmatpush1.bf16.msra.mxu0 %v2884_v32  ;;  %v2051_v25 = vsel %vm3246_vm13, %v2683_v14, %v2050_v15  ;;  %v1852_v34 = vcombine.low %v3314_v21, %v1834_v20  ;;  %v2932_v21 = vld [vmem:[%s3103_s6 + $0x320] ss:$8 sps:$4 sm:$0xff]   ;;  %v2940_v32 = vld [vmem:[%s3103_s6 + $0x314] ss:$8 sps:$4 sm:$0xff]  }
  0x6c   : > { %1317 = vmatprep.subr.bf16.mxu0 %v2892_v37  ;;  %v2069_v31 = vcombine.low %v3309_v19, %v2051_v25  ;;  %v2980_v37 = vld.sshfl [vmem:[%s3135_s14 + $0x8] sm:$0xf pattern:$0x76325410] }
  0x6d   : > { %1535 = vmatpush1.bf16.msra.mxu1 %v2893_v36  ;;  %v1866_v19 = vrot.slane %v1852_v34, %v3159_v50 }
  0x6e   : > { %1536 = vmatprep.subr.bf16.mxu1 %v2901_v17  ;;  %v2083_v36 = vrot.slane %v2069_v31, %v3159_v50  ;;  %v2946_v50 = vld [vmem:[%s3103_s6 + $0x304] ss:$8 sps:$4 sm:$0xff]  }
  0x6f   : > { %1318 = vmatpush1.bf16.msra.mxu0 %v2890_v40  ;;  %v1867_v28 = vcombine.low %v3207_v38, %v1866_v19  ;;  %v1610_v40 = vcombine.low %v2980_v37, %v2981_v27  ;;  %v2957_v38 = vld [vmem:[%s3103_s6 + $0x464] ss:$8 sps:$4 sm:$0xff]  }
  0x70   : > { %1319 = vmatprep.subr.bf16.mxu0 %v2898_v41  ;;  %v2084_v17 = vcombine.low %v3282_v44, %v2083_v36  ;;  %v2938_v44 = vld [vmem:[%s3103_s6 + $0x310] ss:$8 sps:$4 sm:$0xff]  }
  0x71   : > { %1537 = vmatpush1.bf16.msra.mxu1 %v2899_v29  ;;  %v2944_v29 = vld [vmem:[%s3103_s6 + $0x300] ss:$8 sps:$4 sm:$0xff]   ;;  %v2952_v41 = vld [vmem:[%s3103_s6 + $0x470] ss:$8 sps:$4 sm:$0xff]  }
  0x72   : > { %1949 = vmatprep.subr.bf16.mxu1 %v2907_v39  ;;  %v2954_v39 = vld [vmem:[%s3103_s6 + $0x474] ss:$8 sps:$4 sm:$0xff]  }
  0x73   : > { %1320 = vmatpush1.bf16.msra.mxu0 %v2896_v46  ;;  %v2963_v46 = vld [vmem:[%s3103_s6 + $0x444] ss:$8 sps:$4 sm:$0xff]  }
  0x74   : > { %1555 = vmatmul.mubr.bf16.vlgmr.msra.gmra.mxu1 %v1440_v42  ;;  %1692 = vmatprep.subr.bf16.mxu0 %v2904_v48  ;;  %v2955_v42 = vld [vmem:[%s3103_s6 + $0x460] ss:$8 sps:$4 sm:$0xff]   ;;  %v2966_v48 = vld [vmem:[%s3103_s6 + $0x434] ss:$8 sps:$4 sm:$0xff]  }
  0x75   : > { %1950 = vmatpush1.bf16.msra.mxu1 %v2905_v43  ;;  %1981 = vmatprep.mubr.bf16.mxu1 %v3022_v0  ;;  %v2960_v43 = vld [vmem:[%s3103_s6 + $0x454] ss:$8 sps:$4 sm:$0xff]  }
  0x76   : > { %1951 = vmatprep.subr.bf16.mxu1 %v2913_v45  ;;  %1338 = vmatmul.mubr.bf16.vlgmr.msra.gmra.mxu0 %v1223_v26  ;;  %v2947_v26 = vld [vmem:[%s3103_s6 + $0x380] ss:$8 sps:$4 sm:$0xff]   ;;  %v2958_v45 = vld [vmem:[%s3103_s6 + $0x450] ss:$8 sps:$4 sm:$0xff]  }
  0x77   : > { %1693 = vmatpush1.bf16.msra.mxu0 %v2902_v52  ;;  %1724 = vmatprep.mubr.bf16.mxu0 %v3022_v0  ;;  %v2972_v52 = vld [vmem:[%s3103_s6 + $0x414] ss:$8 sps:$4 sm:$0xff]  }
  0x78   : > { %1694 = vmatprep.subr.bf16.mxu0 %v2910_v53  ;;  %v2970_v53 = vld [vmem:[%s3103_s6 + $0x410] ss:$8 sps:$4 sm:$0xff]  }
  0x79   : > { %1952 = vmatpush1.bf16.msra.mxu1 %v2911_v47  ;;  %v2961_v47 = vld [vmem:[%s3103_s6 + $0x440] ss:$8 sps:$4 sm:$0xff]  }
  0x7a   : > { %1953 = vmatprep.subr.bf16.mxu1 %v2919_v49  ;;  %v2964_v49 = vld [vmem:[%s3103_s6 + $0x430] ss:$8 sps:$4 sm:$0xff]  }
  0x7b   : > { %1695 = vmatpush1.bf16.msra.mxu0 %v2908_v61 }
  0x7c   : > { %1696 = vmatprep.subr.bf16.mxu0 %v2916_v2 }
  0x7d   : > { %1954 = vmatpush1.bf16.msra.mxu1 %v2917_v56 }
  0x7e   : > { %1955 = vmatprep.subr.bf16.mxu1 %v2925_v58 }
  0x7f   : > { %1697 = vmatpush1.bf16.msra.mxu0 %v2914_v5 }
  0x80   : > { %1698 = vmatprep.subr.bf16.mxu0 %v2922_v11 }
  0x81   : > { %1956 = vmatpush1.bf16.msra.mxu1 %v2923_v62 }
  0x82   : > { %1957 = vmatprep.subr.bf16.mxu1 %v2931_v4 }
  0x83   : > { %1699 = vmatpush1.bf16.msra.mxu0 %v2920_v16 }
  0x84   : > { %1700 = vmatprep.subr.bf16.mxu0 %v2928_v22 }
  0x85   : > { %1958 = vmatpush1.bf16.msra.mxu1 %v2929_v6 }
  0x86   : > { %1959 = vmatprep.subr.bf16.mxu1 %v2937_v12 }
  0x87   : > { %1701 = vmatpush1.bf16.msra.mxu0 %v2926_v35 }
  0x88   : > { %1702 = vmatprep.subr.bf16.mxu0 %v2934_v33 }
  0x89   : > { %1960 = vmatpush1.bf16.msra.mxu1 %v2935_v18 }
  0x8a   : > { %1961 = vmatprep.subr.bf16.mxu1 %v2943_v23 }
  0x8b   : > { %1703 = vmatpush1.bf16.msra.mxu0 %v2932_v21 }
  0x8c   : > { %1704 = vmatprep.subr.bf16.mxu0 %v2940_v32 }
  0x8d   : > { %1962 = vmatpush1.bf16.msra.mxu1 %v2941_v3 }
  0x8e   : > { %1963 = vmatprep.subr.bf16.mxu1 %v2949_v10 }
  0x8f   : > { %1705 = vmatpush1.bf16.msra.mxu0 %v2938_v44 }
  0x90   : > { %1706 = vmatprep.subr.bf16.mxu0 %v2946_v50 }
  0x91   : > { %1964 = vmatpush1.bf16.msra.mxu1 %v2947_v26 }
  0x93   : > { %1707 = vmatpush1.bf16.msra.mxu0 %v2944_v29 }
  0x94   : > { %1982 = vmatmul.mubr.bf16.vlgmr.msra.gmra.mxu1 %v1867_v28  ;;  %2166 = vmatprep.subr.bf16.mxu0 %v2954_v39 }
  0x96   : > { %1725 = vmatmul.mubr.bf16.vlgmr.msra.gmra.mxu0 %v1610_v40 }
  0x97   : > { %2167 = vmatpush1.bf16.msra.mxu0 %v2952_v41  ;;  %2198 = vmatprep.mubr.bf16.mxu0 %v3022_v0  ;;  %v2967_v0 = vld [vmem:[%s3103_s6 + $0x420] ss:$8 sps:$4 sm:$0xff]  }
  0x98   : > { %2168 = vmatprep.subr.bf16.mxu0 %v2957_v38 }
  0x9b   : > { %2169 = vmatpush1.bf16.msra.mxu0 %v2955_v42 }
  0x9c   : > { %2170 = vmatprep.subr.bf16.mxu0 %v2960_v43 }
  0x9f   : > { %2171 = vmatpush1.bf16.msra.mxu0 %v2958_v45 }
  0xa0   : > { %2172 = vmatprep.subr.bf16.mxu0 %v2963_v46 }
  0xa3   : > { %2173 = vmatpush1.bf16.msra.mxu0 %v2961_v47 }
  0xa4   : > { %2174 = vmatprep.subr.bf16.mxu0 %v2966_v48 }
  0xa7   : > { %2175 = vmatpush1.bf16.msra.mxu0 %v2964_v49 }
  0xa8   : > { %2176 = vmatprep.subr.bf16.mxu0 %v2969_v51 }
  0xab   : > { %2177 = vmatpush1.bf16.msra.mxu0 %v2967_v0 }
  0xac   : > { %2178 = vmatprep.subr.bf16.mxu0 %v2972_v52 }
  0xaf   : > { %2179 = vmatpush1.bf16.msra.mxu0 %v2970_v53 }
  0xb0   : > { %2180 = vmatprep.subr.bf16.mxu0 %v2975_v54 }
  0xb3   : > { %2181 = vmatpush1.bf16.msra.mxu0 %v2973_v55 }
  0xb6   : > { %2199 = vmatmul.mubr.bf16.vlgmr.msra.gmra.mxu0 %v2084_v17 }
  0xf4   : > { %v547_v56 = vpop.f32.mrf.mxu0  ;;  %v692_v57 = vpop.f32.mrf.mxu1 }
  0xf5   : > { %v693_v16 = vadd.f32 %v692_v57, %v547_v56 }
  0xf6   : > { %v549_v58 = vpop.f32.mrf.mxu0  ;;  %v694_v59 = vpop.f32.mrf.mxu1 }
  0xf7   : > { %v695_v18 = vadd.f32 %v694_v59, %v549_v58 }
  0xf8   : > { %v551_v60 = vpop.f32.mrf.mxu0  ;;  %v696_v61 = vpop.f32.mrf.mxu1 }
  0xf9   : > { %v697_v23 = vadd.f32 %v696_v61, %v551_v60 }
  0xfa   : > { %v553_v62 = vpop.f32.mrf.mxu0  ;;  %v698_v1 = vpop.f32.mrf.mxu1 }
  0xfb   : > { %v699_v35 = vadd.f32 %v698_v1, %v553_v62 }
 0x114   : > { %v1082_v4 = vpop.f32.mrf.mxu1 }
 0x116   : > { %v912_v63 = vpop.f32.mrf.mxu0  ;;  %v1084_v6 = vpop.f32.mrf.mxu1 }
 0x117   : > { %v921_v25 = vadd.f32 %v912_v63, %v693_v16 }
 0x118   : > { %v914_v2 = vpop.f32.mrf.mxu0  ;;  %v1086_v8 = vpop.f32.mrf.mxu1 }
 0x119   : > { %v922_v31 = vadd.f32 %v914_v2, %v695_v18  ;;  %v1091_v33 = vadd.f32 %v1082_v4, %v921_v25 }
 0x11a   : > { %v916_v5 = vpop.f32.mrf.mxu0  ;;  %v1088_v11 = vpop.f32.mrf.mxu1 }
 0x11b   : > { %v923_v3 = vadd.f32 %v916_v5, %v697_v23  ;;  %v1092_v10 = vadd.f32 %v1084_v6, %v922_v31 }
 0x11c   : > { %v918_v7 = vpop.f32.mrf.mxu0 }
 0x11d   : > { %v924_v17 = vadd.f32 %v918_v7, %v699_v35  ;;  %v1093_v26 = vadd.f32 %v1086_v8, %v923_v3 }
 0x11f   : > { %v1094_v27 = vadd.f32 %v1088_v11, %v924_v17 }
 0x134   : > { %v1556_v13 = vpop.f32.mrf.mxu1 }
 0x136   : > { %v1339_v9 = vpop.f32.mrf.mxu0  ;;  %v1558_v15 = vpop.f32.mrf.mxu1 }
 0x137   : > { %v1348_v32 = vadd.f32 %v1339_v9, %v1091_v33 }
 0x138   : > { %v1341_v12 = vpop.f32.mrf.mxu0  ;;  %v1560_v22 = vpop.f32.mrf.mxu1 }
 0x139   : > { %v1349_v37 = vadd.f32 %v1341_v12, %v1092_v10  ;;  %v1565_v29 = vadd.f32 %v1556_v13, %v1348_v32 }
 0x13a   : > { %v1343_v14 = vpop.f32.mrf.mxu0  ;;  %v1562_v36 = vpop.f32.mrf.mxu1 }
 0x13b   : > { %v1350_v28 = vadd.f32 %v1343_v14, %v1093_v26  ;;  %v1566_v39 = vadd.f32 %v1558_v15, %v1349_v37 }
 0x13c   : > { %v1345_v20 = vpop.f32.mrf.mxu0 }
 0x13d   : > { %v1351_v40 = vadd.f32 %v1345_v20, %v1094_v27  ;;  %v1567_v41 = vadd.f32 %v1560_v22, %v1350_v28 }
 0x13f   : > { %v1568_v46 = vadd.f32 %v1562_v36, %v1351_v40 }
 0x154   : > { %v1983_v21 = vpop.f32.mrf.mxu1 }
 0x156   : > { %v1726_v34 = vpop.f32.mrf.mxu0  ;;  %v1985_v50 = vpop.f32.mrf.mxu1 }
 0x157   : > { %v1735_v38 = vadd.f32 %v1726_v34, %v1565_v29 }
 0x158   : > { %v1728_v19 = vpop.f32.mrf.mxu0  ;;  %v1987_v45 = vpop.f32.mrf.mxu1 }
 0x159   : > { %v1736_v42 = vadd.f32 %v1728_v19, %v1566_v39  ;;  %v1992_v49 = vadd.f32 %v1983_v21, %v1735_v38 }
 0x15a   : > { %v1730_v44 = vpop.f32.mrf.mxu0  ;;  %v1989_v52 = vpop.f32.mrf.mxu1 }
 0x15b   : > { %v1737_v47 = vadd.f32 %v1730_v44, %v1567_v41  ;;  %v1993_v51 = vadd.f32 %v1985_v50, %v1736_v42 }
 0x15c   : > { %v1732_v43 = vpop.f32.mrf.mxu0 }
 0x15d   : > { %v1738_v0 = vadd.f32 %v1732_v43, %v1568_v46  ;;  %v1994_v54 = vadd.f32 %v1987_v45, %v1737_v47 }
 0x15f   : > { %v1995_v58 = vadd.f32 %v1989_v52, %v1738_v0 }
 0x176   : > { %v2200_v48 = vpop.f32.mrf.mxu0 }
 0x177   : > { %v2209_v55 = vadd.f32 %v2200_v48, %v1992_v49 }
 0x178   : > { %v2202_v53 = vpop.f32.mrf.mxu0 }
 0x179   : > { %v2210_v56 = vadd.f32 %v2202_v53, %v1993_v51  ;;  %v2241_v62 = vmul.f32 %v2209_v55, %v2209_v55 }
 0x17a   : > { %v2204_v57 = vpop.f32.mrf.mxu0 }
 0x17b   : > { %v2705_v59 = vpack.c.bf16 %v2210_v56, %v2209_v55  ;;  %v2211_v60 = vadd.f32 %v2204_v57, %v1994_v54  ;;  %v2242_v8 = vmul.f32 %v2210_v56, %v2210_v56 }
 0x17c   : > { %v2206_v61 = vpop.f32.mrf.mxu0 }
 0x17d   : > { %2225 = vst [vmem:[%s266_s28] sm:$0xff] %v2705_v59  ;;  %v2227_v63 = vadd.f32 %v2211_v60, %v2209_v55  ;;  %v2243_v1 = vmul.f32 %v2211_v60, %v2211_v60  ;;  %v2212_v2 = vadd.f32 %v2206_v61, %v1995_v58 }
 0x17f   : > { %v2228_v4 = vrot.slane %v2227_v63, 4  ;;  %v2245_v5 = vadd.f32 %v2243_v1, %v2241_v62  ;;  %v2706_v6 = vpack.c.bf16 %v2212_v2, %v2211_v60  ;;  %v2234_v7 = vadd.f32 %v2212_v2, %v2210_v56 }
 0x180   : > { %v2244_v9 = vmul.f32 %v2212_v2, %v2212_v2 }
 0x181   : > { %v2229_v11 = vadd.f32 %v2228_v4, %v2227_v63  ;;  %v2246_v12 = vrot.slane %v2245_v5, 4  ;;  %2226 = vst [vmem:[%s266_s28 + $0x8] sm:$0xff] %v2706_v6  ;;  %v2235_v13 = vrot.slane %v2234_v7, 4 }
 0x182   : > { %v2252_v14 = vadd.f32 %v2244_v9, %v2242_v8 }
 0x183   : > { %v2230_v15 = vrot.slane %v2229_v11, 2  ;;  %v2247_v16 = vadd.f32 %v2246_v12, %v2245_v5  ;;  %v2236_v18 = vadd.f32 %v2235_v13, %v2234_v7 }
 0x184   : > { %v2253_v20 = vrot.slane %v2252_v14, 4 }
 0x185   : > { %v2231_v22 = vadd.f32 %v2230_v15, %v2229_v11  ;;  %v2248_v23 = vrot.slane %v2247_v16, 2  ;;  %v2237_v25 = vrot.slane %v2236_v18, 2 }
 0x186   : > { %v2254_v31 = vadd.f32 %v2253_v20, %v2252_v14 }
 0x187   : > { %v2232_v34 = vrot.slane %v2231_v22, 1  ;;  %v2249_v35 = vadd.f32 %v2248_v23, %v2247_v16  ;;  %v2238_v3 = vadd.f32 %v2237_v25, %v2236_v18 }
 0x188   : > { %v2255_v36 = vrot.slane %v2254_v31, 2 }
 0x189   : > { %v2233_v33 = vadd.f32 %v2232_v34, %v2231_v22  ;;  %v2250_v10 = vrot.slane %v2249_v35, 1  ;;  %v2239_v17 = vrot.slane %v2238_v3, 1 }
 0x18a   : > { %v2256_v19 = vadd.f32 %v2255_v36, %v2254_v31  ;;  %2262 = sbr.rel (%p2702_p7) target bundleno = 401 (0x191), region = 32 }
 0x18b   : > { %v2251_v21 = vadd.f32 %v2250_v10, %v2249_v35  ;;  %v2240_v26 = vadd.f32 %v2239_v17, %v2238_v3 }
 0x18c   : > { %v2257_v32 = vrot.slane %v2256_v19, 1 }
 0x18e   : > { %v2258_v37 = vadd.f32 %v2257_v32, %v2256_v19 }
 0x18f   : > { %vm2265_vm14 = vcmp.lt.s32.totalorder %v420_v24, 256  ;;  %v3024_v27 = vmov 0.0  }
 0x190   : > { %2267 = vst.msk [vmem:[%s3093_s26] sm:$0x3] %vm2265_vm14, %v3024_v27  ;;  %2268 = vst.msk [vmem:[%s3098_s29] sm:$0x3] %vm2265_vm14, %v3024_v27 }
 0x191 PF: > { %v3025_v28 = vmov 1966171168   ;;  %v2272_v50 = vcombine.low %v2233_v33, %v2240_v26  ;;  %v2297_v39 = vcombine.low %v2251_v21, %v2258_v37  ;;  %vm2291_vm15 = vcmp.lt.s32.totalorder %v420_v24, 256 }
 0x192   : > { %v2274_v44 = vunpack.c.l.s4 %v3025_v28 }
 0x194   : > { %v2275_v29 = vunpack.c.0.s8 %v2274_v44 }
 0x196   : > { %v2278_v40 = vsub.s32 %v2275_v29, %v3141_v30 }
 0x197   : > { %v2269_v42 = vld [vmem:[%s3093_s26] sm:$0x3] }
 0x198   : > { %v2279_v41 = vrot.slane %v2272_v50, %v2278_v40  ;;  %v2304_v38 = vrot.slane %v2297_v39, %v2278_v40  ;;  %v2294_v43 = vld [vmem:[%s3098_s29] sm:$0x3] }
 0x19a   : > { %v2286_v45 = vrot.slane %v2279_v41, %v2278_v40  ;;  %v2311_v46 = vrot.slane %v2304_v38, %v2278_v40 }
 0x19c   : > { %v2288_v47 = vadd.f32 %v2286_v45, %v2269_v42  ;;  %v2313_v48 = vadd.f32 %v2311_v46, %v2294_v43 }
 0x19e   : > { %2293 = vst.msk [vmem:[%s3093_s26] sm:$0x3] %vm2291_vm15, %v2288_v47  ;;  %2314 = vst.msk [vmem:[%s3098_s29] sm:$0x3] %vm2291_vm15, %v2313_v48 }
 0x19f PF: > { %s15_s19 = sadd.s32 1, %s3020_s19   ;;  %s3451_s15 = smov %s3012_s17 }
 0x1a0   : > { %p12_p8 = scmp.ge.s32.totalorder %s15_s19, 10   ;;  %s3452_s16 = smov %s3016_s18 }
 0x1a1   : > { %s3453_s17 = smov %s3456_s20  ;;  %s3454_s18 = smov %s3460_s21 }
 0x1a2   :  { %14 = sbr.rel (!%p12_p8) target bundleno = 3 (0x3), region = 91 }

// kernel: _device_forward.10
= control target key start
LH: loop header
LB: loop body
LE: loop exit
PB: predicated region body
PF: predicated region fallthrough
CT: control target
= control target key end

     0   :  { %s2310_s15 = smov 0   ;;  %s2312_s16 = smov 0   ;;  %s2647_s0 = inlined_call_operand.vmem [shape: bf16[4,2,4,4,128], index: 0, kind: input, shape index: {}]   ;;  %s2648_s1 = inlined_call_operand.vmem [shape: bf16[4,1152,64], index: 1, kind: input, shape index: {}]   ;;  %s2649_s2 = inlined_call_operand.vmem [shape: bf16[4,2,4,64], index: 2, kind: output, shape index: {0}]   ;;  %s2650_s3 = inlined_call_operand.vmem [shape: f32[4,1,64], index: 3, kind: output, shape index: {1}]   ;;  %s2651_s4 = inlined_call_operand.vmem [shape: f32[4,1,64], index: 4, kind: output, shape index: {2}]  }
   0x1   :  { %s2314_s17 = smov 0   ;;  %s2316_s18 = smov 0  }
   0x2   :  { %s2318_s19 = smov 0  }
   0x3 LB: > { %s24_s20 = sadd.s32 1, %s2271_s17  ;;  %s27_s21 = sadd.s32 1, %s2275_s18  ;;  %s2279_s19 = sphi %s2318_s19, %s15_s19   ;;  %s2275_s18 = sphi %s2316_s18, %s2657_s18   ;;  %s2271_s17 = sphi %s2314_s17, %s2656_s17   ;;  %s2267_s16 = sphi %s2312_s16, %s2655_s16   ;;  %s2263_s15 = sphi %s2310_s15, %s2654_s15  }
   0x4   : > { %p25_p0 = scmp.ge.s32.totalorder %s24_s20, 2  ;;  %p1748_p1 = scmp.ge.s32.totalorder %s2279_s19, 1 }
   0x5   : > { %p197_p2 = scmp.lt.s32.totalorder %s2279_s19, 9 }
   0x6   : > { %s2659_s20 = smov (%p25_p0, %s24_s20), 0  ;;  %s2661_s21 = smov (!%p25_p0, %s27_s21), %s2275_s18 }
   0x7   : > { %p198_p3 = pnand %p1748_p1, %p197_p2  ;;  %p29_p4 = scmp.ge.s32.totalorder %s2661_s21, 4 }
   0x8   : > { %p241_p5 = scmp.lt.s32.totalorder (!%p198_p3), %s2267_s16, 3  ;;  %p243_p6 = scmp.lt.s32.totalorder (!%p198_p3), %s2263_s15, 1 }
   0x9   : > { %s2663_s21 = smov (%p29_p4, %s2661_s21), 0  ;;  %201 = sbr.rel (%p198_p3) target bundleno = 400 (0x190), region = 28 }
   0xa   : > { %p1860_p7 = scmp.ne.s32.totalorder (!%p198_p3), %s2263_s15, 0 }
   0xe   : > { %vm308_vm0 = vsmask.f32 256  ;;  %v2281_v0 = vmov 0.0   ;;  %vm309_vm1 = vsmask.f32 1284  ;;  %s2665_s16 = smov (!%p241_p5, %s2267_s16), 3  ;;  %v361_v9 = vlaneseq }
   0xf   : > { %1944 = vmatprep.subr.bf16.mxu0 %v2281_v0  ;;  %1964 = vmatprep.subr.bf16.mxu1 %v2281_v0  ;;  %vm2282_vm2 = vmmov 0   ;;  %vm310_vm3 = vmor %vm308_vm0, %vm309_vm1  ;;  %vm311_vm4 = vsmask.f32 2312  ;;  %s2124_s22 = smul.u32 576, %s2665_s16  ;;  %s2356_s25 = scalar_lea.vmem %s2650_s3, %s2665_s16  ;;  %vm313_vm6 = vsmask.f32 3340 }
  0x10   : > { %1960 = vmatprep.mubr.msk.bf16.mxu0 %vm2282_vm2, %v2281_v0  ;;  %1980 = vmatprep.mubr.msk.bf16.mxu1 %vm2282_vm2, %v2281_v0  ;;  %s2362_s28 = scalar_lea.vmem %s2651_s4, %s2665_s16  ;;  %vm312_vm5 = vmor %vm310_vm3, %vm311_vm4  ;;  %s1750_s8 = sshll.u32 %s2665_s16, 3  ;;  %vm315_vm8 = vsmask.f32 4368  ;;  %vm317_vm9 = vsmask.f32 5396  ;;  %v362_v15 = vshrl.u32 %v361_v9, 7 }
  0x11   : > { %s2367_s5 = scalar_lea.vmem %s2648_s1, %s2124_s22  ;;  %vm314_vm7 = vmor %vm312_vm5, %vm313_vm6  ;;  %vm319_vm11 = vsmask.f32 6424  ;;  %vm321_vm13 = vsmask.f32 7452  ;;  %v2283_v10 = vmov 1966171168  }
  0x12   : > { %v2169_v1 = vld [vmem:[%s2367_s5 + $0x78] sm:$0xff]   ;;  %s2371_s6 = scalar_select %p243_p6, %s2263_s15, 1  ;;  %v2171_v3 = vld [vmem:[%s2367_s5 + $0x70] sm:$0xff]   ;;  %v2173_v5 = vld [vmem:[%s2367_s5 + $0x68] sm:$0xff]   ;;  %v359_v11 = vunpack.c.l.s4 %v2283_v10  ;;  %vm1563_vm0 = vcmask 519168   ;;  %vm1561_vm1 = vcmask 517120  }
  0x13   : > { %v2170_v2 = vld [vmem:[%s2367_s5 + $0x38] sm:$0xff]   ;;  %1945 = vmatpush3.bf16.msra.mxu0 %v2169_v1  ;;  %v2172_v4 = vld [vmem:[%s2367_s5 + $0x30] sm:$0xff]   ;;  %v2174_v6 = vld [vmem:[%s2367_s5 + $0x28] sm:$0xff]   ;;  %s1753_s14 = sshll.u32 %s2665_s16, 1 }
  0x14   : > { %1965 = vmatpush3.bf16.msra.mxu1 %v2170_v2  ;;  %1946 = vmatprep.subr.bf16.mxu0 %v2281_v0  ;;  %s1749_s7 = sshll.u32 %s2371_s6, 2  ;;  %vm316_vm10 = vmor %vm314_vm7, %vm315_vm8  ;;  %v2175_v7 = vld [vmem:[%s2367_s5 + $0x60] sm:$0xff]   ;;  %v2177_v12 = vld [vmem:[%s2367_s5 + $0x58] sm:$0xff]   ;;  %v360_v20 = vunpack.c.0.s8 %v359_v11  ;;  %s260_s22 = sadd.s32 %s1753_s14, %s2371_s6 }
  0x15   : > { %1966 = vmatprep.subr.bf16.mxu1 %v2281_v0  ;;  %s247_s9 = sadd.s32 %s1750_s8, %s1749_s7  ;;  %v2176_v8 = vld [vmem:[%s2367_s5 + $0x20] sm:$0xff]   ;;  %vm318_vm12 = vmor %vm316_vm10, %vm317_vm9  ;;  %v2178_v13 = vld [vmem:[%s2367_s5 + $0x18] sm:$0xff]   ;;  %s1754_s23 = sshll.u32 %s260_s22, 1 }
  0x16   : > { %s1751_s10 = sshll.u32 %s247_s9, 1  ;;  %vm320_vm14 = vmor %vm318_vm12, %vm319_vm11  ;;  %v2179_v16 = vld [vmem:[%s2367_s5 + $0x50] sm:$0xff]   ;;  %v2412_v30 = vsub.s32 %v360_v20, %v362_v15  ;;  %v2181_v31 = vld [vmem:[%s2367_s5 + $0x48] sm:$0xff]   ;;  %s262_s27 = scalar_lea.vmem %s2649_s2, %s1754_s23 }
  0x17   : > { %1947 = vmatpush3.bf16.msra.mxu0 %v2171_v3  ;;  %s2391_s13 = scalar_lea.vmem %s2647_s0, %s1751_s10  ;;  %vm2402_vm15 = vmor %vm320_vm14, %vm321_vm13  ;;  %v2180_v26 = vld [vmem:[%s2367_s5 + $0x10] sm:$0xff]   ;;  %v2182_v34 = vld [vmem:[%s2367_s5 + $0x8] sm:$0xff]  }
  0x18   : > { %1967 = vmatpush3.bf16.msra.mxu1 %v2172_v4  ;;  %1948 = vmatprep.subr.bf16.mxu0 %v2281_v0  ;;  %v1755_v14 = vld.sshfl [vmem:[%s2391_s13] sm:$0x11 pattern:$0x75316420]  ;;  %v271_v25 = vld [vmem:[%s2391_s13 + $0x2] sm:$0x1] }
  0x19   : > { %1968 = vmatprep.subr.bf16.mxu1 %v2281_v0  ;;  %v1756_v17 = vld.sshfl [vmem:[%s2391_s13 + $0x2] sm:$0x11 pattern:$0x75316420]  ;;  %v299_v18 = vcombine.high %v1755_v14, %v1755_v14  ;;  %v324_v19 = vshrl.u32 %v1755_v14, 16  ;;  %v2185_v42 = vld [vmem:[%s2367_s5 + $0xb8] sm:$0xff]  }
  0x1a   : > { %v270_v21 = vld [vmem:[%s2391_s13] sm:$0x1]  ;;  %v307_v22 = vcombine.high %v1756_v17, %v1756_v17  ;;  %v333_v24 = vshrl.u32 %v1756_v17, 16  ;;  %v2186_v43 = vld [vmem:[%s2367_s5 + $0xf8] sm:$0xff]   ;;  %v2187_v44 = vld [vmem:[%s2367_s5 + $0xb0] sm:$0xff]  }
  0x1b   : > { %1949 = vmatpush3.bf16.msra.mxu0 %v2173_v5  ;;  %v329_v27 = vshll.u32 %v299_v18, 16  ;;  %v463_v33 = vcombine.low %v270_v21, %v271_v25  ;;  %v2183_v37 = vld [vmem:[%s2367_s5 + $0x40] sm:$0xff]   ;;  %v2188_v45 = vld [vmem:[%s2367_s5 + $0xf0] sm:$0xff]   ;;  %v2189_v46 = vld [vmem:[%s2367_s5 + $0xa8] sm:$0xff]  }
  0x1c   : > { %1969 = vmatpush3.bf16.msra.mxu1 %v2174_v6  ;;  %1950 = vmatprep.subr.bf16.mxu0 %v2281_v0  ;;  %v338_v28 = vshll.u32 %v307_v22, 16  ;;  %v2184_v39 = vld [vmem:[%s2367_s5] sm:$0xff]   ;;  %v2190_v47 = vld [vmem:[%s2367_s5 + $0xe8] sm:$0xff]   ;;  %v2193_v50 = vld [vmem:[%s2367_s5 + $0x98] sm:$0xff]  }
  0x1d   : > { %1970 = vmatprep.subr.bf16.mxu1 %v2281_v0  ;;  %v331_v29 = vsel %vm2402_vm15, %v324_v19, %v329_v27  ;;  %v470_v38 = vrot.slane %v463_v33, %v2412_v30  ;;  %v2191_v48 = vld [vmem:[%s2367_s5 + $0xa0] sm:$0xff]   ;;  %v2194_v51 = vld [vmem:[%s2367_s5 + $0xd8] sm:$0xff]   ;;  %v2195_v52 = vld [vmem:[%s2367_s5 + $0x90] sm:$0xff]  }
  0x1e   : > { %v2417_v32 = vsel %vm2402_vm15, %v333_v24, %v338_v28  ;;  %v2192_v49 = vld [vmem:[%s2367_s5 + $0xe0] sm:$0xff]   ;;  %v2196_v55 = vld [vmem:[%s2367_s5 + $0xd0] sm:$0xff]   ;;  %v2197_v59 = vld [vmem:[%s2367_s5 + $0x88] sm:$0xff]  }
  0x1f   : > { %1951 = vmatpush3.bf16.msra.mxu0 %v2175_v7  ;;  %v357_v35 = vcombine.low %v331_v29, %v2417_v32  ;;  %v477_v41 = vrot.slane %v470_v38, %v2412_v30  ;;  %v1775_v53 = vld.sshfl [vmem:[%s2391_s13] sm:$0x10 pattern:$0x75316420]  ;;  %v1786_v56 = vld [vmem:[%s2391_s13 + $0x2] sm:$0x1] }
  0x20   : > { %1971 = vmatpush3.bf16.msra.mxu1 %v2176_v8  ;;  %1952 = vmatprep.subr.bf16.mxu0 %v2281_v0  ;;  %v1776_v54 = vld.sshfl [vmem:[%s2391_s13 + $0x2] sm:$0x10 pattern:$0x75316420]  ;;  %v1787_v57 = vld [vmem:[%s2391_s13 + $0x4] sm:$0x1] }
  0x21   : > { %1972 = vmatprep.subr.bf16.mxu1 %v2281_v0  ;;  %v364_v36 = vrot.slane %v357_v35, %v2412_v30  ;;  %v1799_v58 = vld.sshfl [vmem:[%s2391_s13 + $0x4] sm:$0x11 pattern:$0x75316420]  ;;  %v1777_v60 = vcombine.high %v1775_v53, %v1776_v54  ;;  %v729_v63 = vcombine.low %v1786_v56, %v1787_v57  ;;  %v2198_v2 = vld [vmem:[%s2367_s5 + $0xc8] sm:$0xff]   ;;  %v2201_v15 = vld [vmem:[%s2367_s5 + $0x138] sm:$0xff]  }
  0x22   : > { %v853_v61 = vcombine.high %v1799_v58, %v1799_v58  ;;  %v864_v62 = vshrl.u32 %v1799_v58, 16  ;;  %v2466_v1 = vld.sshfl [vmem:[%s2391_s13 + $0x4] sm:$0x10 pattern:$0x75316420]  ;;  %v2202_v18 = vld [vmem:[%s2367_s5 + $0x178] sm:$0xff]  }
  0x23   : > { %1953 = vmatpush3.bf16.msra.mxu0 %v2177_v12  ;;  %v371_v40 = vrot.slane %v364_v36, %v2412_v30  ;;  %v1814_v4 = vcombine.high %v1776_v54, %v2466_v1  ;;  %v610_v5 = vrot.slane %v1777_v60, %v2412_v30  ;;  %v2199_v8 = vld [vmem:[%s2367_s5 + $0x80] sm:$0xff]   ;;  %v736_v9 = vrot.slane %v729_v63, %v2412_v30  ;;  %v2203_v19 = vld [vmem:[%s2367_s5 + $0x130] sm:$0xff]   ;;  %v2205_v21 = vld [vmem:[%s2367_s5 + $0x128] sm:$0xff]  }
  0x24   : > { %1973 = vmatpush3.bf16.msra.mxu1 %v2178_v13  ;;  %1954 = vmatprep.subr.bf16.mxu0 %v2281_v0  ;;  %v869_v3 = vshll.u32 %v853_v61, 16  ;;  %v2200_v11 = vld [vmem:[%s2367_s5 + $0xc0] sm:$0xff]   ;;  %v2204_v20 = vld [vmem:[%s2367_s5 + $0x170] sm:$0xff]   ;;  %v2206_v25 = vld [vmem:[%s2367_s5 + $0x168] sm:$0xff]  }
  0x25   : > { %1974 = vmatprep.subr.bf16.mxu1 %v2281_v0  ;;  %v2476_v7 = vrot.slane %v1814_v4, %v2412_v30  ;;  %v617_v14 = vrot.slane %v610_v5, %v2412_v30  ;;  %v1823_v22 = vld [vmem:[%s2391_s13 + $0x4] sm:$0x1]  ;;  %v1824_v24 = vld [vmem:[%s2391_s13 + $0x6] sm:$0x1]  ;;  %v2209_v38 = vld [vmem:[%s2367_s5 + $0x118] sm:$0xff]  }
  0x26   : > { %v871_v6 = vsel %vm2402_vm15, %v864_v62, %v869_v3  ;;  %v1836_v27 = vld.sshfl [vmem:[%s2391_s13 + $0x6] sm:$0x11 pattern:$0x75316420]  ;;  %v2219_v53 = vld [vmem:[%s2367_s5 + $0x1b0] sm:$0xff]   ;;  %v2222_v56 = vld [vmem:[%s2367_s5 + $0x1e8] sm:$0xff]  }
  0x27   : > { %1955 = vmatpush3.bf16.msra.mxu0 %v2179_v16  ;;  %v888_v10 = vcombine.low %v2417_v32, %v871_v6  ;;  %v1043_v12 = vrot.slane %v2476_v7, %v2412_v30  ;;  %v743_v16 = vrot.slane %v736_v9, %v2412_v30  ;;  %v1279_v29 = vcombine.high %v1836_v27, %v1836_v27  ;;  %v2207_v32 = vld [vmem:[%s2367_s5 + $0x120] sm:$0xff]   ;;  %v2220_v54 = vld [vmem:[%s2367_s5 + $0x1f0] sm:$0xff]   ;;  %v2226_v60 = vld [vmem:[%s2367_s5 + $0x1d8] sm:$0xff]  }
  0x28   : > { %1975 = vmatpush3.bf16.msra.mxu1 %v2180_v26  ;;  %1956 = vmatprep.subr.bf16.mxu0 %v2281_v0  ;;  %v1155_v26 = vcombine.low %v1823_v22, %v1824_v24  ;;  %v2208_v35 = vld [vmem:[%s2367_s5 + $0x160] sm:$0xff]   ;;  %v2227_v61 = vld [vmem:[%s2367_s5 + $0x190] sm:$0xff]   ;;  %v2229_v63 = vld [vmem:[%s2367_s5 + $0x188] sm:$0xff]  }
  0x29   : > { %1976 = vmatprep.subr.bf16.mxu1 %v2281_v0  ;;  %v2487_v13 = vrot.slane %v888_v10, %v2412_v30  ;;  %v2223_v57 = vld [vmem:[%s2367_s5 + $0x1a0] sm:$0xff]   ;;  %v2228_v62 = vld [vmem:[%s2367_s5 + $0x1d0] sm:$0xff]   ;;  %v2233_v4 = vld [vmem:[%s2367_s5 + $0x238] sm:$0xff]  }
  0x2a   : > { %v2513_v28 = vrot.slane %v1155_v26, %v2412_v30  ;;  %v2224_v58 = vld [vmem:[%s2367_s5 + $0x1e0] sm:$0xff]   ;;  %v2234_v5 = vld [vmem:[%s2367_s5 + $0x230] sm:$0xff]   ;;  %v2239_v10 = vld [vmem:[%s2367_s5 + $0x208] sm:$0xff]  }
  0x2b   : > { %1957 = vmatpush3.bf16.msra.mxu0 %v2181_v31  ;;  %v902_v17 = vrot.slane %v2487_v13, %v2412_v30  ;;  %v1290_v31 = vshrl.u32 %v1836_v27, 16  ;;  %v2232_v3 = vld [vmem:[%s2367_s5 + $0x1c0] sm:$0xff]   ;;  %v2238_v9 = vld [vmem:[%s2367_s5 + $0x210] sm:$0xff]  }
  0x2c   : > { %1977 = vmatpush3.bf16.msra.mxu1 %v2182_v34  ;;  %1958 = vmatprep.subr.bf16.mxu0 %v2281_v0  ;;  %v1169_v33 = vrot.slane %v2513_v28, %v2412_v30  ;;  %v1295_v34 = vshll.u32 %v1279_v29, 16  ;;  %v2236_v7 = vld [vmem:[%s2367_s5 + $0x220] sm:$0xff]  }
  0x2d   : > { %1978 = vmatprep.subr.bf16.mxu1 %v2281_v0 }
  0x2e   : > { %v1297_v36 = vsel %vm2402_vm15, %v1290_v31, %v1295_v34 }
  0x2f   : > { %1959 = vmatpush3.bf16.msra.mxu0 %v2183_v37  ;;  %v1314_v37 = vcombine.low %v871_v6, %v1297_v36  ;;  %v2235_v6 = vld [vmem:[%s2367_s5 + $0x228] sm:$0xff]  }
  0x30   : > { %1979 = vmatpush3.bf16.msra.mxu1 %v2184_v39  ;;  %1984 = vmatprep.subr.bf16.mxu0 %v2281_v0  ;;  %v2210_v39 = vld [vmem:[%s2367_s5 + $0x158] sm:$0xff]  }
  0x31   : > { %2004 = vmatprep.subr.bf16.mxu1 %v2281_v0 }
  0x32   : > { %1961 = vmatmul.mubr.bf16.vlgmr.msra.gmra.mxu0 %v371_v40  ;;  %v2527_v40 = vrot.slane %v1314_v37, %v2412_v30 }
  0x33   : > { %1981 = vmatmul.mubr.bf16.vlgmr.msra.gmra.mxu1 %v477_v41  ;;  %1985 = vmatpush3.bf16.msra.mxu0 %v2185_v42  ;;  %v1850_v41 = vld.sshfl [vmem:[%s2391_s13 + $0x6] sm:$0x10 pattern:$0x75316420] }
  0x34   : > { %2005 = vmatpush3.bf16.msra.mxu1 %v2186_v43  ;;  %1986 = vmatprep.subr.bf16.mxu0 %v2281_v0  ;;  %v1851_v42 = vcombine.high %v2466_v1, %v1850_v41  ;;  %v1328_v23 = vrot.slane %v2527_v40, %v2412_v30  ;;  %v2211_v43 = vld [vmem:[%s2367_s5 + $0x110] sm:$0xff]   ;;  %v2230_v1 = vld [vmem:[%s2367_s5 + $0x1c8] sm:$0xff]  }
  0x35   : > { %2006 = vmatprep.subr.bf16.mxu1 %v2281_v0  ;;  %2000 = vmatprep.mubr.msk.bf16.mxu0 %vm2282_vm2, %v2281_v0 }
  0x36   : > { %2020 = vmatprep.mubr.msk.bf16.mxu1 %vm2282_vm2, %v2281_v0 }
  0x37   : > { %1987 = vmatpush3.bf16.msra.mxu0 %v2187_v44  ;;  %v2536_v44 = vrot.slane %v1851_v42, %v2412_v30 }
  0x38   : > { %2007 = vmatpush3.bf16.msra.mxu1 %v2188_v45  ;;  %1988 = vmatprep.subr.bf16.mxu0 %v2281_v0  ;;  %v2212_v45 = vld [vmem:[%s2367_s5 + $0x150] sm:$0xff]  }
  0x39   : > { %2008 = vmatprep.subr.bf16.mxu1 %v2281_v0 }
  0x3b   : > { %1989 = vmatpush3.bf16.msra.mxu0 %v2189_v46  ;;  %v1469_v46 = vrot.slane %v2536_v44, %v2412_v30 }
  0x3c   : > { %2009 = vmatpush3.bf16.msra.mxu1 %v2190_v47  ;;  %1990 = vmatprep.subr.bf16.mxu0 %v2281_v0  ;;  %v2213_v47 = vld [vmem:[%s2367_s5 + $0x108] sm:$0xff]  }
  0x3d   : > { %2010 = vmatprep.subr.bf16.mxu1 %v2281_v0 }
  0x3f   : > { %1991 = vmatpush3.bf16.msra.mxu0 %v2191_v48  ;;  %v2214_v48 = vld [vmem:[%s2367_s5 + $0x148] sm:$0xff]  }
  0x40   : > { %2011 = vmatpush3.bf16.msra.mxu1 %v2192_v49  ;;  %1992 = vmatprep.subr.bf16.mxu0 %v2281_v0  ;;  %v2215_v49 = vld [vmem:[%s2367_s5 + $0x100] sm:$0xff]  }
  0x41   : > { %2012 = vmatprep.subr.bf16.mxu1 %v2281_v0 }
  0x43   : > { %1993 = vmatpush3.bf16.msra.mxu0 %v2193_v50  ;;  %v2216_v50 = vld [vmem:[%s2367_s5 + $0x140] sm:$0xff]  }
  0x44   : > { %2013 = vmatpush3.bf16.msra.mxu1 %v2194_v51  ;;  %1994 = vmatprep.subr.bf16.mxu0 %v2281_v0  ;;  %v2217_v51 = vld [vmem:[%s2367_s5 + $0x1b8] sm:$0xff]  }
  0x45   : > { %2014 = vmatprep.subr.bf16.mxu1 %v2281_v0 }
  0x47   : > { %1995 = vmatpush3.bf16.msra.mxu0 %v2195_v52  ;;  %v2218_v52 = vld [vmem:[%s2367_s5 + $0x1f8] sm:$0xff]  }
  0x48   : > { %2015 = vmatpush3.bf16.msra.mxu1 %v2196_v55  ;;  %1996 = vmatprep.subr.bf16.mxu0 %v2281_v0  ;;  %v2221_v55 = vld [vmem:[%s2367_s5 + $0x1a8] sm:$0xff]  }
  0x49   : > { %2016 = vmatprep.subr.bf16.mxu1 %v2281_v0 }
  0x4b   : > { %1997 = vmatpush3.bf16.msra.mxu0 %v2197_v59  ;;  %v2225_v59 = vld [vmem:[%s2367_s5 + $0x198] sm:$0xff]  }
  0x4c   : > { %2017 = vmatpush3.bf16.msra.mxu1 %v2198_v2  ;;  %1998 = vmatprep.subr.bf16.mxu0 %v2281_v0  ;;  %v2231_v2 = vld [vmem:[%s2367_s5 + $0x180] sm:$0xff]  }
  0x4d   : > { %2018 = vmatprep.subr.bf16.mxu1 %v2281_v0 }
  0x4f   : > { %1999 = vmatpush3.bf16.msra.mxu0 %v2199_v8  ;;  %v2237_v8 = vld [vmem:[%s2367_s5 + $0x218] sm:$0xff]  }
  0x50   : > { %2019 = vmatpush3.bf16.msra.mxu1 %v2200_v11  ;;  %2024 = vmatprep.subr.bf16.mxu0 %v2281_v0  ;;  %v2240_v11 = vld [vmem:[%s2367_s5 + $0x200] sm:$0xff]  }
  0x51   : > { %2044 = vmatprep.subr.bf16.mxu1 %v2281_v0 }
  0x52   : > { %2001 = vmatmul.mubr.bf16.vlgmr.msra.gmra.mxu0 %v617_v14 }
  0x53   : > { %2025 = vmatpush3.bf16.msra.mxu0 %v2201_v15  ;;  %2021 = vmatmul.mubr.bf16.vlgmr.msra.gmra.mxu1 %v743_v16 }
  0x54   : > { %2045 = vmatpush3.bf16.msra.mxu1 %v2202_v18  ;;  %2026 = vmatprep.subr.bf16.mxu0 %v2281_v0 }
  0x55   : > { %2046 = vmatprep.subr.bf16.mxu1 %v2281_v0  ;;  %2040 = vmatprep.mubr.msk.bf16.mxu0 %vm2282_vm2, %v2281_v0 }
  0x56   : > { %2060 = vmatprep.mubr.msk.bf16.mxu1 %vm2282_vm2, %v2281_v0 }
  0x57   : > { %2027 = vmatpush3.bf16.msra.mxu0 %v2203_v19 }
  0x58   : > { %2047 = vmatpush3.bf16.msra.mxu1 %v2204_v20  ;;  %2028 = vmatprep.subr.bf16.mxu0 %v2281_v0 }
  0x59   : > { %2048 = vmatprep.subr.bf16.mxu1 %v2281_v0 }
  0x5b   : > { %2029 = vmatpush3.bf16.msra.mxu0 %v2205_v21 }
  0x5c   : > { %2049 = vmatpush3.bf16.msra.mxu1 %v2206_v25  ;;  %2030 = vmatprep.subr.bf16.mxu0 %v2281_v0 }
  0x5d   : > { %2050 = vmatprep.subr.bf16.mxu1 %v2281_v0 }
  0x5f   : > { %2031 = vmatpush3.bf16.msra.mxu0 %v2207_v32 }
  0x60   : > { %2051 = vmatpush3.bf16.msra.mxu1 %v2208_v35  ;;  %2032 = vmatprep.subr.bf16.mxu0 %v2281_v0 }
  0x61   : > { %2052 = vmatprep.subr.bf16.mxu1 %v2281_v0 }
  0x63   : > { %2033 = vmatpush3.bf16.msra.mxu0 %v2209_v38 }
  0x64   : > { %2053 = vmatpush3.bf16.msra.mxu1 %v2210_v39  ;;  %2034 = vmatprep.subr.bf16.mxu0 %v2281_v0 }
  0x65   : > { %2054 = vmatprep.subr.bf16.mxu1 %v2281_v0 }
  0x67   : > { %2035 = vmatpush3.bf16.msra.mxu0 %v2211_v43 }
  0x68   : > { %2055 = vmatpush3.bf16.msra.mxu1 %v2212_v45  ;;  %2036 = vmatprep.subr.bf16.mxu0 %v2281_v0 }
  0x69   : > { %2056 = vmatprep.subr.bf16.mxu1 %v2281_v0 }
  0x6b   : > { %2037 = vmatpush3.bf16.msra.mxu0 %v2213_v47 }
  0x6c   : > { %2057 = vmatpush3.bf16.msra.mxu1 %v2214_v48  ;;  %2038 = vmatprep.subr.bf16.mxu0 %v2281_v0 }
  0x6d   : > { %2058 = vmatprep.subr.bf16.mxu1 %v2281_v0 }
  0x6f   : > { %2039 = vmatpush3.bf16.msra.mxu0 %v2215_v49 }
  0x70   : > { %2059 = vmatpush3.bf16.msra.mxu1 %v2216_v50  ;;  %2064 = vmatprep.subr.bf16.mxu0 %v2281_v0 }
  0x71   : > { %2084 = vmatprep.subr.bf16.mxu1 %v2281_v0 }
  0x72   : > { %2041 = vmatmul.mubr.bf16.vlgmr.msra.gmra.mxu0 %v902_v17 }
  0x73   : > { %2065 = vmatpush3.bf16.msra.mxu0 %v2217_v51  ;;  %2061 = vmatmul.mubr.bf16.vlgmr.msra.gmra.mxu1 %v1043_v12 }
  0x74   : > { %2085 = vmatpush3.bf16.msra.mxu1 %v2218_v52  ;;  %2066 = vmatprep.subr.bf16.mxu0 %v2281_v0 }
  0x75   : > { %2086 = vmatprep.subr.bf16.mxu1 %v2281_v0  ;;  %2080 = vmatprep.mubr.msk.bf16.mxu0 %vm2282_vm2, %v2281_v0 }
  0x76   : > { %2100 = vmatprep.mubr.msk.bf16.mxu1 %vm2282_vm2, %v2281_v0 }
  0x77   : > { %2067 = vmatpush3.bf16.msra.mxu0 %v2219_v53 }
  0x78   : > { %2087 = vmatpush3.bf16.msra.mxu1 %v2220_v54  ;;  %2068 = vmatprep.subr.bf16.mxu0 %v2281_v0 }
  0x79   : > { %2088 = vmatprep.subr.bf16.mxu1 %v2281_v0 }
  0x7b   : > { %2069 = vmatpush3.bf16.msra.mxu0 %v2221_v55 }
  0x7c   : > { %2089 = vmatpush3.bf16.msra.mxu1 %v2222_v56  ;;  %2070 = vmatprep.subr.bf16.mxu0 %v2281_v0 }
  0x7d   : > { %2090 = vmatprep.subr.bf16.mxu1 %v2281_v0 }
  0x7f   : > { %2071 = vmatpush3.bf16.msra.mxu0 %v2223_v57 }
  0x80   : > { %2091 = vmatpush3.bf16.msra.mxu1 %v2224_v58  ;;  %2072 = vmatprep.subr.bf16.mxu0 %v2281_v0 }
  0x81   : > { %2092 = vmatprep.subr.bf16.mxu1 %v2281_v0 }
  0x83   : > { %2073 = vmatpush3.bf16.msra.mxu0 %v2225_v59 }
  0x84   : > { %2093 = vmatpush3.bf16.msra.mxu1 %v2226_v60  ;;  %2074 = vmatprep.subr.bf16.mxu0 %v2281_v0 }
  0x85   : > { %2094 = vmatprep.subr.bf16.mxu1 %v2281_v0 }
  0x87   : > { %2075 = vmatpush3.bf16.msra.mxu0 %v2227_v61 }
  0x88   : > { %2095 = vmatpush3.bf16.msra.mxu1 %v2228_v62  ;;  %2076 = vmatprep.subr.bf16.mxu0 %v2281_v0 }
  0x89   : > { %2096 = vmatprep.subr.bf16.mxu1 %v2281_v0 }
  0x8b   : > { %2077 = vmatpush3.bf16.msra.mxu0 %v2229_v63 }
  0x8c   : > { %2097 = vmatpush3.bf16.msra.mxu1 %v2230_v1  ;;  %2078 = vmatprep.subr.bf16.mxu0 %v2281_v0 }
  0x8d   : > { %2098 = vmatprep.subr.bf16.mxu1 %v2281_v0 }
  0x8f   : > { %2079 = vmatpush3.bf16.msra.mxu0 %v2231_v2 }
  0x90   : > { %2099 = vmatpush3.bf16.msra.mxu1 %v2232_v3  ;;  %2104 = vmatprep.subr.bf16.mxu0 %v2281_v0 }
  0x92   : > { %2081 = vmatmul.mubr.bf16.vlgmr.msra.gmra.mxu0 %v1169_v33 }
  0x93   : > { %2105 = vmatpush3.bf16.msra.mxu0 %v2233_v4  ;;  %2101 = vmatmul.mubr.bf16.vlgmr.msra.gmra.mxu1 %v1328_v23 }
  0x94   : > { %2106 = vmatprep.subr.bf16.mxu0 %v2281_v0  ;;  %2120 = vmatprep.mubr.msk.bf16.mxu0 %vm2282_vm2, %v2281_v0 }
  0x97   : > { %2107 = vmatpush3.bf16.msra.mxu0 %v2234_v5 }
  0x98   : > { %2108 = vmatprep.subr.bf16.mxu0 %v2281_v0 }
  0x9b   : > { %2109 = vmatpush3.bf16.msra.mxu0 %v2235_v6 }
  0x9c   : > { %2110 = vmatprep.subr.bf16.mxu0 %v2281_v0 }
  0x9f   : > { %2111 = vmatpush3.bf16.msra.mxu0 %v2236_v7 }
  0xa0   : > { %2112 = vmatprep.subr.bf16.mxu0 %v2281_v0 }
  0xa3   : > { %2113 = vmatpush3.bf16.msra.mxu0 %v2237_v8 }
  0xa4   : > { %2114 = vmatprep.subr.bf16.mxu0 %v2281_v0 }
  0xa7   : > { %2115 = vmatpush3.bf16.msra.mxu0 %v2238_v9 }
  0xa8   : > { %2116 = vmatprep.subr.bf16.mxu0 %v2281_v0 }
  0xab   : > { %2117 = vmatpush3.bf16.msra.mxu0 %v2239_v10 }
  0xac   : > { %2118 = vmatprep.subr.bf16.mxu0 %v2281_v0 }
  0xaf   : > { %2119 = vmatpush3.bf16.msra.mxu0 %v2240_v11 }
  0xb2   : > { %2121 = vmatmul.mubr.bf16.vlgmr.msra.gmra.mxu0 %v1469_v46 }
  0xf2   : > { %v455_v12 = vpop.f32.mrf.mxu0 }
  0xf3   : > { %v561_v13 = vpop.f32.mrf.mxu1 }
  0xf4   : > { %v562_v14 = vadd.f32 %v561_v13, %v455_v12  ;;  %v1962_v15 = vpop.f32.mrf.mxu0 }
  0xf5   : > { %v1982_v16 = vpop.f32.mrf.mxu1 }
  0xf6   : > { %v458_v17 = vpop.f32.mrf.mxu0 }
  0xf7   : > { %v564_v18 = vpop.f32.mrf.mxu1 }
  0xf8   : > { %v1963_v19 = vpop.f32.mrf.mxu0 }
  0xf9   : > { %v1983_v20 = vpop.f32.mrf.mxu1 }
 0x112   : > { %v701_v21 = vpop.f32.mrf.mxu0 }
 0x113   : > { %v707_v22 = vadd.f32 %v701_v21, %v562_v14  ;;  %v827_v24 = vpop.f32.mrf.mxu1 }
 0x114   : > { %v2002_v25 = vpop.f32.mrf.mxu0 }
 0x115   : > { %v833_v26 = vadd.f32 %v827_v24, %v707_v22  ;;  %v2022_v0 = vpop.f32.mrf.mxu1 }
 0x116   : > { %v704_v27 = vpop.f32.mrf.mxu0 }
 0x117   : > { %v830_v28 = vpop.f32.mrf.mxu1 }
 0x118   : > { %v2003_v29 = vpop.f32.mrf.mxu0 }
 0x119   : > { %v2023_v30 = vpop.f32.mrf.mxu1 }
 0x132   : > { %v986_v31 = vpop.f32.mrf.mxu0 }
 0x133   : > { %v1127_v32 = vpop.f32.mrf.mxu1  ;;  %v992_v46 = vadd.f32 %v986_v31, %v833_v26 }
 0x134   : > { %v2042_v33 = vpop.f32.mrf.mxu0 }
 0x135   : > { %v2062_v34 = vpop.f32.mrf.mxu1  ;;  %v1133_v47 = vadd.f32 %v1127_v32, %v992_v46 }
 0x136   : > { %v989_v35 = vpop.f32.mrf.mxu0 }
 0x137   : > { %v1130_v36 = vpop.f32.mrf.mxu1 }
 0x138   : > { %v2043_v37 = vpop.f32.mrf.mxu0 }
 0x139   : > { %v2063_v38 = vpop.f32.mrf.mxu1 }
 0x152   : > { %v1253_v39 = vpop.f32.mrf.mxu0 }
 0x153   : > { %v1412_v40 = vpop.f32.mrf.mxu1  ;;  %v1259_v48 = vadd.f32 %v1253_v39, %v1133_v47 }
 0x154   : > { %v2082_v41 = vpop.f32.mrf.mxu0 }
 0x155   : > { %v2102_v42 = vpop.f32.mrf.mxu1  ;;  %v1418_v49 = vadd.f32 %v1412_v40, %v1259_v48 }
 0x156   : > { %v1256_v23 = vpop.f32.mrf.mxu0 }
 0x157   : > { %v1415_v43 = vpop.f32.mrf.mxu1 }
 0x158   : > { %v2083_v44 = vpop.f32.mrf.mxu0 }
 0x159   : > { %v2103_v45 = vpop.f32.mrf.mxu1 }
 0x172   : > { %v1553_v50 = vpop.f32.mrf.mxu0 }
 0x173   : > { %v1559_v51 = vadd.f32 %v1553_v50, %v1418_v49 }
 0x174   : > { %v2122_v52 = vpop.f32.mrf.mxu0 }
 0x175   : > { %v1560_v53 = vpack.c.bf16 %v1559_v51, %v1559_v51  ;;  %v1564_v54 = vsel %vm1563_vm0, %v1559_v51, 0.0  ;;  %v1571_v55 = vmul.f32 %v1559_v51, %v1559_v51 }
 0x176   : > { %v1565_v56 = vrot.slane %v1564_v54, 4  ;;  %v1556_v57 = vpop.f32.mrf.mxu0 }
 0x177   : > { %1562 = vst.msk [vmem:[%s262_s27] sm:$0x3] %vm1561_vm1, %v1560_v53  ;;  %v1572_v58 = vsel %vm1563_vm0, %v1571_v55, 0.0 }
 0x178   : > { %v1566_v59 = vadd.f32 %v1565_v56, %v1564_v54  ;;  %v1573_v60 = vrot.slane %v1572_v58, 4  ;;  %v2123_v61 = vpop.f32.mrf.mxu0 }
 0x17a   : > { %v1567_v62 = vrot.slane %v1566_v59, 2  ;;  %v1574_v63 = vadd.f32 %v1573_v60, %v1572_v58 }
 0x17c   : > { %v1568_v1 = vadd.f32 %v1567_v62, %v1566_v59  ;;  %v1575_v2 = vrot.slane %v1574_v63, 2 }
 0x17e   : > { %v1569_v3 = vrot.slane %v1568_v1, 1  ;;  %v1576_v4 = vadd.f32 %v1575_v2, %v1574_v63  ;;  %1582 = sbr.rel (%p1860_p7) target bundleno = 389 (0x185), region = 32 }
 0x180   : > { %v1570_v5 = vadd.f32 %v1569_v3, %v1568_v1  ;;  %v1577_v6 = vrot.slane %v1576_v4, 1 }
 0x182   : > { %v1578_v7 = vadd.f32 %v1577_v6, %v1576_v4 }
 0x183   : > { %vm1583_vm2 = vcmask 516096   ;;  %v2284_v8 = vmov 0.0  }
 0x184   : > { %1584 = vst.msk [vmem:[%s2356_s25] sm:$0x1] %vm1583_vm2, %v2284_v8  ;;  %1585 = vst.msk [vmem:[%s2362_s28] sm:$0x1] %vm1583_vm2, %v2284_v8 }
 0x185 PF: > { %vm1588_vm3 = vcmask 516096  }
 0x18b   : > { %v1586_v9 = vld [vmem:[%s2356_s25] sm:$0x1] }
 0x18c   : > { %v1590_v10 = vld [vmem:[%s2362_s28] sm:$0x1]  ;;  %v1587_v11 = vadd.f32 %v1586_v9, %v1570_v5 }
 0x18d   : > { %v1591_v12 = vadd.f32 %v1590_v10, %v1578_v7 }
 0x18e   : > { %1589 = vst.msk [vmem:[%s2356_s25] sm:$0x1] %vm1588_vm3, %v1587_v11 }
 0x18f   : > { %1592 = vst.msk [vmem:[%s2362_s28] sm:$0x1] %vm1588_vm3, %v1591_v12 }
 0x190 PF: > { %s15_s19 = sadd.s32 1, %s2279_s19   ;;  %s2654_s15 = smov %s2271_s17 }
 0x191   : > { %p12_p8 = scmp.ge.s32.totalorder %s15_s19, 10   ;;  %s2655_s16 = smov %s2275_s18 }
 0x192   : > { %s2656_s17 = smov %s2659_s20  ;;  %s2657_s18 = smov %s2663_s21 }
 0x193   :  { %14 = sbr.rel (!%p12_p8) target bundleno = 3 (0x3), region = 91 }

// kernel: _device_forward.9
= control target key start
LH: loop header
LB: loop body
LE: loop exit
PB: predicated region body
PF: predicated region fallthrough
CT: control target
= control target key end

     0   :  { %s3089_s15 = smov 0   ;;  %s3091_s16 = smov 0   ;;  %s3421_s0 = inlined_call_operand.vmem [shape: bf16[4,2,4,4,256], index: 0, kind: input, shape index: {}]   ;;  %s3422_s1 = inlined_call_operand.vmem [shape: bf16[4,2304,128], index: 1, kind: input, shape index: {}]   ;;  %s3423_s2 = inlined_call_operand.vmem [shape: bf16[4,2,4,128], index: 2, kind: output, shape index: {0}]   ;;  %s3424_s3 = inlined_call_operand.vmem [shape: f32[4,1,128], index: 3, kind: output, shape index: {1}]   ;;  %s3425_s4 = inlined_call_operand.vmem [shape: f32[4,1,128], index: 4, kind: output, shape index: {2}]  }
   0x1   :  { %s3093_s17 = smov 0   ;;  %s3095_s18 = smov 0  }
   0x2   :  { %s3097_s19 = smov 0  }
   0x3 LB: > { %s24_s20 = sadd.s32 1, %s3052_s17  ;;  %s27_s21 = sadd.s32 1, %s3056_s18  ;;  %s3060_s19 = sphi %s3097_s19, %s15_s19   ;;  %s3056_s18 = sphi %s3095_s18, %s3437_s18   ;;  %s3052_s17 = sphi %s3093_s17, %s3436_s17   ;;  %s3048_s16 = sphi %s3091_s16, %s3435_s16   ;;  %s3044_s15 = sphi %s3089_s15, %s3434_s15  }
   0x4   : > { %p25_p0 = scmp.ge.s32.totalorder %s24_s20, 2  ;;  %p2444_p1 = scmp.ge.s32.totalorder %s3060_s19, 1 }
   0x5   : > { %p197_p2 = scmp.lt.s32.totalorder %s3060_s19, 9 }
   0x6   : > { %s3439_s20 = smov (%p25_p0, %s24_s20), 0  ;;  %s3441_s21 = smov (!%p25_p0, %s27_s21), %s3056_s18 }
   0x7   : > { %p198_p3 = pnand %p2444_p1, %p197_p2  ;;  %p29_p4 = scmp.ge.s32.totalorder %s3441_s21, 4 }
   0x8   : > { %p241_p5 = scmp.lt.s32.totalorder (!%p198_p3), %s3048_s16, 3  ;;  %p243_p6 = scmp.lt.s32.totalorder (!%p198_p3), %s3044_s15, 1 }
   0x9   : > { %s3443_s21 = smov (%p29_p4, %s3441_s21), 0  ;;  %201 = sbr.rel (%p198_p3) target bundleno = 407 (0x197), region = 28 }
   0xa   : > { %p2634_p7 = scmp.ne.s32.totalorder (!%p198_p3), %s3044_s15, 0 }
   0xe   : > { %vm340_vm0 = vsmask.f32 256  ;;  %vm341_vm1 = vsmask.f32 1284  ;;  %vm343_vm3 = vsmask.f32 2312  ;;  %v409_v32 = vlaneseq }
   0xf   : > { %vm342_vm2 = vmor %vm340_vm0, %vm341_vm1  ;;  %s3445_s16 = smov (!%p241_p5, %s3048_s16), 3  ;;  %vm345_vm5 = vsmask.f32 3340  ;;  %vm347_vm7 = vsmask.f32 4368  ;;  %vm2261_vm15 = vcmask 1043456  }
  0x10   : > { %vm344_vm4 = vmor %vm342_vm2, %vm343_vm3  ;;  %s2835_s22 = smul.u32 1152, %s3445_s16  ;;  %s3128_s25 = scalar_lea.vmem %s3424_s3, %s3445_s16  ;;  %vm349_vm9 = vsmask.f32 5396  ;;  %vm351_vm11 = vsmask.f32 6424  ;;  %v410_v38 = vshrl.u32 %v409_v32, 7 }
  0x11   : > { %s3134_s28 = scalar_lea.vmem %s3425_s4, %s3445_s16  ;;  %vm346_vm6 = vmor %vm344_vm4, %vm345_vm5  ;;  %s2446_s8 = sshll.u32 %s3445_s16, 4  ;;  %vm353_vm13 = vsmask.f32 7452  ;;  %v3062_v30 = vmov 1966171168  }
  0x12   : > { %s3139_s5 = scalar_lea.vmem %s3422_s1, %s2835_s22  ;;  %vm3143_vm8 = vmor %vm346_vm6, %vm347_vm7  ;;  %v407_v31 = vunpack.c.l.s4 %v3062_v30  ;;  %s2449_s14 = sshll.u32 %s3445_s16, 1 }
  0x13   : > { %v2878_v0 = vld [vmem:[%s3139_s5 + $0xf8] sm:$0xff]   ;;  %v2882_v5 = vld [vmem:[%s3139_s5 + $0xf0] sm:$0xff]   ;;  %v2886_v9 = vld [vmem:[%s3139_s5 + $0xe8] sm:$0xff]   ;;  %s3170_s6 = scalar_select %p243_p6, %s3044_s15, 1 }
  0x14   : > { %v2879_v1 = vld [vmem:[%s3139_s5 + $0x78] sm:$0xff]   ;;  %2637 = vmatprep.subr.bf16.mxu0 %v2878_v0  ;;  %v2883_v6 = vld [vmem:[%s3139_s5 + $0x70] sm:$0xff]   ;;  %v2887_v10 = vld [vmem:[%s3139_s5 + $0x68] sm:$0xff]   ;;  %v408_v37 = vunpack.c.0.s8 %v407_v31 }
  0x15   : > { %v2880_v3 = vld [vmem:[%s3139_s5 + $0xb8] sm:$0xff]   ;;  %2659 = vmatprep.subr.bf16.mxu1 %v2879_v1  ;;  %v2884_v7 = vld [vmem:[%s3139_s5 + $0xb0] sm:$0xff]   ;;  %v2888_v11 = vld [vmem:[%s3139_s5 + $0xa8] sm:$0xff]   ;;  %s2445_s7 = sshll.u32 %s3170_s6, 3  ;;  %s260_s22 = sadd.s32 %s2449_s14, %s3170_s6 }
  0x16   : > { %v2881_v4 = vld [vmem:[%s3139_s5 + $0x38] sm:$0xff]   ;;  %2638 = vmatpush3.bf16.msra.mxu0 %v2880_v3  ;;  %v2885_v8 = vld [vmem:[%s3139_s5 + $0x30] sm:$0xff]   ;;  %v2889_v12 = vld [vmem:[%s3139_s5 + $0x28] sm:$0xff]   ;;  %s247_s9 = sadd.s32 %s2446_s8, %s2445_s7  ;;  %v3212_v48 = vsub.s32 %v408_v37, %v410_v38  ;;  %s2450_s23 = sshll.u32 %s260_s22, 1 }
  0x17   : > { %2660 = vmatpush3.bf16.msra.mxu1 %v2881_v4  ;;  %2639 = vmatprep.subr.bf16.mxu0 %v2882_v5  ;;  %v2890_v13 = vld [vmem:[%s3139_s5 + $0xe0] sm:$0xff]   ;;  %vm3162_vm10 = vmor %vm3143_vm8, %vm349_vm9  ;;  %v2894_v18 = vld [vmem:[%s3139_s5 + $0xd8] sm:$0xff]   ;;  %s2447_s10 = sshll.u32 %s247_s9, 1  ;;  %s262_s27 = scalar_lea.vmem %s3423_s2, %s2450_s23 }
  0x18   : > { %2661 = vmatprep.subr.bf16.mxu1 %v2883_v6  ;;  %v2891_v15 = vld [vmem:[%s3139_s5 + $0x60] sm:$0xff]   ;;  %v2895_v19 = vld [vmem:[%s3139_s5 + $0x58] sm:$0xff]   ;;  %v2898_v22 = vld [vmem:[%s3139_s5 + $0xd0] sm:$0xff]   ;;  %s3198_s13 = scalar_lea.vmem %s3421_s0, %s2447_s10 }
  0x19   : > { %v2892_v16 = vld [vmem:[%s3139_s5 + $0xa0] sm:$0xff]   ;;  %v2896_v20 = vld [vmem:[%s3139_s5 + $0x98] sm:$0xff]   ;;  %v2899_v23 = vld [vmem:[%s3139_s5 + $0x50] sm:$0xff]  }
  0x1a   : > { %2640 = vmatpush3.bf16.msra.mxu0 %v2884_v7  ;;  %v2893_v17 = vld [vmem:[%s3139_s5 + $0x20] sm:$0xff]   ;;  %v2897_v21 = vld [vmem:[%s3139_s5 + $0x18] sm:$0xff]   ;;  %v2900_v24 = vld [vmem:[%s3139_s5 + $0x90] sm:$0xff]  }
  0x1b   : > { %2662 = vmatpush3.bf16.msra.mxu1 %v2885_v8  ;;  %2641 = vmatprep.subr.bf16.mxu0 %v2886_v9  ;;  %v2901_v25 = vld [vmem:[%s3139_s5 + $0x10] sm:$0xff]   ;;  %vm3185_vm12 = vmor %vm3162_vm10, %vm351_vm11  ;;  %v2902_v27 = vld [vmem:[%s3139_s5 + $0xc8] sm:$0xff]  }
  0x1c   : > { %2663 = vmatprep.subr.bf16.mxu1 %v2887_v10  ;;  %v2903_v28 = vld [vmem:[%s3139_s5 + $0x48] sm:$0xff]   ;;  %v2906_v34 = vld [vmem:[%s3139_s5 + $0xc0] sm:$0xff]   ;;  %v2910_v44 = vld [vmem:[%s3139_s5 + $0x178] sm:$0xff]  }
  0x1d   : > { %v2904_v29 = vld [vmem:[%s3139_s5 + $0x88] sm:$0xff]   ;;  %v2907_v35 = vld [vmem:[%s3139_s5 + $0x40] sm:$0xff]   ;;  %vm3208_vm14 = vmor %vm3185_vm12, %vm353_vm13 }
  0x1e   : > { %2642 = vmatpush3.bf16.msra.mxu0 %v2888_v11  ;;  %v2905_v33 = vld [vmem:[%s3139_s5 + $0x8] sm:$0xff]   ;;  %v2908_v36 = vld [vmem:[%s3139_s5 + $0x80] sm:$0xff]   ;;  %v2912_v52 = vld [vmem:[%s3139_s5 + $0x1f8] sm:$0xff]  }
  0x1f   : > { %2664 = vmatpush3.bf16.msra.mxu1 %v2889_v12  ;;  %2643 = vmatprep.subr.bf16.mxu0 %v2890_v13  ;;  %v2909_v39 = vld [vmem:[%s3139_s5] sm:$0xff]   ;;  %v2913_v63 = vld [vmem:[%s3139_s5 + $0x1b8] sm:$0xff]   ;;  %v2916_v1 = vld [vmem:[%s3139_s5 + $0x1f0] sm:$0xff]  }
  0x20   : > { %2665 = vmatprep.subr.bf16.mxu1 %v2891_v15  ;;  %v2453_v40 = vld.sshfl [vmem:[%s3198_s13] sm:$0x33 pattern:$0x75316420]  ;;  %v2911_v3 = vld [vmem:[%s3139_s5 + $0x138] sm:$0xff]   ;;  %v2914_v5 = vld [vmem:[%s3139_s5 + $0x170] sm:$0xff]  }
  0x21   : > { %v2454_v41 = vld.sshfl [vmem:[%s3198_s13 + $0x4] sm:$0x33 pattern:$0x75316420]  ;;  %v331_v42 = vcombine.high %v2453_v40, %v2453_v40  ;;  %v356_v43 = vshrl.u32 %v2453_v40, 16  ;;  %v2917_v6 = vld [vmem:[%s3139_s5 + $0x1b0] sm:$0xff]  }
  0x22   : > { %2644 = vmatpush3.bf16.msra.mxu0 %v2892_v16  ;;  %v339_v45 = vcombine.high %v2454_v41, %v2454_v41  ;;  %v365_v47 = vshrl.u32 %v2454_v41, 16  ;;  %v2451_v49 = vld.sshfl [vmem:[%s3198_s13] sm:$0x3 pattern:$0x75316420]  ;;  %v2920_v7 = vld [vmem:[%s3139_s5 + $0x1e8] sm:$0xff]  }
  0x23   : > { %2666 = vmatpush3.bf16.msra.mxu1 %v2893_v17  ;;  %2645 = vmatprep.subr.bf16.mxu0 %v2894_v18  ;;  %v361_v50 = vshll.u32 %v331_v42, 16  ;;  %v3216_v51 = vld.sshfl [vmem:[%s3198_s13 + $0x4] sm:$0x3 pattern:$0x75316420]  ;;  %v2915_v8 = vld [vmem:[%s3139_s5 + $0x130] sm:$0xff]  }
  0x24   : > { %2667 = vmatprep.subr.bf16.mxu1 %v2895_v19  ;;  %v370_v53 = vshll.u32 %v339_v45, 16  ;;  %v566_v54 = vcombine.low %v2451_v49, %v3216_v51  ;;  %v2918_v9 = vld [vmem:[%s3139_s5 + $0x168] sm:$0xff]   ;;  %v2924_v11 = vld [vmem:[%s3139_s5 + $0x1e0] sm:$0xff]   ;;  %v2928_v15 = vld [vmem:[%s3139_s5 + $0x1d8] sm:$0xff]  }
  0x25   : > { %v363_v55 = vsel %vm3208_vm14, %v356_v43, %v361_v50  ;;  %v2921_v10 = vld [vmem:[%s3139_s5 + $0x1a8] sm:$0xff]   ;;  %v2922_v13 = vld [vmem:[%s3139_s5 + $0x160] sm:$0xff]   ;;  %v2926_v17 = vld [vmem:[%s3139_s5 + $0x158] sm:$0xff]  }
  0x26   : > { %2646 = vmatpush3.bf16.msra.mxu0 %v2896_v20  ;;  %v3224_v56 = vsel %vm3208_vm14, %v365_v47, %v370_v53  ;;  %v573_v57 = vrot.slane %v566_v54, %v3212_v48  ;;  %v2919_v12 = vld [vmem:[%s3139_s5 + $0x128] sm:$0xff]   ;;  %v2925_v14 = vld [vmem:[%s3139_s5 + $0x1a0] sm:$0xff]   ;;  %v2929_v18 = vld [vmem:[%s3139_s5 + $0x198] sm:$0xff]  }
  0x27   : > { %2668 = vmatpush3.bf16.msra.mxu1 %v2897_v21  ;;  %2647 = vmatprep.subr.bf16.mxu0 %v2898_v22  ;;  %v405_v58 = vcombine.low %v363_v55, %v3224_v56  ;;  %v2923_v16 = vld [vmem:[%s3139_s5 + $0x120] sm:$0xff]   ;;  %v2932_v19 = vld [vmem:[%s3139_s5 + $0x1d0] sm:$0xff]   ;;  %v2927_v20 = vld [vmem:[%s3139_s5 + $0x118] sm:$0xff]  }
  0x28   : > { %2669 = vmatprep.subr.bf16.mxu1 %v2899_v23  ;;  %v574_v59 = vcombine.high %v573_v57, %v573_v57  ;;  %v581_v61 = vrot.slane %v573_v57, %v3212_v48  ;;  %v2930_v21 = vld [vmem:[%s3139_s5 + $0x150] sm:$0xff]   ;;  %v2937_v26 = vld [vmem:[%s3139_s5 + $0x188] sm:$0xff]   ;;  %v3262_v30 = vld.sshfl [vmem:[%s3198_s13 + $0x4] sm:$0x30 pattern:$0x75316420] }
  0x29   : > { %v412_v60 = vrot.slane %v405_v58, %v3212_v48  ;;  %v2933_v22 = vld [vmem:[%s3139_s5 + $0x190] sm:$0xff]   ;;  %v2938_v31 = vld [vmem:[%s3139_s5 + $0x140] sm:$0xff]   ;;  %v2944_v37 = vld [vmem:[%s3139_s5 + $0x2f8] sm:$0xff]  }
  0x2a   : > { %2648 = vmatpush3.bf16.msra.mxu0 %v2900_v24  ;;  %v588_v62 = vrot.slane %v574_v59, %v3212_v48  ;;  %v2931_v23 = vld [vmem:[%s3139_s5 + $0x110] sm:$0xff]   ;;  %v2936_v24 = vld [vmem:[%s3139_s5 + $0x1c8] sm:$0xff]   ;;  %v2939_v40 = vld [vmem:[%s3139_s5 + $0x100] sm:$0xff]  }
  0x2b   : > { %2670 = vmatpush3.bf16.msra.mxu1 %v2901_v25  ;;  %2649 = vmatprep.subr.bf16.mxu0 %v2902_v27  ;;  %v413_v0 = vcombine.high %v412_v60, %v412_v60  ;;  %v420_v2 = vrot.slane %v412_v60, %v3212_v48  ;;  %v2934_v25 = vld [vmem:[%s3139_s5 + $0x148] sm:$0xff]   ;;  %v2489_v27 = vld.sshfl [vmem:[%s3198_s13] sm:$0x30 pattern:$0x75316420]  ;;  %v2942_v42 = vld [vmem:[%s3139_s5 + $0x278] sm:$0xff]  }
  0x2c   : > { %2671 = vmatprep.subr.bf16.mxu1 %v2903_v28  ;;  %719 = vmatprep.mubr.bf16.mxu1 %v588_v62  ;;  %v2935_v28 = vld [vmem:[%s3139_s5 + $0x108] sm:$0xff]   ;;  %v2491_v32 = vcombine.high %v2489_v27, %v3262_v30  ;;  %v2945_v50 = vld [vmem:[%s3139_s5 + $0x2b8] sm:$0xff]   ;;  %v2947_v53 = vld [vmem:[%s3139_s5 + $0x230] sm:$0xff]  }
  0x2d   : > { %v427_v4 = vrot.slane %v413_v0, %v3212_v48  ;;  %v2949_v54 = vld [vmem:[%s3139_s5 + $0x2b0] sm:$0xff]   ;;  %v2952_v55 = vld [vmem:[%s3139_s5 + $0x2e8] sm:$0xff]   ;;  %v2956_v60 = vld [vmem:[%s3139_s5 + $0x2e0] sm:$0xff]  }
  0x2e   : > { %2650 = vmatpush3.bf16.msra.mxu0 %v2904_v29  ;;  %v2940_v29 = vld [vmem:[%s3139_s5 + $0x1c0] sm:$0xff]   ;;  %v2950_v57 = vld [vmem:[%s3139_s5 + $0x268] sm:$0xff]   ;;  %v2960_v0 = vld [vmem:[%s3139_s5 + $0x2d8] sm:$0xff]  }
  0x2f   : > { %2672 = vmatpush3.bf16.msra.mxu1 %v2905_v33  ;;  %2651 = vmatprep.subr.bf16.mxu0 %v2906_v34  ;;  %v3267_v33 = vld.sshfl [vmem:[%s3198_s13 + $0x8] sm:$0x3 pattern:$0x75316420]  ;;  %v786_v34 = vrot.slane %v2491_v32, %v3212_v48  ;;  %v2955_v62 = vld [vmem:[%s3139_s5 + $0x220] sm:$0xff]  }
  0x30   : > { %2673 = vmatprep.subr.bf16.mxu1 %v2907_v35  ;;  %558 = vmatprep.mubr.bf16.mxu0 %v427_v4  ;;  %v2941_v35 = vld [vmem:[%s3139_s5 + $0x180] sm:$0xff]   ;;  %v2951_v58 = vld [vmem:[%s3139_s5 + $0x228] sm:$0xff]   ;;  %v2964_v4 = vld [vmem:[%s3139_s5 + $0x2d0] sm:$0xff]  }
  0x31   : > { %v787_v38 = vcombine.high %v786_v34, %v786_v34  ;;  %v794_v47 = vrot.slane %v786_v34, %v3212_v48  ;;  %v2953_v59 = vld [vmem:[%s3139_s5 + $0x2a8] sm:$0xff]   ;;  %v2980_v34 = vld [vmem:[%s3139_s5 + $0x3f0] sm:$0xff]  }
  0x32   : > { %2652 = vmatpush3.bf16.msra.mxu0 %v2908_v36  ;;  %v992_v36 = vcombine.low %v3216_v51, %v3267_v33  ;;  %v2948_v51 = vld [vmem:[%s3139_s5 + $0x2f0] sm:$0xff]  }
  0x33   : > { %2674 = vmatpush3.bf16.msra.mxu1 %v2909_v39  ;;  %2681 = vmatprep.subr.bf16.mxu0 %v2910_v44  ;;  %v801_v41 = vrot.slane %v787_v38, %v3212_v48  ;;  %v2943_v44 = vld [vmem:[%s3139_s5 + $0x238] sm:$0xff]   ;;  %v2981_v38 = vld [vmem:[%s3139_s5 + $0x3b0] sm:$0xff]  }
  0x34   : > { %2703 = vmatprep.subr.bf16.mxu1 %v2912_v52  ;;  %v999_v39 = vrot.slane %v992_v36, %v3212_v48  ;;  %v2946_v52 = vld [vmem:[%s3139_s5 + $0x270] sm:$0xff]   ;;  %v2975_v36 = vld [vmem:[%s3139_s5 + $0x338] sm:$0xff]  }
  0x35   : > { %559 = vmatmul.mubr.bf16.vlgmr.msra.gmra.mxu0 %v420_v2  ;;  %v2959_v2 = vld [vmem:[%s3139_s5 + $0x218] sm:$0xff]  }
  0x36   : > { %720 = vmatmul.mubr.bf16.vlgmr.msra.gmra.mxu1 %v581_v61  ;;  %2682 = vmatpush3.bf16.msra.mxu0 %v2911_v3  ;;  %v1000_v43 = vcombine.high %v999_v39, %v999_v39  ;;  %v1007_v45 = vrot.slane %v999_v39, %v3212_v48  ;;  %v2954_v61 = vld [vmem:[%s3139_s5 + $0x260] sm:$0xff]   ;;  %v2961_v3 = vld [vmem:[%s3139_s5 + $0x298] sm:$0xff]   ;;  %v2984_v39 = vld [vmem:[%s3139_s5 + $0x3e8] sm:$0xff]  }
  0x37   : > { %2704 = vmatpush3.bf16.msra.mxu1 %v2913_v63  ;;  %2683 = vmatprep.subr.bf16.mxu0 %v2914_v5  ;;  %v2957_v63 = vld [vmem:[%s3139_s5 + $0x2a0] sm:$0xff]   ;;  %v2962_v5 = vld [vmem:[%s3139_s5 + $0x250] sm:$0xff]  }
  0x38   : > { %2705 = vmatprep.subr.bf16.mxu1 %v2916_v1  ;;  %932 = vmatprep.mubr.bf16.mxu0 %v801_v41  ;;  %v1014_v49 = vrot.slane %v1000_v43, %v3212_v48  ;;  %v2958_v1 = vld [vmem:[%s3139_s5 + $0x258] sm:$0xff]   ;;  %v2982_v41 = vld [vmem:[%s3139_s5 + $0x368] sm:$0xff]   ;;  %v2988_v43 = vld [vmem:[%s3139_s5 + $0x3e0] sm:$0xff]  }
  0x3a   : > { %2684 = vmatpush3.bf16.msra.mxu0 %v2915_v8  ;;  %1145 = vmatprep.mubr.bf16.mxu1 %v1014_v49  ;;  %v2968_v8 = vld [vmem:[%s3139_s5 + $0x2c8] sm:$0xff]   ;;  %v2992_v49 = vld [vmem:[%s3139_s5 + $0x3d8] sm:$0xff]  }
  0x3b   : > { %2706 = vmatpush3.bf16.msra.mxu1 %v2917_v6  ;;  %2685 = vmatprep.subr.bf16.mxu0 %v2918_v9  ;;  %v2963_v6 = vld [vmem:[%s3139_s5 + $0x210] sm:$0xff]   ;;  %v2966_v9 = vld [vmem:[%s3139_s5 + $0x248] sm:$0xff]  }
  0x3c   : > { %2707 = vmatprep.subr.bf16.mxu1 %v2920_v7  ;;  %v2965_v7 = vld [vmem:[%s3139_s5 + $0x290] sm:$0xff]  }
  0x3e   : > { %2686 = vmatpush3.bf16.msra.mxu0 %v2919_v12  ;;  %v2531_v12 = vld.sshfl [vmem:[%s3198_s13 + $0x8] sm:$0x33 pattern:$0x75316420] }
  0x3f   : > { %2708 = vmatpush3.bf16.msra.mxu1 %v2921_v10  ;;  %2687 = vmatprep.subr.bf16.mxu0 %v2922_v13  ;;  %v2967_v10 = vld [vmem:[%s3139_s5 + $0x208] sm:$0xff]   ;;  %v2972_v13 = vld [vmem:[%s3139_s5 + $0x2c0] sm:$0xff]  }
  0x40   : > { %2709 = vmatprep.subr.bf16.mxu1 %v2924_v11  ;;  %v2969_v11 = vld [vmem:[%s3139_s5 + $0x288] sm:$0xff]  }
  0x42   : > { %2688 = vmatpush3.bf16.msra.mxu0 %v2923_v16  ;;  %v2970_v16 = vld [vmem:[%s3139_s5 + $0x240] sm:$0xff]  }
  0x43   : > { %2710 = vmatpush3.bf16.msra.mxu1 %v2925_v14  ;;  %2689 = vmatprep.subr.bf16.mxu0 %v2926_v17  ;;  %v1173_v14 = vcombine.high %v2531_v12, %v2531_v12 }
  0x44   : > { %2711 = vmatprep.subr.bf16.mxu1 %v2928_v15  ;;  %v1184_v15 = vshrl.u32 %v2531_v12, 16 }
  0x45   : > { %v1189_v17 = vshll.u32 %v1173_v14, 16 }
  0x46   : > { %2690 = vmatpush3.bf16.msra.mxu0 %v2927_v20 }
  0x47   : > { %2712 = vmatpush3.bf16.msra.mxu1 %v2929_v18  ;;  %2691 = vmatprep.subr.bf16.mxu0 %v2930_v21  ;;  %v3311_v18 = vld.sshfl [vmem:[%s3198_s13 + $0x8] sm:$0x30 pattern:$0x75316420]  ;;  %v3318_v21 = vsel %vm3208_vm14, %v1184_v15, %v1189_v17  ;;  %v3008_v17 = vld [vmem:[%s3139_s5 + $0x470] sm:$0xff]  }
  0x48   : > { %2713 = vmatprep.subr.bf16.mxu1 %v2932_v19  ;;  %v2971_v19 = vld [vmem:[%s3139_s5 + $0x200] sm:$0xff]   ;;  %v2554_v20 = vcombine.high %v3262_v30, %v3311_v18 }
  0x4a   : > { %2692 = vmatpush3.bf16.msra.mxu0 %v2931_v23  ;;  %v1224_v23 = vcombine.low %v3224_v56, %v3318_v21  ;;  %v2977_v56 = vld [vmem:[%s3139_s5 + $0x3b8] sm:$0xff]  }
  0x4b   : > { %2714 = vmatpush3.bf16.msra.mxu1 %v2933_v22  ;;  %2693 = vmatprep.subr.bf16.mxu0 %v2934_v25  ;;  %v2973_v22 = vld [vmem:[%s3139_s5 + $0x280] sm:$0xff]   ;;  %v2976_v25 = vld [vmem:[%s3139_s5 + $0x3f8] sm:$0xff]  }
  0x4c   : > { %2715 = vmatprep.subr.bf16.mxu1 %v2936_v24  ;;  %v1445_v24 = vrot.slane %v2554_v20, %v3212_v48  ;;  %v1231_v27 = vrot.slane %v1224_v23, %v3212_v48  ;;  %v2616_v23 = vld.sshfl [vmem:[%s3198_s13 + $0xc] sm:$0x30 pattern:$0x75316420] }
  0x4e   : > { %2694 = vmatpush3.bf16.msra.mxu0 %v2935_v28  ;;  %v1446_v28 = vcombine.high %v1445_v24, %v1445_v24  ;;  %v1232_v30 = vcombine.high %v1231_v27, %v1231_v27  ;;  %v1239_v32 = vrot.slane %v1231_v27, %v3212_v48 }
  0x4f   : > { %2716 = vmatpush3.bf16.msra.mxu1 %v2937_v26  ;;  %2695 = vmatprep.subr.bf16.mxu0 %v2938_v31  ;;  %v2974_v26 = vld [vmem:[%s3139_s5 + $0x378] sm:$0xff]  }
  0x50   : > { %2717 = vmatprep.subr.bf16.mxu1 %v2940_v29  ;;  %v1453_v29 = vrot.slane %v1445_v24, %v3212_v48  ;;  %v1460_v31 = vrot.slane %v1446_v28, %v3212_v48  ;;  %v3011_v24 = vld [vmem:[%s3139_s5 + $0x428] sm:$0xff]   ;;  %v3013_v28 = vld [vmem:[%s3139_s5 + $0x420] sm:$0xff]  }
  0x52   : > { %2696 = vmatpush3.bf16.msra.mxu0 %v2939_v40  ;;  %v2979_v40 = vld [vmem:[%s3139_s5 + $0x330] sm:$0xff]  }
  0x53   : > { %2718 = vmatpush3.bf16.msra.mxu1 %v2941_v35  ;;  %2725 = vmatprep.subr.bf16.mxu0 %v2942_v42  ;;  %v1246_v35 = vrot.slane %v1232_v30, %v3212_v48  ;;  %v2985_v42 = vld [vmem:[%s3139_s5 + $0x3a8] sm:$0xff]   ;;  %v3014_v30 = vld [vmem:[%s3139_s5 + $0x458] sm:$0xff]  }
  0x54   : > { %2747 = vmatprep.subr.bf16.mxu1 %v2944_v37  ;;  %v2978_v37 = vld [vmem:[%s3139_s5 + $0x370] sm:$0xff]  }
  0x55   : > { %933 = vmatmul.mubr.bf16.vlgmr.msra.gmra.mxu0 %v794_v47  ;;  %v2989_v47 = vld [vmem:[%s3139_s5 + $0x3a0] sm:$0xff]  }
  0x56   : > { %1146 = vmatmul.mubr.bf16.vlgmr.msra.gmra.mxu1 %v1007_v45  ;;  %2726 = vmatpush3.bf16.msra.mxu0 %v2943_v44  ;;  %v2983_v44 = vld [vmem:[%s3139_s5 + $0x328] sm:$0xff]   ;;  %v2986_v45 = vld [vmem:[%s3139_s5 + $0x360] sm:$0xff]  }
  0x57   : > { %2748 = vmatpush3.bf16.msra.mxu1 %v2945_v50  ;;  %2727 = vmatprep.subr.bf16.mxu0 %v2946_v52  ;;  %v2987_v50 = vld [vmem:[%s3139_s5 + $0x320] sm:$0xff]   ;;  %v2993_v52 = vld [vmem:[%s3139_s5 + $0x398] sm:$0xff]  }
  0x58   : > { %2749 = vmatprep.subr.bf16.mxu1 %v2948_v51  ;;  %1591 = vmatprep.mubr.bf16.mxu1 %v1460_v31  ;;  %v2990_v51 = vld [vmem:[%s3139_s5 + $0x358] sm:$0xff]  }
  0x59   : > { %1377 = vmatprep.mubr.bf16.mxu0 %v1246_v35  ;;  %v3019_v35 = vld [vmem:[%s3139_s5 + $0x408] sm:$0xff]  }
  0x5a   : > { %2728 = vmatpush3.bf16.msra.mxu0 %v2947_v53  ;;  %v2996_v53 = vld [vmem:[%s3139_s5 + $0x3d0] sm:$0xff]  }
  0x5b   : > { %2750 = vmatpush3.bf16.msra.mxu1 %v2949_v54  ;;  %2729 = vmatprep.subr.bf16.mxu0 %v2950_v57  ;;  %v2991_v54 = vld [vmem:[%s3139_s5 + $0x318] sm:$0xff]   ;;  %v2997_v57 = vld [vmem:[%s3139_s5 + $0x390] sm:$0xff]  }
  0x5c   : > { %2751 = vmatprep.subr.bf16.mxu1 %v2952_v55  ;;  %v2994_v55 = vld [vmem:[%s3139_s5 + $0x350] sm:$0xff]  }
  0x5e   : > { %2730 = vmatpush3.bf16.msra.mxu0 %v2951_v58  ;;  %v3000_v58 = vld [vmem:[%s3139_s5 + $0x3c8] sm:$0xff]  }
  0x5f   : > { %2752 = vmatpush3.bf16.msra.mxu1 %v2953_v59  ;;  %2731 = vmatprep.subr.bf16.mxu0 %v2954_v61  ;;  %v2995_v59 = vld [vmem:[%s3139_s5 + $0x310] sm:$0xff]   ;;  %v3001_v61 = vld [vmem:[%s3139_s5 + $0x388] sm:$0xff]  }
  0x60   : > { %2753 = vmatprep.subr.bf16.mxu1 %v2956_v60  ;;  %v2998_v60 = vld [vmem:[%s3139_s5 + $0x348] sm:$0xff]  }
  0x62   : > { %2732 = vmatpush3.bf16.msra.mxu0 %v2955_v62  ;;  %v2574_v62 = vld.sshfl [vmem:[%s3198_s13 + $0xc] sm:$0x3 pattern:$0x75316420] }
  0x63   : > { %2754 = vmatpush3.bf16.msra.mxu1 %v2957_v63  ;;  %2733 = vmatprep.subr.bf16.mxu0 %v2958_v1  ;;  %v2999_v63 = vld [vmem:[%s3139_s5 + $0x308] sm:$0xff]   ;;  %v3004_v1 = vld [vmem:[%s3139_s5 + $0x3c0] sm:$0xff]  }
  0x64   : > { %2755 = vmatprep.subr.bf16.mxu1 %v2960_v0  ;;  %v1651_v0 = vcombine.low %v3267_v33, %v2574_v62  ;;  %v3003_v33 = vld [vmem:[%s3139_s5 + $0x300] sm:$0xff]  }
  0x66   : > { %2734 = vmatpush3.bf16.msra.mxu0 %v2959_v2  ;;  %v1658_v2 = vrot.slane %v1651_v0, %v3212_v48 }
  0x67   : > { %2756 = vmatpush3.bf16.msra.mxu1 %v2961_v3  ;;  %2735 = vmatprep.subr.bf16.mxu0 %v2962_v5  ;;  %v2594_v3 = vld.sshfl [vmem:[%s3198_s13 + $0xc] sm:$0x33 pattern:$0x75316420] }
  0x68   : > { %2757 = vmatprep.subr.bf16.mxu1 %v2964_v4  ;;  %v3002_v4 = vld [vmem:[%s3139_s5 + $0x340] sm:$0xff]   ;;  %v1832_v5 = vcombine.high %v2594_v3, %v2594_v3  ;;  %v1666_v14 = vrot.slane %v1658_v2, %v3212_v48 }
  0x6a   : > { %2736 = vmatpush3.bf16.msra.mxu0 %v2963_v6  ;;  %v1843_v6 = vshrl.u32 %v2594_v3, 16 }
  0x6b   : > { %2758 = vmatpush3.bf16.msra.mxu1 %v2965_v7  ;;  %2737 = vmatprep.subr.bf16.mxu0 %v2966_v9  ;;  %v1659_v7 = vcombine.high %v1658_v2, %v1658_v2  ;;  %v1848_v9 = vshll.u32 %v1832_v5, 16 }
  0x6c   : > { %2759 = vmatprep.subr.bf16.mxu1 %v2968_v8  ;;  %v3005_v8 = vld [vmem:[%s3139_s5 + $0x380] sm:$0xff]  }
  0x6d   : > { %v1850_v12 = vsel %vm3208_vm14, %v1843_v6, %v1848_v9 }
  0x6e   : > { %2738 = vmatpush3.bf16.msra.mxu0 %v2967_v10  ;;  %v1673_v10 = vrot.slane %v1659_v7, %v3212_v48 }
  0x6f   : > { %2760 = vmatpush3.bf16.msra.mxu1 %v2969_v11  ;;  %2739 = vmatprep.subr.bf16.mxu0 %v2970_v16  ;;  %v3006_v11 = vld [vmem:[%s3139_s5 + $0x478] sm:$0xff]  }
  0x70   : > { %2761 = vmatprep.subr.bf16.mxu1 %v2972_v13  ;;  %v1883_v13 = vcombine.low %v3318_v21, %v1850_v12  ;;  %v3007_v16 = vld [vmem:[%s3139_s5 + $0x438] sm:$0xff]   ;;  %v3009_v21 = vld [vmem:[%s3139_s5 + $0x430] sm:$0xff]  }
  0x72   : > { %2740 = vmatpush3.bf16.msra.mxu0 %v2971_v19  ;;  %v1890_v15 = vrot.slane %v1883_v13, %v3212_v48 }
  0x73   : > { %2762 = vmatpush3.bf16.msra.mxu1 %v2973_v22  ;;  %2769 = vmatprep.subr.bf16.mxu0 %v2974_v26  ;;  %v3010_v22 = vld [vmem:[%s3139_s5 + $0x468] sm:$0xff]   ;;  %v3012_v26 = vld [vmem:[%s3139_s5 + $0x460] sm:$0xff]  }
  0x74   : > { %2791 = vmatprep.subr.bf16.mxu1 %v2976_v25  ;;  %v1891_v19 = vcombine.high %v1890_v15, %v1890_v15  ;;  %v1898_v46 = vrot.slane %v1890_v15, %v3212_v48  ;;  %v2617_v25 = vcombine.high %v3311_v18, %v2616_v23  ;;  %v3016_v18 = vld [vmem:[%s3139_s5 + $0x450] sm:$0xff]  }
  0x75   : > { %1378 = vmatmul.mubr.bf16.vlgmr.msra.gmra.mxu0 %v1239_v32  ;;  %v3017_v32 = vld [vmem:[%s3139_s5 + $0x410] sm:$0xff]  }
  0x76   : > { %1592 = vmatmul.mubr.bf16.vlgmr.msra.gmra.mxu1 %v1453_v29  ;;  %2770 = vmatpush3.bf16.msra.mxu0 %v2975_v36  ;;  %v1905_v20 = vrot.slane %v1891_v19, %v3212_v48  ;;  %v2104_v27 = vrot.slane %v2617_v25, %v3212_v48  ;;  %v3020_v36 = vld [vmem:[%s3139_s5 + $0x440] sm:$0xff]  }
  0x77   : > { %2792 = vmatpush3.bf16.msra.mxu1 %v2977_v56  ;;  %2771 = vmatprep.subr.bf16.mxu0 %v2978_v37  ;;  %v3015_v56 = vld [vmem:[%s3139_s5 + $0x418] sm:$0xff]   ;;  %v3021_v37 = vld [vmem:[%s3139_s5 + $0x400] sm:$0xff]  }
  0x78   : > { %2793 = vmatprep.subr.bf16.mxu1 %v2980_v34  ;;  %1804 = vmatprep.mubr.bf16.mxu0 %v1673_v10  ;;  %v2105_v29 = vcombine.high %v2104_v27, %v2104_v27  ;;  %v3018_v34 = vld [vmem:[%s3139_s5 + $0x448] sm:$0xff]  }
  0x79   : > { %2036 = vmatprep.mubr.bf16.mxu1 %v1905_v20 }
  0x7a   : > { %2772 = vmatpush3.bf16.msra.mxu0 %v2979_v40  ;;  %v2119_v31 = vrot.slane %v2105_v29, %v3212_v48 }
  0x7b   : > { %2794 = vmatpush3.bf16.msra.mxu1 %v2981_v38  ;;  %2773 = vmatprep.subr.bf16.mxu0 %v2982_v41  ;;  %v2112_v38 = vrot.slane %v2104_v27, %v3212_v48 }
  0x7c   : > { %2795 = vmatprep.subr.bf16.mxu1 %v2984_v39 }
  0x7e   : > { %2774 = vmatpush3.bf16.msra.mxu0 %v2983_v44 }
  0x7f   : > { %2796 = vmatpush3.bf16.msra.mxu1 %v2985_v42  ;;  %2775 = vmatprep.subr.bf16.mxu0 %v2986_v45 }
  0x80   : > { %2797 = vmatprep.subr.bf16.mxu1 %v2988_v43 }
  0x82   : > { %2776 = vmatpush3.bf16.msra.mxu0 %v2987_v50 }
  0x83   : > { %2798 = vmatpush3.bf16.msra.mxu1 %v2989_v47  ;;  %2777 = vmatprep.subr.bf16.mxu0 %v2990_v51 }
  0x84   : > { %2799 = vmatprep.subr.bf16.mxu1 %v2992_v49 }
  0x86   : > { %2778 = vmatpush3.bf16.msra.mxu0 %v2991_v54 }
  0x87   : > { %2800 = vmatpush3.bf16.msra.mxu1 %v2993_v52  ;;  %2779 = vmatprep.subr.bf16.mxu0 %v2994_v55 }
  0x88   : > { %2801 = vmatprep.subr.bf16.mxu1 %v2996_v53 }
  0x8a   : > { %2780 = vmatpush3.bf16.msra.mxu0 %v2995_v59 }
  0x8b   : > { %2802 = vmatpush3.bf16.msra.mxu1 %v2997_v57  ;;  %2781 = vmatprep.subr.bf16.mxu0 %v2998_v60 }
  0x8c   : > { %2803 = vmatprep.subr.bf16.mxu1 %v3000_v58 }
  0x8e   : > { %2782 = vmatpush3.bf16.msra.mxu0 %v2999_v63 }
  0x8f   : > { %2804 = vmatpush3.bf16.msra.mxu1 %v3001_v61  ;;  %2783 = vmatprep.subr.bf16.mxu0 %v3002_v4 }
  0x90   : > { %2805 = vmatprep.subr.bf16.mxu1 %v3004_v1 }
  0x92   : > { %2784 = vmatpush3.bf16.msra.mxu0 %v3003_v33 }
  0x93   : > { %2806 = vmatpush3.bf16.msra.mxu1 %v3005_v8  ;;  %2813 = vmatprep.subr.bf16.mxu0 %v3006_v11 }
  0x95   : > { %1805 = vmatmul.mubr.bf16.vlgmr.msra.gmra.mxu0 %v1666_v14 }
  0x96   : > { %2814 = vmatpush3.bf16.msra.mxu0 %v3007_v16  ;;  %2037 = vmatmul.mubr.bf16.vlgmr.msra.gmra.mxu1 %v1898_v46 }
  0x97   : > { %2815 = vmatprep.subr.bf16.mxu0 %v3008_v17  ;;  %2250 = vmatprep.mubr.bf16.mxu0 %v2119_v31 }
  0x9a   : > { %2816 = vmatpush3.bf16.msra.mxu0 %v3009_v21 }
  0x9b   : > { %2817 = vmatprep.subr.bf16.mxu0 %v3010_v22 }
  0x9e   : > { %2818 = vmatpush3.bf16.msra.mxu0 %v3011_v24 }
  0x9f   : > { %2819 = vmatprep.subr.bf16.mxu0 %v3012_v26 }
  0xa2   : > { %2820 = vmatpush3.bf16.msra.mxu0 %v3013_v28 }
  0xa3   : > { %2821 = vmatprep.subr.bf16.mxu0 %v3014_v30 }
  0xa6   : > { %2822 = vmatpush3.bf16.msra.mxu0 %v3015_v56 }
  0xa7   : > { %2823 = vmatprep.subr.bf16.mxu0 %v3016_v18 }
  0xaa   : > { %2824 = vmatpush3.bf16.msra.mxu0 %v3017_v32 }
  0xab   : > { %2825 = vmatprep.subr.bf16.mxu0 %v3018_v34 }
  0xae   : > { %2826 = vmatpush3.bf16.msra.mxu0 %v3019_v35 }
  0xaf   : > { %2827 = vmatprep.subr.bf16.mxu0 %v3020_v36 }
  0xb2   : > { %2828 = vmatpush3.bf16.msra.mxu0 %v3021_v37 }
  0xb5   : > { %2251 = vmatmul.mubr.bf16.vlgmr.msra.gmra.mxu0 %v2112_v38 }
  0xf5   : > { %v2653_v41 = vpop.f32.mrf.mxu0 }
  0xf6   : > { %v2675_v39 = vpop.f32.mrf.mxu1 }
  0xf7   : > { %v2654_v44 = vpop.f32.mrf.mxu0 }
  0xf8   : > { %v2676_v40 = vpop.f32.mrf.mxu1  ;;  %v2655_v45 = vadd.f32 %v2654_v44, %v2653_v41 }
  0xf9   : > { %v2677_v42 = vadd.f32 %v2676_v40, %v2675_v39  ;;  %v2656_v49 = vpop.f32.mrf.mxu0 }
  0xfa   : > { %v2678_v43 = vpop.f32.mrf.mxu1 }
  0xfb   : > { %v722_v50 = vadd.f32 %v2677_v42, %v2655_v45  ;;  %v2657_v51 = vpop.f32.mrf.mxu0 }
  0xfc   : > { %v2679_v47 = vpop.f32.mrf.mxu1 }
 0x115   : > { %v2697_v53 = vpop.f32.mrf.mxu0 }
 0x116   : > { %v2719_v52 = vpop.f32.mrf.mxu1 }
 0x117   : > { %v2698_v55 = vpop.f32.mrf.mxu0 }
 0x118   : > { %v2720_v54 = vpop.f32.mrf.mxu1  ;;  %v2699_v58 = vadd.f32 %v2698_v55, %v2697_v53 }
 0x119   : > { %v2721_v57 = vadd.f32 %v2720_v54, %v2719_v52  ;;  %v2700_v59 = vpop.f32.mrf.mxu0 }
 0x11a   : > { %v2722_v48 = vpop.f32.mrf.mxu1  ;;  %v940_v60 = vadd.f32 %v2699_v58, %v722_v50 }
 0x11b   : > { %v2701_v62 = vpop.f32.mrf.mxu0 }
 0x11c   : > { %v2723_v61 = vpop.f32.mrf.mxu1  ;;  %v1153_v63 = vadd.f32 %v2721_v57, %v940_v60 }
 0x135   : > { %v2741_v1 = vpop.f32.mrf.mxu0 }
 0x136   : > { %v2763_v0 = vpop.f32.mrf.mxu1 }
 0x137   : > { %v2742_v3 = vpop.f32.mrf.mxu0 }
 0x138   : > { %v2764_v2 = vpop.f32.mrf.mxu1  ;;  %v2743_v15 = vadd.f32 %v2742_v3, %v2741_v1 }
 0x139   : > { %v2744_v5 = vpop.f32.mrf.mxu0  ;;  %v2765_v17 = vadd.f32 %v2764_v2, %v2763_v0 }
 0x13a   : > { %v2766_v4 = vpop.f32.mrf.mxu1  ;;  %v1385_v16 = vadd.f32 %v2743_v15, %v1153_v63 }
 0x13b   : > { %v2745_v7 = vpop.f32.mrf.mxu0 }
 0x13c   : > { %v2767_v6 = vpop.f32.mrf.mxu1  ;;  %v1599_v46 = vadd.f32 %v2765_v17, %v1385_v16 }
 0x155   : > { %v2785_v8 = vpop.f32.mrf.mxu0 }
 0x156   : > { %v2807_v33 = vpop.f32.mrf.mxu1 }
 0x157   : > { %v2786_v9 = vpop.f32.mrf.mxu0 }
 0x158   : > { %v2808_v11 = vpop.f32.mrf.mxu1  ;;  %v2787_v19 = vadd.f32 %v2786_v9, %v2785_v8 }
 0x159   : > { %v2788_v10 = vpop.f32.mrf.mxu0  ;;  %v2809_v21 = vadd.f32 %v2808_v11, %v2807_v33 }
 0x15a   : > { %v2810_v13 = vpop.f32.mrf.mxu1  ;;  %v1812_v20 = vadd.f32 %v2787_v19, %v1599_v46 }
 0x15b   : > { %v2789_v12 = vpop.f32.mrf.mxu0 }
 0x15c   : > { %v2811_v14 = vpop.f32.mrf.mxu1  ;;  %v2044_v24 = vadd.f32 %v2809_v21, %v1812_v20 }
 0x175   : > { %v2829_v22 = vpop.f32.mrf.mxu0 }
 0x177   : > { %v2830_v23 = vpop.f32.mrf.mxu0 }
 0x178   : > { %v2831_v25 = vadd.f32 %v2830_v23, %v2829_v22 }
 0x179   : > { %v2832_v26 = vpop.f32.mrf.mxu0 }
 0x17a   : > { %v2258_v27 = vadd.f32 %v2831_v25, %v2044_v24 }
 0x17b   : > { %v2833_v28 = vpop.f32.mrf.mxu0 }
 0x17c   : > { %v2259_v29 = vpack.c.bf16 %v2258_v27, %v2258_v27  ;;  %v2262_v30 = vsel %vm2261_vm15, %v2258_v27, 0.0  ;;  %v2269_v31 = vmul.f32 %v2258_v27, %v2258_v27 }
 0x17d   : > { %v2263_v56 = vrot.slane %v2262_v30, 4 }
 0x17e   : > { %2260 = vst [vmem:[%s262_s27] sm:$0x3] %v2259_v29  ;;  %v2270_v18 = vsel %vm2261_vm15, %v2269_v31, 0.0 }
 0x17f   : > { %v2264_v32 = vadd.f32 %v2263_v56, %v2262_v30  ;;  %v2271_v34 = vrot.slane %v2270_v18, 4 }
 0x181   : > { %v2265_v35 = vrot.slane %v2264_v32, 2  ;;  %v2272_v36 = vadd.f32 %v2271_v34, %v2270_v18 }
 0x183   : > { %v2266_v37 = vadd.f32 %v2265_v35, %v2264_v32  ;;  %v2273_v38 = vrot.slane %v2272_v36, 2 }
 0x185   : > { %v2267_v39 = vrot.slane %v2266_v37, 1  ;;  %v2274_v40 = vadd.f32 %v2273_v38, %v2272_v36  ;;  %2280 = sbr.rel (%p2634_p7) target bundleno = 396 (0x18c), region = 32 }
 0x187   : > { %v2268_v41 = vadd.f32 %v2267_v39, %v2266_v37  ;;  %v2275_v42 = vrot.slane %v2274_v40, 1 }
 0x189   : > { %v2276_v43 = vadd.f32 %v2275_v42, %v2274_v40 }
 0x18a   : > { %v3063_v44 = vmov 0.0  }
 0x18b   : > { %2281 = vst [vmem:[%s3128_s25] sm:$0x1] %v3063_v44  ;;  %2282 = vst [vmem:[%s3134_s28] sm:$0x1] %v3063_v44 }
 0x18c PF:  {}
 0x192   : > { %v2283_v45 = vld [vmem:[%s3128_s25] sm:$0x1] }
 0x193   : > { %v2286_v47 = vld [vmem:[%s3134_s28] sm:$0x1]  ;;  %v2284_v49 = vadd.f32 %v2283_v45, %v2268_v41 }
 0x194   : > { %v2287_v50 = vadd.f32 %v2286_v47, %v2276_v43 }
 0x195   : > { %2285 = vst [vmem:[%s3128_s25] sm:$0x1] %v2284_v49 }
 0x196   : > { %2288 = vst [vmem:[%s3134_s28] sm:$0x1] %v2287_v50 }
 0x197 PF: > { %s15_s19 = sadd.s32 1, %s3060_s19   ;;  %s3434_s15 = smov %s3052_s17 }
 0x198   : > { %p12_p8 = scmp.ge.s32.totalorder %s15_s19, 10   ;;  %s3435_s16 = smov %s3056_s18 }
 0x199   : > { %s3436_s17 = smov %s3439_s20  ;;  %s3437_s18 = smov %s3443_s21 }
 0x19a   :  { %14 = sbr.rel (!%p12_p8) target bundleno = 3 (0x3), region = 91 }

// kernel: _device_forward.11
= control target key start
LH: loop header
LB: loop body
LE: loop exit
PB: predicated region body
PF: predicated region fallthrough
CT: control target
= control target key end

     0   :  { %vm216_vm0 = vcmask 523264   ;;  %vm3721_vm1 = vcmask 130112   ;;  %vm3728_vm2 = vcmask 195712   ;;  %vm3735_vm3 = vcmask 261312   ;;  %s6741_s0 = inlined_call_operand.vmem [shape: bf16[2,256,64], index: 0, kind: input, shape index: {}]   ;;  %s6742_s2 = inlined_call_operand.vmem [shape: f32[1,1,64], index: 2, kind: input, shape index: {}]   ;;  %s6743_s1 = inlined_call_operand.vmem [shape: f32[2,256], index: 1, kind: input, shape index: {}]   ;;  %s6744_s3 = inlined_call_operand.vmem [shape: f32[2,1], index: 3, kind: input, shape index: {}]   ;;  %s6745_s4 = inlined_call_operand.vmem [shape: f32[2,256], index: 4, kind: output, shape index: {}]  }
   0x1   :  { %v4206_v0 = vld [vmem:[%s6741_s0 + $0x8] sm:$0xff]   ;;  %v4530_v1 = vld [vmem:[%s6742_s2] ss:$0 sm:$0xff]  ;;  %v4207_v7 = vld [vmem:[%s6741_s0 + $0x10] sm:$0xff]   ;;  %vm3742_vm4 = vcmask 326912   ;;  %vm3749_vm5 = vcmask 392512  }
   0x2   :  { %v4079_v2 = vld [vmem:[%s6741_s0] sm:$0xff]   ;;  %v4084_v3 = vunpack.c.l.bf16 %v4206_v0  ;;  %v4085_v5 = vunpack.c.h.bf16 %v4206_v0  ;;  %v4208_v8 = vld [vmem:[%s6741_s0 + $0x18] sm:$0xff]   ;;  %v4089_v9 = vunpack.c.h.bf16 %v4207_v7  ;;  %v4088_v10 = vunpack.c.l.bf16 %v4207_v7  ;;  %v4210_v26 = vld [vmem:[%s6741_s0 + $0x28] sm:$0xff]  }
   0x3   :  { %v4080_v4 = vunpack.c.l.bf16 %v4079_v2  ;;  %v4081_v6 = vunpack.c.h.bf16 %v4079_v2  ;;  %v4093_v11 = vunpack.c.h.bf16 %v4208_v8  ;;  %v4092_v19 = vunpack.c.l.bf16 %v4208_v8  ;;  %v4209_v20 = vld [vmem:[%s6741_s0 + $0x20] sm:$0xff]   ;;  %v4211_v27 = vld [vmem:[%s6741_s0 + $0x30] sm:$0xff]   ;;  %v4212_v29 = vld [vmem:[%s6741_s0 + $0x38] sm:$0xff]  }
   0x4   :  { %v154_v12 = vmul.f32 %v4084_v3, %v4530_v1  ;;  %v155_v14 = vmul.f32 %v4085_v5, %v4530_v1  ;;  %v157_v18 = vmul.f32 %v4089_v9, %v4530_v1  ;;  %v156_v23 = vmul.f32 %v4088_v10, %v4530_v1  ;;  %v4213_v30 = vld [vmem:[%s6741_s0 + $0x40] sm:$0xff]   ;;  %v4214_v35 = vld [vmem:[%s6741_s0 + $0x48] sm:$0xff]   ;;  %v4215_v40 = vld [vmem:[%s6741_s0 + $0x50] sm:$0xff]  }
   0x5   :  { %v152_v13 = vmul.f32 %v4080_v4, %v4530_v1  ;;  %v153_v15 = vmul.f32 %v4081_v6, %v4530_v1  ;;  %v159_v24 = vmul.f32 %v4093_v11, %v4530_v1  ;;  %v4097_v25 = vunpack.c.h.bf16 %v4209_v20  ;;  %v4216_v41 = vld [vmem:[%s6741_s0 + $0x58] sm:$0xff]   ;;  %v4594_v62 = vld [vmem:[%s6741_s0 + $0x60] sm:$0xff]  }
   0x6   :  { %v223_v16 = vsel %vm216_vm0, %v154_v12, 0.0  ;;  %v226_v21 = vsel %vm216_vm0, %v155_v14, 0.0  ;;  %v158_v28 = vmul.f32 %v4092_v19, %v4530_v1  ;;  %v232_v31 = vsel %vm216_vm0, %v157_v18, 0.0  ;;  %v4221_v12 = vld [vmem:[%s6741_s0 + $0x80] sm:$0xff]  }
   0x7   :  { %v217_v17 = vsel %vm216_vm0, %v152_v13, 0.0  ;;  %224 = vadd.xlane.f32.xlu1 %v223_v16  ;;  %v220_v22 = vsel %vm216_vm0, %v153_v15, 0.0  ;;  %v229_v32 = vsel %vm216_vm0, %v156_v23, 0.0  ;;  %v238_v33 = vsel %vm216_vm0, %v159_v24, 0.0 }
   0x8   :  { %218 = vadd.xlane.f32.xlu0 %v217_v17  ;;  %v4096_v34 = vunpack.c.l.bf16 %v4209_v20  ;;  %v4101_v36 = vunpack.c.h.bf16 %v4210_v26  ;;  %v4100_v37 = vunpack.c.l.bf16 %v4210_v26  ;;  %v4105_v38 = vunpack.c.h.bf16 %v4211_v27  ;;  %v4623_v17 = vld [vmem:[%s6741_s0 + $0x68] sm:$0xff]  }
   0x9   :  { %v4104_v39 = vunpack.c.l.bf16 %v4211_v27  ;;  %v161_v42 = vmul.f32 %v4097_v25, %v4530_v1  ;;  %v4109_v43 = vunpack.c.h.bf16 %v4212_v29  ;;  %v4108_v44 = vunpack.c.l.bf16 %v4212_v29  ;;  %v4223_v27 = vld [vmem:[%s6741_s0 + $0x90] sm:$0xff]  }
   0xa   :  { %v4113_v45 = vunpack.c.h.bf16 %v4213_v30  ;;  %v235_v46 = vsel %vm216_vm0, %v158_v28, 0.0  ;;  %v4112_v47 = vunpack.c.l.bf16 %v4213_v30  ;;  %v4117_v48 = vunpack.c.h.bf16 %v4214_v35  ;;  %v4224_v28 = vld [vmem:[%s6741_s0 + $0x98] sm:$0xff]  }
   0xb   :  { %227 = vadd.xlane.f32.xlu1 %v226_v21  ;;  %v4116_v49 = vunpack.c.l.bf16 %v4214_v35  ;;  %v160_v50 = vmul.f32 %v4096_v34, %v4530_v1  ;;  %v4121_v51 = vunpack.c.h.bf16 %v4215_v40  ;;  %v4120_v52 = vunpack.c.l.bf16 %v4215_v40 }
   0xc   :  { %221 = vadd.xlane.f32.xlu0 %v220_v22  ;;  %v4125_v53 = vunpack.c.h.bf16 %v4216_v41  ;;  %v163_v54 = vmul.f32 %v4101_v36, %v4530_v1  ;;  %v162_v55 = vmul.f32 %v4100_v37, %v4530_v1  ;;  %v165_v56 = vmul.f32 %v4105_v38, %v4530_v1  ;;  %v4222_v22 = vld [vmem:[%s6741_s0 + $0x88] sm:$0xff]  }
   0xd   :  { %v164_v57 = vmul.f32 %v4104_v39, %v4530_v1  ;;  %v244_v58 = vsel %vm216_vm0, %v161_v42, 0.0  ;;  %v167_v59 = vmul.f32 %v4109_v43, %v4530_v1  ;;  %v166_v60 = vmul.f32 %v4108_v44, %v4530_v1 }
   0xe   :  { %v169_v61 = vmul.f32 %v4113_v45, %v4530_v1  ;;  %v168_v63 = vmul.f32 %v4112_v47, %v4530_v1  ;;  %v171_v0 = vmul.f32 %v4117_v48, %v4530_v1  ;;  %v170_v2 = vmul.f32 %v4116_v49, %v4530_v1 }
   0xf   :  { %233 = vadd.xlane.f32.xlu1 %v232_v31  ;;  %v4124_v3 = vunpack.c.l.bf16 %v4216_v41  ;;  %v241_v4 = vsel %vm216_vm0, %v160_v50, 0.0  ;;  %v173_v5 = vmul.f32 %v4121_v51, %v4530_v1  ;;  %v172_v6 = vmul.f32 %v4120_v52, %v4530_v1  ;;  %v4225_v41 = vld [vmem:[%s6741_s0 + $0xa0] sm:$0xff]   ;;  %v4226_v50 = vld [vmem:[%s6741_s0 + $0xa8] sm:$0xff]  }
  0x10   :  { %230 = vadd.xlane.f32.xlu0 %v229_v32  ;;  %v175_v7 = vmul.f32 %v4125_v53, %v4530_v1  ;;  %v250_v8 = vsel %vm216_vm0, %v163_v54, 0.0  ;;  %v247_v9 = vsel %vm216_vm0, %v162_v55, 0.0  ;;  %v256_v10 = vsel %vm216_vm0, %v165_v56, 0.0  ;;  %v4227_v55 = vld [vmem:[%s6741_s0 + $0xb0] sm:$0xff]   ;;  %v4228_v56 = vld [vmem:[%s6741_s0 + $0xb8] sm:$0xff]  }
  0x11   :  { %v4129_v11 = vunpack.c.h.bf16 %v4594_v62  ;;  %v253_v13 = vsel %vm216_vm0, %v164_v57, 0.0  ;;  %v4612_v14 = vsel %vm216_vm0, %v167_v59, 0.0  ;;  %v4615_v15 = vsel %vm216_vm0, %v166_v60, 0.0 }
  0x12   :  { %v4618_v16 = vsel %vm216_vm0, %v169_v61, 0.0  ;;  %v4626_v18 = vsel %vm216_vm0, %v168_v63, 0.0  ;;  %v4629_v19 = vsel %vm216_vm0, %v171_v0, 0.0  ;;  %v4632_v20 = vsel %vm216_vm0, %v170_v2, 0.0 }
  0x13   :  { %239 = vadd.xlane.f32.xlu1 %v238_v33  ;;  %v174_v21 = vmul.f32 %v4124_v3, %v4530_v1  ;;  %v4639_v23 = vsel %vm216_vm0, %v173_v5, 0.0  ;;  %v4642_v24 = vsel %vm216_vm0, %v172_v6, 0.0  ;;  %v4645_v25 = vsel %vm216_vm0, %v175_v7, 0.0  ;;  %v4229_v7 = vld [vmem:[%s6741_s0 + $0xc0] sm:$0xff]  }
  0x14   :  { %236 = vadd.xlane.f32.xlu0 %v235_v46  ;;  %v4145_v26 = vunpack.c.h.bf16 %v4221_v12  ;;  %v4654_v29 = vmul.f32 %v4129_v11, %v4530_v1  ;;  %v4128_v30 = vunpack.c.l.bf16 %v4594_v62  ;;  %v4133_v31 = vunpack.c.h.bf16 %v4623_v17 }
  0x15   :  { %v4132_v32 = vunpack.c.l.bf16 %v4623_v17  ;;  %v4144_v34 = vunpack.c.l.bf16 %v4221_v12  ;;  %v4149_v35 = vunpack.c.h.bf16 %v4222_v22  ;;  %v4148_v36 = vunpack.c.l.bf16 %v4222_v22 }
  0x16   :  { %v185_v33 = vmul.f32 %v4145_v26, %v4530_v1  ;;  %v4661_v37 = vsel %vm216_vm0, %v174_v21, 0.0  ;;  %v4153_v38 = vunpack.c.h.bf16 %v4223_v27  ;;  %v4152_v39 = vunpack.c.l.bf16 %v4223_v27  ;;  %v4230_v26 = vld [vmem:[%s6741_s0 + $0xc8] sm:$0xff]  }
  0x17   :  { %245 = vadd.xlane.f32.xlu1 %v244_v58  ;;  %v4157_v40 = vunpack.c.h.bf16 %v4224_v28  ;;  %v184_v43 = vmul.f32 %v4144_v34, %v4530_v1  ;;  %v187_v44 = vmul.f32 %v4149_v35, %v4530_v1  ;;  %v186_v45 = vmul.f32 %v4148_v36, %v4530_v1  ;;  %v4232_v34 = vld [vmem:[%s6741_s0 + $0xd8] sm:$0xff]  }
  0x18   :  { %242 = vadd.xlane.f32.xlu0 %v241_v4  ;;  %v4667_v42 = vsel %vm216_vm0, %v185_v33, 0.0  ;;  %v189_v46 = vmul.f32 %v4153_v38, %v4530_v1  ;;  %v188_v47 = vmul.f32 %v4152_v39, %v4530_v1  ;;  %v4156_v49 = vunpack.c.l.bf16 %v4224_v28  ;;  %v4231_v33 = vld [vmem:[%s6741_s0 + $0xd0] sm:$0xff]  }
  0x19   :  { %v191_v48 = vmul.f32 %v4157_v40, %v4530_v1  ;;  %v4679_v51 = vsel %vm216_vm0, %v184_v43, 0.0  ;;  %v4682_v52 = vsel %vm216_vm0, %v187_v44, 0.0  ;;  %v4685_v53 = vsel %vm216_vm0, %v186_v45, 0.0 }
  0x1a   :  { %v4161_v54 = vunpack.c.h.bf16 %v4225_v41  ;;  %v4694_v57 = vsel %vm216_vm0, %v189_v46, 0.0  ;;  %v4697_v58 = vsel %vm216_vm0, %v188_v47, 0.0  ;;  %v190_v60 = vmul.f32 %v4156_v49, %v4530_v1  ;;  %v4233_v49 = vld [vmem:[%s6741_s0 + $0xe0] sm:$0xff]  }
  0x1b   :  { %251 = vadd.xlane.f32.xlu1 %v250_v8  ;;  %v4700_v59 = vsel %vm216_vm0, %v191_v48, 0.0  ;;  %v4160_v63 = vunpack.c.l.bf16 %v4225_v41  ;;  %v4165_v0 = vunpack.c.h.bf16 %v4226_v50  ;;  %v4164_v2 = vunpack.c.l.bf16 %v4226_v50 }
  0x1c   :  { %248 = vadd.xlane.f32.xlu0 %v247_v9  ;;  %v193_v61 = vmul.f32 %v4161_v54, %v4530_v1  ;;  %v4705_v3 = vsel %vm216_vm0, %v190_v60, 0.0  ;;  %v4169_v4 = vunpack.c.h.bf16 %v4227_v55  ;;  %v4168_v5 = vunpack.c.l.bf16 %v4227_v55 }
  0x1d   :  { %v4173_v6 = vunpack.c.h.bf16 %v4228_v56  ;;  %v192_v9 = vmul.f32 %v4160_v63, %v4530_v1  ;;  %v194_v11 = vmul.f32 %v4164_v2, %v4530_v1  ;;  %v4172_v22 = vunpack.c.l.bf16 %v4228_v56  ;;  %v4234_v63 = vld [vmem:[%s6741_s0 + $0xe8] sm:$0xff]  }
  0x1e   :  { %v4711_v8 = vsel %vm216_vm0, %v193_v61, 0.0  ;;  %v197_v12 = vmul.f32 %v4169_v4, %v4530_v1  ;;  %v4176_v41 = vunpack.c.l.bf16 %v4229_v7  ;;  %v4181_v43 = vunpack.c.h.bf16 %v4230_v26 }
  0x1f   :  { %257 = vadd.xlane.f32.xlu1 %v256_v10  ;;  %v195_v10 = vmul.f32 %v4165_v0, %v4530_v1  ;;  %v199_v21 = vmul.f32 %v4173_v6, %v4530_v1  ;;  %v4725_v27 = vsel %vm216_vm0, %v192_v9, 0.0  ;;  %v198_v39 = vmul.f32 %v4172_v22, %v4530_v1  ;;  %v4235_v6 = vld [vmem:[%s6741_s0 + $0xf0] sm:$0xff]  }
  0x20   :  { %254 = vadd.xlane.f32.xlu0 %v253_v13  ;;  %v196_v13 = vmul.f32 %v4168_v5, %v4530_v1  ;;  %v4740_v35 = vsel %vm216_vm0, %v197_v12, 0.0  ;;  %v4180_v44 = vunpack.c.l.bf16 %v4230_v26  ;;  %v4185_v46 = vunpack.c.h.bf16 %v4231_v33 }
  0x21   :  { %v4728_v28 = vsel %vm216_vm0, %v195_v10, 0.0  ;;  %v4746_v38 = vsel %vm216_vm0, %v199_v21, 0.0  ;;  %v4753_v45 = vsel %vm216_vm0, %v198_v39, 0.0  ;;  %v4184_v47 = vunpack.c.l.bf16 %v4231_v33 }
  0x22   :  { %v4743_v36 = vsel %vm216_vm0, %v196_v13, 0.0  ;;  %v4189_v48 = vunpack.c.h.bf16 %v4232_v34  ;;  %v200_v54 = vmul.f32 %v4176_v41, %v4530_v1  ;;  %v203_v55 = vmul.f32 %v4181_v43, %v4530_v1 }
  0x23   :  { %263 = vadd.xlane.f32.xlu1 %v4612_v14  ;;  %v4731_v14 = vsel %vm216_vm0, %v194_v11, 0.0  ;;  %v204_v56 = vmul.f32 %v4184_v47, %v4530_v1  ;;  %v4188_v61 = vunpack.c.l.bf16 %v4232_v34  ;;  %v4193_v5 = vunpack.c.h.bf16 %v4233_v49 }
  0x24   :  { %260 = vadd.xlane.f32.xlu0 %v4615_v15  ;;  %v4177_v15 = vunpack.c.h.bf16 %v4229_v7  ;;  %v207_v60 = vmul.f32 %v4189_v48, %v4530_v1  ;;  %v4771_v0 = vsel %vm216_vm0, %v200_v54, 0.0  ;;  %v4774_v2 = vsel %vm216_vm0, %v203_v55, 0.0  ;;  %v4236_v7 = vld [vmem:[%s6741_s0 + $0xf8] sm:$0xff]  }
  0x25   :  { %v4791_v10 = vsel %vm216_vm0, %v204_v56, 0.0  ;;  %v206_v12 = vmul.f32 %v4188_v61, %v4530_v1  ;;  %v209_v13 = vmul.f32 %v4193_v5, %v4530_v1  ;;  %v4192_v21 = vunpack.c.l.bf16 %v4233_v49  ;;  %v4219_v49 = vld [vmem:[%s6741_s0 + $0x70] sm:$0xff]  }
  0x26   :  { %v201_v40 = vmul.f32 %v4177_v15, %v4530_v1  ;;  %v4794_v11 = vsel %vm216_vm0, %v207_v60, 0.0  ;;  %v4197_v22 = vunpack.c.h.bf16 %v4234_v63  ;;  %v4196_v26 = vunpack.c.l.bf16 %v4234_v63 }
  0x27   :  { %269 = vadd.xlane.f32.xlu1 %v4618_v16  ;;  %v202_v16 = vmul.f32 %v4180_v44, %v4530_v1  ;;  %v4200_v15 = vunpack.c.l.bf16 %v4235_v6  ;;  %v4205_v33 = vunpack.c.h.bf16 %v4236_v7  ;;  %v4802_v34 = vsel %vm216_vm0, %v209_v13, 0.0 }
  0x28   :  { %266 = vadd.xlane.f32.xlu0 %v4626_v18  ;;  %v4759_v50 = vsel %vm216_vm0, %v201_v40, 0.0  ;;  %v205_v18 = vmul.f32 %v4185_v46, %v4530_v1  ;;  %v208_v39 = vmul.f32 %v4192_v21, %v4530_v1  ;;  %v211_v40 = vmul.f32 %v4197_v22, %v4530_v1 }
  0x29   :  { %v4777_v4 = vsel %vm216_vm0, %v202_v16, 0.0  ;;  %v210_v41 = vmul.f32 %v4196_v26, %v4530_v1  ;;  %v212_v44 = vmul.f32 %v4200_v15, %v4530_v1  ;;  %v215_v46 = vmul.f32 %v4205_v33, %v4530_v1 }
  0x2a   :  { %v4788_v9 = vsel %vm216_vm0, %v205_v18, 0.0  ;;  %v4204_v47 = vunpack.c.l.bf16 %v4236_v7  ;;  %v176_v48 = vmul.f32 %v4128_v30, %v4530_v1  ;;  %v385_v54 = vsel %vm216_vm0, %v208_v39, 0.0 }
  0x2b   :  { %275 = vadd.xlane.f32.xlu1 %v4629_v19  ;;  %v4799_v19 = vsel %vm216_vm0, %v206_v12, 0.0  ;;  %v397_v16 = vsel %vm216_vm0, %v212_v44, 0.0  ;;  %v406_v18 = vsel %vm216_vm0, %v215_v46, 0.0  ;;  %v4137_v62 = vunpack.c.h.bf16 %v4219_v49 }
  0x2c   :  { %272 = vadd.xlane.f32.xlu0 %v4632_v20  ;;  %v4201_v20 = vunpack.c.h.bf16 %v4235_v6  ;;  %v214_v56 = vmul.f32 %v4204_v47, %v4530_v1  ;;  %v4136_v30 = vunpack.c.l.bf16 %v4219_v49  ;;  %v292_v61 = vsel %vm216_vm0, %v4654_v29, 0.0 }
  0x2d   :  { %v289_v63 = vsel %vm216_vm0, %v176_v48, 0.0  ;;  %v179_v5 = vmul.f32 %v4133_v31, %v4530_v1  ;;  %v178_v6 = vmul.f32 %v4132_v32, %v4530_v1  ;;  %vm3756_vm6 = vcmask 458112  }
  0x2e   :  { %v213_v43 = vmul.f32 %v4201_v20, %v4530_v1  ;;  %v403_v60 = vsel %vm216_vm0, %v214_v56, 0.0  ;;  %v180_v13 = vmul.f32 %v4136_v30, %v4530_v1  ;;  %vm3763_vm7 = vcmask 523712  }
  0x2f   :  { %281 = vadd.xlane.f32.xlu1 %v4639_v23  ;;  %v394_v23 = vsel %vm216_vm0, %v211_v40, 0.0  ;;  %v298_v29 = vsel %vm216_vm0, %v179_v5, 0.0  ;;  %v295_v12 = vsel %vm216_vm0, %v178_v6, 0.0  ;;  %vm3770_vm8 = vcmask 589312  }
  0x30   :  { %278 = vadd.xlane.f32.xlu0 %v4642_v24  ;;  %v391_v24 = vsel %vm216_vm0, %v210_v41, 0.0  ;;  %v400_v55 = vsel %vm216_vm0, %v213_v43, 0.0  ;;  %v301_v32 = vsel %vm216_vm0, %v180_v13, 0.0  ;;  %vm3777_vm9 = vcmask 654912  }
  0x31   :  { %vm3784_vm10 = vcmask 720512   ;;  %vm3791_vm11 = vcmask 786112   ;;  %vm3798_vm12 = vcmask 851712   ;;  %vm3805_vm13 = vcmask 917312  }
  0x32   :  { %vm3812_vm14 = vcmask 982912   ;;  %vm3819_vm15 = vcmask 1048512  }
  0x33   :  { %287 = vadd.xlane.f32.xlu1 %v4645_v25  ;;  %v4220_v25 = vld [vmem:[%s6741_s0 + $0x78] sm:$0xff]  }
  0x34   :  { %284 = vadd.xlane.f32.xlu0 %v4661_v37  ;;  %v181_v37 = vmul.f32 %v4137_v62, %v4530_v1  ;;  %v4141_v7 = vunpack.c.h.bf16 %v4220_v25  ;;  %v4140_v31 = vunpack.c.l.bf16 %v4220_v25 }
  0x36   :  { %v304_v17 = vsel %vm216_vm0, %v181_v37, 0.0  ;;  %v183_v21 = vmul.f32 %v4141_v7, %v4530_v1  ;;  %v182_v22 = vmul.f32 %v4140_v31, %v4530_v1  ;;  %v6746_v1 = vlaneseq }
  0x37   :  { %293 = vadd.xlane.f32.xlu1 %v292_v61 }
  0x38   :  { %290 = vadd.xlane.f32.xlu0 %v289_v63  ;;  %v310_v26 = vsel %vm216_vm0, %v183_v21, 0.0  ;;  %v307_v20 = vsel %vm216_vm0, %v182_v22, 0.0  ;;  %vm4058_vm0 = vcmask 1041409  }
  0x3b   :  { %299 = vadd.xlane.f32.xlu1 %v298_v29 }
  0x3c   :  { %296 = vadd.xlane.f32.xlu0 %v295_v12 }
  0x3f   :  { %305 = vadd.xlane.f32.xlu1 %v304_v17 }
  0x40   :  { %302 = vadd.xlane.f32.xlu0 %v301_v32 }
  0x43   :  { %311 = vadd.xlane.f32.xlu1 %v310_v26 }
  0x44   :  { %308 = vadd.xlane.f32.xlu0 %v307_v20 }
  0x47   :  { %317 = vadd.xlane.f32.xlu1 %v4667_v42  ;;  %v4876_v42 = vshrl.u32 %v6746_v1, 7 }
  0x48   :  { %314 = vadd.xlane.f32.xlu0 %v4679_v51 }
  0x49   :  { %6751 = vst [vmem:[#allocation2_spill] sm:$0xff] %v4876_v42  ;;  %v4879_v51 = vsub.s32 0, %v4876_v42 }
  0x4b   :  { %323 = vadd.xlane.f32.xlu1 %v4682_v52  ;;  %v4884_v52 = vld.sshfl [vmem:[%s6743_s1] sm:$0x33 pattern:$0x76325410] }
  0x4c   :  { %320 = vadd.xlane.f32.xlu0 %v4685_v53 }
  0x4f   :  { %329 = vadd.xlane.f32.xlu1 %v4694_v57 }
  0x50   :  { %326 = vadd.xlane.f32.xlu0 %v4697_v58  ;;  %v422_v58 = vrot.slane %v4884_v52, %v4879_v51 }
  0x53   :  { %335 = vadd.xlane.f32.xlu1 %v4700_v59  ;;  %v4497_v59 = vmov 0  }
  0x54   :  { %332 = vadd.xlane.f32.xlu0 %v4705_v3  ;;  %4240 = vset.pattern.permute.xlu1 %v4497_v59 }
  0x55   :  { %4239 = vset.pattern.permute.xlu0 %v4497_v59 }
  0x57   :  { %341 = vadd.xlane.f32.xlu1 %v4711_v8 }
  0x58   :  { %338 = vadd.xlane.f32.xlu0 %v4725_v27 }
  0x5b   :  { %347 = vadd.xlane.f32.xlu1 %v4728_v28 }
  0x5c   :  { %344 = vadd.xlane.f32.xlu0 %v4731_v14 }
  0x5f   :  { %353 = vadd.xlane.f32.xlu1 %v4740_v35 }
  0x60   :  { %350 = vadd.xlane.f32.xlu0 %v4743_v36 }
  0x63   :  { %359 = vadd.xlane.f32.xlu1 %v4746_v38 }
  0x64   :  { %356 = vadd.xlane.f32.xlu0 %v4753_v45 }
  0x67   :  { %365 = vadd.xlane.f32.xlu1 %v4759_v50 }
  0x68   :  { %362 = vadd.xlane.f32.xlu0 %v4771_v0 }
  0x6b   :  { %371 = vadd.xlane.f32.xlu1 %v4774_v2 }
  0x6c   :  { %368 = vadd.xlane.f32.xlu0 %v4777_v4 }
  0x6f   :  { %377 = vadd.xlane.f32.xlu1 %v4788_v9 }
  0x70   :  { %374 = vadd.xlane.f32.xlu0 %v4791_v10  ;;  %v4922_v10 = vcombine.high %v4884_v52, %v4884_v52 }
  0x72   :  { %v489_v15 = vrot.slane %v4922_v10, %v4879_v51 }
  0x73   :  { %383 = vadd.xlane.f32.xlu1 %v4794_v11 }
  0x74   :  { %380 = vadd.xlane.f32.xlu0 %v4799_v19 }
  0x77   :  { %389 = vadd.xlane.f32.xlu1 %v4802_v34 }
  0x78   :  { %386 = vadd.xlane.f32.xlu0 %v385_v54 }
  0x7b   :  { %395 = vadd.xlane.f32.xlu1 %v394_v23 }
  0x7c   :  { %392 = vadd.xlane.f32.xlu0 %v391_v24 }
  0x7f   :  { %401 = vadd.xlane.f32.xlu1 %v400_v55  ;;  %v4959_v55 = vsub.s32 1, %v4876_v42 }
  0x80   :  { %398 = vadd.xlane.f32.xlu0 %v397_v16 }
  0x81   :  { %v556_v56 = vrot.slane %v4884_v52, %v4959_v55  ;;  %v623_v21 = vrot.slane %v4922_v10, %v4959_v55 }
  0x83   :  { %407 = vadd.xlane.f32.xlu1 %v406_v18 }
  0x84   :  { %404 = vadd.xlane.f32.xlu0 %v403_v60 }
  0x90   :  { %v4886_v53 = vpop.xlane.xlu1 %224 }
  0x91   :  { %v4888_v57 = vpop.xlane.xlu0 %218 }
  0x94   :  { %v4892_v3 = vpop.xlane.xlu1 %227  ;;  %428 = vbcast.lane.b32.xlu1 %v422_v58, 264 }
  0x95   :  { %v4894_v8 = vpop.xlane.xlu0 %221 }
  0x98   :  { %v4896_v27 = vpop.xlane.xlu1 %233  ;;  %432 = vbcast.lane.b32.xlu1 %v422_v58, 272 }
  0x99   :  { %v4898_v28 = vpop.xlane.xlu0 %230 }
  0x9a   :  { %424 = vbcast.lane.b32.xlu0 %v422_v58, 256 }
  0x9c   :  { %v4900_v14 = vpop.xlane.xlu1 %239  ;;  %436 = vbcast.lane.b32.xlu1 %v422_v58, 280 }
  0x9d   :  { %v4902_v35 = vpop.xlane.xlu0 %236 }
  0x9e   :  { %440 = vbcast.lane.b32.xlu0 %v422_v58, 288 }
  0xa0   :  { %v4904_v36 = vpop.xlane.xlu1 %245  ;;  %444 = vbcast.lane.b32.xlu1 %v422_v58, 296 }
  0xa1   :  { %v4906_v38 = vpop.xlane.xlu0 %242 }
  0xa2   :  { %448 = vbcast.lane.b32.xlu0 %v422_v58, 304 }
  0xa4   :  { %v4908_v45 = vpop.xlane.xlu1 %251  ;;  %452 = vbcast.lane.b32.xlu1 %v422_v58, 312 }
  0xa5   :  { %v4910_v50 = vpop.xlane.xlu0 %248 }
  0xa6   :  { %456 = vbcast.lane.b32.xlu0 %v422_v58, 320 }
  0xa8   :  { %v4912_v0 = vpop.xlane.xlu1 %257  ;;  %460 = vbcast.lane.b32.xlu1 %v422_v58, 328 }
  0xa9   :  { %v4914_v2 = vpop.xlane.xlu0 %254 }
  0xaa   :  { %464 = vbcast.lane.b32.xlu0 %v422_v58, 336 }
  0xac   :  { %v4916_v4 = vpop.xlane.xlu1 %263  ;;  %468 = vbcast.lane.b32.xlu1 %v422_v58, 344 }
  0xad   :  { %v4918_v9 = vpop.xlane.xlu0 %260 }
  0xae   :  { %472 = vbcast.lane.b32.xlu0 %v422_v58, 352 }
  0xb0   :  { %v4924_v11 = vpop.xlane.xlu1 %269  ;;  %476 = vbcast.lane.b32.xlu1 %v422_v58, 360 }
  0xb1   :  { %v4926_v19 = vpop.xlane.xlu0 %266 }
  0xb2   :  { %480 = vbcast.lane.b32.xlu0 %v422_v58, 368 }
  0xb4   :  { %v4930_v33 = vpop.xlane.xlu1 %275  ;;  %484 = vbcast.lane.b32.xlu1 %v422_v58, 376 }
  0xb5   :  { %v4932_v34 = vpop.xlane.xlu0 %272 }
  0xb6   :  { %491 = vbcast.lane.b32.xlu0 %v489_v15, 256 }
  0xb8   :  { %v4934_v39 = vpop.xlane.xlu1 %281  ;;  %495 = vbcast.lane.b32.xlu1 %v489_v15, 264 }
  0xb9   :  { %6752 = vst [vmem:[#allocation3_spill] sm:$0xff] %v4934_v39  ;;  %v4936_v40 = vpop.xlane.xlu0 %278 }
  0xba   :  { %499 = vbcast.lane.b32.xlu0 %v489_v15, 272 }
  0xbc   :  { %v4938_v41 = vpop.xlane.xlu1 %287  ;;  %503 = vbcast.lane.b32.xlu1 %v489_v15, 280 }
  0xbd   :  { %6753 = vst [vmem:[#allocation4_spill] sm:$0xff] %v4938_v41  ;;  %v4940_v43 = vpop.xlane.xlu0 %284 }
  0xbe   :  { %507 = vbcast.lane.b32.xlu0 %v489_v15, 288 }
  0xc0   :  { %v4942_v44 = vpop.xlane.xlu1 %293  ;;  %511 = vbcast.lane.b32.xlu1 %v489_v15, 296 }
  0xc1   :  { %6754 = vst [vmem:[#allocation5_spill] sm:$0xff] %v4942_v44  ;;  %v4944_v46 = vpop.xlane.xlu0 %290 }
  0xc2   :  { %6755 = vst [vmem:[#allocation6_spill] sm:$0xff] %v4944_v46  ;;  %515 = vbcast.lane.b32.xlu0 %v489_v15, 304 }
  0xc4   :  { %v4946_v47 = vpop.xlane.xlu1 %299  ;;  %519 = vbcast.lane.b32.xlu1 %v489_v15, 312 }
  0xc5   :  { %6756 = vst [vmem:[#allocation7_spill] sm:$0xff] %v4946_v47  ;;  %v4948_v48 = vpop.xlane.xlu0 %296 }
  0xc6   :  { %6757 = vst [vmem:[#allocation8_spill] sm:$0xff] %v4948_v48  ;;  %523 = vbcast.lane.b32.xlu0 %v489_v15, 320 }
  0xc8   :  { %v4950_v49 = vpop.xlane.xlu1 %305  ;;  %527 = vbcast.lane.b32.xlu1 %v489_v15, 328 }
  0xc9   :  { %6758 = vst [vmem:[#allocation9_spill] sm:$0xff] %v4950_v49  ;;  %v4952_v54 = vpop.xlane.xlu0 %302 }
  0xca   :  { %6759 = vst [vmem:[#allocation10_spill] sm:$0xff] %v4952_v54  ;;  %531 = vbcast.lane.b32.xlu0 %v489_v15, 336 }
  0xcc   :  { %v4954_v23 = vpop.xlane.xlu1 %311  ;;  %535 = vbcast.lane.b32.xlu1 %v489_v15, 344 }
  0xcd   :  { %6760 = vst [vmem:[#allocation11_spill] sm:$0xff] %v4954_v23  ;;  %v4956_v24 = vpop.xlane.xlu0 %308 }
  0xce   :  { %539 = vbcast.lane.b32.xlu0 %v489_v15, 352 }
  0xd0   :  { %v4961_v16 = vpop.xlane.xlu1 %317  ;;  %543 = vbcast.lane.b32.xlu1 %v489_v15, 360 }
  0xd1   :  { %6761 = vst [vmem:[#allocation12_spill] sm:$0xff] %v4961_v16  ;;  %v4963_v18 = vpop.xlane.xlu0 %314 }
  0xd2   :  { %6762 = vst [vmem:[#allocation13_spill] sm:$0xff] %v4963_v18  ;;  %547 = vbcast.lane.b32.xlu0 %v489_v15, 368 }
  0xd4   :  { %v4967_v62 = vpop.xlane.xlu1 %323  ;;  %551 = vbcast.lane.b32.xlu1 %v489_v15, 376 }
  0xd5   :  { %6763 = vst [vmem:[#allocation14_spill] sm:$0xff] %v4967_v62  ;;  %v4969_v30 = vpop.xlane.xlu0 %320 }
  0xd6   :  { %6764 = vst [vmem:[#allocation15_spill] sm:$0xff] %v4969_v30  ;;  %558 = vbcast.lane.b32.xlu0 %v556_v56, 256 }
  0xd8   :  { %v4971_v60 = vpop.xlane.xlu1 %329  ;;  %562 = vbcast.lane.b32.xlu1 %v556_v56, 264 }
  0xd9   :  { %6765 = vst [vmem:[#allocation16_spill] sm:$0xff] %v4971_v60  ;;  %v4973_v61 = vpop.xlane.xlu0 %326 }
  0xda   :  { %6766 = vst [vmem:[#allocation17_spill] sm:$0xff] %v4973_v61  ;;  %566 = vbcast.lane.b32.xlu0 %v556_v56, 272 }
  0xdc   :  { %v4975_v63 = vpop.xlane.xlu1 %335  ;;  %570 = vbcast.lane.b32.xlu1 %v556_v56, 280 }
  0xdd   :  { %6767 = vst [vmem:[#allocation18_spill] sm:$0xff] %v4975_v63  ;;  %v4977_v5 = vpop.xlane.xlu0 %332 }
  0xde   :  { %6768 = vst [vmem:[#allocation19_spill] sm:$0xff] %v4977_v5  ;;  %574 = vbcast.lane.b32.xlu0 %v556_v56, 288 }
  0xe0   :  { %v4979_v6 = vpop.xlane.xlu1 %341  ;;  %578 = vbcast.lane.b32.xlu1 %v556_v56, 296 }
  0xe1   :  { %6769 = vst [vmem:[#allocation20_spill] sm:$0xff] %v4979_v6  ;;  %v4981_v25 = vpop.xlane.xlu0 %338 }
  0xe2   :  { %6770 = vst [vmem:[#allocation21_spill] sm:$0xff] %v4981_v25  ;;  %582 = vbcast.lane.b32.xlu0 %v556_v56, 304 }
  0xe4   :  { %v4983_v37 = vpop.xlane.xlu1 %347  ;;  %586 = vbcast.lane.b32.xlu1 %v556_v56, 312 }
  0xe5   :  { %6771 = vst [vmem:[#allocation22_spill] sm:$0xff] %v4983_v37  ;;  %v4985_v7 = vpop.xlane.xlu0 %344 }
  0xe6   :  { %6772 = vst [vmem:[#allocation23_spill] sm:$0xff] %v4985_v7  ;;  %590 = vbcast.lane.b32.xlu0 %v556_v56, 320 }
  0xe8   :  { %v4987_v29 = vpop.xlane.xlu1 %353  ;;  %594 = vbcast.lane.b32.xlu1 %v556_v56, 328 }
  0xe9   :  { %6773 = vst [vmem:[#allocation24_spill] sm:$0xff] %v4987_v29  ;;  %v4989_v12 = vpop.xlane.xlu0 %350 }
  0xea   :  { %6774 = vst [vmem:[#allocation25_spill] sm:$0xff] %v4989_v12  ;;  %598 = vbcast.lane.b32.xlu0 %v556_v56, 336 }
  0xec   :  { %v4991_v13 = vpop.xlane.xlu1 %359  ;;  %602 = vbcast.lane.b32.xlu1 %v556_v56, 344 }
  0xed   :  { %6775 = vst [vmem:[#allocation26_spill] sm:$0xff] %v4991_v13  ;;  %v4993_v31 = vpop.xlane.xlu0 %356 }
  0xee   :  { %606 = vbcast.lane.b32.xlu0 %v556_v56, 352 }
  0xf0   :  { %v4995_v17 = vpop.xlane.xlu1 %365  ;;  %610 = vbcast.lane.b32.xlu1 %v556_v56, 360 }
  0xf1   :  { %6776 = vst [vmem:[#allocation27_spill] sm:$0xff] %v4995_v17  ;;  %v4997_v32 = vpop.xlane.xlu0 %362 }
  0xf2   :  { %6777 = vst [vmem:[#allocation28_spill] sm:$0xff] %v4997_v32  ;;  %614 = vbcast.lane.b32.xlu0 %v556_v56, 368 }
  0xf4   :  { %v5001_v22 = vpop.xlane.xlu1 %371  ;;  %618 = vbcast.lane.b32.xlu1 %v556_v56, 376 }
  0xf5   :  { %6778 = vst [vmem:[#allocation29_spill] sm:$0xff] %v5001_v22  ;;  %v5003_v26 = vpop.xlane.xlu0 %368 }
  0xf6   :  { %6779 = vst [vmem:[#allocation30_spill] sm:$0xff] %v5003_v26  ;;  %625 = vbcast.lane.b32.xlu0 %v623_v21, 256 }
  0xf8   :  { %v5005_v20 = vpop.xlane.xlu1 %377  ;;  %629 = vbcast.lane.b32.xlu1 %v623_v21, 264 }
  0xf9   :  { %6780 = vst [vmem:[#allocation31_spill] sm:$0xff] %v5005_v20  ;;  %v5007_v52 = vpop.xlane.xlu0 %374 }
  0xfa   :  { %6781 = vst [vmem:[#allocation32_spill] sm:$0xff] %v5007_v52  ;;  %633 = vbcast.lane.b32.xlu0 %v623_v21, 272 }
  0xfc   :  { %v5009_v58 = vpop.xlane.xlu1 %383  ;;  %637 = vbcast.lane.b32.xlu1 %v623_v21, 280 }
  0xfd   :  { %6782 = vst [vmem:[#allocation33_spill] sm:$0xff] %v5009_v58  ;;  %v5011_v59 = vpop.xlane.xlu0 %380 }
  0xfe   :  { %6783 = vst [vmem:[#allocation34_spill] sm:$0xff] %v5011_v59  ;;  %641 = vbcast.lane.b32.xlu0 %v623_v21, 288 }
 0x100   :  { %v5013_v15 = vpop.xlane.xlu1 %389  ;;  %645 = vbcast.lane.b32.xlu1 %v623_v21, 296 }
 0x101   :  { %6784 = vst [vmem:[#allocation35_spill] sm:$0xff] %v5013_v15  ;;  %v5015_v10 = vpop.xlane.xlu0 %386 }
 0x102   :  { %6785 = vst [vmem:[#allocation36_spill] sm:$0xff] %v5015_v10  ;;  %649 = vbcast.lane.b32.xlu0 %v623_v21, 304 }
 0x104   :  { %v5017_v56 = vpop.xlane.xlu1 %395  ;;  %653 = vbcast.lane.b32.xlu1 %v623_v21, 312 }
 0x105   :  { %6786 = vst [vmem:[#allocation37_spill] sm:$0xff] %v5017_v56  ;;  %v5019_v1 = vpop.xlane.xlu0 %392 }
 0x106   :  { %6787 = vst [vmem:[#allocation38_spill] sm:$0xff] %v5019_v1  ;;  %657 = vbcast.lane.b32.xlu0 %v623_v21, 320 }
 0x108   :  { %v5021_v20 = vpop.xlane.xlu1 %401  ;;  %661 = vbcast.lane.b32.xlu1 %v623_v21, 328 }
 0x109   :  { %6788 = vst [vmem:[#allocation39_spill] sm:$0xff] %v5021_v20  ;;  %v5023_v22 = vpop.xlane.xlu0 %398  ;;  %v815_v20 = vld [vmem:[%s6744_s3] sm:$0x3] }
 0x10a   :  { %665 = vbcast.lane.b32.xlu0 %v623_v21, 336 }
 0x10c   :  { %v5025_v58 = vpop.xlane.xlu1 %407  ;;  %669 = vbcast.lane.b32.xlu1 %v623_v21, 344 }
 0x10d   :  { %6789 = vst [vmem:[#allocation40_spill] sm:$0xff] %v5025_v58  ;;  %v5027_v59 = vpop.xlane.xlu0 %404 }
 0x10e   :  { %673 = vbcast.lane.b32.xlu0 %v623_v21, 352 }
 0x110   :  { %v5029_v15 = vpop.permute.xlu1 %428  ;;  %677 = vbcast.lane.b32.xlu1 %v623_v21, 360 }
 0x111   :  { %v5031_v10 = vpop.permute.xlu0 %424 }
 0x112   :  { %681 = vbcast.lane.b32.xlu0 %v623_v21, 368 }
 0x114   :  { %v5036_v56 = vpop.permute.xlu1 %432  ;;  %685 = vbcast.lane.b32.xlu1 %v623_v21, 376 }
 0x115   :  { %v5038_v1 = vpop.permute.xlu0 %440 }
 0x116   :  { %818 = vperm.xlu0 %4239, %v815_v20  }
 0x118   :  { %v5040_v58 = vpop.permute.xlu1 %436 }
 0x119   :  { %v5042_v52 = vpop.permute.xlu0 %448 }
 0x11c   :  { %v5044_v17 = vpop.permute.xlu1 %444 }
 0x11d   :  { %v5046_v26 = vpop.permute.xlu0 %456 }
 0x120   :  { %v5048_v13 = vpop.permute.xlu1 %452 }
 0x121   :  { %v5050_v32 = vpop.permute.xlu0 %464 }
 0x124   :  { %v5052_v29 = vpop.permute.xlu1 %460 }
 0x125   :  { %v5054_v37 = vpop.permute.xlu0 %472 }
 0x128   :  { %v5056_v12 = vpop.permute.xlu1 %468 }
 0x129   :  { %v5058_v21 = vpop.permute.xlu0 %480 }
 0x12c   :  { %v5060_v20 = vpop.permute.xlu1 %476 }
 0x12d   :  { %v5062_v6 = vpop.permute.xlu0 %491 }
 0x130   :  { %v5064_v7 = vpop.permute.xlu1 %484 }
 0x131   :  { %v5066_v63 = vpop.permute.xlu0 %499 }
 0x134   :  { %v5068_v25 = vpop.permute.xlu1 %495 }
 0x135   :  { %v5070_v60 = vpop.permute.xlu0 %507 }
 0x138   :  { %v5072_v5 = vpop.permute.xlu1 %503 }
 0x139   :  { %v5074_v62 = vpop.permute.xlu0 %515 }
 0x13c   :  { %v5076_v61 = vpop.permute.xlu1 %511 }
 0x13d   :  { %6790 = vst [vmem:[#allocation41_spill] sm:$0xff] %v5076_v61  ;;  %v5078_v16 = vpop.permute.xlu0 %523 }
 0x13e   :  { %6791 = vst [vmem:[#allocation42_spill] sm:$0xff] %v5078_v16 }
 0x140   :  { %v5080_v30 = vpop.permute.xlu1 %519 }
 0x141   :  { %6792 = vst [vmem:[#allocation43_spill] sm:$0xff] %v5080_v30  ;;  %v5082_v23 = vpop.permute.xlu0 %531 }
 0x142   :  { %6793 = vst [vmem:[#allocation44_spill] sm:$0xff] %v5082_v23 }
 0x144   :  { %v5084_v18 = vpop.permute.xlu1 %527 }
 0x145   :  { %6794 = vst [vmem:[#allocation45_spill] sm:$0xff] %v5084_v18  ;;  %v5086_v42 = vpop.permute.xlu0 %539 }
 0x146   :  { %6795 = vst [vmem:[#allocation46_spill] sm:$0xff] %v5086_v42 }
 0x148   :  { %v5088_v49 = vpop.permute.xlu1 %535 }
 0x149   :  { %6796 = vst [vmem:[#allocation47_spill] sm:$0xff] %v5088_v49  ;;  %v548_v47 = vpop.permute.xlu0 %547 }
 0x14c   :  { %v5090_v54 = vpop.permute.xlu1 %543 }
 0x14d   :  { %6797 = vst [vmem:[#allocation48_spill] sm:$0xff] %v5090_v54  ;;  %v5092_v44 = vpop.permute.xlu0 %558 }
 0x14e   :  { %6798 = vst [vmem:[#allocation49_spill] sm:$0xff] %v5092_v44 }
 0x150   :  { %v5094_v48 = vpop.permute.xlu1 %551 }
 0x151   :  { %6799 = vst [vmem:[#allocation50_spill] sm:$0xff] %v5094_v48  ;;  %v5096_v41 = vpop.permute.xlu0 %566 }
 0x152   :  { %6800 = vst [vmem:[#allocation51_spill] sm:$0xff] %v5096_v41 }
 0x154   :  { %v5098_v16 = vpop.permute.xlu1 %562 }
 0x155   :  { %6801 = vst [vmem:[#allocation52_spill] sm:$0xff] %v5098_v16  ;;  %v5100_v30 = vpop.permute.xlu0 %574 }
 0x156   :  { %6802 = vst [vmem:[#allocation53_spill] sm:$0xff] %v5100_v30 }
 0x158   :  { %v5102_v23 = vpop.permute.xlu1 %570 }
 0x159   :  { %6803 = vst [vmem:[#allocation54_spill] sm:$0xff] %v5102_v23  ;;  %v5104_v18 = vpop.permute.xlu0 %582 }
 0x15a   :  { %6804 = vst [vmem:[#allocation55_spill] sm:$0xff] %v5104_v18 }
 0x15c   :  { %v5106_v42 = vpop.permute.xlu1 %578 }
 0x15d   :  { %6805 = vst [vmem:[#allocation56_spill] sm:$0xff] %v5106_v42  ;;  %v5108_v49 = vpop.permute.xlu0 %590 }
 0x15e   :  { %6806 = vst [vmem:[#allocation57_spill] sm:$0xff] %v5108_v49 }
 0x160   :  { %v5112_v54 = vpop.permute.xlu1 %586 }
 0x161   :  { %v5110_v46 = vpop.permute.xlu0 %598  ;;  %6808 = vst [vmem:[#allocation59_spill] sm:$0xff] %v5112_v54 }
 0x162   :  { %6807 = vst [vmem:[#allocation58_spill] sm:$0xff] %v5110_v46 }
 0x164   :  { %v5116_v48 = vpop.permute.xlu1 %594 }
 0x165   :  { %v5114_v44 = vpop.permute.xlu0 %606  ;;  %6810 = vst [vmem:[#allocation61_spill] sm:$0xff] %v5116_v48 }
 0x166   :  { %6809 = vst [vmem:[#allocation60_spill] sm:$0xff] %v5114_v44 }
 0x168   :  { %v5120_v30 = vpop.permute.xlu1 %602 }
 0x169   :  { %v615_v41 = vpop.permute.xlu0 %614  ;;  %6812 = vst [vmem:[#allocation63_spill] sm:$0xff] %v5120_v30 }
 0x16c   :  { %v5124_v18 = vpop.permute.xlu1 %610 }
 0x16d   :  { %v5118_v16 = vpop.permute.xlu0 %625  ;;  %6814 = vst [vmem:[#allocation65_spill] sm:$0xff] %v5124_v18 }
 0x16e   :  { %6811 = vst [vmem:[#allocation62_spill] sm:$0xff] %v5118_v16 }
 0x170   :  { %v5130_v46 = vpop.permute.xlu1 %618 }
 0x171   :  { %v5122_v23 = vpop.permute.xlu0 %633 }
 0x172   :  { %6813 = vst [vmem:[#allocation64_spill] sm:$0xff] %v5122_v23 }
 0x174   :  { %v5134_v44 = vpop.permute.xlu1 %629 }
 0x175   :  { %v5126_v42 = vpop.permute.xlu0 %641  ;;  %6818 = vst [vmem:[#allocation69_spill] sm:$0xff] %v5134_v44  ;;  %v5152_v44 = vadd.f32 %v5029_v15, %v4894_v8  ;;  %v5174_v8 = vadd.f32 %v5040_v58, %v4892_v3  ;;  %v797_v3 = vadd.f32 %v615_v41, %v4993_v31  ;;  %v5211_v41 = vadd.f32 %v5058_v21, %v4918_v9  ;;  %v6833_v31 = vld [vmem:[#allocation45_spill] sm:$0xff]  ;;  %v6839_v58 = vld [vmem:[#allocation47_spill] sm:$0xff] }
 0x176   :  { %6815 = vst [vmem:[#allocation66_spill] sm:$0xff] %v5126_v42  ;;  %v5234_v9 = vadd.f32 %v5068_v25, %v4924_v11  ;;  %v6825_v11 = vld [vmem:[#allocation41_spill] sm:$0xff] }
 0x177   :  { %v6840_v15 = vld [vmem:[#allocation9_spill] sm:$0xff] }
 0x178   :  { %v5138_v61 = vpop.permute.xlu1 %637 }
 0x179   :  { %v5128_v49 = vpop.permute.xlu0 %649 }
 0x17a   :  { %6816 = vst [vmem:[#allocation67_spill] sm:$0xff] %v5128_v49 }
 0x17c   :  { %v5140_v30 = vpop.permute.xlu1 %645 }
 0x17d   :  { %v5132_v54 = vpop.permute.xlu0 %657  ;;  %6820 = vst [vmem:[#allocation71_spill] sm:$0xff] %v5140_v30  ;;  %v5160_v30 = vadd.f32 %v5036_v56, %v4886_v53  ;;  %v4498_v53 = vmov 1983009808  }
 0x17e   :  { %6817 = vst [vmem:[#allocation68_spill] sm:$0xff] %v5132_v54  ;;  %v781_v54 = vadd.f32 %v548_v47, %v4956_v24  ;;  %v5170_v47 = vadd.f32 %v5038_v1, %v4898_v28  ;;  %v1344_v24 = vunpack.c.l.s4 %v4498_v53  ;;  %v5190_v1 = vadd.f32 %v5048_v13, %v4900_v14 }
 0x17f   :  { %v5195_v28 = vadd.f32 %v5050_v32, %v4910_v50  ;;  %v5215_v50 = vadd.f32 %v5060_v20, %v4912_v0  ;;  %v6836_v32 = vld [vmem:[#allocation10_spill] sm:$0xff] }
 0x180   :  { %v5142_v39 = vpop.permute.xlu1 %653  ;;  %v1345_v0 = vunpack.c.0.s8 %v1344_v24  ;;  %v6842_v20 = vld [vmem:[#allocation2_spill] sm:$0xff]  ;;  %v6844_v24 = vld [vmem:[#allocation13_spill] sm:$0xff] }
 0x181   :  { %v5136_v48 = vpop.permute.xlu0 %665  ;;  %6821 = vst [vmem:[#allocation72_spill] sm:$0xff] %v5142_v39 }
 0x182   :  { %6819 = vst [vmem:[#allocation70_spill] sm:$0xff] %v5136_v48  ;;  %v5156_v48 = vadd.f32 %v5031_v10, %v4888_v57  ;;  %v5178_v57 = vadd.f32 %v5042_v52, %v4902_v35  ;;  %v5199_v35 = vadd.f32 %v5052_v29, %v4904_v36  ;;  %v5219_v36 = vadd.f32 %v5062_v6, %v4926_v19  ;;  %v6827_v29 = vld [vmem:[#allocation42_spill] sm:$0xff]  ;;  %v6838_v52 = vld [vmem:[#allocation7_spill] sm:$0xff]  ;;  %v6841_v10 = vld [vmem:[#allocation48_spill] sm:$0xff] }
 0x183   :  { %v5238_v19 = vadd.f32 %v5070_v60, %v4936_v40  ;;  %v5242_v6 = vadd.f32 %v5072_v5, %v4930_v33  ;;  %v6828_v60 = vld [vmem:[#allocation4_spill] sm:$0xff]  ;;  %v5286_v56 = vadd.f32 %v6841_v10, %v6840_v15  ;;  %v5289_v53 = vsub.s32 %v1345_v0, %v6842_v20  ;;  %v6857_v15 = vld [vmem:[#allocation55_spill] sm:$0xff]  ;;  %v6865_v20 = vld [vmem:[#allocation58_spill] sm:$0xff] }
 0x184   :  { %v5147_v49 = vpop.permute.xlu1 %661  ;;  %v6830_v5 = vld [vmem:[#allocation8_spill] sm:$0xff] }
 0x185   :  { %v674_v16 = vpop.permute.xlu0 %673 }
 0x188   :  { %v670_v14 = vpop.permute.xlu1 %669 }
 0x189   :  { %v682_v23 = vpop.permute.xlu0 %681 }
 0x18c   :  { %v678_v21 = vpop.permute.xlu1 %677 }
 0x191   :  { %v819_v18 = vpop.permute.xlu0 %818 }
 0x192   :  { %v5145_v42 = vrot.slane %v819_v18, %v4879_v51  ;;  %v5163_v39 = vrot.slane %v819_v18, %v4959_v55  ;;  %v5182_v55 = vadd.f32 %v5044_v17, %v4896_v27  ;;  %v5203_v27 = vadd.f32 %v5054_v37, %v4914_v2 }
 0x193   :  { %v5230_v18 = vadd.f32 %v5066_v63, %v4932_v34  ;;  %v813_v37 = vadd.f32 %v682_v23, %v5027_v59  ;;  %v5248_v34 = vadd.f32 %v5074_v62, %v4940_v43  ;;  %v6824_v63 = vld [vmem:[#allocation3_spill] sm:$0xff]  ;;  %v6832_v23 = vld [vmem:[#allocation5_spill] sm:$0xff]  ;;  %v5282_v59 = vadd.f32 %v6839_v58, %v6838_v52 }
 0x194   :  { %v5166_v51 = vadd.f32 %v5145_v42, %v781_v54  ;;  %v5186_v54 = vadd.f32 %v5046_v26, %v4906_v38  ;;  %v5207_v38 = vadd.f32 %v5056_v12, %v4908_v45  ;;  %v5222_v2 = vadd.f32 %v5163_v39, %v797_v3  ;;  %v6829_v12 = vld [vmem:[#allocation43_spill] sm:$0xff]  ;;  %v6845_v3 = vld [vmem:[#allocation49_spill] sm:$0xff] }
 0x195   :  { %v5226_v45 = vadd.f32 %v5064_v7, %v4916_v4  ;;  %v811_v4 = vadd.f32 %v674_v16, %v5023_v22  ;;  %v5252_v25 = vadd.f32 %v6825_v11, %v6824_v63  ;;  %v6826_v7 = vld [vmem:[#allocation6_spill] sm:$0xff]  ;;  %v5260_v33 = vadd.f32 %v6829_v12, %v6828_v60  ;;  %v6831_v16 = vld [vmem:[#allocation44_spill] sm:$0xff]  ;;  %v6856_v58 = vld [vmem:[#allocation19_spill] sm:$0xff] }
 0x196   :  { %6822 = vst [vmem:[#allocation73_spill] sm:$0xff] %v5166_v51  ;;  %6823 = vst [vmem:[#allocation74_spill] sm:$0xff] %v5222_v2  ;;  %v5256_v40 = vadd.f32 %v6827_v29, %v6826_v7  ;;  %v5264_v13 = vadd.f32 %v6831_v16, %v6830_v5  ;;  %v5268_v43 = vadd.f32 %v6833_v31, %v6832_v23  ;;  %v6837_v22 = vld [vmem:[#allocation46_spill] sm:$0xff]  ;;  %v6848_v7 = vld [vmem:[#allocation15_spill] sm:$0xff] }
 0x197   :  { %v5271_v62 = vadd.f32 %v5163_v39, %v811_v4  ;;  %v5274_v17 = vadd.f32 %v5163_v39, %v813_v37  ;;  %v5278_v26 = vadd.f32 %v6837_v22, %v6836_v32  ;;  %6843 = vst [vmem:[#allocation6_spill] sm:$0xff] %v5289_v53  ;;  %v5293_v4 = vadd.f32 %v6845_v3, %v6844_v24  ;;  %v6846_v37 = vld [vmem:[#allocation11_spill] sm:$0xff]  ;;  %v6847_v63 = vld [vmem:[#allocation50_spill] sm:$0xff]  ;;  %v6850_v12 = vld [vmem:[#allocation12_spill] sm:$0xff] }
 0x198   :  { %v5297_v11 = vadd.f32 %v6847_v63, %v6846_v37  ;;  %v6849_v29 = vld [vmem:[#allocation51_spill] sm:$0xff]  ;;  %v6851_v5 = vld [vmem:[#allocation52_spill] sm:$0xff]  ;;  %v6852_v23 = vld [vmem:[#allocation17_spill] sm:$0xff]  ;;  %v5317_v10 = vadd.f32 %v6857_v15, %v6856_v58 }
 0x199   :  { %6834 = vst [vmem:[#allocation3_spill] sm:$0xff] %v5271_v62  ;;  %6835 = vst [vmem:[#allocation41_spill] sm:$0xff] %v5274_v17  ;;  %v5301_v60 = vadd.f32 %v6849_v29, %v6848_v7  ;;  %v5305_v16 = vadd.f32 %v6851_v5, %v6850_v12  ;;  %v6853_v31 = vld [vmem:[#allocation53_spill] sm:$0xff]  ;;  %v6854_v32 = vld [vmem:[#allocation14_spill] sm:$0xff] }
 0x19a   :  { %v5309_v0 = vadd.f32 %v6853_v31, %v6852_v23  ;;  %v6855_v22 = vld [vmem:[#allocation54_spill] sm:$0xff]  ;;  %v6858_v24 = vld [vmem:[#allocation16_spill] sm:$0xff]  ;;  %v6860_v63 = vld [vmem:[#allocation21_spill] sm:$0xff] }
 0x19b   :  { %v5313_v52 = vadd.f32 %v6855_v22, %v6854_v32  ;;  %v6859_v3 = vld [vmem:[#allocation56_spill] sm:$0xff]  ;;  %v6861_v7 = vld [vmem:[#allocation57_spill] sm:$0xff]  ;;  %v6862_v12 = vld [vmem:[#allocation18_spill] sm:$0xff] }
 0x19c   :  { %v5321_v37 = vadd.f32 %v6859_v3, %v6858_v24  ;;  %v5325_v29 = vadd.f32 %v6861_v7, %v6860_v63  ;;  %v6863_v5 = vld [vmem:[#allocation59_spill] sm:$0xff]  ;;  %v6867_v22 = vld [vmem:[#allocation20_spill] sm:$0xff]  ;;  %v6868_v17 = vld [vmem:[#allocation61_spill] sm:$0xff] }
 0x19d   :  { %v5329_v23 = vadd.f32 %v6863_v5, %v6862_v12  ;;  %v6864_v31 = vld [vmem:[#allocation23_spill] sm:$0xff]  ;;  %v5337_v58 = vadd.f32 %v6868_v17, %v6867_v22  ;;  %v6869_v15 = vld [vmem:[#allocation25_spill] sm:$0xff]  ;;  %v6870_v62 = vld [vmem:[#allocation60_spill] sm:$0xff] }
 0x19e   :  { %v5333_v32 = vadd.f32 %v6865_v20, %v6864_v31  ;;  %v5341_v24 = vadd.f32 %v6870_v62, %v6869_v15  ;;  %v6872_v3 = vld [vmem:[#allocation22_spill] sm:$0xff]  ;;  %v6873_v2 = vld [vmem:[#allocation63_spill] sm:$0xff]  ;;  %v6875_v7 = vld [vmem:[#allocation24_spill] sm:$0xff] }
 0x19f   :  { %v5345_v63 = vadd.f32 %v6873_v2, %v6872_v3  ;;  %v6876_v53 = vld [vmem:[#allocation65_spill] sm:$0xff]  ;;  %v6877_v5 = vld [vmem:[#allocation28_spill] sm:$0xff]  ;;  %v6878_v51 = vld [vmem:[#allocation62_spill] sm:$0xff] }
 0x1a0   :  { %6866 = vst [vmem:[#allocation42_spill] sm:$0xff] %v5333_v32  ;;  %6871 = vst [vmem:[#allocation4_spill] sm:$0xff] %v5341_v24  ;;  %v5349_v12 = vadd.f32 %v6876_v53, %v6875_v7  ;;  %v5353_v20 = vadd.f32 %v6878_v51, %v6877_v5  ;;  %v6880_v31 = vld [vmem:[#allocation26_spill] sm:$0xff]  ;;  %v6883_v32 = vld [vmem:[#allocation64_spill] sm:$0xff] }
 0x1a1   :  { %6874 = vst [vmem:[#allocation43_spill] sm:$0xff] %v5345_v63  ;;  %v5357_v17 = vadd.f32 %v5130_v46, %v6880_v31  ;;  %v6882_v22 = vld [vmem:[#allocation30_spill] sm:$0xff]  ;;  %v6885_v15 = vld [vmem:[#allocation27_spill] sm:$0xff]  ;;  %v6886_v24 = vld [vmem:[#allocation69_spill] sm:$0xff] }
 0x1a2   :  { %6879 = vst [vmem:[#allocation8_spill] sm:$0xff] %v5353_v20  ;;  %v5361_v62 = vadd.f32 %v6883_v32, %v6882_v22  ;;  %v5365_v2 = vadd.f32 %v6886_v24, %v6885_v15  ;;  %v6888_v3 = vld [vmem:[#allocation32_spill] sm:$0xff]  ;;  %v6889_v63 = vld [vmem:[#allocation66_spill] sm:$0xff]  ;;  %v6891_v7 = vld [vmem:[#allocation29_spill] sm:$0xff]  ;;  %v686_v15 = vpop.permute.xlu1 %685 }
 0x1a3   :  { %6881 = vst [vmem:[#allocation44_spill] sm:$0xff] %v5357_v17  ;;  %v5369_v53 = vadd.f32 %v6889_v63, %v6888_v3  ;;  %v5373_v51 = vadd.f32 %v5138_v61, %v6891_v7  ;;  %v6893_v5 = vld [vmem:[#allocation34_spill] sm:$0xff]  ;;  %v6894_v20 = vld [vmem:[#allocation67_spill] sm:$0xff]  ;;  %v6898_v22 = vld [vmem:[#allocation36_spill] sm:$0xff] }
 0x1a4   :  { %6884 = vst [vmem:[#allocation5_spill] sm:$0xff] %v5361_v62  ;;  %6887 = vst [vmem:[#allocation45_spill] sm:$0xff] %v5365_v2  ;;  %v5377_v46 = vadd.f32 %v6894_v20, %v6893_v5  ;;  %v6896_v31 = vld [vmem:[#allocation31_spill] sm:$0xff]  ;;  %v6899_v62 = vld [vmem:[#allocation68_spill] sm:$0xff] }
 0x1a5   :  { %6890 = vst [vmem:[#allocation10_spill] sm:$0xff] %v5369_v53  ;;  %6892 = vst [vmem:[#allocation46_spill] sm:$0xff] %v5373_v51  ;;  %v6897_v17 = vld [vmem:[#allocation71_spill] sm:$0xff]  ;;  %v5385_v24 = vadd.f32 %v6899_v62, %v6898_v22  ;;  %v6900_v2 = vld [vmem:[#allocation33_spill] sm:$0xff]  ;;  %v830_v62 = vadd.f32 %v5145_v42, %v5156_v48  ;;  %v836_v48 = vadd.f32 %v5145_v42, %v5178_v57 }
 0x1a6   :  { %6895 = vst [vmem:[#allocation7_spill] sm:$0xff] %v5377_v46  ;;  %v5381_v32 = vadd.f32 %v6897_v17, %v6896_v31  ;;  %v6901_v63 = vld [vmem:[#allocation72_spill] sm:$0xff]  ;;  %v6902_v53 = vld [vmem:[#allocation38_spill] sm:$0xff]  ;;  %v6904_v51 = vld [vmem:[#allocation35_spill] sm:$0xff]  ;;  %v5436_v57 = vadd.f32 %v5145_v42, %v5215_v50 }
 0x1a7   :  { %v5389_v3 = vadd.f32 %v6901_v63, %v6900_v2  ;;  %v6903_v61 = vld [vmem:[#allocation70_spill] sm:$0xff]  ;;  %v5397_v20 = vadd.f32 %v5147_v49, %v6904_v51  ;;  %v6905_v5 = vld [vmem:[#allocation37_spill] sm:$0xff]  ;;  %v6906_v31 = vld [vmem:[#allocation39_spill] sm:$0xff]  ;;  %v831_v2 = vadd.f32 %v5145_v42, %v5152_v44  ;;  %v833_v49 = vadd.f32 %v5145_v42, %v5174_v8 }
 0x1a8   :  { %v5393_v7 = vadd.f32 %v6903_v61, %v6902_v53  ;;  %v5400_v17 = vadd.f32 %v670_v14, %v6905_v5  ;;  %v5403_v46 = vadd.f32 %v678_v21, %v6906_v31  ;;  %v832_v53 = vadd.f32 %v5145_v42, %v5160_v30  ;;  %v6907_v22 = vld [vmem:[#allocation40_spill] sm:$0xff] }
 0x1a9   :  { %v5412_v63 = vadd.f32 %v686_v15, %v6907_v22  ;;  %v834_v14 = vadd.f32 %v5145_v42, %v5170_v47  ;;  %v835_v21 = vadd.f32 %v5145_v42, %v5182_v55  ;;  %v837_v44 = vadd.f32 %v5145_v42, %v5190_v1 }
 0x1aa   :  { %v838_v30 = vadd.f32 %v5145_v42, %v5186_v54  ;;  %v839_v51 = vadd.f32 %v5145_v42, %v5199_v35  ;;  %v840_v8 = vadd.f32 %v5145_v42, %v5195_v28  ;;  %v841_v47 = vadd.f32 %v5145_v42, %v5207_v38 }
 0x1ab   :  { %v842_v55 = vadd.f32 %v5145_v42, %v5203_v27  ;;  %v5440_v1 = vadd.f32 %v5145_v42, %v5211_v41  ;;  %v894_v54 = vsub.f32 0.0, %v830_v62  ;;  %v895_v15 = vsub.f32 0.0, %v831_v2 }
 0x1ac   :  { %v896_v35 = vsub.f32 0.0, %v832_v53  ;;  %v5444_v28 = vadd.f32 %v5145_v42, %v5226_v45  ;;  %v5448_v38 = vadd.f32 %v5145_v42, %v5219_v36  ;;  %v5452_v27 = vadd.f32 %v5145_v42, %v5234_v9 }
 0x1ad   :  { %v897_v50 = vsub.f32 0.0, %v833_v49  ;;  %v5456_v41 = vadd.f32 %v5145_v42, %v5230_v18  ;;  %v5460_v61 = vadd.f32 %v5145_v42, %v5242_v6  ;;  %v5464_v45 = vadd.f32 %v5145_v42, %v5238_v19 }
 0x1ae   :  { %v898_v5 = vsub.f32 0.0, %v834_v14  ;;  %v5468_v36 = vadd.f32 %v5145_v42, %v5252_v25  ;;  %v5472_v9 = vadd.f32 %v5145_v42, %v5248_v34  ;;  %v899_v31 = vsub.f32 0.0, %v835_v21 }
 0x1af   :  { %v900_v18 = vsub.f32 0.0, %v836_v48  ;;  %v5476_v62 = vadd.f32 %v5145_v42, %v5260_v33  ;;  %v962_v6 = vmul.f32 1.442695, %v896_v35  ;;  %v958_v2 = vmul.f32 1.442695, %v894_v54 }
 0x1b0   :  { %v960_v53 = vmul.f32 1.442695, %v895_v15  ;;  %v5480_v19 = vadd.f32 %v5145_v42, %v5256_v40  ;;  %v5484_v25 = vadd.f32 %v5145_v42, %v5268_v43  ;;  %v901_v22 = vsub.f32 0.0, %v837_v44 }
 0x1b1   :  { %v964_v34 = vmul.f32 1.442695, %v897_v50  ;;  %v5488_v49 = vadd.f32 %v5145_v42, %v5264_v13  ;;  %v902_v14 = vsub.f32 0.0, %v838_v30  ;;  %4241 = vpow2.f32 %v962_v6 }
 0x1b2   :  { %v966_v33 = vmul.f32 1.442695, %v898_v5  ;;  %v5492_v21 = vadd.f32 %v5145_v42, %v5282_v59  ;;  %v903_v48 = vsub.f32 0.0, %v839_v51  ;;  %v968_v40 = vmul.f32 1.442695, %v899_v31 }
 0x1b3   :  { %4243 = vpow2.f32 %v958_v2  ;;  %v5496_v43 = vadd.f32 %v5145_v42, %v5278_v26  ;;  %v904_v44 = vsub.f32 0.0, %v840_v8  ;;  %v970_v54 = vmul.f32 1.442695, %v900_v18 }
 0x1b4   :  { %4245 = vpow2.f32 %v960_v53  ;;  %v5500_v13 = vadd.f32 %v5145_v42, %v5286_v56  ;;  %v905_v30 = vsub.f32 0.0, %v841_v47  ;;  %v972_v15 = vmul.f32 1.442695, %v901_v22  ;;  %v6908_v53 = vld [vmem:[#allocation42_spill] sm:$0xff]  ;;  %v6909_v22 = vld [vmem:[#allocation43_spill] sm:$0xff] }
 0x1b5   :  { %4247 = vpow2.f32 %v964_v34  ;;  %v5504_v59 = vadd.f32 %v5145_v42, %v5297_v11  ;;  %v906_v51 = vsub.f32 0.0, %v842_v55  ;;  %v974_v35 = vmul.f32 1.442695, %v902_v14 }
 0x1b6   :  { %4249 = vpow2.f32 %v966_v33  ;;  %v5508_v26 = vadd.f32 %v5163_v39, %v5293_v4  ;;  %v907_v8 = vsub.f32 0.0, %v5436_v57  ;;  %v976_v50 = vmul.f32 1.442695, %v903_v48 }
 0x1b7   :  { %4251 = vpow2.f32 %v968_v40  ;;  %v5513_v56 = vadd.f32 %v5163_v39, %v5305_v16  ;;  %v908_v47 = vsub.f32 0.0, %v5440_v1  ;;  %v978_v5 = vmul.f32 1.442695, %v904_v44 }
 0x1b8   :  { %4253 = vpow2.f32 %v970_v54  ;;  %v5518_v42 = vadd.f32 %v5163_v39, %v5301_v60  ;;  %v909_v11 = vsub.f32 0.0, %v5444_v28  ;;  %v980_v4 = vmul.f32 1.442695, %v905_v30 }
 0x1b9   :  { %4255 = vpow2.f32 %v972_v15  ;;  %v5523_v55 = vadd.f32 %v5163_v39, %v5313_v52  ;;  %v5527_v16 = vadd.f32 %v5163_v39, %v5309_v0  ;;  %v982_v57 = vmul.f32 1.442695, %v906_v51 }
 0x1ba   :  { %4257 = vpow2.f32 %v974_v35  ;;  %v5531_v1 = vadd.f32 %v5163_v39, %v5321_v37  ;;  %v910_v60 = vsub.f32 0.0, %v5448_v38  ;;  %v984_v31 = vmul.f32 1.442695, %v907_v8  ;;  %v6911_v8 = vld [vmem:[#allocation44_spill] sm:$0xff] }
 0x1bb   :  { %4259 = vpow2.f32 %v976_v50  ;;  %v5536_v28 = vadd.f32 %v5163_v39, %v5317_v10  ;;  %v911_v52 = vsub.f32 0.0, %v5452_v27  ;;  %v986_v18 = vmul.f32 1.442695, %v908_v47  ;;  %v6912_v47 = vld [vmem:[#allocation8_spill] sm:$0xff] }
 0x1bc   :  { %4261 = vpow2.f32 %v978_v5  ;;  %v5541_v0 = vadd.f32 %v5163_v39, %v5329_v23  ;;  %v912_v6 = vsub.f32 0.0, %v5456_v41  ;;  %v988_v37 = vmul.f32 1.442695, %v909_v11 }
 0x1bd   :  { %4263 = vpow2.f32 %v980_v4  ;;  %v5546_v38 = vadd.f32 %v5163_v39, %v5325_v29  ;;  %v5550_v10 = vadd.f32 %v5163_v39, %v5337_v58  ;;  %v913_v27 = vsub.f32 0.0, %v5460_v61  ;;  %v6910_v61 = vld [vmem:[#allocation4_spill] sm:$0xff] }
 0x1be   :  { %4265 = vpow2.f32 %v982_v57  ;;  %v4242_v2 = vpop.eup %4241  ;;  %v5555_v23 = vadd.f32 %v5163_v39, %v6908_v53  ;;  %v5559_v41 = vadd.f32 %v5163_v39, %v6909_v22  ;;  %v990_v34 = vmul.f32 1.442695, %v910_v60  ;;  %v6915_v53 = vld [vmem:[#allocation46_spill] sm:$0xff] }
 0x1bf   :  { %4267 = vpow2.f32 %v984_v31  ;;  %v914_v14 = vsub.f32 0.0, %v5464_v45  ;;  %v1088_v33 = vadd.f32 1.0, %v4242_v2  ;;  %v992_v58 = vmul.f32 1.442695, %v911_v52 }
 0x1c0   :  { %v4244_v29 = vpop.eup %4243  ;;  %4269 = vpow2.f32 %v986_v18  ;;  %v5566_v40 = vadd.f32 %v5163_v39, %v6910_v61  ;;  %v915_v44 = vsub.f32 0.0, %v5468_v36  ;;  %v994_v54 = vmul.f32 1.442695, %v912_v6 }
 0x1c1   :  { %v5562_v48 = vpop.eup %4245  ;;  %4271 = vpow2.f32 %v988_v37  ;;  %v5573_v15 = vadd.f32 %v5163_v39, %v5349_v12  ;;  %v916_v45 = vsub.f32 0.0, %v5472_v9  ;;  %v996_v51 = vmul.f32 1.442695, %v913_v27  ;;  %v6913_v12 = vld [vmem:[#allocation45_spill] sm:$0xff] }
 0x1c2   :  { %v5569_v30 = vpop.eup %4247  ;;  %4273 = vrcp.f32 %v1088_v33  ;;  %v5580_v50 = vadd.f32 %v5163_v39, %v6911_v8  ;;  %v5584_v36 = vadd.f32 %v5163_v39, %v6912_v47  ;;  %v917_v5 = vsub.f32 0.0, %v5476_v62  ;;  %v6914_v62 = vld [vmem:[#allocation5_spill] sm:$0xff] }
 0x1c3   :  { %v5576_v35 = vpop.eup %4249  ;;  %4275 = vpow2.f32 %v990_v34  ;;  %v5591_v9 = vadd.f32 %v5163_v39, %v6913_v12  ;;  %v918_v4 = vsub.f32 0.0, %v5480_v19  ;;  %v998_v57 = vmul.f32 1.442695, %v914_v14  ;;  %v6916_v14 = vld [vmem:[#allocation10_spill] sm:$0xff]  ;;  %v6918_v47 = vld [vmem:[#allocation73_spill] sm:$0xff] }
 0x1c4   :  { %v5587_v11 = vpop.eup %4251  ;;  %4277 = vpow2.f32 %v992_v58  ;;  %v919_v31 = vsub.f32 0.0, %v5484_v25  ;;  %v1000_v52 = vmul.f32 1.442695, %v915_v44  ;;  %v1086_v18 = vadd.f32 1.0, %v4244_v29 }
 0x1c5   :  { %v5594_v60 = vpop.eup %4253  ;;  %4279 = vpow2.f32 %v994_v54  ;;  %v5601_v37 = vadd.f32 %v5163_v39, %v6914_v62  ;;  %v920_v27 = vsub.f32 0.0, %v5488_v49  ;;  %v1002_v2 = vmul.f32 1.442695, %v916_v45 }
 0x1c6   :  { %v5597_v6 = vpop.eup %4255  ;;  %4281 = vpow2.f32 %v996_v51  ;;  %v5608_v22 = vadd.f32 %v5163_v39, %v6915_v53  ;;  %v921_v25 = vsub.f32 0.0, %v5492_v21  ;;  %v1004_v34 = vmul.f32 1.442695, %v917_v5  ;;  %v6917_v51 = vld [vmem:[#allocation7_spill] sm:$0xff] }
 0x1c7   :  { %v5604_v19 = vpop.eup %4257  ;;  %4283 = vrcp.f32 %v1086_v18  ;;  %v5615_v33 = vadd.f32 %v5163_v39, %v6916_v14  ;;  %v922_v49 = vsub.f32 0.0, %v5496_v43  ;;  %v1006_v58 = vmul.f32 1.442695, %v918_v4 }
 0x1c8   :  { %v5611_v29 = vpop.eup %4259  ;;  %4285 = vpow2.f32 %v998_v57  ;;  %v5622_v44 = vadd.f32 %v5163_v39, %v5381_v32  ;;  %v923_v21 = vsub.f32 0.0, %v5500_v13  ;;  %v1008_v54 = vmul.f32 1.442695, %v919_v31 }
 0x1c9   :  { %v5618_v61 = vpop.eup %4261  ;;  %4287 = vpow2.f32 %v1000_v52  ;;  %v5629_v8 = vadd.f32 %v5163_v39, %v6917_v51  ;;  %v924_v43 = vsub.f32 0.0, %v6918_v47  ;;  %v1010_v5 = vmul.f32 1.442695, %v920_v27 }
 0x1ca   :  { %v5625_v45 = vpop.eup %4263  ;;  %4289 = vpow2.f32 %v1002_v2  ;;  %v925_v4 = vsub.f32 0.0, %v5504_v59  ;;  %v926_v32 = vsub.f32 0.0, %v5508_v26  ;;  %v1012_v57 = vmul.f32 1.442695, %v921_v25 }
 0x1cb   :  { %v5632_v12 = vpop.eup %4265  ;;  %4291 = vpow2.f32 %v1004_v34  ;;  %v927_v31 = vsub.f32 0.0, %v5513_v56  ;;  %v928_v52 = vsub.f32 0.0, %v5518_v42  ;;  %v1014_v18 = vmul.f32 1.442695, %v922_v49 }
 0x1cc   :  { %v5636_v13 = vpop.eup %4267  ;;  %4293 = vpow2.f32 %v1006_v58  ;;  %v929_v27 = vsub.f32 0.0, %v5523_v55  ;;  %v930_v2 = vsub.f32 0.0, %v5527_v16  ;;  %v1016_v53 = vmul.f32 1.442695, %v923_v21  ;;  %v6919_v58 = vld [vmem:[#allocation6_spill] sm:$0xff] }
 0x1cd   :  { %v5640_v62 = vpop.eup %4269  ;;  %4295 = vpow2.f32 %v1008_v54  ;;  %v931_v26 = vsub.f32 0.0, %v5531_v1  ;;  %v932_v25 = vsub.f32 0.0, %v5536_v28  ;;  %v1018_v34 = vmul.f32 1.442695, %v924_v43 }
 0x1ce   :  { %v5644_v59 = vpop.eup %4271  ;;  %4297 = vpow2.f32 %v1010_v5  ;;  %v933_v42 = vsub.f32 0.0, %v5541_v0  ;;  %v934_v14 = vsub.f32 0.0, %v5546_v38  ;;  %v1020_v49 = vmul.f32 1.442695, %v925_v4 }
 0x1cf   :  { %v4274_v56 = vpop.eup %4273  ;;  %4299 = vpow2.f32 %v1012_v57  ;;  %v1022_v54 = vmul.f32 1.442695, %v926_v32  ;;  %v935_v1 = vsub.f32 0.0, %v5550_v10  ;;  %v936_v28 = vsub.f32 0.0, %v5555_v23 }
 0x1d0   :  { %v5650_v55 = vpop.eup %4275  ;;  %v1376_v16 = vcombine.high %v4274_v56, %v4274_v56  ;;  %v1383_v21 = vrot.slane %v4274_v56, %v6919_v58  ;;  %4301 = vpow2.f32 %v1014_v18  ;;  %v1024_v47 = vmul.f32 1.442695, %v927_v31 }
 0x1d1   :  { %v5653_v51 = vpop.eup %4277  ;;  %4303 = vpow2.f32 %v1016_v53  ;;  %v1026_v5 = vmul.f32 1.442695, %v928_v52  ;;  %v937_v32 = vsub.f32 0.0, %v5559_v41  ;;  %v938_v57 = vsub.f32 0.0, %v5566_v40 }
 0x1d2   :  { %v5657_v0 = vpop.eup %4279  ;;  %v1390_v38 = vrot.slane %v1376_v16, %v6919_v58  ;;  %v1391_v43 = vcombine.high %v1383_v21, %v1383_v21  ;;  %4305 = vpow2.f32 %v1018_v34  ;;  %v1028_v18 = vmul.f32 1.442695, %v929_v27 }
 0x1d3   :  { %6920 = vst [vmem:[#allocation47_spill] sm:$0xff] %v5657_v0  ;;  %v5660_v4 = vpop.eup %4281  ;;  %4307 = vpow2.f32 %v1020_v49  ;;  %v1030_v31 = vmul.f32 1.442695, %v930_v2  ;;  %v1032_v0 = vmul.f32 1.442695, %v931_v26  ;;  %v939_v41 = vsub.f32 0.0, %v5573_v15 }
 0x1d4   :  { %6921 = vst [vmem:[#allocation9_spill] sm:$0xff] %v5660_v4  ;;  %v4284_v10 = vpop.eup %4283  ;;  %v1392_v56 = vcombine.high %v1390_v38, %v1390_v38  ;;  %v2464_v23 = vcombine.low %v1383_v21, %v1391_v43  ;;  %4309 = vpow2.f32 %v1022_v54  ;;  %v1034_v40 = vmul.f32 1.442695, %v932_v25 }
 0x1d5   :  { %v5664_v53 = vpop.eup %4285  ;;  %v1342_v16 = vcombine.high %v4284_v10, %v4284_v10  ;;  %v1349_v52 = vrot.slane %v4284_v10, %v6919_v58  ;;  %4311 = vpow2.f32 %v1024_v47  ;;  %v1036_v49 = vmul.f32 1.442695, %v933_v42  ;;  %v6923_v42 = vld [vmem:[#allocation74_spill] sm:$0xff] }
 0x1d6   :  { %v5667_v34 = vpop.eup %4287  ;;  %v2465_v4 = vcombine.low %v1390_v38, %v1392_v56  ;;  %4313 = vpow2.f32 %v1026_v5  ;;  %v2472_v26 = vrot.slane %v2464_v23, %v6919_v58  ;;  %v1038_v43 = vmul.f32 1.442695, %v934_v14 }
 0x1d7   :  { %v5670_v27 = vpop.eup %4289  ;;  %v1356_v2 = vrot.slane %v1342_v16, %v6919_v58  ;;  %v1357_v21 = vcombine.high %v1349_v52, %v1349_v52  ;;  %4315 = vpow2.f32 %v1028_v18  ;;  %v1040_v15 = vmul.f32 1.442695, %v935_v1 }
 0x1d8   :  { %v5673_v54 = vpop.eup %4291  ;;  %v2479_v47 = vrot.slane %v2465_v4, %v6919_v58  ;;  %4317 = vpow2.f32 %v1030_v31  ;;  %v940_v56 = vsub.f32 0.0, %v6923_v42  ;;  %v1042_v18 = vmul.f32 1.442695, %v936_v28 }
 0x1d9   :  { %6922 = vst [vmem:[#allocation48_spill] sm:$0xff] %v5673_v54  ;;  %v5677_v10 = vpop.eup %4293  ;;  %v1358_v25 = vcombine.high %v1356_v2, %v1356_v2  ;;  %v2430_v38 = vcombine.low %v1349_v52, %v1357_v21  ;;  %4319 = vpow2.f32 %v1032_v0  ;;  %v941_v23 = vsub.f32 0.0, %v5580_v50 }
 0x1da   :  { %v5679_v5 = vpop.eup %4295  ;;  %v2480_v16 = vcombine.low %v2472_v26, %v2479_v47  ;;  %4321 = vpow2.f32 %v1034_v40  ;;  %v1044_v4 = vmul.f32 1.442695, %v937_v32  ;;  %v942_v1 = vsub.f32 0.0, %v5584_v36 }
 0x1db   :  { %v5682_v54 = vpop.eup %4297  ;;  %v2431_v14 = vcombine.low %v1356_v2, %v1358_v25  ;;  %4323 = vpow2.f32 %v1036_v49  ;;  %v943_v0 = vsub.f32 0.0, %v5591_v9  ;;  %v1046_v52 = vmul.f32 1.442695, %v938_v57 }
 0x1dc   :  { %v5685_v31 = vpop.eup %4299  ;;  %3525 = vperm.xlu0 %4239, %v2480_v16   ;;  %4325 = vpow2.f32 %v1038_v43  ;;  %v1048_v28 = vmul.f32 1.442695, %v939_v41  ;;  %v2438_v40 = vrot.slane %v2430_v38, %v6919_v58  ;;  %v885_v32 = vadd.f32 %v5163_v39, %v5389_v3 }
 0x1dd   :  { %v5689_v21 = vpop.eup %4301  ;;  %v2445_v26 = vrot.slane %v2431_v14, %v6919_v58  ;;  %4327 = vpow2.f32 %v1040_v15  ;;  %v944_v36 = vsub.f32 0.0, %v5601_v37  ;;  %v1050_v49 = vmul.f32 1.442695, %v940_v56 }
 0x1de   :  { %v5693_v50 = vpop.eup %4303  ;;  %4329 = vpow2.f32 %v1042_v18  ;;  %v945_v57 = vsub.f32 0.0, %v5608_v22  ;;  %v1052_v2 = vmul.f32 1.442695, %v941_v23  ;;  %v886_v43 = vadd.f32 %v5163_v39, %v5385_v24 }
 0x1df   :  { %v5698_v9 = vpop.eup %4305  ;;  %v2446_v41 = vcombine.low %v2438_v40, %v2445_v26  ;;  %4331 = vpow2.f32 %v1044_v4  ;;  %v946_v15 = vsub.f32 0.0, %v5615_v33  ;;  %v1054_v25 = vmul.f32 1.442695, %v942_v1 }
 0x1e0   :  { %v5701_v47 = vpop.eup %4307  ;;  %4333 = vpow2.f32 %v1046_v52  ;;  %v887_v37 = vadd.f32 %v5163_v39, %v5397_v20  ;;  %v947_v38 = vsub.f32 0.0, %v5622_v44  ;;  %v1056_v22 = vmul.f32 1.442695, %v943_v0 }
 0x1e1   :  { %v5706_v3 = vpop.eup %4309  ;;  %3519 = vperm.xlu1 %4240, %v2446_v41   ;;  %4335 = vpow2.f32 %v1048_v28  ;;  %v888_v56 = vadd.f32 %v5163_v39, %v5393_v7  ;;  %v948_v24 = vsub.f32 0.0, %v5629_v8  ;;  %v1058_v33 = vmul.f32 1.442695, %v944_v36 }
 0x1e2   :  { %v5711_v42 = vpop.eup %4311  ;;  %4337 = vpow2.f32 %v1050_v49  ;;  %v889_v18 = vadd.f32 %v5163_v39, %v5400_v17  ;;  %v949_v20 = vsub.f32 0.0, %v885_v32  ;;  %v1060_v23 = vmul.f32 1.442695, %v945_v57  ;;  %v6924_v49 = vld [vmem:[#allocation3_spill] sm:$0xff] }
 0x1e3   :  { %v5716_v16 = vpop.eup %4313  ;;  %4339 = vpow2.f32 %v1052_v2  ;;  %v891_v4 = vadd.f32 %v5163_v39, %v5403_v46  ;;  %v950_v14 = vsub.f32 0.0, %v886_v43  ;;  %v1062_v1 = vmul.f32 1.442695, %v946_v15 }
 0x1e4   :  { %v5720_v44 = vpop.eup %4315  ;;  %4341 = vpow2.f32 %v1054_v25  ;;  %v893_v8 = vadd.f32 %v5163_v39, %v5412_v63  ;;  %v951_v0 = vsub.f32 0.0, %v887_v37  ;;  %v1064_v52 = vmul.f32 1.442695, %v947_v38  ;;  %v6925_v63 = vld [vmem:[#allocation41_spill] sm:$0xff] }
 0x1e5   :  { %v5724_v7 = vpop.eup %4317  ;;  %4343 = vpow2.f32 %v1056_v22  ;;  %v952_v28 = vsub.f32 0.0, %v888_v56  ;;  %v1066_v40 = vmul.f32 1.442695, %v948_v24  ;;  %v953_v32 = vsub.f32 0.0, %v889_v18 }
 0x1e6   :  { %v5728_v17 = vpop.eup %4319  ;;  %4345 = vpow2.f32 %v1058_v33  ;;  %v1068_v46 = vmul.f32 1.442695, %v949_v20  ;;  %v954_v57 = vsub.f32 0.0, %v6924_v49  ;;  %v955_v2 = vsub.f32 0.0, %v891_v4 }
 0x1e7   :  { %v5730_v26 = vpop.eup %4321  ;;  %4347 = vpow2.f32 %v1060_v23  ;;  %v1070_v41 = vmul.f32 1.442695, %v950_v14  ;;  %v956_v43 = vsub.f32 0.0, %v6925_v63  ;;  %v957_v15 = vsub.f32 0.0, %v893_v8 }
 0x1e8   :  { %v5732_v36 = vpop.eup %4323  ;;  %4349 = vpow2.f32 %v1062_v1  ;;  %v1072_v25 = vmul.f32 1.442695, %v951_v0  ;;  %v1074_v38 = vmul.f32 1.442695, %v952_v28  ;;  %v1076_v56 = vmul.f32 1.442695, %v953_v32 }
 0x1e9   :  { %v5735_v39 = vpop.eup %4325  ;;  %4351 = vpow2.f32 %v1064_v52  ;;  %v1078_v33 = vmul.f32 1.442695, %v954_v57  ;;  %v1080_v20 = vmul.f32 1.442695, %v955_v2  ;;  %v1082_v23 = vmul.f32 1.442695, %v956_v43 }
 0x1ea   :  { %v5738_v37 = vpop.eup %4327  ;;  %4353 = vpow2.f32 %v1066_v40  ;;  %v1084_v4 = vmul.f32 1.442695, %v957_v15  ;;  %v1090_v1 = vadd.f32 1.0, %v5576_v35  ;;  %v1087_v8 = vadd.f32 1.0, %v5562_v48 }
 0x1eb   :  { %v5740_v22 = vpop.eup %4329  ;;  %4355 = vpow2.f32 %v1068_v46  ;;  %v1089_v0 = vadd.f32 1.0, %v5569_v30  ;;  %v1091_v28 = vadd.f32 1.0, %v5587_v11  ;;  %v1092_v40 = vadd.f32 1.0, %v5594_v60 }
 0x1ec   :  { %v5742_v24 = vpop.eup %4331  ;;  %4357 = vpow2.f32 %v1070_v41  ;;  %v1093_v32 = vadd.f32 1.0, %v5597_v6  ;;  %v1094_v49 = vadd.f32 1.0, %v5604_v19  ;;  %v1095_v35 = vadd.f32 1.0, %v5611_v29 }
 0x1ed   :  { %v5744_v18 = vpop.eup %4333  ;;  %4359 = vpow2.f32 %v1072_v25  ;;  %v1096_v48 = vadd.f32 1.0, %v5618_v61  ;;  %v1097_v30 = vadd.f32 1.0, %v5625_v45  ;;  %v5763_v2 = vadd.f32 1.0, %v5632_v12  ;;  %v6926_v12 = vld [vmem:[#allocation47_spill] sm:$0xff] }
 0x1ee   :  { %v5746_v14 = vpop.eup %4335  ;;  %4361 = vpow2.f32 %v1074_v38  ;;  %v5766_v11 = vadd.f32 1.0, %v5636_v13  ;;  %v5769_v6 = vadd.f32 1.0, %v5640_v62  ;;  %v5772_v19 = vadd.f32 1.0, %v5644_v59  ;;  %v6927_v13 = vld [vmem:[#allocation9_spill] sm:$0xff] }
 0x1ef   :  { %v5751_v52 = vpop.eup %4337  ;;  %4363 = vpow2.f32 %v1076_v56  ;;  %v5775_v29 = vadd.f32 1.0, %v5650_v55  ;;  %v5778_v45 = vadd.f32 1.0, %v5653_v51  ;;  %v5781_v41 = vadd.f32 1.0, %v6926_v12  ;;  %v6928_v51 = vld [vmem:[#allocation48_spill] sm:$0xff] }
 0x1f0   :  { %v5756_v46 = vpop.eup %4339  ;;  %4365 = vpow2.f32 %v1078_v33  ;;  %v5784_v63 = vadd.f32 1.0, %v6927_v13  ;;  %v5787_v62 = vadd.f32 1.0, %v5664_v53  ;;  %v5790_v59 = vadd.f32 1.0, %v5667_v34 }
 0x1f1   :  { %v4342_v57 = vpop.eup %4341  ;;  %4367 = vpow2.f32 %v1080_v20  ;;  %v5793_v55 = vadd.f32 1.0, %v5670_v27  ;;  %v5796_v25 = vadd.f32 1.0, %v6928_v51  ;;  %v5799_v38 = vadd.f32 1.0, %v5677_v10 }
 0x1f2   :  { %v4344_v60 = vpop.eup %4343  ;;  %4369 = vpow2.f32 %v1082_v23  ;;  %v5802_v56 = vadd.f32 1.0, %v5679_v5  ;;  %v5805_v53 = vadd.f32 1.0, %v5682_v54  ;;  %v5808_v34 = vadd.f32 1.0, %v5685_v31 }
 0x1f3   :  { %v4346_v61 = vpop.eup %4345  ;;  %4371 = vpow2.f32 %v1084_v4  ;;  %v5811_v27 = vadd.f32 1.0, %v5689_v21  ;;  %v5814_v23 = vadd.f32 1.0, %v5693_v50  ;;  %v5817_v10 = vadd.f32 1.0, %v5698_v9 }
 0x1f4   :  { %v4348_v43 = vpop.eup %4347  ;;  %4373 = vrcp.f32 %v1090_v1  ;;  %v5820_v5 = vadd.f32 1.0, %v5701_v47  ;;  %v5823_v4 = vadd.f32 1.0, %v5706_v3  ;;  %v5826_v31 = vadd.f32 1.0, %v5711_v42 }
 0x1f5   :  { %v4350_v15 = vpop.eup %4349  ;;  %4375 = vrcp.f32 %v1087_v8  ;;  %v5829_v21 = vadd.f32 1.0, %v5716_v16  ;;  %v5832_v1 = vadd.f32 1.0, %v5720_v44  ;;  %v5835_v9 = vadd.f32 1.0, %v5724_v7 }
 0x1f6   :  { %v4352_v33 = vpop.eup %4351  ;;  %4377 = vrcp.f32 %v1089_v0  ;;  %v5838_v47 = vadd.f32 1.0, %v5728_v17  ;;  %v5841_v8 = vadd.f32 1.0, %v5730_v26  ;;  %v5844_v42 = vadd.f32 1.0, %v5732_v36 }
 0x1f7   :  { %v4354_v20 = vpop.eup %4353  ;;  %4379 = vrcp.f32 %v1091_v28  ;;  %v5847_v16 = vadd.f32 1.0, %v5735_v39  ;;  %v5850_v0 = vadd.f32 1.0, %v5738_v37  ;;  %v5853_v7 = vadd.f32 1.0, %v5740_v22 }
 0x1f8   :  { %v4356_v54 = vpop.eup %4355  ;;  %4381 = vrcp.f32 %v1092_v40  ;;  %v5856_v17 = vadd.f32 1.0, %v5742_v24  ;;  %v5859_v28 = vadd.f32 1.0, %v5744_v18  ;;  %v5862_v36 = vadd.f32 1.0, %v5746_v14 }
 0x1f9   :  { %v4358_v50 = vpop.eup %4357  ;;  %4383 = vrcp.f32 %v1093_v32  ;;  %v5865_v39 = vadd.f32 1.0, %v5751_v52  ;;  %v5868_v40 = vadd.f32 1.0, %v5756_v46  ;;  %v5870_v22 = vadd.f32 1.0, %v4342_v57 }
 0x1fa   :  { %v4360_v3 = vpop.eup %4359  ;;  %4385 = vrcp.f32 %v1094_v49  ;;  %v5872_v24 = vadd.f32 1.0, %v4344_v60  ;;  %v5874_v49 = vadd.f32 1.0, %v4346_v61  ;;  %v5876_v18 = vadd.f32 1.0, %v4348_v43 }
 0x1fb   :  { %v4362_v44 = vpop.eup %4361  ;;  %4387 = vrcp.f32 %v1095_v35  ;;  %v5878_v14 = vadd.f32 1.0, %v4350_v15  ;;  %v5881_v35 = vadd.f32 1.0, %v4352_v33  ;;  %v5885_v46 = vadd.f32 1.0, %v4356_v54 }
 0x1fc   :  { %v4364_v26 = vpop.eup %4363  ;;  %4389 = vrcp.f32 %v1096_v48  ;;  %v5883_v48 = vadd.f32 1.0, %v4354_v20  ;;  %v5890_v60 = vadd.f32 1.0, %v4360_v3  ;;  %v5892_v61 = vadd.f32 1.0, %v4362_v44 }
 0x1fd   :  { %v4366_v37 = vpop.eup %4365  ;;  %4391 = vrcp.f32 %v1097_v30  ;;  %v5888_v30 = vadd.f32 1.0, %v4358_v50 }
 0x1fe   :  { %v4368_v32 = vpop.eup %4367  ;;  %4393 = vrcp.f32 %v5763_v2  ;;  %v5895_v2 = vadd.f32 1.0, %v4364_v26  ;;  %v5897_v13 = vadd.f32 1.0, %v4366_v37 }
 0x1ff   :  { %v4370_v52 = vpop.eup %4369  ;;  %4395 = vrcp.f32 %v5766_v11  ;;  %v5899_v43 = vadd.f32 1.0, %v4368_v32 }
 0x200   :  { %v4372_v57 = vpop.eup %4371  ;;  %4397 = vrcp.f32 %v5769_v6  ;;  %6929 = vst [vmem:[#allocation13_spill] sm:$0xff] %v5897_v13  ;;  %v5903_v33 = vadd.f32 1.0, %v4370_v52 }
 0x201   :  { %v4374_v12 = vpop.eup %4373  ;;  %6930 = vst [vmem:[#allocation49_spill] sm:$0xff] %v5899_v43  ;;  %4399 = vrcp.f32 %v5772_v19  ;;  %v5906_v54 = vadd.f32 1.0, %v4372_v57 }
 0x202   :  { %v4376_v15 = vpop.eup %4375  ;;  %v1410_v11 = vcombine.high %v4374_v12, %v4374_v12  ;;  %v1417_v51 = vrot.slane %v4374_v12, %v6919_v58  ;;  %6931 = vst [vmem:[#allocation11_spill] sm:$0xff] %v5903_v33  ;;  %4401 = vrcp.f32 %v5775_v29 }
 0x203   :  { %v4378_v20 = vpop.eup %4377  ;;  %6932 = vst [vmem:[#allocation50_spill] sm:$0xff] %v5906_v54  ;;  %v1359_v6 = vcombine.high %v4376_v15, %v4376_v15  ;;  %v1366_v50 = vrot.slane %v4376_v15, %v6919_v58  ;;  %4403 = vrcp.f32 %v5778_v45 }
 0x204   :  { %v5910_v3 = vpop.eup %4379  ;;  %v1424_v19 = vrot.slane %v1410_v11, %v6919_v58  ;;  %v1425_v44 = vcombine.high %v1417_v51, %v1417_v51  ;;  %4405 = vrcp.f32 %v5781_v41  ;;  %v1393_v26 = vcombine.high %v4378_v20, %v4378_v20 }
 0x205   :  { %v4382_v37 = vpop.eup %4381  ;;  %v1373_v32 = vrot.slane %v1359_v6, %v6919_v58  ;;  %v1374_v29 = vcombine.high %v1366_v50, %v1366_v50  ;;  %4407 = vrcp.f32 %v5784_v63  ;;  %v1400_v52 = vrot.slane %v4378_v20, %v6919_v58 }
 0x206   :  { %v5917_v57 = vpop.eup %4383  ;;  %v1426_v12 = vcombine.high %v1424_v19, %v1424_v19  ;;  %v2498_v45 = vcombine.low %v1417_v51, %v1425_v44  ;;  %4409 = vrcp.f32 %v5787_v62  ;;  %v1444_v15 = vcombine.high %v4382_v37, %v4382_v37 }
 0x207   :  { %v4386_v11 = vpop.eup %4385  ;;  %v1375_v54 = vcombine.high %v1373_v32, %v1373_v32  ;;  %v2447_v33 = vcombine.low %v1366_v50, %v1374_v29  ;;  %4411 = vrcp.f32 %v5790_v59  ;;  %v1451_v41 = vrot.slane %v4382_v37, %v6919_v58 }
 0x208   :  { %v5922_v6 = vpop.eup %4387  ;;  %v2499_v43 = vcombine.low %v1424_v19, %v1426_v12  ;;  %v2506_v63 = vrot.slane %v2498_v45, %v6919_v58  ;;  %4413 = vrcp.f32 %v5793_v55  ;;  %v1458_v20 = vrot.slane %v1444_v15, %v6919_v58 }
 0x209   :  { %v5927_v51 = vpop.eup %4389  ;;  %v2448_v62 = vcombine.low %v1373_v32, %v1375_v54  ;;  %v2455_v44 = vrot.slane %v2447_v33, %v6919_v58  ;;  %4415 = vrcp.f32 %v5796_v25  ;;  %v1459_v50 = vcombine.high %v1451_v41, %v1451_v41 }
 0x20a   :  { %v5931_v59 = vpop.eup %4391  ;;  %v2513_v37 = vrot.slane %v2499_v43, %v6919_v58  ;;  %4417 = vrcp.f32 %v5799_v38  ;;  %v1460_v19 = vcombine.high %v1458_v20, %v1458_v20  ;;  %v1407_v29 = vrot.slane %v1393_v26, %v6919_v58 }
 0x20b   :  { %v5936_v55 = vpop.eup %4393  ;;  %v2462_v12 = vrot.slane %v2448_v62, %v6919_v58  ;;  %4419 = vrcp.f32 %v5802_v56  ;;  %v2532_v54 = vcombine.low %v1451_v41, %v1459_v50  ;;  %v1408_v33 = vcombine.high %v1400_v52, %v1400_v52 }
 0x20c   :  { %v5940_v32 = vpop.eup %4395  ;;  %v2514_v25 = vcombine.low %v2506_v63, %v2513_v37  ;;  %4421 = vrcp.f32 %v5805_v53  ;;  %v2533_v45 = vcombine.low %v1458_v20, %v1460_v19  ;;  %v1409_v43 = vcombine.high %v1407_v29, %v1407_v29 }
 0x20d   :  { %v5943_v15 = vpop.eup %4397  ;;  %v2463_v38 = vcombine.low %v2455_v44, %v2462_v12  ;;  %4423 = vrcp.f32 %v5808_v34  ;;  %v2540_v26 = vrot.slane %v2532_v54, %v6919_v58  ;;  %v2481_v13 = vcombine.low %v1400_v52, %v1408_v33 }
 0x20e   :  { %v5947_v62 = vpop.eup %4399  ;;  %3531 = vperm.xlu0 %4239, %v2514_v25   ;;  %4425 = vrcp.f32 %v5811_v27  ;;  %v2547_v56 = vrot.slane %v2533_v45, %v6919_v58  ;;  %v2482_v41 = vcombine.low %v1407_v29, %v1409_v43  ;;  %v1478_v63 = vcombine.high %v4386_v11, %v4386_v11 }
 0x20f   :  { %v5951_v53 = vpop.eup %4401  ;;  %3522 = vperm.xlu1 %4240, %v2463_v38   ;;  %4427 = vrcp.f32 %v5814_v23  ;;  %v2489_v20 = vrot.slane %v2481_v13, %v6919_v58  ;;  %v1485_v34 = vrot.slane %v4386_v11, %v6919_v58  ;;  %v1427_v52 = vcombine.high %v5910_v3, %v5910_v3 }
 0x210   :  { %v5958_v44 = vpop.eup %4403  ;;  %4429 = vrcp.f32 %v5817_v10  ;;  %v2548_v27 = vcombine.low %v2540_v26, %v2547_v56  ;;  %v2496_v50 = vrot.slane %v2482_v41, %v6919_v58  ;;  %v1492_v37 = vrot.slane %v1478_v63, %v6919_v58 }
 0x211   :  { %v5963_v19 = vpop.eup %4405  ;;  %4431 = vrcp.f32 %v5820_v5  ;;  %v1493_v23 = vcombine.high %v1485_v34, %v1485_v34  ;;  %v1434_v13 = vrot.slane %v5910_v3, %v6919_v58  ;;  %v1441_v11 = vrot.slane %v1427_v52, %v6919_v58 }
 0x212   :  { %v5969_v29 = vpop.eup %4407  ;;  %4433 = vrcp.f32 %v5823_v4  ;;  %3537 = vperm.xlu0 %4239, %v2548_v27   ;;  %v2497_v10 = vcombine.low %v2489_v20, %v2496_v50  ;;  %v1494_v12 = vcombine.high %v1492_v37, %v1492_v37  ;;  %v1512_v54 = vcombine.high %v5927_v51, %v5927_v51 }
 0x213   :  { %v5974_v33 = vpop.eup %4409  ;;  %4435 = vrcp.f32 %v5826_v31  ;;  %v2566_v5 = vcombine.low %v1485_v34, %v1493_v23  ;;  %v1442_v25 = vcombine.high %v1434_v13, %v1434_v13  ;;  %v1443_v45 = vcombine.high %v1441_v11, %v1441_v11 }
 0x214   :  { %v5977_v3 = vpop.eup %4411  ;;  %4437 = vrcp.f32 %v5829_v21  ;;  %3528 = vperm.xlu1 %4240, %v2497_v10   ;;  %v2567_v43 = vcombine.low %v1492_v37, %v1494_v12  ;;  %v1519_v4 = vrot.slane %v5927_v51, %v6919_v58  ;;  %v1526_v38 = vrot.slane %v1512_v54, %v6919_v58 }
 0x215   :  { %v5983_v26 = vpop.eup %4413  ;;  %4439 = vrcp.f32 %v5832_v1  ;;  %v2574_v31 = vrot.slane %v2566_v5, %v6919_v58  ;;  %v2515_v56 = vcombine.low %v1434_v13, %v1442_v25  ;;  %v2516_v41 = vcombine.low %v1441_v11, %v1443_v45 }
 0x216   :  { %v5987_v63 = vpop.eup %4415  ;;  %4441 = vrcp.f32 %v5835_v9  ;;  %v2581_v21 = vrot.slane %v2567_v43, %v6919_v58  ;;  %v1527_v20 = vcombine.high %v1519_v4, %v1519_v4  ;;  %v1528_v34 = vcombine.high %v1526_v38, %v1526_v38 }
 0x217   :  { %v5991_v52 = vpop.eup %4417  ;;  %4443 = vrcp.f32 %v5838_v47  ;;  %v2523_v51 = vrot.slane %v2515_v56, %v6919_v58  ;;  %v2530_v1 = vrot.slane %v2516_v41, %v6919_v58  ;;  %v1461_v27 = vcombine.high %v5917_v57, %v5917_v57 }
 0x218   :  { %v5998_v50 = vpop.eup %4419  ;;  %4445 = vrcp.f32 %v5841_v8  ;;  %v2582_v9 = vcombine.low %v2574_v31, %v2581_v21  ;;  %v2600_v37 = vcombine.low %v1519_v4, %v1527_v20  ;;  %v2601_v23 = vcombine.low %v1526_v38, %v1528_v34 }
 0x219   :  { %v6001_v13 = vpop.eup %4421  ;;  %4447 = vrcp.f32 %v5844_v42  ;;  %v2531_v11 = vcombine.low %v2523_v51, %v2530_v1  ;;  %v1468_v47 = vrot.slane %v5917_v57, %v6919_v58  ;;  %v1475_v10 = vrot.slane %v1461_v27, %v6919_v58 }
 0x21a   :  { %v6007_v12 = vpop.eup %4423  ;;  %4449 = vrcp.f32 %v5847_v16  ;;  %3543 = vperm.xlu0 %4239, %v2582_v9   ;;  %v2608_v8 = vrot.slane %v2600_v37, %v6919_v58  ;;  %v2615_v54 = vrot.slane %v2601_v23, %v6919_v58  ;;  %v1546_v5 = vcombine.high %v5936_v55, %v5936_v55 }
 0x21b   :  { %v6014_v25 = vpop.eup %4425  ;;  %4451 = vrcp.f32 %v5850_v0  ;;  %3534 = vperm.xlu1 %4240, %v2531_v11   ;;  %v1476_v42 = vcombine.high %v1468_v47, %v1468_v47  ;;  %v1477_v57 = vcombine.high %v1475_v10, %v1475_v10  ;;  %v1553_v45 = vrot.slane %v5936_v55, %v6919_v58 }
 0x21c   :  { %v6019_v43 = vpop.eup %4427  ;;  %4453 = vrcp.f32 %v5853_v7  ;;  %v2616_v16 = vcombine.low %v2608_v8, %v2615_v54  ;;  %v1560_v4 = vrot.slane %v1546_v5, %v6919_v58  ;;  %v1495_v38 = vcombine.high %v5922_v6, %v5922_v6 }
 0x21d   :  { %v6025_v31 = vpop.eup %4429  ;;  %4455 = vrcp.f32 %v5856_v17  ;;  %v2549_v0 = vcombine.low %v1468_v47, %v1476_v42  ;;  %v2550_v56 = vcombine.low %v1475_v10, %v1477_v57  ;;  %v1561_v41 = vcombine.high %v1553_v45, %v1553_v45 }
 0x21e   :  { %v6028_v21 = vpop.eup %4431  ;;  %4457 = vrcp.f32 %v5859_v28  ;;  %3549 = vperm.xlu0 %4239, %v2616_v16   ;;  %v1562_v55 = vcombine.high %v1560_v4, %v1560_v4  ;;  %v1502_v7 = vrot.slane %v5922_v6, %v6919_v58  ;;  %v1509_v20 = vrot.slane %v1495_v38, %v6919_v58 }
 0x21f   :  { %v6034_v34 = vpop.eup %4433  ;;  %4459 = vrcp.f32 %v5862_v36  ;;  %v2557_v17 = vrot.slane %v2549_v0, %v6919_v58  ;;  %v2564_v51 = vrot.slane %v2550_v56, %v6919_v58  ;;  %v2634_v1 = vcombine.low %v1553_v45, %v1561_v41 }
 0x220   :  { %v6039_v27 = vpop.eup %4435  ;;  %4461 = vrcp.f32 %v5865_v39  ;;  %v2635_v28 = vcombine.low %v1560_v4, %v1562_v55  ;;  %v1510_v9 = vcombine.high %v1502_v7, %v1502_v7  ;;  %v1511_v37 = vcombine.high %v1509_v20, %v1509_v20 }
 0x221   :  { %v6042_v23 = vpop.eup %4437  ;;  %4463 = vrcp.f32 %v5868_v40  ;;  %v2565_v6 = vcombine.low %v2557_v17, %v2564_v51  ;;  %v2642_v11 = vrot.slane %v2634_v1, %v6919_v58  ;;  %v1580_v36 = vcombine.high %v5943_v15, %v5943_v15 }
 0x222   :  { %v6048_v47 = vpop.eup %4439  ;;  %4465 = vrcp.f32 %v5870_v22  ;;  %v2649_v10 = vrot.slane %v2635_v28, %v6919_v58  ;;  %v2583_v39 = vcombine.low %v1502_v7, %v1510_v9  ;;  %v2584_v8 = vcombine.low %v1509_v20, %v1511_v37 }
 0x223   :  { %v6052_v54 = vpop.eup %4441  ;;  %4467 = vrcp.f32 %v5872_v24  ;;  %3540 = vperm.xlu1 %4240, %v2565_v6   ;;  %v1587_v40 = vrot.slane %v5943_v15, %v6919_v58  ;;  %v1594_v5 = vrot.slane %v1580_v36, %v6919_v58  ;;  %v1529_v42 = vcombine.high %v5931_v59, %v5931_v59 }
 0x224   :  { %v6060_v57 = vpop.eup %4443  ;;  %4469 = vrcp.f32 %v5874_v49  ;;  %v2650_v22 = vcombine.low %v2642_v11, %v2649_v10  ;;  %v2591_v45 = vrot.slane %v2583_v39, %v6919_v58  ;;  %v2598_v16 = vrot.slane %v2584_v8, %v6919_v58 }
 0x225   :  { %v6065_v4 = vpop.eup %4445  ;;  %4471 = vrcp.f32 %v5876_v18  ;;  %v1595_v24 = vcombine.high %v1587_v40, %v1587_v40  ;;  %v1596_v15 = vcombine.high %v1594_v5, %v1594_v5  ;;  %v1536_v38 = vrot.slane %v5931_v59, %v6919_v58 }
 0x226   :  { %v6070_v0 = vpop.eup %4447  ;;  %4473 = vrcp.f32 %v5878_v14  ;;  %3555 = vperm.xlu0 %4239, %v2650_v22   ;;  %v2599_v49 = vcombine.low %v2591_v45, %v2598_v16  ;;  %v1543_v56 = vrot.slane %v1529_v42, %v6919_v58  ;;  %v1614_v41 = vcombine.high %v5951_v53, %v5951_v53 }
 0x227   :  { %v6076_v55 = vpop.eup %4449  ;;  %4475 = vrcp.f32 %v5881_v35  ;;  %v2668_v18 = vcombine.low %v1587_v40, %v1595_v24  ;;  %v2669_v7 = vcombine.low %v1594_v5, %v1596_v15  ;;  %v1544_v20 = vcombine.high %v1536_v38, %v1536_v38 }
 0x228   :  { %v6079_v17 = vpop.eup %4451  ;;  %4477 = vrcp.f32 %v5883_v48  ;;  %3546 = vperm.xlu1 %4240, %v2599_v49   ;;  %v1545_v14 = vcombine.high %v1543_v56, %v1543_v56  ;;  %v1621_v59 = vrot.slane %v5951_v53, %v6919_v58  ;;  %v1628_v51 = vrot.slane %v1614_v41, %v6919_v58 }
 0x229   :  { %v6085_v1 = vpop.eup %4453  ;;  %4479 = vrcp.f32 %v5885_v46  ;;  %v2676_v35 = vrot.slane %v2668_v18, %v6919_v58  ;;  %v2683_v28 = vrot.slane %v2669_v7, %v6919_v58  ;;  %v2617_v9 = vcombine.low %v1536_v38, %v1544_v20  ;;  %v6935_v18 = vld [vmem:[#allocation11_spill] sm:$0xff] }
 0x22a   :  { %v6090_v37 = vpop.eup %4455  ;;  %4481 = vrcp.f32 %v5888_v30  ;;  %v2618_v48 = vcombine.low %v1543_v56, %v1545_v14  ;;  %v1629_v6 = vcombine.high %v1621_v59, %v1621_v59  ;;  %v1630_v11 = vcombine.high %v1628_v51, %v1628_v51 }
 0x22b   :  { %v6093_v36 = vpop.eup %4457  ;;  %4483 = vrcp.f32 %v5890_v60  ;;  %v2684_v53 = vcombine.low %v2676_v35, %v2683_v28  ;;  %v2625_v10 = vrot.slane %v2617_v9, %v6919_v58  ;;  %v1563_v46 = vcombine.high %v5940_v32, %v5940_v32 }
 0x22c   :  { %v6099_v39 = vpop.eup %4459  ;;  %4485 = vrcp.f32 %v5892_v61  ;;  %v2632_v8 = vrot.slane %v2618_v48, %v6919_v58  ;;  %v2702_v30 = vcombine.low %v1621_v59, %v1629_v6  ;;  %v2703_v40 = vcombine.low %v1628_v51, %v1630_v11  ;;  %v6933_v61 = vld [vmem:[#allocation13_spill] sm:$0xff]  ;;  %v6936_v51 = vld [vmem:[#allocation50_spill] sm:$0xff] }
 0x22d   :  { %v6103_v5 = vpop.eup %4461  ;;  %4487 = vrcp.f32 %v5895_v2  ;;  %3561 = vperm.xlu0 %4239, %v2684_v53   ;;  %v1570_v60 = vrot.slane %v5940_v32, %v6919_v58  ;;  %v1577_v42 = vrot.slane %v1563_v46, %v6919_v58  ;;  %v1648_v22 = vcombine.high %v5963_v19, %v5963_v19  ;;  %v6934_v2 = vld [vmem:[#allocation49_spill] sm:$0xff] }
 0x22e   :  { %v6111_v45 = vpop.eup %4463  ;;  %4489 = vrcp.f32 %v6933_v61  ;;  %v2633_v16 = vcombine.low %v2625_v10, %v2632_v8  ;;  %v2710_v24 = vrot.slane %v2702_v30, %v6919_v58  ;;  %v2717_v15 = vrot.slane %v2703_v40, %v6919_v58 }
 0x22f   :  { %v6116_v38 = vpop.eup %4465  ;;  %4491 = vrcp.f32 %v6934_v2  ;;  %v1578_v49 = vcombine.high %v1570_v60, %v1570_v60  ;;  %v1579_v32 = vcombine.high %v1577_v42, %v1577_v42  ;;  %v1655_v56 = vrot.slane %v5963_v19, %v6919_v58 }
 0x230   :  { %v6121_v41 = vpop.eup %4467  ;;  %4493 = vrcp.f32 %v6935_v18  ;;  %3552 = vperm.xlu1 %4240, %v2633_v16   ;;  %v2718_v7 = vcombine.low %v2710_v24, %v2717_v15  ;;  %v1662_v20 = vrot.slane %v1648_v22, %v6919_v58  ;;  %v1597_v14 = vcombine.high %v5947_v62, %v5947_v62 }
 0x231   :  { %v6127_v59 = vpop.eup %4469  ;;  %4495 = vrcp.f32 %v6936_v51  ;;  %v2651_v35 = vcombine.low %v1570_v60, %v1578_v49  ;;  %v2652_v28 = vcombine.low %v1577_v42, %v1579_v32  ;;  %v1663_v9 = vcombine.high %v1655_v56, %v1655_v56 }
 0x232   :  { %v6130_v48 = vpop.eup %4471  ;;  %3567 = vperm.xlu0 %4239, %v2718_v7   ;;  %v1664_v19 = vcombine.high %v1662_v20, %v1662_v20  ;;  %v1604_v6 = vrot.slane %v5947_v62, %v6919_v58  ;;  %v1611_v11 = vrot.slane %v1597_v14, %v6919_v58  ;;  %v1682_v53 = vcombine.high %v5974_v33, %v5974_v33 }
 0x233   :  { %v6137_v10 = vpop.eup %4473  ;;  %v2659_v46 = vrot.slane %v2651_v35, %v6919_v58  ;;  %v2666_v8 = vrot.slane %v2652_v28, %v6919_v58  ;;  %v2736_v30 = vcombine.low %v1655_v56, %v1663_v9  ;;  %v1689_v40 = vrot.slane %v5974_v33, %v6919_v58 }
 0x234   :  { %v6143_v60 = vpop.eup %4475  ;;  %v2737_v42 = vcombine.low %v1662_v20, %v1664_v19  ;;  %v1612_v22 = vcombine.high %v1604_v6, %v1604_v6  ;;  %v1613_v62 = vcombine.high %v1611_v11, %v1611_v11  ;;  %v1696_v61 = vrot.slane %v1682_v53, %v6919_v58 }
 0x235   :  { %v6146_v16 = vpop.eup %4477  ;;  %v2667_v24 = vcombine.low %v2659_v46, %v2666_v8  ;;  %v2744_v15 = vrot.slane %v2736_v30, %v6919_v58  ;;  %v1697_v2 = vcombine.high %v1689_v40, %v1689_v40  ;;  %v1631_v49 = vcombine.high %v5958_v44, %v5958_v44 }
 0x236   :  { %v6151_v32 = vpop.eup %4479  ;;  %v2751_v33 = vrot.slane %v2737_v42, %v6919_v58  ;;  %v2685_v56 = vcombine.low %v1604_v6, %v1612_v22  ;;  %v2686_v18 = vcombine.low %v1611_v11, %v1613_v62  ;;  %v1698_v7 = vcombine.high %v1696_v61, %v1696_v61 }
 0x237   :  { %v6154_v20 = vpop.eup %4481  ;;  %3558 = vperm.xlu1 %4240, %v2667_v24   ;;  %v2770_v14 = vcombine.low %v1689_v40, %v1697_v2  ;;  %v1638_v51 = vrot.slane %v5958_v44, %v6919_v58  ;;  %v1645_v35 = vrot.slane %v1631_v49, %v6919_v58  ;;  %v1716_v28 = vcombine.high %v5983_v26, %v5983_v26 }
 0x238   :  { %v6161_v9 = vpop.eup %4483  ;;  %v2752_v19 = vcombine.low %v2744_v15, %v2751_v33  ;;  %v2693_v53 = vrot.slane %v2685_v56, %v6919_v58  ;;  %v2700_v6 = vrot.slane %v2686_v18, %v6919_v58  ;;  %v2771_v11 = vcombine.low %v1696_v61, %v1698_v7 }
 0x239   :  { %v6165_v46 = vpop.eup %4485  ;;  %v2778_v8 = vrot.slane %v2770_v14, %v6919_v58  ;;  %v1646_v30 = vcombine.high %v1638_v51, %v1638_v51  ;;  %v1647_v40 = vcombine.high %v1645_v35, %v1645_v35  ;;  %v1723_v44 = vrot.slane %v5983_v26, %v6919_v58 }
 0x23a   :  { %v6170_v42 = vpop.eup %4487  ;;  %3573 = vperm.xlu0 %4239, %v2752_v19   ;;  %v2701_v22 = vcombine.low %v2693_v53, %v2700_v6  ;;  %v2785_v62 = vrot.slane %v2771_v11, %v6919_v58  ;;  %v1730_v24 = vrot.slane %v1716_v28, %v6919_v58  ;;  %v1665_v61 = vcombine.high %v5969_v29, %v5969_v29 }
 0x23b   :  { %v6176_v15 = vpop.eup %4489  ;;  %v2719_v2 = vcombine.low %v1638_v51, %v1646_v30  ;;  %v2720_v49 = vcombine.low %v1645_v35, %v1647_v40  ;;  %v1731_v33 = vcombine.high %v1723_v44, %v1723_v44  ;;  %v1672_v56 = vrot.slane %v5969_v29, %v6919_v58 }
 0x23c   :  { %v6180_v26 = vpop.eup %4491  ;;  %3564 = vperm.xlu1 %4240, %v2701_v22   ;;  %v2786_v18 = vcombine.low %v2778_v8, %v2785_v62  ;;  %v1732_v7 = vcombine.high %v1730_v24, %v1730_v24  ;;  %v1679_v14 = vrot.slane %v1665_v61, %v6919_v58  ;;  %v1750_v28 = vcombine.high %v5991_v52, %v5991_v52 }
 0x23d   :  { %v6185_v19 = vpop.eup %4493  ;;  %v2727_v53 = vrot.slane %v2719_v2, %v6919_v58  ;;  %v2734_v51 = vrot.slane %v2720_v49, %v6919_v58  ;;  %v2804_v35 = vcombine.low %v1723_v44, %v1731_v33  ;;  %v1680_v6 = vcombine.high %v1672_v56, %v1672_v56 }
 0x23e   :  { %v6189_v11 = vpop.eup %4495  ;;  %3579 = vperm.xlu0 %4239, %v2786_v18   ;;  %v2805_v29 = vcombine.low %v1730_v24, %v1732_v7  ;;  %v1681_v30 = vcombine.high %v1679_v14, %v1679_v14  ;;  %v1757_v8 = vrot.slane %v5991_v52, %v6919_v58  ;;  %v1764_v40 = vrot.slane %v1750_v28, %v6919_v58 }
 0x23f   :  { %6937 = vst [vmem:[#allocation15_spill] sm:$0xff] %v6189_v11  ;;  %v2735_v22 = vcombine.low %v2727_v53, %v2734_v51  ;;  %v2812_v62 = vrot.slane %v2804_v35, %v6919_v58  ;;  %v2753_v61 = vcombine.low %v1672_v56, %v1680_v6  ;;  %v1699_v2 = vcombine.high %v5977_v3, %v5977_v3 }
 0x240   :  { %v2819_v44 = vrot.slane %v2805_v29, %v6919_v58  ;;  %v2754_v49 = vcombine.low %v1679_v14, %v1681_v30  ;;  %v1765_v33 = vcombine.high %v1757_v8, %v1757_v8  ;;  %v1766_v11 = vcombine.high %v1764_v40, %v1764_v40 }
 0x241   :  { %3570 = vperm.xlu1 %4240, %v2735_v22   ;;  %v2761_v24 = vrot.slane %v2753_v61, %v6919_v58  ;;  %v1706_v52 = vrot.slane %v5977_v3, %v6919_v58  ;;  %v1713_v18 = vrot.slane %v1699_v2, %v6919_v58  ;;  %v1784_v7 = vcombine.high %v6001_v13, %v6001_v13 }
 0x242   :  { %v2820_v56 = vcombine.low %v2812_v62, %v2819_v44  ;;  %v2768_v28 = vrot.slane %v2754_v49, %v6919_v58  ;;  %v2838_v53 = vcombine.low %v1757_v8, %v1765_v33  ;;  %v2839_v51 = vcombine.low %v1764_v40, %v1766_v11 }
 0x243   :  { %v1714_v35 = vcombine.high %v1706_v52, %v1706_v52  ;;  %v1715_v14 = vcombine.high %v1713_v18, %v1713_v18  ;;  %v1791_v6 = vrot.slane %v6001_v13, %v6919_v58  ;;  %v1798_v29 = vrot.slane %v1784_v7, %v6919_v58 }
 0x244   :  { %3585 = vperm.xlu0 %4239, %v2820_v56   ;;  %v2769_v30 = vcombine.low %v2761_v24, %v2768_v28  ;;  %v2846_v3 = vrot.slane %v2838_v53, %v6919_v58  ;;  %v2853_v22 = vrot.slane %v2839_v51, %v6919_v58  ;;  %v1733_v62 = vcombine.high %v5987_v63, %v5987_v63 }
 0x245   :  { %v2787_v61 = vcombine.low %v1706_v52, %v1714_v35  ;;  %v2788_v2 = vcombine.low %v1713_v18, %v1715_v14  ;;  %v1799_v8 = vcombine.high %v1791_v6, %v1791_v6  ;;  %v1800_v11 = vcombine.high %v1798_v29, %v1798_v29 }
 0x246   :  { %3576 = vperm.xlu1 %4240, %v2769_v30   ;;  %v2854_v40 = vcombine.low %v2846_v3, %v2853_v22  ;;  %v1740_v13 = vrot.slane %v5987_v63, %v6919_v58  ;;  %v1747_v44 = vrot.slane %v1733_v62, %v6919_v58  ;;  %v1818_v49 = vcombine.high %v6014_v25, %v6014_v25 }
 0x247   :  { %v2795_v33 = vrot.slane %v2787_v61, %v6919_v58  ;;  %v2802_v24 = vrot.slane %v2788_v2, %v6919_v58  ;;  %v2872_v7 = vcombine.low %v1791_v6, %v1799_v8  ;;  %v2873_v56 = vcombine.low %v1798_v29, %v1800_v11 }
 0x248   :  { %3591 = vperm.xlu0 %4239, %v2854_v40   ;;  %v1748_v52 = vcombine.high %v1740_v13, %v1740_v13  ;;  %v1749_v18 = vcombine.high %v1747_v44, %v1747_v44  ;;  %v1825_v28 = vrot.slane %v6014_v25, %v6919_v58  ;;  %v1832_v53 = vrot.slane %v1818_v49, %v6919_v58 }
 0x249   :  { %v2803_v63 = vcombine.low %v2795_v33, %v2802_v24  ;;  %v2880_v51 = vrot.slane %v2872_v7, %v6919_v58  ;;  %v2887_v35 = vrot.slane %v2873_v56, %v6919_v58  ;;  %v1767_v14 = vcombine.high %v5998_v50, %v5998_v50 }
 0x24a   :  { %v2821_v30 = vcombine.low %v1740_v13, %v1748_v52  ;;  %v2822_v3 = vcombine.low %v1747_v44, %v1749_v18  ;;  %v1833_v6 = vcombine.high %v1825_v28, %v1825_v28  ;;  %v1834_v29 = vcombine.high %v1832_v53, %v1832_v53 }
 0x24b   :  { %3582 = vperm.xlu1 %4240, %v2803_v63   ;;  %v2888_v22 = vcombine.low %v2880_v51, %v2887_v35  ;;  %v1774_v62 = vrot.slane %v5998_v50, %v6919_v58  ;;  %v1781_v25 = vrot.slane %v1767_v14, %v6919_v58  ;;  %v1852_v61 = vcombine.high %v6025_v31, %v6025_v31 }
 0x24c   :  { %v2829_v2 = vrot.slane %v2821_v30, %v6919_v58  ;;  %v2836_v8 = vrot.slane %v2822_v3, %v6919_v58  ;;  %v2906_v11 = vcombine.low %v1825_v28, %v1833_v6  ;;  %v2907_v40 = vcombine.low %v1832_v53, %v1834_v29 }
 0x24d   :  { %3597 = vperm.xlu0 %4239, %v2888_v22   ;;  %v1782_v13 = vcombine.high %v1774_v62, %v1774_v62  ;;  %v1783_v44 = vcombine.high %v1781_v25, %v1781_v25  ;;  %v1859_v49 = vrot.slane %v6025_v31, %v6919_v58  ;;  %v1866_v33 = vrot.slane %v1852_v61, %v6919_v58 }
 0x24e   :  { %v2837_v50 = vcombine.low %v2829_v2, %v2836_v8  ;;  %v2914_v24 = vrot.slane %v2906_v11, %v6919_v58  ;;  %v2921_v7 = vrot.slane %v2907_v40, %v6919_v58  ;;  %v1801_v56 = vcombine.high %v6007_v12, %v6007_v12 }
 0x24f   :  { %v2855_v52 = vcombine.low %v1774_v62, %v1782_v13  ;;  %v2856_v18 = vcombine.low %v1781_v25, %v1783_v44  ;;  %v1867_v28 = vcombine.high %v1859_v49, %v1859_v49  ;;  %v1868_v53 = vcombine.high %v1866_v33, %v1866_v33 }
 0x250   :  { %3588 = vperm.xlu1 %4240, %v2837_v50   ;;  %v2922_v63 = vcombine.low %v2914_v24, %v2921_v7  ;;  %v1808_v51 = vrot.slane %v6007_v12, %v6919_v58  ;;  %v1815_v31 = vrot.slane %v1801_v56, %v6919_v58  ;;  %v1886_v35 = vcombine.high %v6034_v34, %v6034_v34 }
 0x251   :  { %v2863_v14 = vrot.slane %v2855_v52, %v6919_v58  ;;  %v2870_v30 = vrot.slane %v2856_v18, %v6919_v58  ;;  %v2940_v3 = vcombine.low %v1859_v49, %v1867_v28  ;;  %v2941_v6 = vcombine.low %v1866_v33, %v1868_v53 }
 0x252   :  { %3603 = vperm.xlu0 %4239, %v2922_v63   ;;  %v1816_v29 = vcombine.high %v1808_v51, %v1808_v51  ;;  %v1817_v22 = vcombine.high %v1815_v31, %v1815_v31  ;;  %v1893_v62 = vrot.slane %v6034_v34, %v6919_v58  ;;  %v1900_v25 = vrot.slane %v1886_v35, %v6919_v58 }
 0x253   :  { %v2871_v12 = vcombine.low %v2863_v14, %v2870_v30  ;;  %v2948_v61 = vrot.slane %v2940_v3, %v6919_v58  ;;  %v2955_v2 = vrot.slane %v2941_v6, %v6919_v58  ;;  %v1835_v8 = vcombine.high %v6019_v43, %v6019_v43 }
 0x254   :  { %v2889_v11 = vcombine.low %v1808_v51, %v1816_v29  ;;  %v2890_v40 = vcombine.low %v1815_v31, %v1817_v22  ;;  %v1901_v13 = vcombine.high %v1893_v62, %v1893_v62  ;;  %v1902_v44 = vcombine.high %v1900_v25, %v1900_v25 }
 0x255   :  { %3594 = vperm.xlu1 %4240, %v2871_v12   ;;  %v2956_v49 = vcombine.low %v2948_v61, %v2955_v2  ;;  %v1842_v33 = vrot.slane %v6019_v43, %v6919_v58  ;;  %v1849_v34 = vrot.slane %v1835_v8, %v6919_v58  ;;  %v1920_v50 = vcombine.high %v6042_v23, %v6042_v23 }
 0x256   :  { %v2897_v24 = vrot.slane %v2889_v11, %v6919_v58  ;;  %v2904_v7 = vrot.slane %v2890_v40, %v6919_v58  ;;  %v2974_v56 = vcombine.low %v1893_v62, %v1901_v13  ;;  %v2975_v52 = vcombine.low %v1900_v25, %v1902_v44 }
 0x257   :  { %3609 = vperm.xlu0 %4239, %v2956_v49   ;;  %v1850_v18 = vcombine.high %v1842_v33, %v1842_v33  ;;  %v1851_v28 = vcombine.high %v1849_v34, %v1849_v34  ;;  %v1927_v53 = vrot.slane %v6042_v23, %v6919_v58  ;;  %v1934_v63 = vrot.slane %v1920_v50, %v6919_v58 }
 0x258   :  { %v2905_v43 = vcombine.low %v2897_v24, %v2904_v7  ;;  %v2982_v51 = vrot.slane %v2974_v56, %v6919_v58  ;;  %v2989_v31 = vrot.slane %v2975_v52, %v6919_v58  ;;  %v1869_v35 = vcombine.high %v6028_v21, %v6028_v21 }
 0x259   :  { %v2923_v14 = vcombine.low %v1842_v33, %v1850_v18  ;;  %v2924_v30 = vcombine.low %v1849_v34, %v1851_v28  ;;  %v1935_v3 = vcombine.high %v1927_v53, %v1927_v53  ;;  %v1936_v6 = vcombine.high %v1934_v63, %v1934_v63 }
 0x25a   :  { %3600 = vperm.xlu1 %4240, %v2905_v43   ;;  %v2990_v29 = vcombine.low %v2982_v51, %v2989_v31  ;;  %v1876_v22 = vrot.slane %v6028_v21, %v6919_v58  ;;  %v1883_v23 = vrot.slane %v1869_v35, %v6919_v58  ;;  %v1954_v62 = vcombine.high %v6052_v54, %v6052_v54 }
 0x25b   :  { %v2931_v25 = vrot.slane %v2923_v14, %v6919_v58  ;;  %v2938_v12 = vrot.slane %v2924_v30, %v6919_v58  ;;  %v3008_v61 = vcombine.low %v1927_v53, %v1935_v3  ;;  %v3009_v2 = vcombine.low %v1934_v63, %v1936_v6 }
 0x25c   :  { %3615 = vperm.xlu0 %4239, %v2990_v29   ;;  %v1884_v8 = vcombine.high %v1876_v22, %v1876_v22  ;;  %v1885_v11 = vcombine.high %v1883_v23, %v1883_v23  ;;  %v1961_v40 = vrot.slane %v6052_v54, %v6919_v58  ;;  %v1968_v13 = vrot.slane %v1954_v62, %v6919_v58 }
 0x25d   :  { %v2939_v21 = vcombine.low %v2931_v25, %v2938_v12  ;;  %v3016_v44 = vrot.slane %v3008_v61, %v6919_v58  ;;  %v3023_v49 = vrot.slane %v3009_v2, %v6919_v58  ;;  %v1903_v33 = vcombine.high %v6039_v27, %v6039_v27 }
 0x25e   :  { %v2957_v34 = vcombine.low %v1876_v22, %v1884_v8  ;;  %v2958_v50 = vcombine.low %v1883_v23, %v1885_v11  ;;  %v1969_v24 = vcombine.high %v1961_v40, %v1961_v40  ;;  %v1970_v7 = vcombine.high %v1968_v13, %v1968_v13 }
 0x25f   :  { %3606 = vperm.xlu1 %4240, %v2939_v21   ;;  %v3024_v56 = vcombine.low %v3016_v44, %v3023_v49  ;;  %v1910_v52 = vrot.slane %v6039_v27, %v6919_v58  ;;  %v1917_v54 = vrot.slane %v1903_v33, %v6919_v58  ;;  %v1988_v18 = vcombine.high %v6065_v4, %v6065_v4 }
 0x260   :  { %v2965_v28 = vrot.slane %v2957_v34, %v6919_v58  ;;  %v2972_v53 = vrot.slane %v2958_v50, %v6919_v58  ;;  %v3042_v63 = vcombine.low %v1961_v40, %v1969_v24  ;;  %v3043_v43 = vcombine.low %v1968_v13, %v1970_v7 }
 0x261   :  { %3621 = vperm.xlu0 %4239, %v3024_v56   ;;  %v1918_v51 = vcombine.high %v1910_v52, %v1910_v52  ;;  %v1919_v31 = vcombine.high %v1917_v54, %v1917_v54  ;;  %v1995_v35 = vrot.slane %v6065_v4, %v6919_v58  ;;  %v2002_v14 = vrot.slane %v1988_v18, %v6919_v58 }
 0x262   :  { %v2973_v27 = vcombine.low %v2965_v28, %v2972_v53  ;;  %v3050_v30 = vrot.slane %v3042_v63, %v6919_v58  ;;  %v3057_v3 = vrot.slane %v3043_v43, %v6919_v58  ;;  %v1937_v6 = vcombine.high %v6048_v47, %v6048_v47 }
 0x263   :  { %v2991_v29 = vcombine.low %v1910_v52, %v1918_v51  ;;  %v2992_v22 = vcombine.low %v1917_v54, %v1919_v31  ;;  %v2003_v23 = vcombine.high %v1995_v35, %v1995_v35  ;;  %v2004_v62 = vcombine.high %v2002_v14, %v2002_v14 }
 0x264   :  { %3612 = vperm.xlu1 %4240, %v2973_v27   ;;  %v3058_v25 = vcombine.low %v3050_v30, %v3057_v3  ;;  %v1944_v12 = vrot.slane %v6048_v47, %v6919_v58  ;;  %v1951_v4 = vrot.slane %v1937_v6, %v6919_v58  ;;  %v2022_v61 = vcombine.high %v6076_v55, %v6076_v55 }
 0x265   :  { %v2999_v2 = vrot.slane %v2991_v29, %v6919_v58  ;;  %v3006_v8 = vrot.slane %v2992_v22, %v6919_v58  ;;  %v3076_v11 = vcombine.low %v1995_v35, %v2003_v23  ;;  %v3077_v40 = vcombine.low %v2002_v14, %v2004_v62 }
 0x266   :  { %3627 = vperm.xlu0 %4239, %v3058_v25   ;;  %v1952_v13 = vcombine.high %v1944_v12, %v1944_v12  ;;  %v1953_v21 = vcombine.high %v1951_v4, %v1951_v4  ;;  %v2029_v44 = vrot.slane %v6076_v55, %v6919_v58  ;;  %v2036_v49 = vrot.slane %v2022_v61, %v6919_v58 }
 0x267   :  { %v3007_v47 = vcombine.low %v2999_v2, %v3006_v8  ;;  %v3084_v33 = vrot.slane %v3076_v11, %v6919_v58  ;;  %v3091_v34 = vrot.slane %v3077_v40, %v6919_v58  ;;  %v1971_v50 = vcombine.high %v6060_v57, %v6060_v57 }
 0x268   :  { %v3025_v24 = vcombine.low %v1944_v12, %v1952_v13  ;;  %v3026_v7 = vcombine.low %v1951_v4, %v1953_v21  ;;  %v2037_v56 = vcombine.high %v2029_v44, %v2029_v44  ;;  %v2038_v52 = vcombine.high %v2036_v49, %v2036_v49 }
 0x269   :  { %3618 = vperm.xlu1 %4240, %v3007_v47   ;;  %v3092_v54 = vcombine.low %v3084_v33, %v3091_v34  ;;  %v1978_v18 = vrot.slane %v6060_v57, %v6919_v58  ;;  %v1985_v55 = vrot.slane %v1971_v50, %v6919_v58  ;;  %v2056_v28 = vcombine.high %v6085_v1, %v6085_v1 }
 0x26a   :  { %v3033_v53 = vrot.slane %v3025_v24, %v6919_v58  ;;  %v3040_v63 = vrot.slane %v3026_v7, %v6919_v58  ;;  %v3110_v43 = vcombine.low %v2029_v44, %v2037_v56  ;;  %v3111_v51 = vcombine.low %v2036_v49, %v2038_v52 }
 0x26b   :  { %3633 = vperm.xlu0 %4239, %v3092_v54   ;;  %v1986_v31 = vcombine.high %v1978_v18, %v1978_v18  ;;  %v1987_v35 = vcombine.high %v1985_v55, %v1985_v55  ;;  %v2063_v14 = vrot.slane %v6085_v1, %v6919_v58  ;;  %v2070_v27 = vrot.slane %v2056_v28, %v6919_v58 }
 0x26c   :  { %v3041_v57 = vcombine.low %v3033_v53, %v3040_v63  ;;  %v3118_v30 = vrot.slane %v3110_v43, %v6919_v58  ;;  %v3125_v3 = vrot.slane %v3111_v51, %v6919_v58  ;;  %v2005_v6 = vcombine.high %v6070_v0, %v6070_v0 }
 0x26d   :  { %v3059_v29 = vcombine.low %v1978_v18, %v1986_v31  ;;  %v3060_v22 = vcombine.low %v1985_v55, %v1987_v35  ;;  %v2071_v23 = vcombine.high %v2063_v14, %v2063_v14  ;;  %v2072_v62 = vcombine.high %v2070_v27, %v2070_v27 }
 0x26e   :  { %3624 = vperm.xlu1 %4240, %v3041_v57   ;;  %v3126_v25 = vcombine.low %v3118_v30, %v3125_v3  ;;  %v2012_v12 = vrot.slane %v6070_v0, %v6919_v58  ;;  %v2019_v1 = vrot.slane %v2005_v6, %v6919_v58  ;;  %v2158_v4 = vcombine.high %v6116_v38, %v6116_v38 }
 0x26f   :  { %v3067_v61 = vrot.slane %v3059_v29, %v6919_v58  ;;  %v3074_v2 = vrot.slane %v3060_v22, %v6919_v58  ;;  %v3144_v8 = vcombine.low %v2063_v14, %v2071_v23  ;;  %v3145_v11 = vcombine.low %v2070_v27, %v2072_v62 }
 0x270   :  { %3639 = vperm.xlu0 %4239, %v3126_v25   ;;  %v2020_v40 = vcombine.high %v2012_v12, %v2012_v12  ;;  %v2021_v13 = vcombine.high %v2019_v1, %v2019_v1  ;;  %v2165_v21 = vrot.slane %v6116_v38, %v6919_v58  ;;  %v2172_v44 = vrot.slane %v2158_v4, %v6919_v58 }
 0x271   :  { %v3075_v0 = vcombine.low %v3067_v61, %v3074_v2  ;;  %v3152_v49 = vrot.slane %v3144_v8, %v6919_v58  ;;  %v3159_v47 = vrot.slane %v3145_v11, %v6919_v58  ;;  %v2039_v33 = vcombine.high %v6079_v17, %v6079_v17 }
 0x272   :  { %v3093_v34 = vcombine.low %v2012_v12, %v2020_v40  ;;  %v3094_v50 = vcombine.low %v2019_v1, %v2021_v13  ;;  %v2173_v24 = vcombine.high %v2165_v21, %v2165_v21  ;;  %v2174_v7 = vcombine.high %v2172_v44, %v2172_v44 }
 0x273   :  { %3630 = vperm.xlu1 %4240, %v3075_v0   ;;  %v3160_v56 = vcombine.low %v3152_v49, %v3159_v47  ;;  %v2046_v52 = vrot.slane %v6079_v17, %v6919_v58  ;;  %v2053_v38 = vrot.slane %v2039_v33, %v6919_v58  ;;  %v2192_v54 = vcombine.high %v6127_v59, %v6127_v59 }
 0x274   :  { %v3101_v18 = vrot.slane %v3093_v34, %v6919_v58  ;;  %v3108_v55 = vrot.slane %v3094_v50, %v6919_v58  ;;  %v3246_v28 = vcombine.low %v2165_v21, %v2173_v24  ;;  %v3247_v53 = vcombine.low %v2172_v44, %v2174_v7 }
 0x275   :  { %3645 = vperm.xlu0 %4239, %v3160_v56   ;;  %v2054_v63 = vcombine.high %v2046_v52, %v2046_v52  ;;  %v2055_v43 = vcombine.high %v2053_v38, %v2053_v38  ;;  %v2199_v51 = vrot.slane %v6127_v59, %v6919_v58  ;;  %v2206_v31 = vrot.slane %v2192_v54, %v6919_v58 }
 0x276   :  { %v3109_v17 = vcombine.low %v3101_v18, %v3108_v55  ;;  %v3254_v35 = vrot.slane %v3246_v28, %v6919_v58  ;;  %v3261_v14 = vrot.slane %v3247_v53, %v6919_v58  ;;  %v2073_v27 = vcombine.high %v6090_v37, %v6090_v37 }
 0x277   :  { %v3127_v57 = vcombine.low %v2046_v52, %v2054_v63  ;;  %v3128_v30 = vcombine.low %v2053_v38, %v2055_v43  ;;  %v2207_v3 = vcombine.high %v2199_v51, %v2199_v51  ;;  %v2208_v6 = vcombine.high %v2206_v31, %v2206_v31 }
 0x278   :  { %3636 = vperm.xlu1 %4240, %v3109_v17   ;;  %v3262_v29 = vcombine.low %v3254_v35, %v3261_v14  ;;  %v2080_v22 = vrot.slane %v6090_v37, %v6919_v58  ;;  %v2087_v59 = vrot.slane %v2073_v27, %v6919_v58  ;;  %v2226_v23 = vcombine.high %v6137_v10, %v6137_v10 }
 0x279   :  { %v3135_v62 = vrot.slane %v3127_v57, %v6919_v58  ;;  %v3142_v25 = vrot.slane %v3128_v30, %v6919_v58  ;;  %v3280_v12 = vcombine.low %v2199_v51, %v2207_v3  ;;  %v3281_v1 = vcombine.low %v2206_v31, %v2208_v6 }
 0x27a   :  { %3663 = vperm.xlu0 %4239, %v3262_v29   ;;  %v2088_v4 = vcombine.high %v2080_v22, %v2080_v22  ;;  %v2089_v61 = vcombine.high %v2087_v59, %v2087_v59  ;;  %v2233_v2 = vrot.slane %v6137_v10, %v6919_v58  ;;  %v2240_v8 = vrot.slane %v2226_v23, %v6919_v58 }
 0x27b   :  { %v3143_v37 = vcombine.low %v3135_v62, %v3142_v25  ;;  %v3288_v11 = vrot.slane %v3280_v12, %v6919_v58  ;;  %v3295_v40 = vrot.slane %v3281_v1, %v6919_v58  ;;  %v2175_v13 = vcombine.high %v6121_v41, %v6121_v41  ;;  %v6394_v12 = vpop.permute.xlu0 %3525 }
 0x27c   :  { %v3161_v21 = vcombine.low %v2080_v22, %v2088_v4  ;;  %v3162_v44 = vcombine.low %v2087_v59, %v2089_v61  ;;  %v2241_v0 = vcombine.high %v2233_v2, %v2233_v2  ;;  %v2242_v49 = vcombine.high %v2240_v8, %v2240_v8 }
 0x27d   :  { %3642 = vperm.xlu1 %4240, %v3143_v37   ;;  %v3296_v47 = vcombine.low %v3288_v11, %v3295_v40  ;;  %v2182_v33 = vrot.slane %v6121_v41, %v6919_v58  ;;  %v2189_v10 = vrot.slane %v2175_v13, %v6919_v58  ;;  %v2260_v34 = vcombine.high %v6146_v16, %v6146_v16 }
 0x27e   :  { %v3169_v50 = vrot.slane %v3161_v21, %v6919_v58  ;;  %v3176_v24 = vrot.slane %v3162_v44, %v6919_v58  ;;  %v3314_v7 = vcombine.low %v2233_v2, %v2241_v0  ;;  %v3315_v56 = vcombine.low %v2240_v8, %v2242_v49  ;;  %v6403_v0 = vpop.permute.xlu1 %3519 }
 0x27f   :  { %3669 = vperm.xlu0 %4239, %v3296_v47   ;;  %v2190_v52 = vcombine.high %v2182_v33, %v2182_v33  ;;  %v2191_v38 = vcombine.high %v2189_v10, %v2189_v10  ;;  %v2267_v54 = vrot.slane %v6146_v16, %v6919_v58  ;;  %v2274_v18 = vrot.slane %v2260_v34, %v6919_v58 }
 0x280   :  { %v3177_v41 = vcombine.low %v3169_v50, %v3176_v24  ;;  %v3322_v55 = vrot.slane %v3314_v7, %v6919_v58  ;;  %v3329_v28 = vrot.slane %v3315_v56, %v6919_v58  ;;  %v2209_v53 = vcombine.high %v6130_v48, %v6130_v48 }
 0x281   :  { %v3263_v63 = vcombine.low %v2182_v33, %v2190_v52  ;;  %v3264_v43 = vcombine.low %v2189_v10, %v2191_v38  ;;  %v2275_v51 = vcombine.high %v2267_v54, %v2267_v54  ;;  %v2276_v31 = vcombine.high %v2274_v18, %v2274_v18 }
 0x282   :  { %3648 = vperm.xlu1 %4240, %v3177_v41   ;;  %v3330_v17 = vcombine.low %v3322_v55, %v3329_v28  ;;  %v2216_v35 = vrot.slane %v6130_v48, %v6919_v58  ;;  %v2223_v16 = vrot.slane %v2209_v53, %v6919_v58  ;;  %v2294_v14 = vcombine.high %v6154_v20, %v6154_v20 }
 0x283   :  { %v3271_v27 = vrot.slane %v3263_v63, %v6919_v58  ;;  %v3278_v57 = vrot.slane %v3264_v43, %v6919_v58  ;;  %v3348_v30 = vcombine.low %v2267_v54, %v2275_v51  ;;  %v3349_v3 = vcombine.low %v2274_v18, %v2276_v31 }
 0x284   :  { %3675 = vperm.xlu0 %4239, %v3330_v17   ;;  %v2224_v6 = vcombine.high %v2216_v35, %v2216_v35  ;;  %v2225_v29 = vcombine.high %v2223_v16, %v2223_v16  ;;  %v2301_v22 = vrot.slane %v6154_v20, %v6919_v58  ;;  %v2308_v59 = vrot.slane %v2294_v14, %v6919_v58 }
 0x285   :  { %v3279_v48 = vcombine.low %v3271_v27, %v3278_v57  ;;  %v3356_v23 = vrot.slane %v3348_v30, %v6919_v58  ;;  %v3363_v62 = vrot.slane %v3349_v3, %v6919_v58  ;;  %v2243_v25 = vcombine.high %v6143_v60, %v6143_v60 }
 0x286   :  { %v3297_v1 = vcombine.low %v2216_v35, %v2224_v6  ;;  %v3298_v4 = vcombine.low %v2223_v16, %v2225_v29  ;;  %v2309_v61 = vcombine.high %v2301_v22, %v2301_v22  ;;  %v2310_v2 = vcombine.high %v2308_v59, %v2308_v59 }
 0x287   :  { %3666 = vperm.xlu1 %4240, %v3279_v48   ;;  %v3364_v8 = vcombine.low %v3356_v23, %v3363_v62  ;;  %v2250_v20 = vrot.slane %v6143_v60, %v6919_v58  ;;  %v2257_v37 = vrot.slane %v2243_v25, %v6919_v58  ;;  %v2328_v11 = vcombine.high %v6165_v46, %v6165_v46 }
 0x288   :  { %v3305_v40 = vrot.slane %v3297_v1, %v6919_v58  ;;  %v3312_v13 = vrot.slane %v3298_v4, %v6919_v58  ;;  %v3382_v21 = vcombine.low %v2301_v22, %v2309_v61  ;;  %v3383_v44 = vcombine.low %v2308_v59, %v2310_v2 }
 0x289   :  { %3681 = vperm.xlu0 %4239, %v3364_v8   ;;  %v2258_v49 = vcombine.high %v2250_v20, %v2250_v20  ;;  %v2259_v47 = vcombine.high %v2257_v37, %v2257_v37  ;;  %v2335_v33 = vrot.slane %v6165_v46, %v6919_v58  ;;  %v2342_v60 = vrot.slane %v2328_v11, %v6919_v58  ;;  %v6412_v54 = vpop.permute.xlu0 %3531 }
 0x28a   :  { %v3313_v10 = vcombine.low %v3305_v40, %v3312_v13  ;;  %v3390_v34 = vrot.slane %v3382_v21, %v6919_v58  ;;  %v3397_v50 = vrot.slane %v3383_v44, %v6919_v58  ;;  %v2277_v24 = vcombine.high %v6151_v32, %v6151_v32 }
 0x28b   :  { %v3331_v7 = vcombine.low %v2250_v20, %v2258_v49  ;;  %v3332_v56 = vcombine.low %v2257_v37, %v2259_v47  ;;  %v2343_v52 = vcombine.high %v2335_v33, %v2335_v33  ;;  %v2344_v38 = vcombine.high %v2342_v60, %v2342_v60 }
 0x28c   :  { %3672 = vperm.xlu1 %4240, %v3313_v10   ;;  %v3398_v18 = vcombine.low %v3390_v34, %v3397_v50  ;;  %v2284_v46 = vrot.slane %v6151_v32, %v6919_v58  ;;  %v2291_v41 = vrot.slane %v2277_v24, %v6919_v58  ;;  %v2090_v55 = vcombine.high %v6093_v36, %v6093_v36  ;;  %v6424_v32 = vpop.permute.xlu1 %3522 }
 0x28d   :  { %v3339_v28 = vrot.slane %v3331_v7, %v6919_v58  ;;  %v3346_v53 = vrot.slane %v3332_v56, %v6919_v58  ;;  %v3416_v63 = vcombine.low %v2335_v33, %v2343_v52  ;;  %v3417_v43 = vcombine.low %v2342_v60, %v2344_v38  ;;  %v6435_v23 = vpop.permute.xlu0 %3537 }
 0x28e   :  { %3687 = vperm.xlu0 %4239, %v3398_v18   ;;  %v2292_v51 = vcombine.high %v2284_v46, %v2284_v46  ;;  %v2293_v31 = vcombine.high %v2291_v41, %v2291_v41  ;;  %v2097_v17 = vrot.slane %v6093_v36, %v6919_v58  ;;  %v2104_v35 = vrot.slane %v2090_v55, %v6919_v58 }
 0x28f   :  { %v3347_v16 = vcombine.low %v3339_v28, %v3346_v53  ;;  %v3424_v14 = vrot.slane %v3416_v63, %v6919_v58  ;;  %v3431_v27 = vrot.slane %v3417_v43, %v6919_v58  ;;  %v2311_v57 = vcombine.high %v6161_v9, %v6161_v9 }
 0x290   :  { %v3365_v30 = vcombine.low %v2284_v46, %v2292_v51  ;;  %v3366_v3 = vcombine.low %v2291_v41, %v2293_v31  ;;  %v2105_v6 = vcombine.high %v2097_v17, %v2097_v17  ;;  %v2106_v29 = vcombine.high %v2104_v35, %v2104_v35  ;;  %v6446_v13 = vpop.permute.xlu1 %3528 }
 0x291   :  { %3678 = vperm.xlu1 %4240, %v3347_v16   ;;  %v3432_v22 = vcombine.low %v3424_v14, %v3431_v27  ;;  %v2318_v36 = vrot.slane %v6161_v9, %v6919_v58  ;;  %v2325_v59 = vrot.slane %v2311_v57, %v6919_v58  ;;  %v2107_v48 = vcombine.high %v6099_v39, %v6099_v39 }
 0x292   :  { %v3373_v62 = vrot.slane %v3365_v30, %v6919_v58  ;;  %v3380_v25 = vrot.slane %v3366_v3, %v6919_v58  ;;  %v3178_v1 = vcombine.low %v2097_v17, %v2105_v6  ;;  %v3179_v4 = vcombine.low %v2104_v35, %v2106_v29 }
 0x293   :  { %3693 = vperm.xlu0 %4239, %v3432_v22   ;;  %v2326_v61 = vcombine.high %v2318_v36, %v2318_v36  ;;  %v2327_v2 = vcombine.high %v2325_v59, %v2325_v59  ;;  %v2114_v8 = vrot.slane %v6099_v39, %v6919_v58  ;;  %v2121_v9 = vrot.slane %v2107_v48, %v6919_v58 }
 0x294   :  { %v3381_v20 = vcombine.low %v3373_v62, %v3380_v25  ;;  %v3186_v37 = vrot.slane %v3178_v1, %v6919_v58  ;;  %v3193_v11 = vrot.slane %v3179_v4, %v6919_v58  ;;  %v2345_v40 = vcombine.high %v6170_v42, %v6170_v42 }
 0x295   :  { %v3399_v21 = vcombine.low %v2318_v36, %v2326_v61  ;;  %v3400_v44 = vcombine.low %v2325_v59, %v2327_v2  ;;  %v2122_v49 = vcombine.high %v2114_v8, %v2114_v8  ;;  %v2123_v47 = vcombine.high %v2121_v9, %v2121_v9  ;;  %v6455_v56 = vpop.permute.xlu0 %3543 }
 0x296   :  { %3684 = vperm.xlu1 %4240, %v3381_v20   ;;  %v3194_v33 = vcombine.low %v3186_v37, %v3193_v11  ;;  %v2352_v39 = vrot.slane %v6170_v42, %v6919_v58  ;;  %v2359_v60 = vrot.slane %v2345_v40, %v6919_v58  ;;  %v2124_v10 = vcombine.high %v6103_v5, %v6103_v5  ;;  %v6464_v31 = vpop.permute.xlu1 %3534 }
 0x297   :  { %v3407_v34 = vrot.slane %v3399_v21, %v6919_v58  ;;  %v3414_v50 = vrot.slane %v3400_v44, %v6919_v58  ;;  %v3195_v24 = vcombine.low %v2114_v8, %v2122_v49  ;;  %v3196_v7 = vcombine.low %v2121_v9, %v2123_v47 }
 0x298   :  { %3651 = vperm.xlu0 %4239, %v3194_v33   ;;  %v2360_v52 = vcombine.high %v2352_v39, %v2352_v39  ;;  %v2361_v38 = vcombine.high %v2359_v60, %v2359_v60  ;;  %v2131_v18 = vrot.slane %v6103_v5, %v6919_v58  ;;  %v2138_v42 = vrot.slane %v2124_v10, %v6919_v58 }
 0x299   :  { %v3415_v46 = vcombine.low %v3407_v34, %v3414_v50  ;;  %v3203_v41 = vrot.slane %v3195_v24, %v6919_v58  ;;  %v3210_v55 = vrot.slane %v3196_v7, %v6919_v58  ;;  %v2362_v28 = vcombine.high %v6176_v15, %v6176_v15 }
 0x29a   :  { %v3433_v53 = vcombine.low %v2352_v39, %v2360_v52  ;;  %v3434_v63 = vcombine.low %v2359_v60, %v2361_v38  ;;  %v2139_v43 = vcombine.high %v2131_v18, %v2131_v18  ;;  %v2140_v51 = vcombine.high %v2138_v42, %v2138_v42  ;;  %v6939_v39 = vld [vmem:[#allocation2_spill] sm:$0xff] }
 0x29b   :  { %3690 = vperm.xlu1 %4240, %v3415_v46   ;;  %v3211_v17 = vcombine.low %v3203_v41, %v3210_v55  ;;  %v2369_v5 = vrot.slane %v6176_v15, %v6919_v58  ;;  %v2376_v35 = vrot.slane %v2362_v28, %v6919_v58  ;;  %v2141_v16 = vcombine.high %v6111_v45, %v6111_v45  ;;  %v6476_v15 = vpop.permute.xlu0 %3549 }
 0x29c   :  { %v3441_v14 = vrot.slane %v3433_v53, %v6919_v58  ;;  %v3448_v27 = vrot.slane %v3434_v63, %v6919_v58  ;;  %v3212_v57 = vcombine.low %v2131_v18, %v2139_v43  ;;  %v3213_v30 = vcombine.low %v2138_v42, %v2140_v51 }
 0x29d   :  { %3654 = vperm.xlu0 %4239, %v3211_v17   ;;  %v2377_v3 = vcombine.high %v2369_v5, %v2369_v5  ;;  %v2378_v6 = vcombine.high %v2376_v35, %v2376_v35  ;;  %v2148_v29 = vrot.slane %v6111_v45, %v6919_v58  ;;  %v2155_v22 = vrot.slane %v2141_v16, %v6919_v58 }
 0x29e   :  { %v3449_v36 = vcombine.low %v3441_v14, %v3448_v27  ;;  %v3220_v59 = vrot.slane %v3212_v57, %v6919_v58  ;;  %v3227_v48 = vrot.slane %v3213_v30, %v6919_v58  ;;  %v2379_v62 = vcombine.high %v6180_v26, %v6180_v26  ;;  %v6488_v37 = vpop.permute.xlu1 %3540 }
 0x29f   :  { %v3450_v25 = vcombine.low %v2369_v5, %v2377_v3  ;;  %v3451_v1 = vcombine.low %v2376_v35, %v2378_v6  ;;  %v2156_v4 = vcombine.high %v2148_v29, %v2148_v29  ;;  %v2157_v61 = vcombine.high %v2155_v22, %v2155_v22  ;;  %v6940_v35 = vld [vmem:[#allocation15_spill] sm:$0xff] }
 0x2a0   :  { %3696 = vperm.xlu1 %4240, %v3449_v36   ;;  %v3228_v2 = vcombine.low %v3220_v59, %v3227_v48  ;;  %v2386_v45 = vrot.slane %v6180_v26, %v6919_v58  ;;  %v2393_v8 = vrot.slane %v2379_v62, %v6919_v58  ;;  %v6938_v9 = vlaneseq }
 0x2a1   :  { %v3458_v11 = vrot.slane %v3450_v25, %v6919_v58  ;;  %v3465_v40 = vrot.slane %v3451_v1, %v6919_v58  ;;  %v3229_v21 = vcombine.low %v2148_v29, %v2156_v4  ;;  %v3230_v44 = vcombine.low %v2155_v22, %v2157_v61  ;;  %v6501_v24 = vpop.permute.xlu0 %3555 }
 0x2a2   :  { %v6486_v20 = vand.u32 127, %v6938_v9  ;;  %3657 = vperm.xlu0 %4239, %v3228_v2   ;;  %v2394_v49 = vcombine.high %v2386_v45, %v2386_v45  ;;  %v2395_v47 = vcombine.high %v2393_v8, %v2393_v8  ;;  %v2396_v50 = vcombine.high %v6185_v19, %v6185_v19 }
 0x2a3   :  { %v3466_v60 = vcombine.low %v3458_v11, %v3465_v40  ;;  %v3237_v10 = vrot.slane %v3229_v21, %v6919_v58  ;;  %v3244_v34 = vrot.slane %v3230_v44, %v6919_v58  ;;  %v2403_v42 = vrot.slane %v6185_v19, %v6919_v58  ;;  %v6512_v53 = vpop.permute.xlu1 %3546 }
 0x2a4   :  { %v3723_v33 = vadd.s32 4294967280, %v6486_v20  ;;  %v6495_v26 = vsub.s32 %v6486_v20, %v6939_v39  ;;  %v3467_v7 = vcombine.low %v2386_v45, %v2394_v49  ;;  %v3468_v52 = vcombine.low %v2393_v8, %v2395_v47 }
 0x2a5   :  { %3699 = vperm.xlu1 %4240, %v3466_v60   ;;  %v3245_v38 = vcombine.low %v3237_v10, %v3244_v34  ;;  %v2410_v46 = vrot.slane %v2396_v50, %v6919_v58  ;;  %v3716_v28 = vadd.s32 4294967288, %v6486_v20  ;;  %v2411_v43 = vcombine.high %v2403_v42, %v2403_v42 }
 0x2a6   :  { %v6504_v18 = vsub.s32 %v3723_v33, %v6939_v39  ;;  %v3475_v41 = vrot.slane %v3467_v7, %v6919_v58  ;;  %v3482_v55 = vrot.slane %v3468_v52, %v6919_v58  ;;  %v3715_v63 = vrot.slane %v6403_v0, %v6495_v26 }
 0x2a7   :  { %3660 = vperm.xlu0 %4239, %v3245_v38   ;;  %v2412_v51 = vcombine.high %v2410_v46, %v2410_v46  ;;  %v3737_v17 = vadd.s32 4294967264, %v6486_v20  ;;  %v6518_v19 = vsub.s32 %v3716_v28, %v6939_v39  ;;  %v2413_v16 = vcombine.high %v6940_v35, %v6940_v35 }
 0x2a8   :  { %v3483_v5 = vcombine.low %v3475_v41, %v3482_v55  ;;  %v2420_v14 = vrot.slane %v6940_v35, %v6919_v58  ;;  %v3727_v27 = vrot.slane %v6394_v12, %v6504_v18  ;;  %v3484_v57 = vcombine.low %v2403_v42, %v2411_v43  ;;  %v6526_v0 = vpop.permute.xlu0 %3561 }
 0x2a9   :  { %v3485_v30 = vcombine.low %v2410_v46, %v2412_v51  ;;  %v3720_v3 = vrot.slane %v6424_v32, %v6518_v19  ;;  %v2427_v6 = vrot.slane %v2413_v16, %v6919_v58  ;;  %v6534_v59 = vsub.s32 %v3737_v17, %v6939_v39 }
 0x2aa   :  { %3702 = vperm.xlu1 %4240, %v3483_v5   ;;  %v2428_v29 = vcombine.high %v2420_v14, %v2420_v14  ;;  %v3492_v22 = vrot.slane %v3484_v57, %v6919_v58  ;;  %v3730_v12 = vadd.s32 4294967272, %v6486_v20  ;;  %v3751_v1 = vadd.s32 4294967248, %v6486_v20 }
 0x2ab   :  { %v3499_v36 = vrot.slane %v3485_v30, %v6919_v58  ;;  %v3722_v48 = vsel %vm3721_vm1, %v3720_v3, %v3715_v63  ;;  %v2429_v62 = vcombine.high %v2427_v6, %v2427_v6  ;;  %v6539_v32 = vpop.permute.xlu1 %3552  ;;  %v3765_v8 = vadd.s32 4294967232, %v6486_v20 }
 0x2ac   :  { %v3501_v25 = vcombine.low %v2420_v14, %v2428_v29  ;;  %v3729_v61 = vsel %vm3728_vm2, %v3727_v27, %v3722_v48  ;;  %v6543_v2 = vsub.s32 %v3730_v12, %v6939_v39  ;;  %v3741_v9 = vrot.slane %v6412_v54, %v6534_v59 }
 0x2ad   :  { %v3500_v4 = vcombine.low %v3492_v22, %v3499_v36  ;;  %v3502_v45 = vcombine.low %v2427_v6, %v2429_v62  ;;  %v3744_v40 = vadd.s32 4294967256, %v6486_v20  ;;  %v6551_v21 = vpop.permute.xlu0 %3567  ;;  %v6556_v47 = vsub.s32 %v3751_v1, %v6939_v39 }
 0x2ae   :  { %v3734_v11 = vrot.slane %v6446_v13, %v6543_v2  ;;  %v3509_v44 = vrot.slane %v3501_v25, %v6919_v58  ;;  %v3758_v33 = vadd.s32 4294967240, %v6486_v20  ;;  %v3779_v13 = vadd.s32 4294967216, %v6486_v20 }
 0x2af   :  { %3705 = vperm.xlu1 %4240, %v3500_v4   ;;  %v3516_v49 = vrot.slane %v3502_v45, %v6919_v58  ;;  %v6561_v54 = vsub.s32 %v3744_v40, %v6939_v39  ;;  %v6565_v34 = vsub.s32 %v3765_v8, %v6939_v39  ;;  %v3793_v38 = vadd.s32 4294967200, %v6486_v20 }
 0x2b0   :  { %v3736_v60 = vsel %vm3735_vm3, %v3734_v11, %v3729_v61  ;;  %v6569_v58 = vsub.s32 %v3758_v33, %v6939_v39  ;;  %v3755_v42 = vrot.slane %v6435_v23, %v6556_v47  ;;  %v3772_v41 = vadd.s32 4294967224, %v6486_v20 }
 0x2b1   :  { %v3517_v10 = vcombine.low %v3509_v44, %v3516_v49  ;;  %v3743_v50 = vsel %vm3742_vm4, %v3741_v9, %v3736_v60  ;;  %v3748_v52 = vrot.slane %v6464_v31, %v6561_v54  ;;  %v6581_v28 = vsub.s32 %v3779_v13, %v6939_v39 }
 0x2b2   :  { %v3559_v7 = vpop.permute.xlu1 %3558  ;;  %v3762_v46 = vrot.slane %v6488_v37, %v6569_v58  ;;  %v3786_v31 = vadd.s32 4294967208, %v6486_v20  ;;  %v3769_v43 = vrot.slane %v6455_v56, %v6565_v34  ;;  %v6588_v51 = vsub.s32 %v3772_v41, %v6939_v39 }
 0x2b3   :  { %3708 = vperm.xlu1 %4240, %v3517_v10   ;;  %v3750_v55 = vsel %vm3749_vm5, %v3748_v52, %v3743_v50  ;;  %v3807_v37 = vadd.s32 4294967184, %v6486_v20  ;;  %v6593_v5 = vsub.s32 %v3793_v38, %v6939_v39  ;;  %v3783_v27 = vrot.slane %v6476_v15, %v6581_v28 }
 0x2b4   :  { %v3757_v23 = vsel %vm3756_vm6, %v3755_v42, %v3750_v55  ;;  %v6596_v35 = vsub.s32 %v3786_v31, %v6939_v39  ;;  %v3776_v56 = vrot.slane %v6512_v53, %v6588_v51  ;;  %v3800_v30 = vadd.s32 4294967192, %v6486_v20 }
 0x2b5   :  { %v3574_v63 = vpop.permute.xlu0 %3573  ;;  %v3764_v17 = vsel %vm3763_vm7, %v3762_v46, %v3757_v23  ;;  %v6608_v29 = vsub.s32 %v3807_v37, %v6939_v39  ;;  %v3814_v22 = vadd.s32 4294967176, %v6486_v20  ;;  %v3797_v53 = vrot.slane %v6501_v24, %v6593_v5 }
 0x2b6   :  { %v3771_v14 = vsel %vm3770_vm8, %v3769_v43, %v3764_v17  ;;  %v3790_v57 = vrot.slane %v6539_v32, %v6596_v35  ;;  %v6615_v36 = vsub.s32 %v3800_v30, %v6939_v39  ;;  %v3824_v48 = vrot.slane %v6551_v21, %v6495_v26 }
 0x2b7   :  { %v3565_v16 = vpop.permute.xlu1 %3564  ;;  %v3778_v6 = vsel %vm3777_vm9, %v3776_v56, %v3771_v14  ;;  %v6621_v62 = vsub.s32 %v3814_v22, %v6939_v39  ;;  %v3811_v32 = vrot.slane %v6526_v0, %v6608_v29  ;;  %v3833_v4 = vrot.slane %v3574_v63, %v6504_v18 }
 0x2b8   :  { %v3785_v15 = vsel %vm3784_vm10, %v3783_v27, %v3778_v6  ;;  %v3804_v1 = vrot.slane %v3559_v7, %v6615_v36 }
 0x2b9   :  { %v3580_v3 = vpop.permute.xlu0 %3579  ;;  %v3792_v12 = vsel %vm3791_vm11, %v3790_v57, %v3785_v15  ;;  %v3818_v61 = vrot.slane %v3565_v16, %v6621_v62 }
 0x2ba   :  { %v3799_v20 = vsel %vm3798_vm12, %v3797_v53, %v3792_v12  ;;  %v3843_v44 = vrot.slane %v3580_v3, %v6534_v59 }
 0x2bb   :  { %v3806_v45 = vsel %vm3805_vm13, %v3804_v1, %v3799_v20 }
 0x2bc   :  { %v3571_v25 = vpop.permute.xlu1 %3570  ;;  %v3813_v9 = vsel %vm3812_vm14, %v3811_v32, %v3806_v45 }
 0x2bd   :  { %v3828_v24 = vrot.slane %v3571_v25, %v6518_v19  ;;  %v6635_v40 = vsel %vm3819_vm15, %v3818_v61, %v3813_v9 }
 0x2bf   :  { %v3829_v39 = vsel %vm3721_vm1, %v3828_v24, %v3824_v48  ;;  %v3586_v8 = vpop.permute.xlu0 %3585 }
 0x2c0   :  { %v3834_v11 = vsel %vm3728_vm2, %v3833_v4, %v3829_v39  ;;  %v3853_v50 = vrot.slane %v3586_v8, %v6556_v47 }
 0x2c1   :  { %v3577_v21 = vpop.permute.xlu1 %3576 }
 0x2c2   :  { %v3838_v0 = vrot.slane %v3577_v21, %v6543_v2 }
 0x2c3   :  { %v3592_v49 = vpop.permute.xlu0 %3591 }
 0x2c4   :  { %v3839_v33 = vsel %vm3735_vm3, %v3838_v0, %v3834_v11  ;;  %v3863_v41 = vrot.slane %v3592_v49, %v6565_v34 }
 0x2c5   :  { %v3844_v60 = vsel %vm3742_vm4, %v3843_v44, %v3839_v33 }
 0x2c6   :  { %v3583_v13 = vpop.permute.xlu1 %3582 }
 0x2c7   :  { %v3848_v10 = vrot.slane %v3583_v13, %v6561_v54 }
 0x2c8   :  { %v3598_v7 = vpop.permute.xlu0 %3597 }
 0x2c9   :  { %v3849_v52 = vsel %vm3749_vm5, %v3848_v10, %v3844_v60  ;;  %v3873_v37 = vrot.slane %v3598_v7, %v6581_v28 }
 0x2ca   :  { %v3854_v38 = vsel %vm3756_vm6, %v3853_v50, %v3849_v52 }
 0x2cb   :  { %v3589_v42 = vpop.permute.xlu1 %3588 }
 0x2cc   :  { %v3858_v46 = vrot.slane %v3589_v42, %v6569_v58 }
 0x2cd   :  { %v3604_v55 = vpop.permute.xlu0 %3603 }
 0x2ce   :  { %v3859_v31 = vsel %vm3763_vm7, %v3858_v46, %v3854_v38  ;;  %v3883_v57 = vrot.slane %v3604_v55, %v6593_v5 }
 0x2cf   :  { %v3864_v63 = vsel %vm3770_vm8, %v3863_v41, %v3859_v31 }
 0x2d0   :  { %v3595_v43 = vpop.permute.xlu1 %3594 }
 0x2d1   :  { %v3868_v23 = vrot.slane %v3595_v43, %v6588_v51 }
 0x2d2   :  { %v3610_v17 = vpop.permute.xlu0 %3609 }
 0x2d3   :  { %v3869_v16 = vsel %vm3777_vm9, %v3868_v23, %v3864_v63  ;;  %v3893_v48 = vrot.slane %v3610_v17, %v6608_v29 }
 0x2d4   :  { %v3874_v14 = vsel %vm3784_vm10, %v3873_v37, %v3869_v16 }
 0x2d5   :  { %v3601_v56 = vpop.permute.xlu1 %3600 }
 0x2d6   :  { %v3878_v27 = vrot.slane %v3601_v56, %v6596_v35 }
 0x2d7   :  { %v3616_v30 = vpop.permute.xlu0 %3615 }
 0x2d8   :  { %v3879_v3 = vsel %vm3791_vm11, %v3878_v27, %v3874_v14  ;;  %v3903_v46 = vrot.slane %v3616_v30, %v6495_v26 }
 0x2d9   :  { %v3884_v6 = vsel %vm3798_vm12, %v3883_v57, %v3879_v3 }
 0x2da   :  { %v3607_v22 = vpop.permute.xlu1 %3606 }
 0x2db   :  { %v3888_v53 = vrot.slane %v3607_v22, %v6615_v36 }
 0x2dc   :  { %v3622_v15 = vpop.permute.xlu0 %3621 }
 0x2dd   :  { %v3889_v12 = vsel %vm3805_vm13, %v3888_v53, %v3884_v6  ;;  %v3912_v37 = vrot.slane %v3622_v15, %v6504_v18 }
 0x2de   :  { %v3894_v1 = vsel %vm3812_vm14, %v3893_v48, %v3889_v12 }
 0x2df   :  { %v3613_v25 = vpop.permute.xlu1 %3612 }
 0x2e0   :  { %v3898_v20 = vrot.slane %v3613_v25, %v6621_v62 }
 0x2e1   :  { %v3628_v24 = vpop.permute.xlu0 %3627 }
 0x2e2   :  { %v6663_v32 = vsel %vm3819_vm15, %v3898_v20, %v3894_v1  ;;  %v3922_v30 = vrot.slane %v3628_v24, %v6534_v59 }
 0x2e4   :  { %v3619_v4 = vpop.permute.xlu1 %3618 }
 0x2e5   :  { %v3907_v42 = vrot.slane %v3619_v4, %v6518_v19 }
 0x2e6   :  { %v3634_v61 = vpop.permute.xlu0 %3633 }
 0x2e7   :  { %v3908_v63 = vsel %vm3721_vm1, %v3907_v42, %v3903_v46  ;;  %v3932_v48 = vrot.slane %v3634_v61, %v6556_v47 }
 0x2e8   :  { %v3913_v14 = vsel %vm3728_vm2, %v3912_v37, %v3908_v63 }
 0x2e9   :  { %v3625_v45 = vpop.permute.xlu1 %3624 }
 0x2ea   :  { %v3917_v43 = vrot.slane %v3625_v45, %v6543_v2 }
 0x2eb   :  { %v3640_v39 = vpop.permute.xlu0 %3639 }
 0x2ee   :  { %v3631_v8 = vpop.permute.xlu1 %3630 }
 0x2ef   :  { %v3927_v57 = vrot.slane %v3631_v8, %v6561_v54  ;;  %v3942_v8 = vrot.slane %v3640_v39, %v6565_v34 }
 0x2f0   :  { %v6665_v9 = vpop.permute.xlu0 %3645 }
 0x2f3   :  { %v3637_v11 = vpop.permute.xlu1 %3636 }
 0x2f4   :  { %v3937_v15 = vrot.slane %v3637_v11, %v6569_v58 }
 0x2f5   :  { %v3664_v21 = vpop.permute.xlu0 %3663 }
 0x2f6   :  { %v3982_v23 = vrot.slane %v3664_v21, %v6495_v26 }
 0x2f8   :  { %v3643_v0 = vpop.permute.xlu1 %3642 }
 0x2f9   :  { %v3947_v45 = vrot.slane %v3643_v0, %v6588_v51  ;;  %v3952_v0 = vrot.slane %v6665_v9, %v6581_v28 }
 0x2fa   :  { %v3670_v44 = vpop.permute.xlu0 %3669 }
 0x2fb   :  { %v3991_v56 = vrot.slane %v3670_v44, %v6504_v18 }
 0x2fd   :  { %v6667_v49 = vpop.permute.xlu1 %3648 }
 0x2ff   :  { %v3676_v33 = vpop.permute.xlu0 %3675 }
 0x300   :  { %v4001_v53 = vrot.slane %v3676_v33, %v6534_v59 }
 0x302   :  { %v3667_v60 = vpop.permute.xlu1 %3666 }
 0x303   :  { %v3986_v41 = vrot.slane %v3667_v60, %v6518_v19  ;;  %v3918_v19 = vsel %vm3735_vm3, %v3917_v43, %v3913_v14  ;;  %v3957_v60 = vrot.slane %v6667_v49, %v6596_v35 }
 0x304   :  { %v3682_v13 = vpop.permute.xlu0 %3681 }
 0x305   :  { %v3987_v17 = vsel %vm3721_vm1, %v3986_v41, %v3982_v23 }
 0x306   :  { %v3992_v3 = vsel %vm3728_vm2, %v3991_v56, %v3987_v17 }
 0x307   :  { %v3673_v10 = vpop.permute.xlu1 %3672 }
 0x308   :  { %v3996_v16 = vrot.slane %v3673_v10, %v6543_v2  ;;  %v3923_v2 = vsel %vm3742_vm4, %v3922_v30, %v3918_v19 }
 0x309   :  { %v3688_v50 = vpop.permute.xlu0 %3687  ;;  %v3928_v18 = vsel %vm3749_vm5, %v3927_v57, %v3923_v2 }
 0x30a   :  { %v3997_v6 = vsel %vm3735_vm3, %v3996_v16, %v3992_v3  ;;  %v3933_v24 = vsel %vm3756_vm6, %v3932_v48, %v3928_v18  ;;  %v4021_v33 = vrot.slane %v3688_v50, %v6565_v34 }
 0x30b   :  { %v4002_v25 = vsel %vm3742_vm4, %v4001_v53, %v3997_v6  ;;  %v3938_v59 = vsel %vm3763_vm7, %v3937_v15, %v3933_v24 }
 0x30c   :  { %v3679_v7 = vpop.permute.xlu1 %3678 }
 0x30d   :  { %v4006_v22 = vrot.slane %v3679_v7, %v6561_v54  ;;  %v4011_v54 = vrot.slane %v3682_v13, %v6556_v47 }
 0x30e   :  { %v6669_v52 = vpop.permute.xlu0 %3693 }
 0x30f   :  { %v4007_v20 = vsel %vm3749_vm5, %v4006_v22, %v4002_v25  ;;  %v4031_v49 = vrot.slane %v6669_v52, %v6581_v28 }
 0x310   :  { %v4012_v11 = vsel %vm3756_vm6, %v4011_v54, %v4007_v20 }
 0x311   :  { %v3685_v38 = vpop.permute.xlu1 %3684 }
 0x312   :  { %v4016_v1 = vrot.slane %v3685_v38, %v6569_v58  ;;  %v3943_v58 = vsel %vm3770_vm8, %v3942_v8, %v3938_v59 }
 0x313   :  { %v3652_v31 = vpop.permute.xlu0 %3651  ;;  %v3948_v47 = vsel %vm3777_vm9, %v3947_v45, %v3943_v58 }
 0x314   :  { %v4017_v21 = vsel %vm3763_vm7, %v4016_v1, %v4012_v11  ;;  %v3962_v39 = vrot.slane %v3652_v31, %v6593_v5  ;;  %v3953_v50 = vsel %vm3784_vm10, %v3952_v0, %v3948_v47 }
 0x315   :  { %v4022_v13 = vsel %vm3770_vm8, %v4021_v33, %v4017_v21  ;;  %v3958_v46 = vsel %vm3791_vm11, %v3957_v60, %v3953_v50 }
 0x316   :  { %v3691_v55 = vpop.permute.xlu1 %3690  ;;  %v3963_v31 = vsel %vm3798_vm12, %v3962_v39, %v3958_v46 }
 0x317   :  { %v4026_v44 = vrot.slane %v3691_v55, %v6588_v51 }
 0x318   :  { %v3655_v26 = vpop.permute.xlu0 %3654 }
 0x319   :  { %v4027_v7 = vsel %vm3777_vm9, %v4026_v44, %v4022_v13  ;;  %v3967_v51 = vrot.slane %v3655_v26, %v6615_v36 }
 0x31b   :  { %v3697_v27 = vpop.permute.xlu1 %3696  ;;  %v3968_v43 = vsel %vm3805_vm13, %v3967_v51, %v3963_v31 }
 0x31c   :  { %v4036_v38 = vrot.slane %v3697_v27, %v6596_v35  ;;  %v4032_v35 = vsel %vm3784_vm10, %v4031_v49, %v4027_v7 }
 0x31d   :  { %v3658_v4 = vpop.permute.xlu0 %3657 }
 0x31e   :  { %v3972_v42 = vrot.slane %v3658_v4, %v6608_v29  ;;  %v4037_v28 = vsel %vm3791_vm11, %v4036_v38, %v4032_v35 }
 0x320   :  { %v3700_v12 = vpop.permute.xlu1 %3699  ;;  %v3973_v52 = vsel %vm3812_vm14, %v3972_v42, %v3968_v43 }
 0x321   :  { %v4041_v9 = vrot.slane %v3700_v12, %v6593_v5 }
 0x322   :  { %v3661_v10 = vpop.permute.xlu0 %3660 }
 0x323   :  { %v3977_v41 = vrot.slane %v3661_v10, %v6621_v62  ;;  %v4042_v5 = vsel %vm3798_vm12, %v4041_v9, %v4037_v28 }
 0x325   :  { %v3703_v61 = vpop.permute.xlu1 %3702  ;;  %v3978_v37 = vsel %vm3819_vm15, %v3977_v41, %v3973_v52 }
 0x326   :  { %v4046_v55 = vrot.slane %v3703_v61, %v6615_v36  ;;  %v4059_v14 = vsel %vm4058_vm0, %v3978_v37, %v6635_v40 }
 0x328   :  { %v4047_v36 = vsel %vm3805_vm13, %v4046_v55, %v4042_v5 }
 0x32a   :  { %v3706_v34 = vpop.permute.xlu1 %3705 }
 0x32b   :  { %v4051_v63 = vrot.slane %v3706_v34, %v6608_v29 }
 0x32d   :  { %v4052_v16 = vsel %vm3812_vm14, %v4051_v63, %v4047_v36 }
 0x32e   :  { %v3709_v23 = vpop.permute.xlu1 %3708 }
 0x32f   :  { %v4056_v17 = vrot.slane %v3709_v23, %v6621_v62 }
 0x331   :  { %v4057_v29 = vsel %vm3819_vm15, %v4056_v17, %v4052_v16 }
 0x332   :  { %v4060_v56 = vsel %vm4058_vm0, %v4057_v29, %v6663_v32 }
 0x333   :  { %v4061_v27 = vcombine.low %v4059_v14, %v4060_v56 }
 0x335   :  { %4077 = vst.sshfl [vmem:[%s6745_s4] sm:$0x33 pattern:$0x76325410] %v4061_v27 }

</bundles_post_ra>
